<compile_context>
chip_gen: v7x
topology: tpu7x:2x2x1
jax: 0.10.0
libtpu: 0.0.40
codegen_flags: <defaults>
</compile_context>

<pallas_src>
import jax
import jax.numpy as jnp
import numpy as np
from jax.experimental import pallas as pl
from jax.experimental.pallas import tpu as pltpu

# ---------------- model hyperparameters -------------------------------------
VOCAB = 64          # input_size (embedding rows)
HIDDEN = 32         # hidden_size
NUM_LAYERS = 2      # num_layers
OUT_SIZE = 64       # out_size
BATCH = 1           # the PyTorch module only typechecks for batch_size == 1
SEQ = 8             # number of fused forward() steps in the demo

# lane-padded sizes (gate slices / stores become full 128-lane vregs)
HP = 128            # padded hidden
OP = 128            # padded output


# ---------------- kernel ------------------------------------------------------
def rnn_seq_kernel(ids_ref,                  # SMEM (T,) int32   (scalar prefetch)
                   embed_ref,                # (V, HP)
                   w_ih_ref,                 # (L, HP, 4*HP)   gate order (i,f,o,g)
                   w_hh_ref,                 # (L, HP, 4*HP)
                   b_ref,                    # (L, 1, 4*HP)    b_ih + b_hh
                   wfc_ref,                  # (HP, OP)
                   bfc_ref,                  # (1, OP)
                   h0_ref, c0_ref,           # (L, B, HP) initial states
                   out_ref,                  # (T, OP)
                   hout_ref, cout_ref,       # (L, B, HP) final states
                   emb_scr,                  # VMEM (T, HP) scratch: gathered embeddings
                   hall_scr):                # VMEM (T, HP) scratch: top-layer h per step
    T = out_ref.shape[0]
    L = h0_ref.shape[0]

    # ---- gather all T embedding rows into VMEM scratch (in-VMEM gather) ----
    for t in range(T):
        emb_scr[pl.ds(t, 1), :] = embed_ref[pl.ds(ids_ref[t], 1), :]

    # ---- hoisted layer-0 input projection: one batched (T,HP)@(HP,4HP) dot ----
    x_gates_all = (jnp.dot(emb_scr[...], w_ih_ref[0],
                           preferred_element_type=jnp.float32)
                   + b_ref[0])                              # (T, 4*HP)

    # ---- serial LSTM recurrence, fully unrolled (T and L are tiny) ----
    h = [h0_ref[l] for l in range(L)]                       # each (B, HP)
    c = [c0_ref[l] for l in range(L)]

    for t in range(T):
        inp = None
        for l in range(L):
            if l == 0:
                gates = (x_gates_all[t:t + 1, :]
                         + jnp.dot(h[0], w_hh_ref[0],
                                   preferred_element_type=jnp.float32))
            else:
                gates = (jnp.dot(inp, w_ih_ref[l],
                                 preferred_element_type=jnp.float32)
                         + jnp.dot(h[l], w_hh_ref[l],
                                   preferred_element_type=jnp.float32)
                         + b_ref[l])                        # (B, 4*HP)
            # gate order (i, f, o, g): one sigmoid over a contiguous 3*HP slab
            sig = jax.nn.sigmoid(gates[:, :3 * HP])
            i_g = sig[:, 0 * HP:1 * HP]
            f_g = sig[:, 1 * HP:2 * HP]
            o_g = sig[:, 2 * HP:3 * HP]
            g_g = jnp.tanh(gates[:, 3 * HP:4 * HP])
            c_new = f_g * c[l] + i_g * g_g
            h_new = o_g * jnp.tanh(c_new)
            h[l] = h_new
            c[l] = c_new
            inp = h_new
        hall_scr[pl.ds(t, 1), :] = inp                      # stash top-layer h

    # ---- deferred FC: one (T,HP)@(HP,OP) matmul + one full-tile store ----
    out_ref[...] = (jnp.dot(hall_scr[...], wfc_ref[...],
                            preferred_element_type=jnp.float32)
                    + bfc_ref[...])

    # ---- write back final states ----
    for l in range(L):
        hout_ref[l] = h[l]
        cout_ref[l] = c[l]


# ---------------- one-time parameter re-layout --------------------------------
GATE_PERM = (0, 1, 3, 2)   # PyTorch (i, f, g, o) -> kernel (i, f, o, g)


def prepare_params(params):
    """Transpose / pad / reorder weights once (off the per-call critical path)."""
    L, H, O = NUM_LAYERS, HIDDEN, OUT_SIZE

    def gate_pad_w(w):                        # (L, 4H, H) -> (L, HP, 4*HP)
        w = w.reshape(L, 4, H, H)             # (L, gate, out, in)
        w = w[:, GATE_PERM]                   # reorder gates to (i,f,o,g)
        w = jnp.transpose(w, (0, 3, 1, 2))    # (L, in, gate, out)
        w = jnp.pad(w, ((0, 0), (0, HP - H), (0, 0), (0, HP - H)))
        return w.reshape(L, HP, 4 * HP)

    w_ih_p = gate_pad_w(params["w_ih"])
    w_hh_p = gate_pad_w(params["w_hh"])

    b = (params["b_ih"] + params["b_hh"]).reshape(L, 4, H)
    b = b[:, GATE_PERM]
    b_cat = jnp.pad(b, ((0, 0), (0, 0), (0, HP - H))).reshape(L, 1, 4 * HP)

    embed = jnp.pad(params["embed"].astype(jnp.float32), ((0, 0), (0, HP - H)))
    w_fc = jnp.pad(params["w_fc"].T, ((0, HP - H), (0, OP - O)))  # (HP, OP)
    b_fc = jnp.pad(params["b_fc"], (0, OP - O)).reshape(1, OP)

    return {"embed": embed, "w_ih": w_ih_p, "w_hh": w_hh_p, "b": b_cat,
            "w_fc": w_fc, "b_fc": b_fc}


# ---------------- forward wrappers --------------------------------------------
@jax.jit
def rnn_forward_seq(token_ids, hidden, cell, prep):
    """T successive RNN.forward() steps fused into one single-step pallas_call."""
    T = token_ids.shape[0]
    L, B, H = hidden.shape

    h_pad = jnp.pad(hidden.astype(jnp.float32), ((0, 0), (0, 0), (0, HP - H)))
    c_pad = jnp.pad(cell.astype(jnp.float32), ((0, 0), (0, 0), (0, HP - H)))

    def const(nd):
        return lambda i, ids: (0,) * nd       # everything VMEM-resident

    out_p, h_p, c_p = pl.pallas_call(
        rnn_seq_kernel,
        out_shape=(
            jax.ShapeDtypeStruct((T, OP), jnp.float32),
            jax.ShapeDtypeStruct((L, B, HP), jnp.float32),
            jax.ShapeDtypeStruct((L, B, HP), jnp.float32),
        ),
        grid_spec=pltpu.PrefetchScalarGridSpec(
            num_scalar_prefetch=1,
            grid=(1,),                                      # single kernel step
            in_specs=[
                pl.BlockSpec((VOCAB, HP), const(2)),        # embed table
                pl.BlockSpec((L, HP, 4 * HP), const(3)),    # W_ih (padded)
                pl.BlockSpec((L, HP, 4 * HP), const(3)),    # W_hh (padded)
                pl.BlockSpec((L, 1, 4 * HP), const(3)),     # fused bias
                pl.BlockSpec((HP, OP), const(2)),           # fc weight
                pl.BlockSpec((1, OP), const(2)),            # fc bias
                pl.BlockSpec((L, B, HP), const(3)),         # h0
                pl.BlockSpec((L, B, HP), const(3)),         # c0
            ],
            out_specs=(
                pl.BlockSpec((T, OP), const(2)),            # all step logits
                pl.BlockSpec((L, B, HP), const(3)),         # final hidden
                pl.BlockSpec((L, B, HP), const(3)),         # final cell
            ),
            scratch_shapes=[
                pltpu.VMEM((T, HP), jnp.float32),           # gathered embeddings
                pltpu.VMEM((T, HP), jnp.float32),           # top-layer h per step
            ],
        ),
        compiler_params=pltpu.CompilerParams(
            dimension_semantics=("arbitrary",)),
    )(token_ids.astype(jnp.int32), prep["embed"], prep["w_ih"], prep["w_hh"],
      prep["b"], prep["w_fc"], prep["b_fc"], h_pad, c_pad)

    return out_p[:, :OUT_SIZE], (h_p[..., :H], c_p[..., :H])


def rnn_forward(x_idx, hidden, cell, prep):
    """Module-equivalent single step: forward(x, hidden, cell) -> (out, (h, c))."""
    out, (h, c) = rnn_forward_seq(x_idx.reshape(-1), hidden, cell, prep)
    return out, (h, c)


# ---------------- pure-JAX reference (mirrors the PyTorch module) --------------
def rnn_step_reference(x_idx, hidden, cell, params):
    emb = params["embed"][x_idx]              # (B, H)
    L, B, H = hidden.shape
    inp = emb
    hs, cs = [], []
    for l in range(L):
        gates = (inp @ params["w_ih"][l].T + params["b_ih"][l]
                 + hidden[l] @ params["w_hh"][l].T + params["b_hh"][l])
        i_g = jax.nn.sigmoid(gates[:, 0 * H:1 * H])
        f_g = jax.nn.sigmoid(gates[:, 1 * H:2 * H])
        g_g = jnp.tanh(gates[:, 2 * H:3 * H])
        o_g = jax.nn.sigmoid(gates[:, 3 * H:4 * H])
        c_new = f_g * cell[l] + i_g * g_g
        h_new = o_g * jnp.tanh(c_new)
        hs.append(h_new)
        cs.append(c_new)
        inp = h_new
    out = inp @ params["w_fc"].T + params["b_fc"]
    return out, (jnp.stack(hs), jnp.stack(cs))


def rnn_seq_reference(token_ids, hidden, cell, params):
    outs = []
    for t in range(token_ids.shape[0]):
        out, (hidden, cell) = rnn_step_reference(token_ids[t:t + 1], hidden,
                                                 cell, params)
        outs.append(out)
    return jnp.concatenate(outs, axis=0), (hidden, cell)


def init_params(key):
    """Deterministic init matching nn.Embedding / nn.LSTM / nn.Linear shapes."""
    ks = jax.random.split(key, 7)
    s = 1.0 / np.sqrt(HIDDEN)
    return {
        "embed": jax.random.normal(ks[0], (VOCAB, HIDDEN), jnp.float32),
        "w_ih": jax.random.uniform(ks[1], (NUM_LAYERS, 4 * HIDDEN, HIDDEN),
                                   jnp.float32, -s, s),
        "w_hh": jax.random.uniform(ks[2], (NUM_LAYERS, 4 * HIDDEN, HIDDEN),
                                   jnp.float32, -s, s),
        "b_ih": jax.random.uniform(ks[3], (NUM_LAYERS, 4 * HIDDEN),
                                   jnp.float32, -s, s),
        "b_hh": jax.random.uniform(ks[4], (NUM_LAYERS, 4 * HIDDEN),
                                   jnp.float32, -s, s),
        "w_fc": jax.random.uniform(ks[5], (OUT_SIZE, HIDDEN),
                                   jnp.float32, -s, s),
        "b_fc": jax.random.uniform(ks[6], (OUT_SIZE,), jnp.float32, -s, s),
    }


if __name__ == "__main__":
    key = jax.random.PRNGKey(0)
    pkey, xkey, hkey, ckey = jax.random.split(key, 4)

    params = init_params(pkey)
    prep = prepare_params(params)      # one-time weight re-layout

    ids = jax.random.randint(xkey, (SEQ,), 0, VOCAB, dtype=jnp.int32)
    hidden = 0.1 * jax.random.normal(hkey, (NUM_LAYERS, BATCH, HIDDEN), jnp.float32)
    cell = 0.1 * jax.random.normal(ckey, (NUM_LAYERS, BATCH, HIDDEN), jnp.float32)

    # fused sequence: SEQ successive forward() steps, one single-step pallas_call
    out_seq, (h_new, c_new) = rnn_forward_seq(ids, hidden, cell, prep)
    jax.block_until_ready((out_seq, h_new, c_new))

    out_ref, (h_ref, c_ref) = rnn_seq_reference(ids, hidden, cell, params)
    np.testing.assert_allclose(np.asarray(out_seq), np.asarray(out_ref),
                               rtol=1e-4, atol=1e-5)
    np.testing.assert_allclose(np.asarray(h_new), np.asarray(h_ref),
                               rtol=1e-4, atol=1e-5)
    np.testing.assert_allclose(np.asarray(c_new), np.asarray(c_ref),
                               rtol=1e-4, atol=1e-5)

    # module-equivalent single step (T == 1)
    out1, (h1, c1) = rnn_forward(ids[:1], hidden, cell, prep)
    jax.block_until_ready((out1, h1, c1))
    out1_ref, (h1_ref, c1_ref) = rnn_step_reference(ids[:1], hidden, cell, params)
    np.testing.assert_allclose(np.asarray(out1), np.asarray(out1_ref),
                               rtol=1e-4, atol=1e-5)
    np.testing.assert_allclose(np.asarray(h1), np.asarray(h1_ref),
                               rtol=1e-4, atol=1e-5)
    np.testing.assert_allclose(np.asarray(c1), np.asarray(c1_ref),
                               rtol=1e-4, atol=1e-5)

    print("KERNEL_OK")
</pallas_src>

<mosaic_0001>
module attributes {stable_mosaic.version = 11 : i64} {
  func.func @rnn_seq_kernel(%arg0: i32, %arg1: memref<8xi32, #tpu.memory_space<smem>>, %arg2: memref<64x128xf32, #tpu.memory_space<vmem>>, %arg3: memref<2x128x512xf32, #tpu.memory_space<vmem>>, %arg4: memref<2x128x512xf32, #tpu.memory_space<vmem>>, %arg5: memref<2x1x512xf32, #tpu.memory_space<vmem>>, %arg6: memref<128x128xf32, #tpu.memory_space<vmem>>, %arg7: memref<1x128xf32, #tpu.memory_space<vmem>>, %arg8: memref<2x1x128xf32, #tpu.memory_space<vmem>>, %arg9: memref<2x1x128xf32, #tpu.memory_space<vmem>>, %arg10: memref<8x128xf32, #tpu.memory_space<vmem>>, %arg11: memref<2x1x128xf32, #tpu.memory_space<vmem>>, %arg12: memref<2x1x128xf32, #tpu.memory_space<vmem>>, %arg13: memref<8x128xf32, #tpu.memory_space<vmem>>, %arg14: memref<8x128xf32, #tpu.memory_space<vmem>>) attributes {dimension_semantics = [#tpu.dimension_semantics<arbitrary>], iteration_bounds = array<i64: 1>, scalar_prefetch = 1 : i64, scratch_operands = 2 : i64, tpu.core_type = #tpu.core_type<tc>, window_params = [{pipeline_mode = #tpu.pipeline_mode<synchronous>, transform_indices = @transform_0, window_bounds = array<i64: 64, 128>}, {pipeline_mode = #tpu.pipeline_mode<synchronous>, transform_indices = @transform_1, window_bounds = array<i64: 2, 128, 512>}, {pipeline_mode = #tpu.pipeline_mode<synchronous>, transform_indices = @transform_2, window_bounds = array<i64: 2, 128, 512>}, {pipeline_mode = #tpu.pipeline_mode<synchronous>, transform_indices = @transform_3, window_bounds = array<i64: 2, 1, 512>}, {pipeline_mode = #tpu.pipeline_mode<synchronous>, transform_indices = @transform_4, window_bounds = array<i64: 128, 128>}, {pipeline_mode = #tpu.pipeline_mode<synchronous>, transform_indices = @transform_5, window_bounds = array<i64: 1, 128>}, {pipeline_mode = #tpu.pipeline_mode<synchronous>, transform_indices = @transform_6, window_bounds = array<i64: 2, 1, 128>}, {pipeline_mode = #tpu.pipeline_mode<synchronous>, transform_indices = @transform_7, window_bounds = array<i64: 2, 1, 128>}, {pipeline_mode = #tpu.pipeline_mode<synchronous>, transform_indices = @transform_8, window_bounds = array<i64: 8, 128>}, {pipeline_mode = #tpu.pipeline_mode<synchronous>, transform_indices = @transform_9, window_bounds = array<i64: 2, 1, 128>}, {pipeline_mode = #tpu.pipeline_mode<synchronous>, transform_indices = @transform_10, window_bounds = array<i64: 2, 1, 128>}]} {
    %c0 = arith.constant 0 : index
    %0 = memref.load %arg1[%c0] : memref<8xi32, #tpu.memory_space<smem>>
    %1 = arith.index_cast %0 : i32 to index
    %c0_0 = arith.constant 0 : index
    %2 = vector.load %arg2[%1, %c0_0] : memref<64x128xf32, #tpu.memory_space<vmem>>, vector<1x128xf32>
    %c0_1 = arith.constant 0 : index
    %c0_2 = arith.constant 0 : index
    %3 = vector.load %arg13[%c0_1, %c0_2] : memref<8x128xf32, #tpu.memory_space<vmem>>, vector<1x128xf32>
    tpu.vector_store %arg13[%c0_1, %c0_2], %2 {strides = array<i32>} : memref<8x128xf32, #tpu.memory_space<vmem>>, vector<1x128xf32>,
    %c1 = arith.constant 1 : index
    %4 = memref.load %arg1[%c1] : memref<8xi32, #tpu.memory_space<smem>>
    %5 = arith.index_cast %4 : i32 to index
    %c0_3 = arith.constant 0 : index
    %6 = vector.load %arg2[%5, %c0_3] : memref<64x128xf32, #tpu.memory_space<vmem>>, vector<1x128xf32>
    %c1_4 = arith.constant 1 : index
    %c0_5 = arith.constant 0 : index
    %7 = vector.load %arg13[%c1_4, %c0_5] : memref<8x128xf32, #tpu.memory_space<vmem>>, vector<1x128xf32>
    tpu.vector_store %arg13[%c1_4, %c0_5], %6 {strides = array<i32>} : memref<8x128xf32, #tpu.memory_space<vmem>>, vector<1x128xf32>,
    %c2 = arith.constant 2 : index
    %8 = memref.load %arg1[%c2] : memref<8xi32, #tpu.memory_space<smem>>
    %9 = arith.index_cast %8 : i32 to index
    %c0_6 = arith.constant 0 : index
    %10 = vector.load %arg2[%9, %c0_6] : memref<64x128xf32, #tpu.memory_space<vmem>>, vector<1x128xf32>
    %c2_7 = arith.constant 2 : index
    %c0_8 = arith.constant 0 : index
    %11 = vector.load %arg13[%c2_7, %c0_8] : memref<8x128xf32, #tpu.memory_space<vmem>>, vector<1x128xf32>
    tpu.vector_store %arg13[%c2_7, %c0_8], %10 {strides = array<i32>} : memref<8x128xf32, #tpu.memory_space<vmem>>, vector<1x128xf32>,
    %c3 = arith.constant 3 : index
    %12 = memref.load %arg1[%c3] : memref<8xi32, #tpu.memory_space<smem>>
    %13 = arith.index_cast %12 : i32 to index
    %c0_9 = arith.constant 0 : index
    %14 = vector.load %arg2[%13, %c0_9] : memref<64x128xf32, #tpu.memory_space<vmem>>, vector<1x128xf32>
    %c3_10 = arith.constant 3 : index
    %c0_11 = arith.constant 0 : index
    %15 = vector.load %arg13[%c3_10, %c0_11] : memref<8x128xf32, #tpu.memory_space<vmem>>, vector<1x128xf32>
    tpu.vector_store %arg13[%c3_10, %c0_11], %14 {strides = array<i32>} : memref<8x128xf32, #tpu.memory_space<vmem>>, vector<1x128xf32>,
    %c4 = arith.constant 4 : index
    %16 = memref.load %arg1[%c4] : memref<8xi32, #tpu.memory_space<smem>>
    %17 = arith.index_cast %16 : i32 to index
    %c0_12 = arith.constant 0 : index
    %18 = vector.load %arg2[%17, %c0_12] : memref<64x128xf32, #tpu.memory_space<vmem>>, vector<1x128xf32>
    %c4_13 = arith.constant 4 : index
    %c0_14 = arith.constant 0 : index
    %19 = vector.load %arg13[%c4_13, %c0_14] : memref<8x128xf32, #tpu.memory_space<vmem>>, vector<1x128xf32>
    tpu.vector_store %arg13[%c4_13, %c0_14], %18 {strides = array<i32>} : memref<8x128xf32, #tpu.memory_space<vmem>>, vector<1x128xf32>,
    %c5 = arith.constant 5 : index
    %20 = memref.load %arg1[%c5] : memref<8xi32, #tpu.memory_space<smem>>
    %21 = arith.index_cast %20 : i32 to index
    %c0_15 = arith.constant 0 : index
    %22 = vector.load %arg2[%21, %c0_15] : memref<64x128xf32, #tpu.memory_space<vmem>>, vector<1x128xf32>
    %c5_16 = arith.constant 5 : index
    %c0_17 = arith.constant 0 : index
    %23 = vector.load %arg13[%c5_16, %c0_17] : memref<8x128xf32, #tpu.memory_space<vmem>>, vector<1x128xf32>
    tpu.vector_store %arg13[%c5_16, %c0_17], %22 {strides = array<i32>} : memref<8x128xf32, #tpu.memory_space<vmem>>, vector<1x128xf32>,
    %c6 = arith.constant 6 : index
    %24 = memref.load %arg1[%c6] : memref<8xi32, #tpu.memory_space<smem>>
    %25 = arith.index_cast %24 : i32 to index
    %c0_18 = arith.constant 0 : index
    %26 = vector.load %arg2[%25, %c0_18] : memref<64x128xf32, #tpu.memory_space<vmem>>, vector<1x128xf32>
    %c6_19 = arith.constant 6 : index
    %c0_20 = arith.constant 0 : index
    %27 = vector.load %arg13[%c6_19, %c0_20] : memref<8x128xf32, #tpu.memory_space<vmem>>, vector<1x128xf32>
    tpu.vector_store %arg13[%c6_19, %c0_20], %26 {strides = array<i32>} : memref<8x128xf32, #tpu.memory_space<vmem>>, vector<1x128xf32>,
    %c7 = arith.constant 7 : index
    %28 = memref.load %arg1[%c7] : memref<8xi32, #tpu.memory_space<smem>>
    %29 = arith.index_cast %28 : i32 to index
    %c0_21 = arith.constant 0 : index
    %30 = vector.load %arg2[%29, %c0_21] : memref<64x128xf32, #tpu.memory_space<vmem>>, vector<1x128xf32>
    %c7_22 = arith.constant 7 : index
    %c0_23 = arith.constant 0 : index
    %31 = vector.load %arg13[%c7_22, %c0_23] : memref<8x128xf32, #tpu.memory_space<vmem>>, vector<1x128xf32>
    tpu.vector_store %arg13[%c7_22, %c0_23], %30 {strides = array<i32>} : memref<8x128xf32, #tpu.memory_space<vmem>>, vector<1x128xf32>,
    %c0_24 = arith.constant 0 : index
    %c0_25 = arith.constant 0 : index
    %32 = vector.load %arg13[%c0_24, %c0_25] : memref<8x128xf32, #tpu.memory_space<vmem>>, vector<8x128xf32>
    %c0_26 = arith.constant 0 : index
    %c0_27 = arith.constant 0 : index
    %c0_28 = arith.constant 0 : index
    %33 = vector.load %arg3[%c0_26, %c0_27, %c0_28] : memref<2x128x512xf32, #tpu.memory_space<vmem>>, vector<1x128x512xf32>
    %34 = vector.shape_cast %33 : vector<1x128x512xf32> to vector<128x512xf32>
    %cst = arith.constant dense<0.000000e+00> : vector<8x512xf32>
    %35 = tpu.matmul %32, %34, %cst {dimension_numbers = #tpu.dot_dimension_numbers<[1], [0], [0], [1], [0, 0, 1, 1], [], []>} : vector<8x128xf32>, vector<128x512xf32>, vector<8x512xf32> -> vector<8x512xf32>
    %c0_29 = arith.constant 0 : index
    %c0_30 = arith.constant 0 : index
    %c0_31 = arith.constant 0 : index
    %36 = vector.load %arg5[%c0_29, %c0_30, %c0_31] : memref<2x1x512xf32, #tpu.memory_space<vmem>>, vector<1x1x512xf32>
    %37 = vector.shape_cast %36 : vector<1x1x512xf32> to vector<1x512xf32>
    %38 = vector.broadcast %37 : vector<1x512xf32> to vector<8x512xf32>
    %39 = arith.addf %35, %38 : vector<8x512xf32>
    %c0_32 = arith.constant 0 : index
    %c0_33 = arith.constant 0 : index
    %c0_34 = arith.constant 0 : index
    %40 = vector.load %arg8[%c0_32, %c0_33, %c0_34] : memref<2x1x128xf32, #tpu.memory_space<vmem>>, vector<1x1x128xf32>
    %41 = vector.shape_cast %40 : vector<1x1x128xf32> to vector<1x128xf32>
    %c1_35 = arith.constant 1 : index
    %c0_36 = arith.constant 0 : index
    %c0_37 = arith.constant 0 : index
    %42 = vector.load %arg8[%c1_35, %c0_36, %c0_37] : memref<2x1x128xf32, #tpu.memory_space<vmem>>, vector<1x1x128xf32>
    %43 = vector.shape_cast %42 : vector<1x1x128xf32> to vector<1x128xf32>
    %c0_38 = arith.constant 0 : index
    %c0_39 = arith.constant 0 : index
    %c0_40 = arith.constant 0 : index
    %44 = vector.load %arg9[%c0_38, %c0_39, %c0_40] : memref<2x1x128xf32, #tpu.memory_space<vmem>>, vector<1x1x128xf32>
    %45 = vector.shape_cast %44 : vector<1x1x128xf32> to vector<1x128xf32>
    %c1_41 = arith.constant 1 : index
    %c0_42 = arith.constant 0 : index
    %c0_43 = arith.constant 0 : index
    %46 = vector.load %arg9[%c1_41, %c0_42, %c0_43] : memref<2x1x128xf32, #tpu.memory_space<vmem>>, vector<1x1x128xf32>
    %47 = vector.shape_cast %46 : vector<1x1x128xf32> to vector<1x128xf32>
    %48 = vector.extract_strided_slice %39 {offsets = [0, 0], sizes = [1, 512], strides = [1, 1]} : vector<8x512xf32> to vector<1x512xf32>
    %c0_44 = arith.constant 0 : index
    %c0_45 = arith.constant 0 : index
    %c0_46 = arith.constant 0 : index
    %49 = vector.load %arg4[%c0_44, %c0_45, %c0_46] : memref<2x128x512xf32, #tpu.memory_space<vmem>>, vector<1x128x512xf32>
    %50 = vector.shape_cast %49 : vector<1x128x512xf32> to vector<128x512xf32>
    %cst_47 = arith.constant dense<0.000000e+00> : vector<1x512xf32>
    %51 = tpu.matmul %41, %50, %cst_47 {dimension_numbers = #tpu.dot_dimension_numbers<[1], [0], [0], [1], [0, 0, 1, 1], [], []>} : vector<1x128xf32>, vector<128x512xf32>, vector<1x512xf32> -> vector<1x512xf32>
    %52 = arith.addf %48, %51 : vector<1x512xf32>
    %53 = vector.extract_strided_slice %52 {offsets = [0, 0], sizes = [1, 384], strides = [1, 1]} : vector<1x512xf32> to vector<1x384xf32>
    %54 = arith.negf %53 : vector<1x384xf32>
    %55 = math.exp %54 : vector<1x384xf32>
    %cst_48 = arith.constant 1.000000e+00 : f32
    %56 = vector.broadcast %cst_48 : f32 to vector<1x384xf32>
    %57 = arith.addf %56, %55 : vector<1x384xf32>
    %58 = arith.divf %56, %57 : vector<1x384xf32>
    %59 = vector.extract_strided_slice %58 {offsets = [0, 0], sizes = [1, 128], strides = [1, 1]} : vector<1x384xf32> to vector<1x128xf32>
    %60 = vector.extract_strided_slice %58 {offsets = [0, 128], sizes = [1, 128], strides = [1, 1]} : vector<1x384xf32> to vector<1x128xf32>
    %61 = vector.extract_strided_slice %58 {offsets = [0, 256], sizes = [1, 128], strides = [1, 1]} : vector<1x384xf32> to vector<1x128xf32>
    %62 = vector.extract_strided_slice %52 {offsets = [0, 384], sizes = [1, 128], strides = [1, 1]} : vector<1x512xf32> to vector<1x128xf32>
    %63 = math.tanh %62 : vector<1x128xf32>
    %64 = arith.mulf %60, %45 : vector<1x128xf32>
    %65 = arith.mulf %59, %63 : vector<1x128xf32>
    %66 = arith.addf %64, %65 : vector<1x128xf32>
    %67 = math.tanh %66 : vector<1x128xf32>
    %68 = arith.mulf %61, %67 : vector<1x128xf32>
    %c1_49 = arith.constant 1 : index
    %c0_50 = arith.constant 0 : index
    %c0_51 = arith.constant 0 : index
    %69 = vector.load %arg3[%c1_49, %c0_50, %c0_51] : memref<2x128x512xf32, #tpu.memory_space<vmem>>, vector<1x128x512xf32>
    %70 = vector.shape_cast %69 : vector<1x128x512xf32> to vector<128x512xf32>
    %cst_52 = arith.constant dense<0.000000e+00> : vector<1x512xf32>
    %71 = tpu.matmul %68, %70, %cst_52 {dimension_numbers = #tpu.dot_dimension_numbers<[1], [0], [0], [1], [0, 0, 1, 1], [], []>} : vector<1x128xf32>, vector<128x512xf32>, vector<1x512xf32> -> vector<1x512xf32>
    %c1_53 = arith.constant 1 : index
    %c0_54 = arith.constant 0 : index
    %c0_55 = arith.constant 0 : index
    %72 = vector.load %arg4[%c1_53, %c0_54, %c0_55] : memref<2x128x512xf32, #tpu.memory_space<vmem>>, vector<1x128x512xf32>
    %73 = vector.shape_cast %72 : vector<1x128x512xf32> to vector<128x512xf32>
    %cst_56 = arith.constant dense<0.000000e+00> : vector<1x512xf32>
    %74 = tpu.matmul %43, %73, %cst_56 {dimension_numbers = #tpu.dot_dimension_numbers<[1], [0], [0], [1], [0, 0, 1, 1], [], []>} : vector<1x128xf32>, vector<128x512xf32>, vector<1x512xf32> -> vector<1x512xf32>
    %75 = arith.addf %71, %74 : vector<1x512xf32>
    %c1_57 = arith.constant 1 : index
    %c0_58 = arith.constant 0 : index
    %c0_59 = arith.constant 0 : index
    %76 = vector.load %arg5[%c1_57, %c0_58, %c0_59] : memref<2x1x512xf32, #tpu.memory_space<vmem>>, vector<1x1x512xf32>
    %77 = vector.shape_cast %76 : vector<1x1x512xf32> to vector<1x512xf32>
    %78 = arith.addf %75, %77 : vector<1x512xf32>
    %79 = vector.extract_strided_slice %78 {offsets = [0, 0], sizes = [1, 384], strides = [1, 1]} : vector<1x512xf32> to vector<1x384xf32>
    %80 = arith.negf %79 : vector<1x384xf32>
    %81 = math.exp %80 : vector<1x384xf32>
    %cst_60 = arith.constant 1.000000e+00 : f32
    %82 = vector.broadcast %cst_60 : f32 to vector<1x384xf32>
    %83 = arith.addf %82, %81 : vector<1x384xf32>
    %84 = arith.divf %82, %83 : vector<1x384xf32>
    %85 = vector.extract_strided_slice %84 {offsets = [0, 0], sizes = [1, 128], strides = [1, 1]} : vector<1x384xf32> to vector<1x128xf32>
    %86 = vector.extract_strided_slice %84 {offsets = [0, 128], sizes = [1, 128], strides = [1, 1]} : vector<1x384xf32> to vector<1x128xf32>
    %87 = vector.extract_strided_slice %84 {offsets = [0, 256], sizes = [1, 128], strides = [1, 1]} : vector<1x384xf32> to vector<1x128xf32>
    %88 = vector.extract_strided_slice %78 {offsets = [0, 384], sizes = [1, 128], strides = [1, 1]} : vector<1x512xf32> to vector<1x128xf32>
    %89 = math.tanh %88 : vector<1x128xf32>
    %90 = arith.mulf %86, %47 : vector<1x128xf32>
    %91 = arith.mulf %85, %89 : vector<1x128xf32>
    %92 = arith.addf %90, %91 : vector<1x128xf32>
    %93 = math.tanh %92 : vector<1x128xf32>
    %94 = arith.mulf %87, %93 : vector<1x128xf32>
    %c0_61 = arith.constant 0 : index
    %c0_62 = arith.constant 0 : index
    %95 = vector.load %arg14[%c0_61, %c0_62] : memref<8x128xf32, #tpu.memory_space<vmem>>, vector<1x128xf32>
    tpu.vector_store %arg14[%c0_61, %c0_62], %94 {strides = array<i32>} : memref<8x128xf32, #tpu.memory_space<vmem>>, vector<1x128xf32>,
    %96 = vector.extract_strided_slice %39 {offsets = [1, 0], sizes = [1, 512], strides = [1, 1]} : vector<8x512xf32> to vector<1x512xf32>
    %c0_63 = arith.constant 0 : index
    %c0_64 = arith.constant 0 : index
    %c0_65 = arith.constant 0 : index
    %97 = vector.load %arg4[%c0_63, %c0_64, %c0_65] : memref<2x128x512xf32, #tpu.memory_space<vmem>>, vector<1x128x512xf32>
    %98 = vector.shape_cast %97 : vector<1x128x512xf32> to vector<128x512xf32>
    %cst_66 = arith.constant dense<0.000000e+00> : vector<1x512xf32>
    %99 = tpu.matmul %68, %98, %cst_66 {dimension_numbers = #tpu.dot_dimension_numbers<[1], [0], [0], [1], [0, 0, 1, 1], [], []>} : vector<1x128xf32>, vector<128x512xf32>, vector<1x512xf32> -> vector<1x512xf32>
    %100 = arith.addf %96, %99 : vector<1x512xf32>
    %101 = vector.extract_strided_slice %100 {offsets = [0, 0], sizes = [1, 384], strides = [1, 1]} : vector<1x512xf32> to vector<1x384xf32>
    %102 = arith.negf %101 : vector<1x384xf32>
    %103 = math.exp %102 : vector<1x384xf32>
    %cst_67 = arith.constant 1.000000e+00 : f32
    %104 = vector.broadcast %cst_67 : f32 to vector<1x384xf32>
    %105 = arith.addf %104, %103 : vector<1x384xf32>
    %106 = arith.divf %104, %105 : vector<1x384xf32>
    %107 = vector.extract_strided_slice %106 {offsets = [0, 0], sizes = [1, 128], strides = [1, 1]} : vector<1x384xf32> to vector<1x128xf32>
    %108 = vector.extract_strided_slice %106 {offsets = [0, 128], sizes = [1, 128], strides = [1, 1]} : vector<1x384xf32> to vector<1x128xf32>
    %109 = vector.extract_strided_slice %106 {offsets = [0, 256], sizes = [1, 128], strides = [1, 1]} : vector<1x384xf32> to vector<1x128xf32>
    %110 = vector.extract_strided_slice %100 {offsets = [0, 384], sizes = [1, 128], strides = [1, 1]} : vector<1x512xf32> to vector<1x128xf32>
    %111 = math.tanh %110 : vector<1x128xf32>
    %112 = arith.mulf %108, %66 : vector<1x128xf32>
    %113 = arith.mulf %107, %111 : vector<1x128xf32>
    %114 = arith.addf %112, %113 : vector<1x128xf32>
    %115 = math.tanh %114 : vector<1x128xf32>
    %116 = arith.mulf %109, %115 : vector<1x128xf32>
    %c1_68 = arith.constant 1 : index
    %c0_69 = arith.constant 0 : index
    %c0_70 = arith.constant 0 : index
    %117 = vector.load %arg3[%c1_68, %c0_69, %c0_70] : memref<2x128x512xf32, #tpu.memory_space<vmem>>, vector<1x128x512xf32>
    %118 = vector.shape_cast %117 : vector<1x128x512xf32> to vector<128x512xf32>
    %cst_71 = arith.constant dense<0.000000e+00> : vector<1x512xf32>
    %119 = tpu.matmul %116, %118, %cst_71 {dimension_numbers = #tpu.dot_dimension_numbers<[1], [0], [0], [1], [0, 0, 1, 1], [], []>} : vector<1x128xf32>, vector<128x512xf32>, vector<1x512xf32> -> vector<1x512xf32>
    %c1_72 = arith.constant 1 : index
    %c0_73 = arith.constant 0 : index
    %c0_74 = arith.constant 0 : index
    %120 = vector.load %arg4[%c1_72, %c0_73, %c0_74] : memref<2x128x512xf32, #tpu.memory_space<vmem>>, vector<1x128x512xf32>
    %121 = vector.shape_cast %120 : vector<1x128x512xf32> to vector<128x512xf32>
    %cst_75 = arith.constant dense<0.000000e+00> : vector<1x512xf32>
    %122 = tpu.matmul %94, %121, %cst_75 {dimension_numbers = #tpu.dot_dimension_numbers<[1], [0], [0], [1], [0, 0, 1, 1], [], []>} : vector<1x128xf32>, vector<128x512xf32>, vector<1x512xf32> -> vector<1x512xf32>
    %123 = arith.addf %119, %122 : vector<1x512xf32>
    %c1_76 = arith.constant 1 : index
    %c0_77 = arith.constant 0 : index
    %c0_78 = arith.constant 0 : index
    %124 = vector.load %arg5[%c1_76, %c0_77, %c0_78] : memref<2x1x512xf32, #tpu.memory_space<vmem>>, vector<1x1x512xf32>
    %125 = vector.shape_cast %124 : vector<1x1x512xf32> to vector<1x512xf32>
    %126 = arith.addf %123, %125 : vector<1x512xf32>
    %127 = vector.extract_strided_slice %126 {offsets = [0, 0], sizes = [1, 384], strides = [1, 1]} : vector<1x512xf32> to vector<1x384xf32>
    %128 = arith.negf %127 : vector<1x384xf32>
    %129 = math.exp %128 : vector<1x384xf32>
    %cst_79 = arith.constant 1.000000e+00 : f32
    %130 = vector.broadcast %cst_79 : f32 to vector<1x384xf32>
    %131 = arith.addf %130, %129 : vector<1x384xf32>
    %132 = arith.divf %130, %131 : vector<1x384xf32>
    %133 = vector.extract_strided_slice %132 {offsets = [0, 0], sizes = [1, 128], strides = [1, 1]} : vector<1x384xf32> to vector<1x128xf32>
    %134 = vector.extract_strided_slice %132 {offsets = [0, 128], sizes = [1, 128], strides = [1, 1]} : vector<1x384xf32> to vector<1x128xf32>
    %135 = vector.extract_strided_slice %132 {offsets = [0, 256], sizes = [1, 128], strides = [1, 1]} : vector<1x384xf32> to vector<1x128xf32>
    %136 = vector.extract_strided_slice %126 {offsets = [0, 384], sizes = [1, 128], strides = [1, 1]} : vector<1x512xf32> to vector<1x128xf32>
    %137 = math.tanh %136 : vector<1x128xf32>
    %138 = arith.mulf %134, %92 : vector<1x128xf32>
    %139 = arith.mulf %133, %137 : vector<1x128xf32>
    %140 = arith.addf %138, %139 : vector<1x128xf32>
    %141 = math.tanh %140 : vector<1x128xf32>
    %142 = arith.mulf %135, %141 : vector<1x128xf32>
    %c1_80 = arith.constant 1 : index
    %c0_81 = arith.constant 0 : index
    %143 = vector.load %arg14[%c1_80, %c0_81] : memref<8x128xf32, #tpu.memory_space<vmem>>, vector<1x128xf32>
    tpu.vector_store %arg14[%c1_80, %c0_81], %142 {strides = array<i32>} : memref<8x128xf32, #tpu.memory_space<vmem>>, vector<1x128xf32>,
    %144 = vector.extract_strided_slice %39 {offsets = [2, 0], sizes = [1, 512], strides = [1, 1]} : vector<8x512xf32> to vector<1x512xf32>
    %c0_82 = arith.constant 0 : index
    %c0_83 = arith.constant 0 : index
    %c0_84 = arith.constant 0 : index
    %145 = vector.load %arg4[%c0_82, %c0_83, %c0_84] : memref<2x128x512xf32, #tpu.memory_space<vmem>>, vector<1x128x512xf32>
    %146 = vector.shape_cast %145 : vector<1x128x512xf32> to vector<128x512xf32>
    %cst_85 = arith.constant dense<0.000000e+00> : vector<1x512xf32>
    %147 = tpu.matmul %116, %146, %cst_85 {dimension_numbers = #tpu.dot_dimension_numbers<[1], [0], [0], [1], [0, 0, 1, 1], [], []>} : vector<1x128xf32>, vector<128x512xf32>, vector<1x512xf32> -> vector<1x512xf32>
    %148 = arith.addf %144, %147 : vector<1x512xf32>
    %149 = vector.extract_strided_slice %148 {offsets = [0, 0], sizes = [1, 384], strides = [1, 1]} : vector<1x512xf32> to vector<1x384xf32>
    %150 = arith.negf %149 : vector<1x384xf32>
    %151 = math.exp %150 : vector<1x384xf32>
    %cst_86 = arith.constant 1.000000e+00 : f32
    %152 = vector.broadcast %cst_86 : f32 to vector<1x384xf32>
    %153 = arith.addf %152, %151 : vector<1x384xf32>
    %154 = arith.divf %152, %153 : vector<1x384xf32>
    %155 = vector.extract_strided_slice %154 {offsets = [0, 0], sizes = [1, 128], strides = [1, 1]} : vector<1x384xf32> to vector<1x128xf32>
    %156 = vector.extract_strided_slice %154 {offsets = [0, 128], sizes = [1, 128], strides = [1, 1]} : vector<1x384xf32> to vector<1x128xf32>
    %157 = vector.extract_strided_slice %154 {offsets = [0, 256], sizes = [1, 128], strides = [1, 1]} : vector<1x384xf32> to vector<1x128xf32>
    %158 = vector.extract_strided_slice %148 {offsets = [0, 384], sizes = [1, 128], strides = [1, 1]} : vector<1x512xf32> to vector<1x128xf32>
    %159 = math.tanh %158 : vector<1x128xf32>
    %160 = arith.mulf %156, %114 : vector<1x128xf32>
    %161 = arith.mulf %155, %159 : vector<1x128xf32>
    %162 = arith.addf %160, %161 : vector<1x128xf32>
    %163 = math.tanh %162 : vector<1x128xf32>
    %164 = arith.mulf %157, %163 : vector<1x128xf32>
    %c1_87 = arith.constant 1 : index
    %c0_88 = arith.constant 0 : index
    %c0_89 = arith.constant 0 : index
    %165 = vector.load %arg3[%c1_87, %c0_88, %c0_89] : memref<2x128x512xf32, #tpu.memory_space<vmem>>, vector<1x128x512xf32>
    %166 = vector.shape_cast %165 : vector<1x128x512xf32> to vector<128x512xf32>
    %cst_90 = arith.constant dense<0.000000e+00> : vector<1x512xf32>
    %167 = tpu.matmul %164, %166, %cst_90 {dimension_numbers = #tpu.dot_dimension_numbers<[1], [0], [0], [1], [0, 0, 1, 1], [], []>} : vector<1x128xf32>, vector<128x512xf32>, vector<1x512xf32> -> vector<1x512xf32>
    %c1_91 = arith.constant 1 : index
    %c0_92 = arith.constant 0 : index
    %c0_93 = arith.constant 0 : index
    %168 = vector.load %arg4[%c1_91, %c0_92, %c0_93] : memref<2x128x512xf32, #tpu.memory_space<vmem>>, vector<1x128x512xf32>
    %169 = vector.shape_cast %168 : vector<1x128x512xf32> to vector<128x512xf32>
    %cst_94 = arith.constant dense<0.000000e+00> : vector<1x512xf32>
    %170 = tpu.matmul %142, %169, %cst_94 {dimension_numbers = #tpu.dot_dimension_numbers<[1], [0], [0], [1], [0, 0, 1, 1], [], []>} : vector<1x128xf32>, vector<128x512xf32>, vector<1x512xf32> -> vector<1x512xf32>
    %171 = arith.addf %167, %170 : vector<1x512xf32>
    %c1_95 = arith.constant 1 : index
    %c0_96 = arith.constant 0 : index
    %c0_97 = arith.constant 0 : index
    %172 = vector.load %arg5[%c1_95, %c0_96, %c0_97] : memref<2x1x512xf32, #tpu.memory_space<vmem>>, vector<1x1x512xf32>
    %173 = vector.shape_cast %172 : vector<1x1x512xf32> to vector<1x512xf32>
    %174 = arith.addf %171, %173 : vector<1x512xf32>
    %175 = vector.extract_strided_slice %174 {offsets = [0, 0], sizes = [1, 384], strides = [1, 1]} : vector<1x512xf32> to vector<1x384xf32>
    %176 = arith.negf %175 : vector<1x384xf32>
    %177 = math.exp %176 : vector<1x384xf32>
    %cst_98 = arith.constant 1.000000e+00 : f32
    %178 = vector.broadcast %cst_98 : f32 to vector<1x384xf32>
    %179 = arith.addf %178, %177 : vector<1x384xf32>
    %180 = arith.divf %178, %179 : vector<1x384xf32>
    %181 = vector.extract_strided_slice %180 {offsets = [0, 0], sizes = [1, 128], strides = [1, 1]} : vector<1x384xf32> to vector<1x128xf32>
    %182 = vector.extract_strided_slice %180 {offsets = [0, 128], sizes = [1, 128], strides = [1, 1]} : vector<1x384xf32> to vector<1x128xf32>
    %183 = vector.extract_strided_slice %180 {offsets = [0, 256], sizes = [1, 128], strides = [1, 1]} : vector<1x384xf32> to vector<1x128xf32>
    %184 = vector.extract_strided_slice %174 {offsets = [0, 384], sizes = [1, 128], strides = [1, 1]} : vector<1x512xf32> to vector<1x128xf32>
    %185 = math.tanh %184 : vector<1x128xf32>
    %186 = arith.mulf %182, %140 : vector<1x128xf32>
    %187 = arith.mulf %181, %185 : vector<1x128xf32>
    %188 = arith.addf %186, %187 : vector<1x128xf32>
    %189 = math.tanh %188 : vector<1x128xf32>
    %190 = arith.mulf %183, %189 : vector<1x128xf32>
    %c2_99 = arith.constant 2 : index
    %c0_100 = arith.constant 0 : index
    %191 = vector.load %arg14[%c2_99, %c0_100] : memref<8x128xf32, #tpu.memory_space<vmem>>, vector<1x128xf32>
    tpu.vector_store %arg14[%c2_99, %c0_100], %190 {strides = array<i32>} : memref<8x128xf32, #tpu.memory_space<vmem>>, vector<1x128xf32>,
    %192 = vector.extract_strided_slice %39 {offsets = [3, 0], sizes = [1, 512], strides = [1, 1]} : vector<8x512xf32> to vector<1x512xf32>
    %c0_101 = arith.constant 0 : index
    %c0_102 = arith.constant 0 : index
    %c0_103 = arith.constant 0 : index
    %193 = vector.load %arg4[%c0_101, %c0_102, %c0_103] : memref<2x128x512xf32, #tpu.memory_space<vmem>>, vector<1x128x512xf32>
    %194 = vector.shape_cast %193 : vector<1x128x512xf32> to vector<128x512xf32>
    %cst_104 = arith.constant dense<0.000000e+00> : vector<1x512xf32>
    %195 = tpu.matmul %164, %194, %cst_104 {dimension_numbers = #tpu.dot_dimension_numbers<[1], [0], [0], [1], [0, 0, 1, 1], [], []>} : vector<1x128xf32>, vector<128x512xf32>, vector<1x512xf32> -> vector<1x512xf32>
    %196 = arith.addf %192, %195 : vector<1x512xf32>
    %197 = vector.extract_strided_slice %196 {offsets = [0, 0], sizes = [1, 384], strides = [1, 1]} : vector<1x512xf32> to vector<1x384xf32>
    %198 = arith.negf %197 : vector<1x384xf32>
    %199 = math.exp %198 : vector<1x384xf32>
    %cst_105 = arith.constant 1.000000e+00 : f32
    %200 = vector.broadcast %cst_105 : f32 to vector<1x384xf32>
    %201 = arith.addf %200, %199 : vector<1x384xf32>
    %202 = arith.divf %200, %201 : vector<1x384xf32>
    %203 = vector.extract_strided_slice %202 {offsets = [0, 0], sizes = [1, 128], strides = [1, 1]} : vector<1x384xf32> to vector<1x128xf32>
    %204 = vector.extract_strided_slice %202 {offsets = [0, 128], sizes = [1, 128], strides = [1, 1]} : vector<1x384xf32> to vector<1x128xf32>
    %205 = vector.extract_strided_slice %202 {offsets = [0, 256], sizes = [1, 128], strides = [1, 1]} : vector<1x384xf32> to vector<1x128xf32>
    %206 = vector.extract_strided_slice %196 {offsets = [0, 384], sizes = [1, 128], strides = [1, 1]} : vector<1x512xf32> to vector<1x128xf32>
    %207 = math.tanh %206 : vector<1x128xf32>
    %208 = arith.mulf %204, %162 : vector<1x128xf32>
    %209 = arith.mulf %203, %207 : vector<1x128xf32>
    %210 = arith.addf %208, %209 : vector<1x128xf32>
    %211 = math.tanh %210 : vector<1x128xf32>
    %212 = arith.mulf %205, %211 : vector<1x128xf32>
    %c1_106 = arith.constant 1 : index
    %c0_107 = arith.constant 0 : index
    %c0_108 = arith.constant 0 : index
    %213 = vector.load %arg3[%c1_106, %c0_107, %c0_108] : memref<2x128x512xf32, #tpu.memory_space<vmem>>, vector<1x128x512xf32>
    %214 = vector.shape_cast %213 : vector<1x128x512xf32> to vector<128x512xf32>
    %cst_109 = arith.constant dense<0.000000e+00> : vector<1x512xf32>
    %215 = tpu.matmul %212, %214, %cst_109 {dimension_numbers = #tpu.dot_dimension_numbers<[1], [0], [0], [1], [0, 0, 1, 1], [], []>} : vector<1x128xf32>, vector<128x512xf32>, vector<1x512xf32> -> vector<1x512xf32>
    %c1_110 = arith.constant 1 : index
    %c0_111 = arith.constant 0 : index
    %c0_112 = arith.constant 0 : index
    %216 = vector.load %arg4[%c1_110, %c0_111, %c0_112] : memref<2x128x512xf32, #tpu.memory_space<vmem>>, vector<1x128x512xf32>
    %217 = vector.shape_cast %216 : vector<1x128x512xf32> to vector<128x512xf32>
    %cst_113 = arith.constant dense<0.000000e+00> : vector<1x512xf32>
    %218 = tpu.matmul %190, %217, %cst_113 {dimension_numbers = #tpu.dot_dimension_numbers<[1], [0], [0], [1], [0, 0, 1, 1], [], []>} : vector<1x128xf32>, vector<128x512xf32>, vector<1x512xf32> -> vector<1x512xf32>
    %219 = arith.addf %215, %218 : vector<1x512xf32>
    %c1_114 = arith.constant 1 : index
    %c0_115 = arith.constant 0 : index
    %c0_116 = arith.constant 0 : index
    %220 = vector.load %arg5[%c1_114, %c0_115, %c0_116] : memref<2x1x512xf32, #tpu.memory_space<vmem>>, vector<1x1x512xf32>
    %221 = vector.shape_cast %220 : vector<1x1x512xf32> to vector<1x512xf32>
    %222 = arith.addf %219, %221 : vector<1x512xf32>
    %223 = vector.extract_strided_slice %222 {offsets = [0, 0], sizes = [1, 384], strides = [1, 1]} : vector<1x512xf32> to vector<1x384xf32>
    %224 = arith.negf %223 : vector<1x384xf32>
    %225 = math.exp %224 : vector<1x384xf32>
    %cst_117 = arith.constant 1.000000e+00 : f32
    %226 = vector.broadcast %cst_117 : f32 to vector<1x384xf32>
    %227 = arith.addf %226, %225 : vector<1x384xf32>
    %228 = arith.divf %226, %227 : vector<1x384xf32>
    %229 = vector.extract_strided_slice %228 {offsets = [0, 0], sizes = [1, 128], strides = [1, 1]} : vector<1x384xf32> to vector<1x128xf32>
    %230 = vector.extract_strided_slice %228 {offsets = [0, 128], sizes = [1, 128], strides = [1, 1]} : vector<1x384xf32> to vector<1x128xf32>
    %231 = vector.extract_strided_slice %228 {offsets = [0, 256], sizes = [1, 128], strides = [1, 1]} : vector<1x384xf32> to vector<1x128xf32>
    %232 = vector.extract_strided_slice %222 {offsets = [0, 384], sizes = [1, 128], strides = [1, 1]} : vector<1x512xf32> to vector<1x128xf32>
    %233 = math.tanh %232 : vector<1x128xf32>
    %234 = arith.mulf %230, %188 : vector<1x128xf32>
    %235 = arith.mulf %229, %233 : vector<1x128xf32>
    %236 = arith.addf %234, %235 : vector<1x128xf32>
    %237 = math.tanh %236 : vector<1x128xf32>
    %238 = arith.mulf %231, %237 : vector<1x128xf32>
    %c3_118 = arith.constant 3 : index
    %c0_119 = arith.constant 0 : index
    %239 = vector.load %arg14[%c3_118, %c0_119] : memref<8x128xf32, #tpu.memory_space<vmem>>, vector<1x128xf32>
    tpu.vector_store %arg14[%c3_118, %c0_119], %238 {strides = array<i32>} : memref<8x128xf32, #tpu.memory_space<vmem>>, vector<1x128xf32>,
    %240 = vector.extract_strided_slice %39 {offsets = [4, 0], sizes = [1, 512], strides = [1, 1]} : vector<8x512xf32> to vector<1x512xf32>
    %c0_120 = arith.constant 0 : index
    %c0_121 = arith.constant 0 : index
    %c0_122 = arith.constant 0 : index
    %241 = vector.load %arg4[%c0_120, %c0_121, %c0_122] : memref<2x128x512xf32, #tpu.memory_space<vmem>>, vector<1x128x512xf32>
    %242 = vector.shape_cast %241 : vector<1x128x512xf32> to vector<128x512xf32>
    %cst_123 = arith.constant dense<0.000000e+00> : vector<1x512xf32>
    %243 = tpu.matmul %212, %242, %cst_123 {dimension_numbers = #tpu.dot_dimension_numbers<[1], [0], [0], [1], [0, 0, 1, 1], [], []>} : vector<1x128xf32>, vector<128x512xf32>, vector<1x512xf32> -> vector<1x512xf32>
    %244 = arith.addf %240, %243 : vector<1x512xf32>
    %245 = vector.extract_strided_slice %244 {offsets = [0, 0], sizes = [1, 384], strides = [1, 1]} : vector<1x512xf32> to vector<1x384xf32>
    %246 = arith.negf %245 : vector<1x384xf32>
    %247 = math.exp %246 : vector<1x384xf32>
    %cst_124 = arith.constant 1.000000e+00 : f32
    %248 = vector.broadcast %cst_124 : f32 to vector<1x384xf32>
    %249 = arith.addf %248, %247 : vector<1x384xf32>
    %250 = arith.divf %248, %249 : vector<1x384xf32>
    %251 = vector.extract_strided_slice %250 {offsets = [0, 0], sizes = [1, 128], strides = [1, 1]} : vector<1x384xf32> to vector<1x128xf32>
    %252 = vector.extract_strided_slice %250 {offsets = [0, 128], sizes = [1, 128], strides = [1, 1]} : vector<1x384xf32> to vector<1x128xf32>
    %253 = vector.extract_strided_slice %250 {offsets = [0, 256], sizes = [1, 128], strides = [1, 1]} : vector<1x384xf32> to vector<1x128xf32>
    %254 = vector.extract_strided_slice %244 {offsets = [0, 384], sizes = [1, 128], strides = [1, 1]} : vector<1x512xf32> to vector<1x128xf32>
    %255 = math.tanh %254 : vector<1x128xf32>
    %256 = arith.mulf %252, %210 : vector<1x128xf32>
    %257 = arith.mulf %251, %255 : vector<1x128xf32>
    %258 = arith.addf %256, %257 : vector<1x128xf32>
    %259 = math.tanh %258 : vector<1x128xf32>
    %260 = arith.mulf %253, %259 : vector<1x128xf32>
    %c1_125 = arith.constant 1 : index
    %c0_126 = arith.constant 0 : index
    %c0_127 = arith.constant 0 : index
    %261 = vector.load %arg3[%c1_125, %c0_126, %c0_127] : memref<2x128x512xf32, #tpu.memory_space<vmem>>, vector<1x128x512xf32>
    %262 = vector.shape_cast %261 : vector<1x128x512xf32> to vector<128x512xf32>
    %cst_128 = arith.constant dense<0.000000e+00> : vector<1x512xf32>
    %263 = tpu.matmul %260, %262, %cst_128 {dimension_numbers = #tpu.dot_dimension_numbers<[1], [0], [0], [1], [0, 0, 1, 1], [], []>} : vector<1x128xf32>, vector<128x512xf32>, vector<1x512xf32> -> vector<1x512xf32>
    %c1_129 = arith.constant 1 : index
    %c0_130 = arith.constant 0 : index
    %c0_131 = arith.constant 0 : index
    %264 = vector.load %arg4[%c1_129, %c0_130, %c0_131] : memref<2x128x512xf32, #tpu.memory_space<vmem>>, vector<1x128x512xf32>
    %265 = vector.shape_cast %264 : vector<1x128x512xf32> to vector<128x512xf32>
    %cst_132 = arith.constant dense<0.000000e+00> : vector<1x512xf32>
    %266 = tpu.matmul %238, %265, %cst_132 {dimension_numbers = #tpu.dot_dimension_numbers<[1], [0], [0], [1], [0, 0, 1, 1], [], []>} : vector<1x128xf32>, vector<128x512xf32>, vector<1x512xf32> -> vector<1x512xf32>
    %267 = arith.addf %263, %266 : vector<1x512xf32>
    %c1_133 = arith.constant 1 : index
    %c0_134 = arith.constant 0 : index
    %c0_135 = arith.constant 0 : index
    %268 = vector.load %arg5[%c1_133, %c0_134, %c0_135] : memref<2x1x512xf32, #tpu.memory_space<vmem>>, vector<1x1x512xf32>
    %269 = vector.shape_cast %268 : vector<1x1x512xf32> to vector<1x512xf32>
    %270 = arith.addf %267, %269 : vector<1x512xf32>
    %271 = vector.extract_strided_slice %270 {offsets = [0, 0], sizes = [1, 384], strides = [1, 1]} : vector<1x512xf32> to vector<1x384xf32>
    %272 = arith.negf %271 : vector<1x384xf32>
    %273 = math.exp %272 : vector<1x384xf32>
    %cst_136 = arith.constant 1.000000e+00 : f32
    %274 = vector.broadcast %cst_136 : f32 to vector<1x384xf32>
    %275 = arith.addf %274, %273 : vector<1x384xf32>
    %276 = arith.divf %274, %275 : vector<1x384xf32>
    %277 = vector.extract_strided_slice %276 {offsets = [0, 0], sizes = [1, 128], strides = [1, 1]} : vector<1x384xf32> to vector<1x128xf32>
    %278 = vector.extract_strided_slice %276 {offsets = [0, 128], sizes = [1, 128], strides = [1, 1]} : vector<1x384xf32> to vector<1x128xf32>
    %279 = vector.extract_strided_slice %276 {offsets = [0, 256], sizes = [1, 128], strides = [1, 1]} : vector<1x384xf32> to vector<1x128xf32>
    %280 = vector.extract_strided_slice %270 {offsets = [0, 384], sizes = [1, 128], strides = [1, 1]} : vector<1x512xf32> to vector<1x128xf32>
    %281 = math.tanh %280 : vector<1x128xf32>
    %282 = arith.mulf %278, %236 : vector<1x128xf32>
    %283 = arith.mulf %277, %281 : vector<1x128xf32>
    %284 = arith.addf %282, %283 : vector<1x128xf32>
    %285 = math.tanh %284 : vector<1x128xf32>
    %286 = arith.mulf %279, %285 : vector<1x128xf32>
    %c4_137 = arith.constant 4 : index
    %c0_138 = arith.constant 0 : index
    %287 = vector.load %arg14[%c4_137, %c0_138] : memref<8x128xf32, #tpu.memory_space<vmem>>, vector<1x128xf32>
    tpu.vector_store %arg14[%c4_137, %c0_138], %286 {strides = array<i32>} : memref<8x128xf32, #tpu.memory_space<vmem>>, vector<1x128xf32>,
    %288 = vector.extract_strided_slice %39 {offsets = [5, 0], sizes = [1, 512], strides = [1, 1]} : vector<8x512xf32> to vector<1x512xf32>
    %c0_139 = arith.constant 0 : index
    %c0_140 = arith.constant 0 : index
    %c0_141 = arith.constant 0 : index
    %289 = vector.load %arg4[%c0_139, %c0_140, %c0_141] : memref<2x128x512xf32, #tpu.memory_space<vmem>>, vector<1x128x512xf32>
    %290 = vector.shape_cast %289 : vector<1x128x512xf32> to vector<128x512xf32>
    %cst_142 = arith.constant dense<0.000000e+00> : vector<1x512xf32>
    %291 = tpu.matmul %260, %290, %cst_142 {dimension_numbers = #tpu.dot_dimension_numbers<[1], [0], [0], [1], [0, 0, 1, 1], [], []>} : vector<1x128xf32>, vector<128x512xf32>, vector<1x512xf32> -> vector<1x512xf32>
    %292 = arith.addf %288, %291 : vector<1x512xf32>
    %293 = vector.extract_strided_slice %292 {offsets = [0, 0], sizes = [1, 384], strides = [1, 1]} : vector<1x512xf32> to vector<1x384xf32>
    %294 = arith.negf %293 : vector<1x384xf32>
    %295 = math.exp %294 : vector<1x384xf32>
    %cst_143 = arith.constant 1.000000e+00 : f32
    %296 = vector.broadcast %cst_143 : f32 to vector<1x384xf32>
    %297 = arith.addf %296, %295 : vector<1x384xf32>
    %298 = arith.divf %296, %297 : vector<1x384xf32>
    %299 = vector.extract_strided_slice %298 {offsets = [0, 0], sizes = [1, 128], strides = [1, 1]} : vector<1x384xf32> to vector<1x128xf32>
    %300 = vector.extract_strided_slice %298 {offsets = [0, 128], sizes = [1, 128], strides = [1, 1]} : vector<1x384xf32> to vector<1x128xf32>
    %301 = vector.extract_strided_slice %298 {offsets = [0, 256], sizes = [1, 128], strides = [1, 1]} : vector<1x384xf32> to vector<1x128xf32>
    %302 = vector.extract_strided_slice %292 {offsets = [0, 384], sizes = [1, 128], strides = [1, 1]} : vector<1x512xf32> to vector<1x128xf32>
    %303 = math.tanh %302 : vector<1x128xf32>
    %304 = arith.mulf %300, %258 : vector<1x128xf32>
    %305 = arith.mulf %299, %303 : vector<1x128xf32>
    %306 = arith.addf %304, %305 : vector<1x128xf32>
    %307 = math.tanh %306 : vector<1x128xf32>
    %308 = arith.mulf %301, %307 : vector<1x128xf32>
    %c1_144 = arith.constant 1 : index
    %c0_145 = arith.constant 0 : index
    %c0_146 = arith.constant 0 : index
    %309 = vector.load %arg3[%c1_144, %c0_145, %c0_146] : memref<2x128x512xf32, #tpu.memory_space<vmem>>, vector<1x128x512xf32>
    %310 = vector.shape_cast %309 : vector<1x128x512xf32> to vector<128x512xf32>
    %cst_147 = arith.constant dense<0.000000e+00> : vector<1x512xf32>
    %311 = tpu.matmul %308, %310, %cst_147 {dimension_numbers = #tpu.dot_dimension_numbers<[1], [0], [0], [1], [0, 0, 1, 1], [], []>} : vector<1x128xf32>, vector<128x512xf32>, vector<1x512xf32> -> vector<1x512xf32>
    %c1_148 = arith.constant 1 : index
    %c0_149 = arith.constant 0 : index
    %c0_150 = arith.constant 0 : index
    %312 = vector.load %arg4[%c1_148, %c0_149, %c0_150] : memref<2x128x512xf32, #tpu.memory_space<vmem>>, vector<1x128x512xf32>
    %313 = vector.shape_cast %312 : vector<1x128x512xf32> to vector<128x512xf32>
    %cst_151 = arith.constant dense<0.000000e+00> : vector<1x512xf32>
    %314 = tpu.matmul %286, %313, %cst_151 {dimension_numbers = #tpu.dot_dimension_numbers<[1], [0], [0], [1], [0, 0, 1, 1], [], []>} : vector<1x128xf32>, vector<128x512xf32>, vector<1x512xf32> -> vector<1x512xf32>
    %315 = arith.addf %311, %314 : vector<1x512xf32>
    %c1_152 = arith.constant 1 : index
    %c0_153 = arith.constant 0 : index
    %c0_154 = arith.constant 0 : index
    %316 = vector.load %arg5[%c1_152, %c0_153, %c0_154] : memref<2x1x512xf32, #tpu.memory_space<vmem>>, vector<1x1x512xf32>
    %317 = vector.shape_cast %316 : vector<1x1x512xf32> to vector<1x512xf32>
    %318 = arith.addf %315, %317 : vector<1x512xf32>
    %319 = vector.extract_strided_slice %318 {offsets = [0, 0], sizes = [1, 384], strides = [1, 1]} : vector<1x512xf32> to vector<1x384xf32>
    %320 = arith.negf %319 : vector<1x384xf32>
    %321 = math.exp %320 : vector<1x384xf32>
    %cst_155 = arith.constant 1.000000e+00 : f32
    %322 = vector.broadcast %cst_155 : f32 to vector<1x384xf32>
    %323 = arith.addf %322, %321 : vector<1x384xf32>
    %324 = arith.divf %322, %323 : vector<1x384xf32>
    %325 = vector.extract_strided_slice %324 {offsets = [0, 0], sizes = [1, 128], strides = [1, 1]} : vector<1x384xf32> to vector<1x128xf32>
    %326 = vector.extract_strided_slice %324 {offsets = [0, 128], sizes = [1, 128], strides = [1, 1]} : vector<1x384xf32> to vector<1x128xf32>
    %327 = vector.extract_strided_slice %324 {offsets = [0, 256], sizes = [1, 128], strides = [1, 1]} : vector<1x384xf32> to vector<1x128xf32>
    %328 = vector.extract_strided_slice %318 {offsets = [0, 384], sizes = [1, 128], strides = [1, 1]} : vector<1x512xf32> to vector<1x128xf32>
    %329 = math.tanh %328 : vector<1x128xf32>
    %330 = arith.mulf %326, %284 : vector<1x128xf32>
    %331 = arith.mulf %325, %329 : vector<1x128xf32>
    %332 = arith.addf %330, %331 : vector<1x128xf32>
    %333 = math.tanh %332 : vector<1x128xf32>
    %334 = arith.mulf %327, %333 : vector<1x128xf32>
    %c5_156 = arith.constant 5 : index
    %c0_157 = arith.constant 0 : index
    %335 = vector.load %arg14[%c5_156, %c0_157] : memref<8x128xf32, #tpu.memory_space<vmem>>, vector<1x128xf32>
    tpu.vector_store %arg14[%c5_156, %c0_157], %334 {strides = array<i32>} : memref<8x128xf32, #tpu.memory_space<vmem>>, vector<1x128xf32>,
    %336 = vector.extract_strided_slice %39 {offsets = [6, 0], sizes = [1, 512], strides = [1, 1]} : vector<8x512xf32> to vector<1x512xf32>
    %c0_158 = arith.constant 0 : index
    %c0_159 = arith.constant 0 : index
    %c0_160 = arith.constant 0 : index
    %337 = vector.load %arg4[%c0_158, %c0_159, %c0_160] : memref<2x128x512xf32, #tpu.memory_space<vmem>>, vector<1x128x512xf32>
    %338 = vector.shape_cast %337 : vector<1x128x512xf32> to vector<128x512xf32>
    %cst_161 = arith.constant dense<0.000000e+00> : vector<1x512xf32>
    %339 = tpu.matmul %308, %338, %cst_161 {dimension_numbers = #tpu.dot_dimension_numbers<[1], [0], [0], [1], [0, 0, 1, 1], [], []>} : vector<1x128xf32>, vector<128x512xf32>, vector<1x512xf32> -> vector<1x512xf32>
    %340 = arith.addf %336, %339 : vector<1x512xf32>
    %341 = vector.extract_strided_slice %340 {offsets = [0, 0], sizes = [1, 384], strides = [1, 1]} : vector<1x512xf32> to vector<1x384xf32>
    %342 = arith.negf %341 : vector<1x384xf32>
    %343 = math.exp %342 : vector<1x384xf32>
    %cst_162 = arith.constant 1.000000e+00 : f32
    %344 = vector.broadcast %cst_162 : f32 to vector<1x384xf32>
    %345 = arith.addf %344, %343 : vector<1x384xf32>
    %346 = arith.divf %344, %345 : vector<1x384xf32>
    %347 = vector.extract_strided_slice %346 {offsets = [0, 0], sizes = [1, 128], strides = [1, 1]} : vector<1x384xf32> to vector<1x128xf32>
    %348 = vector.extract_strided_slice %346 {offsets = [0, 128], sizes = [1, 128], strides = [1, 1]} : vector<1x384xf32> to vector<1x128xf32>
    %349 = vector.extract_strided_slice %346 {offsets = [0, 256], sizes = [1, 128], strides = [1, 1]} : vector<1x384xf32> to vector<1x128xf32>
    %350 = vector.extract_strided_slice %340 {offsets = [0, 384], sizes = [1, 128], strides = [1, 1]} : vector<1x512xf32> to vector<1x128xf32>
    %351 = math.tanh %350 : vector<1x128xf32>
    %352 = arith.mulf %348, %306 : vector<1x128xf32>
    %353 = arith.mulf %347, %351 : vector<1x128xf32>
    %354 = arith.addf %352, %353 : vector<1x128xf32>
    %355 = math.tanh %354 : vector<1x128xf32>
    %356 = arith.mulf %349, %355 : vector<1x128xf32>
    %c1_163 = arith.constant 1 : index
    %c0_164 = arith.constant 0 : index
    %c0_165 = arith.constant 0 : index
    %357 = vector.load %arg3[%c1_163, %c0_164, %c0_165] : memref<2x128x512xf32, #tpu.memory_space<vmem>>, vector<1x128x512xf32>
    %358 = vector.shape_cast %357 : vector<1x128x512xf32> to vector<128x512xf32>
    %cst_166 = arith.constant dense<0.000000e+00> : vector<1x512xf32>
    %359 = tpu.matmul %356, %358, %cst_166 {dimension_numbers = #tpu.dot_dimension_numbers<[1], [0], [0], [1], [0, 0, 1, 1], [], []>} : vector<1x128xf32>, vector<128x512xf32>, vector<1x512xf32> -> vector<1x512xf32>
    %c1_167 = arith.constant 1 : index
    %c0_168 = arith.constant 0 : index
    %c0_169 = arith.constant 0 : index
    %360 = vector.load %arg4[%c1_167, %c0_168, %c0_169] : memref<2x128x512xf32, #tpu.memory_space<vmem>>, vector<1x128x512xf32>
    %361 = vector.shape_cast %360 : vector<1x128x512xf32> to vector<128x512xf32>
    %cst_170 = arith.constant dense<0.000000e+00> : vector<1x512xf32>
    %362 = tpu.matmul %334, %361, %cst_170 {dimension_numbers = #tpu.dot_dimension_numbers<[1], [0], [0], [1], [0, 0, 1, 1], [], []>} : vector<1x128xf32>, vector<128x512xf32>, vector<1x512xf32> -> vector<1x512xf32>
    %363 = arith.addf %359, %362 : vector<1x512xf32>
    %c1_171 = arith.constant 1 : index
    %c0_172 = arith.constant 0 : index
    %c0_173 = arith.constant 0 : index
    %364 = vector.load %arg5[%c1_171, %c0_172, %c0_173] : memref<2x1x512xf32, #tpu.memory_space<vmem>>, vector<1x1x512xf32>
    %365 = vector.shape_cast %364 : vector<1x1x512xf32> to vector<1x512xf32>
    %366 = arith.addf %363, %365 : vector<1x512xf32>
    %367 = vector.extract_strided_slice %366 {offsets = [0, 0], sizes = [1, 384], strides = [1, 1]} : vector<1x512xf32> to vector<1x384xf32>
    %368 = arith.negf %367 : vector<1x384xf32>
    %369 = math.exp %368 : vector<1x384xf32>
    %cst_174 = arith.constant 1.000000e+00 : f32
    %370 = vector.broadcast %cst_174 : f32 to vector<1x384xf32>
    %371 = arith.addf %370, %369 : vector<1x384xf32>
    %372 = arith.divf %370, %371 : vector<1x384xf32>
    %373 = vector.extract_strided_slice %372 {offsets = [0, 0], sizes = [1, 128], strides = [1, 1]} : vector<1x384xf32> to vector<1x128xf32>
    %374 = vector.extract_strided_slice %372 {offsets = [0, 128], sizes = [1, 128], strides = [1, 1]} : vector<1x384xf32> to vector<1x128xf32>
    %375 = vector.extract_strided_slice %372 {offsets = [0, 256], sizes = [1, 128], strides = [1, 1]} : vector<1x384xf32> to vector<1x128xf32>
    %376 = vector.extract_strided_slice %366 {offsets = [0, 384], sizes = [1, 128], strides = [1, 1]} : vector<1x512xf32> to vector<1x128xf32>
    %377 = math.tanh %376 : vector<1x128xf32>
    %378 = arith.mulf %374, %332 : vector<1x128xf32>
    %379 = arith.mulf %373, %377 : vector<1x128xf32>
    %380 = arith.addf %378, %379 : vector<1x128xf32>
    %381 = math.tanh %380 : vector<1x128xf32>
    %382 = arith.mulf %375, %381 : vector<1x128xf32>
    %c6_175 = arith.constant 6 : index
    %c0_176 = arith.constant 0 : index
    %383 = vector.load %arg14[%c6_175, %c0_176] : memref<8x128xf32, #tpu.memory_space<vmem>>, vector<1x128xf32>
    tpu.vector_store %arg14[%c6_175, %c0_176], %382 {strides = array<i32>} : memref<8x128xf32, #tpu.memory_space<vmem>>, vector<1x128xf32>,
    %384 = vector.extract_strided_slice %39 {offsets = [7, 0], sizes = [1, 512], strides = [1, 1]} : vector<8x512xf32> to vector<1x512xf32>
    %c0_177 = arith.constant 0 : index
    %c0_178 = arith.constant 0 : index
    %c0_179 = arith.constant 0 : index
    %385 = vector.load %arg4[%c0_177, %c0_178, %c0_179] : memref<2x128x512xf32, #tpu.memory_space<vmem>>, vector<1x128x512xf32>
    %386 = vector.shape_cast %385 : vector<1x128x512xf32> to vector<128x512xf32>
    %cst_180 = arith.constant dense<0.000000e+00> : vector<1x512xf32>
    %387 = tpu.matmul %356, %386, %cst_180 {dimension_numbers = #tpu.dot_dimension_numbers<[1], [0], [0], [1], [0, 0, 1, 1], [], []>} : vector<1x128xf32>, vector<128x512xf32>, vector<1x512xf32> -> vector<1x512xf32>
    %388 = arith.addf %384, %387 : vector<1x512xf32>
    %389 = vector.extract_strided_slice %388 {offsets = [0, 0], sizes = [1, 384], strides = [1, 1]} : vector<1x512xf32> to vector<1x384xf32>
    %390 = arith.negf %389 : vector<1x384xf32>
    %391 = math.exp %390 : vector<1x384xf32>
    %cst_181 = arith.constant 1.000000e+00 : f32
    %392 = vector.broadcast %cst_181 : f32 to vector<1x384xf32>
    %393 = arith.addf %392, %391 : vector<1x384xf32>
    %394 = arith.divf %392, %393 : vector<1x384xf32>
    %395 = vector.extract_strided_slice %394 {offsets = [0, 0], sizes = [1, 128], strides = [1, 1]} : vector<1x384xf32> to vector<1x128xf32>
    %396 = vector.extract_strided_slice %394 {offsets = [0, 128], sizes = [1, 128], strides = [1, 1]} : vector<1x384xf32> to vector<1x128xf32>
    %397 = vector.extract_strided_slice %394 {offsets = [0, 256], sizes = [1, 128], strides = [1, 1]} : vector<1x384xf32> to vector<1x128xf32>
    %398 = vector.extract_strided_slice %388 {offsets = [0, 384], sizes = [1, 128], strides = [1, 1]} : vector<1x512xf32> to vector<1x128xf32>
    %399 = math.tanh %398 : vector<1x128xf32>
    %400 = arith.mulf %396, %354 : vector<1x128xf32>
    %401 = arith.mulf %395, %399 : vector<1x128xf32>
    %402 = arith.addf %400, %401 : vector<1x128xf32>
    %403 = math.tanh %402 : vector<1x128xf32>
    %404 = arith.mulf %397, %403 : vector<1x128xf32>
    %c1_182 = arith.constant 1 : index
    %c0_183 = arith.constant 0 : index
    %c0_184 = arith.constant 0 : index
    %405 = vector.load %arg3[%c1_182, %c0_183, %c0_184] : memref<2x128x512xf32, #tpu.memory_space<vmem>>, vector<1x128x512xf32>
    %406 = vector.shape_cast %405 : vector<1x128x512xf32> to vector<128x512xf32>
    %cst_185 = arith.constant dense<0.000000e+00> : vector<1x512xf32>
    %407 = tpu.matmul %404, %406, %cst_185 {dimension_numbers = #tpu.dot_dimension_numbers<[1], [0], [0], [1], [0, 0, 1, 1], [], []>} : vector<1x128xf32>, vector<128x512xf32>, vector<1x512xf32> -> vector<1x512xf32>
    %c1_186 = arith.constant 1 : index
    %c0_187 = arith.constant 0 : index
    %c0_188 = arith.constant 0 : index
    %408 = vector.load %arg4[%c1_186, %c0_187, %c0_188] : memref<2x128x512xf32, #tpu.memory_space<vmem>>, vector<1x128x512xf32>
    %409 = vector.shape_cast %408 : vector<1x128x512xf32> to vector<128x512xf32>
    %cst_189 = arith.constant dense<0.000000e+00> : vector<1x512xf32>
    %410 = tpu.matmul %382, %409, %cst_189 {dimension_numbers = #tpu.dot_dimension_numbers<[1], [0], [0], [1], [0, 0, 1, 1], [], []>} : vector<1x128xf32>, vector<128x512xf32>, vector<1x512xf32> -> vector<1x512xf32>
    %411 = arith.addf %407, %410 : vector<1x512xf32>
    %c1_190 = arith.constant 1 : index
    %c0_191 = arith.constant 0 : index
    %c0_192 = arith.constant 0 : index
    %412 = vector.load %arg5[%c1_190, %c0_191, %c0_192] : memref<2x1x512xf32, #tpu.memory_space<vmem>>, vector<1x1x512xf32>
    %413 = vector.shape_cast %412 : vector<1x1x512xf32> to vector<1x512xf32>
    %414 = arith.addf %411, %413 : vector<1x512xf32>
    %415 = vector.extract_strided_slice %414 {offsets = [0, 0], sizes = [1, 384], strides = [1, 1]} : vector<1x512xf32> to vector<1x384xf32>
    %416 = arith.negf %415 : vector<1x384xf32>
    %417 = math.exp %416 : vector<1x384xf32>
    %cst_193 = arith.constant 1.000000e+00 : f32
    %418 = vector.broadcast %cst_193 : f32 to vector<1x384xf32>
    %419 = arith.addf %418, %417 : vector<1x384xf32>
    %420 = arith.divf %418, %419 : vector<1x384xf32>
    %421 = vector.extract_strided_slice %420 {offsets = [0, 0], sizes = [1, 128], strides = [1, 1]} : vector<1x384xf32> to vector<1x128xf32>
    %422 = vector.extract_strided_slice %420 {offsets = [0, 128], sizes = [1, 128], strides = [1, 1]} : vector<1x384xf32> to vector<1x128xf32>
    %423 = vector.extract_strided_slice %420 {offsets = [0, 256], sizes = [1, 128], strides = [1, 1]} : vector<1x384xf32> to vector<1x128xf32>
    %424 = vector.extract_strided_slice %414 {offsets = [0, 384], sizes = [1, 128], strides = [1, 1]} : vector<1x512xf32> to vector<1x128xf32>
    %425 = math.tanh %424 : vector<1x128xf32>
    %426 = arith.mulf %422, %380 : vector<1x128xf32>
    %427 = arith.mulf %421, %425 : vector<1x128xf32>
    %428 = arith.addf %426, %427 : vector<1x128xf32>
    %429 = math.tanh %428 : vector<1x128xf32>
    %430 = arith.mulf %423, %429 : vector<1x128xf32>
    %c7_194 = arith.constant 7 : index
    %c0_195 = arith.constant 0 : index
    %431 = vector.load %arg14[%c7_194, %c0_195] : memref<8x128xf32, #tpu.memory_space<vmem>>, vector<1x128xf32>
    tpu.vector_store %arg14[%c7_194, %c0_195], %430 {strides = array<i32>} : memref<8x128xf32, #tpu.memory_space<vmem>>, vector<1x128xf32>,
    %c0_196 = arith.constant 0 : index
    %c0_197 = arith.constant 0 : index
    %432 = vector.load %arg14[%c0_196, %c0_197] : memref<8x128xf32, #tpu.memory_space<vmem>>, vector<8x128xf32>
    %c0_198 = arith.constant 0 : index
    %c0_199 = arith.constant 0 : index
    %433 = vector.load %arg6[%c0_198, %c0_199] : memref<128x128xf32, #tpu.memory_space<vmem>>, vector<128x128xf32>
    %cst_200 = arith.constant dense<0.000000e+00> : vector<8x128xf32>
    %434 = tpu.matmul %432, %433, %cst_200 {dimension_numbers = #tpu.dot_dimension_numbers<[1], [0], [0], [1], [0, 0, 1, 1], [], []>} : vector<8x128xf32>, vector<128x128xf32>, vector<8x128xf32> -> vector<8x128xf32>
    %c0_201 = arith.constant 0 : index
    %c0_202 = arith.constant 0 : index
    %435 = vector.load %arg7[%c0_201, %c0_202] : memref<1x128xf32, #tpu.memory_space<vmem>>, vector<1x128xf32>
    %436 = vector.broadcast %435 : vector<1x128xf32> to vector<8x128xf32>
    %437 = arith.addf %434, %436 : vector<8x128xf32>
    %c0_203 = arith.constant 0 : index
    %c0_204 = arith.constant 0 : index
    %438 = vector.load %arg10[%c0_203, %c0_204] : memref<8x128xf32, #tpu.memory_space<vmem>>, vector<8x128xf32>
    tpu.vector_store %arg10[%c0_203, %c0_204], %437 {strides = array<i32>} : memref<8x128xf32, #tpu.memory_space<vmem>>, vector<8x128xf32>,
    %c0_205 = arith.constant 0 : index
    %c0_206 = arith.constant 0 : index
    %c0_207 = arith.constant 0 : index
    %439 = vector.load %arg11[%c0_205, %c0_206, %c0_207] : memref<2x1x128xf32, #tpu.memory_space<vmem>>, vector<1x1x128xf32>
    %440 = vector.shape_cast %439 : vector<1x1x128xf32> to vector<1x128xf32>
    %441 = vector.shape_cast %404 : vector<1x128xf32> to vector<1x1x128xf32>
    tpu.vector_store %arg11[%c0_205, %c0_206, %c0_207], %441 {strides = array<i32>} : memref<2x1x128xf32, #tpu.memory_space<vmem>>, vector<1x1x128xf32>,
    %c0_208 = arith.constant 0 : index
    %c0_209 = arith.constant 0 : index
    %c0_210 = arith.constant 0 : index
    %442 = vector.load %arg12[%c0_208, %c0_209, %c0_210] : memref<2x1x128xf32, #tpu.memory_space<vmem>>, vector<1x1x128xf32>
    %443 = vector.shape_cast %442 : vector<1x1x128xf32> to vector<1x128xf32>
    %444 = vector.shape_cast %402 : vector<1x128xf32> to vector<1x1x128xf32>
    tpu.vector_store %arg12[%c0_208, %c0_209, %c0_210], %444 {strides = array<i32>} : memref<2x1x128xf32, #tpu.memory_space<vmem>>, vector<1x1x128xf32>,
    %c1_211 = arith.constant 1 : index
    %c0_212 = arith.constant 0 : index
    %c0_213 = arith.constant 0 : index
    %445 = vector.load %arg11[%c1_211, %c0_212, %c0_213] : memref<2x1x128xf32, #tpu.memory_space<vmem>>, vector<1x1x128xf32>
    %446 = vector.shape_cast %445 : vector<1x1x128xf32> to vector<1x128xf32>
    %447 = vector.shape_cast %430 : vector<1x128xf32> to vector<1x1x128xf32>
    tpu.vector_store %arg11[%c1_211, %c0_212, %c0_213], %447 {strides = array<i32>} : memref<2x1x128xf32, #tpu.memory_space<vmem>>, vector<1x1x128xf32>,
    %c1_214 = arith.constant 1 : index
    %c0_215 = arith.constant 0 : index
    %c0_216 = arith.constant 0 : index
    %448 = vector.load %arg12[%c1_214, %c0_215, %c0_216] : memref<2x1x128xf32, #tpu.memory_space<vmem>>, vector<1x1x128xf32>
    %449 = vector.shape_cast %448 : vector<1x1x128xf32> to vector<1x128xf32>
    %450 = vector.shape_cast %428 : vector<1x128xf32> to vector<1x1x128xf32>
    tpu.vector_store %arg12[%c1_214, %c0_215, %c0_216], %450 {strides = array<i32>} : memref<2x1x128xf32, #tpu.memory_space<vmem>>, vector<1x1x128xf32>,
    return
  }
  func.func @transform_0(%arg0: i32, %arg1: memref<8xi32, #tpu.memory_space<smem>>) -> (i32, i32) {
    %c0_i32 = arith.constant 0 : i32
    %c0_i32_0 = arith.constant 0 : i32
    %c0_i32_1 = arith.constant 0 : i32
    return %c0_i32, %c0_i32_0 : i32, i32
  }
  func.func @transform_1(%arg0: i32, %arg1: memref<8xi32, #tpu.memory_space<smem>>) -> (i32, i32, i32) {
    %c0_i32 = arith.constant 0 : i32
    %c0_i32_0 = arith.constant 0 : i32
    %c0_i32_1 = arith.constant 0 : i32
    %c0_i32_2 = arith.constant 0 : i32
    return %c0_i32, %c0_i32_0, %c0_i32_1 : i32, i32, i32
  }
  func.func @transform_2(%arg0: i32, %arg1: memref<8xi32, #tpu.memory_space<smem>>) -> (i32, i32, i32) {
    %c0_i32 = arith.constant 0 : i32
    %c0_i32_0 = arith.constant 0 : i32
    %c0_i32_1 = arith.constant 0 : i32
    %c0_i32_2 = arith.constant 0 : i32
    return %c0_i32, %c0_i32_0, %c0_i32_1 : i32, i32, i32
  }
  func.func @transform_3(%arg0: i32, %arg1: memref<8xi32, #tpu.memory_space<smem>>) -> (i32, i32, i32) {
    %c0_i32 = arith.constant 0 : i32
    %c0_i32_0 = arith.constant 0 : i32
    %c0_i32_1 = arith.constant 0 : i32
    %c0_i32_2 = arith.constant 0 : i32
    return %c0_i32, %c0_i32_0, %c0_i32_1 : i32, i32, i32
  }
  func.func @transform_4(%arg0: i32, %arg1: memref<8xi32, #tpu.memory_space<smem>>) -> (i32, i32) {
    %c0_i32 = arith.constant 0 : i32
    %c0_i32_0 = arith.constant 0 : i32
    %c0_i32_1 = arith.constant 0 : i32
    return %c0_i32, %c0_i32_0 : i32, i32
  }
  func.func @transform_5(%arg0: i32, %arg1: memref<8xi32, #tpu.memory_space<smem>>) -> (i32, i32) {
    %c0_i32 = arith.constant 0 : i32
    %c0_i32_0 = arith.constant 0 : i32
    %c0_i32_1 = arith.constant 0 : i32
    return %c0_i32, %c0_i32_0 : i32, i32
  }
  func.func @transform_6(%arg0: i32, %arg1: memref<8xi32, #tpu.memory_space<smem>>) -> (i32, i32, i32) {
    %c0_i32 = arith.constant 0 : i32
    %c0_i32_0 = arith.constant 0 : i32
    %c0_i32_1 = arith.constant 0 : i32
    %c0_i32_2 = arith.constant 0 : i32
    return %c0_i32, %c0_i32_0, %c0_i32_1 : i32, i32, i32
  }
  func.func @transform_7(%arg0: i32, %arg1: memref<8xi32, #tpu.memory_space<smem>>) -> (i32, i32, i32) {
    %c0_i32 = arith.constant 0 : i32
    %c0_i32_0 = arith.constant 0 : i32
    %c0_i32_1 = arith.constant 0 : i32
    %c0_i32_2 = arith.constant 0 : i32
    return %c0_i32, %c0_i32_0, %c0_i32_1 : i32, i32, i32
  }
  func.func @transform_8(%arg0: i32, %arg1: memref<8xi32, #tpu.memory_space<smem>>) -> (i32, i32) {
    %c0_i32 = arith.constant 0 : i32
    %c0_i32_0 = arith.constant 0 : i32
    %c0_i32_1 = arith.constant 0 : i32
    return %c0_i32, %c0_i32_0 : i32, i32
  }
  func.func @transform_9(%arg0: i32, %arg1: memref<8xi32, #tpu.memory_space<smem>>) -> (i32, i32, i32) {
    %c0_i32 = arith.constant 0 : i32
    %c0_i32_0 = arith.constant 0 : i32
    %c0_i32_1 = arith.constant 0 : i32
    %c0_i32_2 = arith.constant 0 : i32
    return %c0_i32, %c0_i32_0, %c0_i32_1 : i32, i32, i32
  }
  func.func @transform_10(%arg0: i32, %arg1: memref<8xi32, #tpu.memory_space<smem>>) -> (i32, i32, i32) {
    %c0_i32 = arith.constant 0 : i32
    %c0_i32_0 = arith.constant 0 : i32
    %c0_i32_1 = arith.constant 0 : i32
    %c0_i32_2 = arith.constant 0 : i32
    return %c0_i32, %c0_i32_0, %c0_i32_1 : i32, i32, i32
  }
}

</mosaic_0001>

<bundles_post_ra>
// kernel: rnn_forward_seq.1
= control target key start
LH: loop header
LB: loop body
LE: loop exit
PB: predicated region body
PF: predicated region fallthrough
CT: control target
= control target key end

     0   :  { %s10444_s0 = inlined_call_operand.vmem [shape: s32[8], index: 0, kind: input, shape index: {}]   ;;  %s10445_s1 = inlined_call_operand.hbm [shape: f32[64,128], index: 1, kind: input, shape index: {}]   ;;  %s10446_s2 = inlined_call_operand.hbm [shape: f32[2,128,512], index: 2, kind: input, shape index: {}]   ;;  %s10447_s3 = inlined_call_operand.hbm [shape: f32[2,128,512], index: 3, kind: input, shape index: {}]   ;;  %s10448_s4 = inlined_call_operand.vmem [shape: f32[2,1,512], index: 4, kind: input, shape index: {}]   ;;  %s10449_s5 = inlined_call_operand.hbm [shape: f32[128,128], index: 5, kind: input, shape index: {}]   ;;  %s10450_s6 = inlined_call_operand.vmem [shape: f32[1,128], index: 6, kind: input, shape index: {}]   ;;  %s10451_s7 = inlined_call_operand.vmem [shape: f32[2,1,128], index: 7, kind: input, shape index: {}]   ;;  %s10452_s8 = inlined_call_operand.vmem [shape: f32[2,1,128], index: 8, kind: input, shape index: {}]   ;;  %s10453_s9 = inlined_call_operand.hbm [shape: f32[8,128], index: 9, kind: output, shape index: {0}]   ;;  %s10454_s10 = inlined_call_operand.hbm [shape: f32[2,1,128], index: 10, kind: output, shape index: {1}]   ;;  %s10455_s11 = inlined_call_operand.hbm [shape: f32[2,1,128], index: 11, kind: output, shape index: {2}]  }
   0x1   :  { %s17_s19 = sshll.u32 %s10444_s0, 4  ;;  %s18_s19 = int_to_ptr.vmem [resolvable:$true] %s17_s19 }
   0x2   :  { %s8272_s20 = scalar_lea.vmem %s18_s19, 16  ;;  %p8277_p1 = scmp.lt.s32.totalorder %s18_s19, %s18_s19 }
   0x3   :  { %p8273_p0 = scmp.ne.s32.totalorder %s18_s19, %s8272_s20  ;;  %p8278_p2 = scmp.lt.s32.totalorder %s8272_s20, %s8272_s20 }
   0x5   :  { %p8279_p3 = por %p8278_p2, %p8277_p1 }
   0x7   :  { %p8280_p4 = pnand %p8279_p3, %p8273_p0 }
   0x9   :  { %8283 = shalt.err (!%p8280_p4)  }
   0xa   :  { %s8450_s21 = smov [#allocation5]  }
   0xb   :  { %20 = dma.vmem_to_smem %s18_s19, 16, %s8450_s21, [#allocation4] }
   0xc   :  { %8438 = dma.done.wait [#allocation4], 16 }
   0xd   :  { %8439 = vsyncadd [#allocation4], 4294967280 }
   0xe   :  { %22 = sfence }
   0xf   :  { %23 = vsyncpa [#allocation7], 0 }
  0x10   :  { %24 = vsyncpa [#allocation10], 0 }
  0x11   :  { %25 = vsyncpa [#allocation13], 0 }
  0x12   :  { %26 = vsyncpa [#allocation8], 0 }
  0x13   :  { %27 = vsyncpa [#allocation16], 0  ;;  %s8451_s22 = smov [#allocation9]   ;;  %s8284_s25 = scalar_lea.hbm %s10446_s2, 16384 }
  0x14   :  { %s45_s0 = sshll.u32 %s8451_s22, 4  ;;  %p8285_p5 = scmp.ne.s32.totalorder %s10446_s2, %s8284_s25  ;;  %s46_s0 = int_to_ptr.vmem [resolvable:$true] %s45_s0 }
  0x15   :  { %p8288_p6 = scmp.lt.u32.totalorder %s8284_s25, %s10446_s2 }
  0x17   :  { %p8290_p7 = pnand %p8288_p6, %p8285_p5 }
  0x19   :  { %8293 = shalt.err (!%p8290_p7)
}
  0x1a   :  { %s8294_s30 = scalar_lea.vmem %s46_s0, 16384  ;;  %p8299_p9 = scmp.lt.s32.totalorder %s46_s0, %s46_s0 }
  0x1b   :  { %p8295_p8 = scmp.ne.s32.totalorder %s46_s0, %s8294_s30  ;;  %p8300_p10 = scmp.lt.s32.totalorder %s8294_s30, %s8294_s30 }
  0x1d   :  { %p8301_p11 = por %p8300_p10, %p8299_p9 }
  0x1f   :  { %p8302_p12 = pnand %p8301_p11, %p8295_p8 }
  0x21   :  { %8305 = shalt.err (!%p8302_p12)
}
  0x22   :  { %s8452_s12 = smov 512   ;;  %s8453_s13 = smov 32  }
  0x23   :  { %51 = dma.hbm_to_vmem [thread:$0]  %s10446_s2, 16384, %s46_s0, [#allocation10], %s8452_s12, %s8452_s12, %s8453_s13  }
  0x24   :  { %s8454_s16 = smov [#allocation6]   ;;  %s8306_s20 = scalar_lea.hbm %s10445_s1, 1024 }
  0x25   :  { %s33_s17 = sshll.u32 %s8454_s16, 4  ;;  %p8307_p13 = scmp.ne.s32.totalorder %s10445_s1, %s8306_s20  ;;  %s34_s17 = int_to_ptr.vmem [resolvable:$true] %s33_s17 }
  0x26   :  { %p8310_p0 = scmp.lt.u32.totalorder %s8306_s20, %s10445_s1 }
  0x28   :  { %p8312_p1 = pnand %p8310_p0, %p8307_p13 }
  0x2a   :  { %8315 = shalt.err (!%p8312_p1)
}
  0x2b   :  { %s8316_s25 = scalar_lea.vmem %s34_s17, 1024  ;;  %p8321_p3 = scmp.lt.s32.totalorder %s34_s17, %s34_s17 }
  0x2c   :  { %p8317_p2 = scmp.ne.s32.totalorder %s34_s17, %s8316_s25  ;;  %p8322_p4 = scmp.lt.s32.totalorder %s8316_s25, %s8316_s25 }
  0x2e   :  { %p8323_p5 = por %p8322_p4, %p8321_p3 }
  0x30   :  { %p8324_p6 = pnand %p8323_p5, %p8317_p2 }
  0x32   :  { %8327 = shalt.err (!%p8324_p6)
}
  0x33   :  { %s8455_s2 = smov 128   ;;  %s8456_s0 = smov 8  }
  0x34   :  { %39 = dma.hbm_to_vmem [thread:$0]  %s10445_s1, 1024, %s34_s17, [#allocation7], %s8455_s2, %s8455_s2, %s8456_s0  }
  0x35   :  { %s8457_s28 = smov [#allocation11]   ;;  %s8458_s30 = smov [#allocation12]  }
  0x36   :  { %s57_s29 = sshll.u32 %s8457_s28, 4  ;;  %s71_s14 = sshll.u32 %s8458_s30, 4  ;;  %s58_s29 = int_to_ptr.vmem [resolvable:$true] %s57_s29  ;;  %s8560_s14 = int_to_ptr.vmem [resolvable:$true] %s71_s14 }
  0x37   :  { %s8328_s18 = scalar_lea.hbm %s10447_s3, 16384 }
  0x38   :  { %p8329_p7 = scmp.ne.s32.totalorder %s10447_s3, %s8328_s18  ;;  %p8332_p8 = scmp.lt.u32.totalorder %s8328_s18, %s10447_s3 }
  0x3a   :  { %p8334_p9 = pnand %p8332_p8, %p8329_p7 }
  0x3c   :  { %8337 = shalt.err (!%p8334_p9)
}
  0x3d   :  { %s8338_s1 = scalar_lea.vmem %s58_s29, 16384  ;;  %p8343_p11 = scmp.lt.s32.totalorder %s58_s29, %s58_s29 }
  0x3e   :  { %p8339_p10 = scmp.ne.s32.totalorder %s58_s29, %s8338_s1  ;;  %p8344_p12 = scmp.lt.s32.totalorder %s8338_s1, %s8338_s1 }
  0x40   :  { %p8345_p13 = por %p8344_p12, %p8343_p11 }
  0x42   :  { %p8346_p0 = pnand %p8345_p13, %p8339_p10 }
  0x44   :  { %8349 = shalt.err (!%p8346_p0)
}
  0x45   :  { %63 = dma.hbm_to_vmem [thread:$0]  %s10447_s3, 16384, %s58_s29, [#allocation10], %s8452_s12, %s8452_s12, %s8453_s13  }
  0x46   :  { %s8350_s26 = scalar_lea.hbm %s10449_s5, 2048 }
  0x47   :  { %p8351_p1 = scmp.ne.s32.totalorder %s10449_s5, %s8350_s26  ;;  %p8354_p2 = scmp.lt.u32.totalorder %s8350_s26, %s10449_s5 }
  0x49   :  { %p8356_p3 = pnand %p8354_p2, %p8351_p1 }
  0x4b   :  { %8359 = shalt.err (!%p8356_p3)
}
  0x4c   :  { %s8360_s16 = scalar_lea.vmem %s8560_s14, 2048  ;;  %p8365_p5 = scmp.lt.s32.totalorder %s8560_s14, %s8560_s14 }
  0x4d   :  { %p8361_p4 = scmp.ne.s32.totalorder %s8560_s14, %s8360_s16  ;;  %p8366_p6 = scmp.lt.s32.totalorder %s8360_s16, %s8360_s16 }
  0x4f   :  { %p8367_p7 = por %p8366_p6, %p8365_p5 }
  0x51   :  { %p8368_p8 = pnand %p8367_p7, %p8361_p4 }
  0x53   :  { %8371 = shalt.err (!%p8368_p8)
}
  0x54   :  { %77 = dma.hbm_to_vmem [thread:$0]  %s10449_s5, 2048, %s8560_s14, [#allocation13], %s8455_s2, %s8455_s2, %s8456_s0  }
  0x55   :  { %8440 = dma.done.wait [#allocation7], 1024  }
  0x56   :  { %8441 = vsyncadd [#allocation7], 4294966272 }
  0x57   :  { %8442 = dma.done.wait [#allocation10], 32768  }
  0x58   :  { %8443 = vsyncadd [#allocation10], 4294934528 }
  0x59   :  { %8444 = dma.done.wait [#allocation13], 2048  }
  0x5a   :  { %8445 = vsyncadd [#allocation13], 4294965248  ;;  %v10456_v0 = vmov 0.0   ;;  %v130_v1 = vld [vmem:[#allocation9 + $0x8] sm:$0xff]  ;;  %v132_v3 = vld [vmem:[#allocation9 + $0x18] sm:$0xff]  ;;  %s8599_s5 = sld [smem:[#allocation5]] }
  0x5b   :  { %279 = vmatprep.mubr.f32.mxu0 %v10456_v0  ;;  %350 = vmatprep.mubr.f32.mxu1 %v10456_v0  ;;  %v134_v2 = vld [vmem:[#allocation9 + $0x28] sm:$0xff]  ;;  %v136_v5 = vld [vmem:[#allocation9 + $0x38] sm:$0xff]  ;;  %v129_v6 = vld [vmem:[#allocation9] sm:$0xff]  ;;  %s8601_s13 = sld [smem:[#allocation5 + $0x1]]  ;;  %s8603_s2 = sld [smem:[#allocation5 + $0x2]]  ;;  %vm8461_vm0 = vmmov 0  }
  0x5c   :  { %v6343_v4 = vpack.c.bf16 %v134_v2, %v130_v1  ;;  %v133_v7 = vld [vmem:[#allocation9 + $0x20] sm:$0xff]  ;;  %v6375_v8 = vpack.c.bf16 %v136_v5, %v132_v3  ;;  %v131_v10 = vld [vmem:[#allocation9 + $0x10] sm:$0xff]  ;;  %v138_v12 = vld [vmem:[#allocation9 + $0x48] sm:$0xff]  ;;  %s8605_s0 = sld [smem:[#allocation5 + $0x3]]  ;;  %s8607_s29 = sld [smem:[#allocation5 + $0x4]] }
  0x5d   :  { %v6345_v9 = vpack.c.bf16 %v133_v7, %v129_v6  ;;  %v135_v11 = vld [vmem:[#allocation9 + $0x30] sm:$0xff]  ;;  %v142_v14 = vld [vmem:[#allocation9 + $0x68] sm:$0xff]  ;;  %v140_v15 = vld [vmem:[#allocation9 + $0x58] sm:$0xff]  ;;  %s8609_s14 = sld [smem:[#allocation5 + $0x5]]  ;;  %s8611_s18 = sld [smem:[#allocation5 + $0x6]] }
  0x5e   :  { %6344 = vmatprep.subr.bf16.mxu0 %v6343_v4  ;;  %v6377_v13 = vpack.c.bf16 %v135_v11, %v131_v10  ;;  %v144_v16 = vld [vmem:[#allocation9 + $0x78] sm:$0xff]  ;;  %6376 = vmatprep.subr.bf16.mxu1 %v6375_v8  ;;  %v6347_v17 = vpack.c.bf16 %v142_v14, %v138_v12  ;;  %v137_v19 = vld [vmem:[#allocation9 + $0x40] sm:$0xff]  ;;  %v139_v21 = vld [vmem:[#allocation9 + $0x50] sm:$0xff]  ;;  %s8613_s19 = sld [smem:[#allocation5 + $0x7]] }
  0x5f   :  { %6346 = vmatpush1.bf16.msra.mxu0 %v6345_v9  ;;  %v6379_v18 = vpack.c.bf16 %v144_v16, %v140_v15  ;;  %v141_v20 = vld [vmem:[#allocation9 + $0x60] sm:$0xff]  ;;  %v143_v23 = vld [vmem:[#allocation9 + $0x70] sm:$0xff]  ;;  %v146_v24 = vld [vmem:[#allocation9 + $0x88] sm:$0xff] }
  0x60   :  { %6378 = vmatpush1.bf16.msra.mxu1 %v6377_v13  ;;  %v6349_v22 = vpack.c.bf16 %v141_v20, %v137_v19  ;;  %v150_v25 = vld [vmem:[#allocation9 + $0xa8] sm:$0xff]  ;;  %6348 = vmatprep.subr.bf16.mxu0 %v6347_v17  ;;  %v6381_v26 = vpack.c.bf16 %v143_v23, %v139_v21  ;;  %v148_v28 = vld [vmem:[#allocation9 + $0x98] sm:$0xff]  ;;  %v145_v30 = vld [vmem:[#allocation9 + $0x80] sm:$0xff]  ;;  %s97_s20 = scalar_lea.vmem [#allocation6], %s8599_s5 }
  0x61   :  { %6380 = vmatprep.subr.bf16.mxu1 %v6379_v18  ;;  %v6351_v27 = vpack.c.bf16 %v150_v25, %v146_v24  ;;  %v152_v29 = vld [vmem:[#allocation9 + $0xb8] sm:$0xff]  ;;  %v149_v32 = vld [vmem:[#allocation9 + $0xa0] sm:$0xff]  ;;  %v147_v33 = vld [vmem:[#allocation9 + $0x90] sm:$0xff]  ;;  %s101_s21 = scalar_lea.vmem [#allocation6], %s8601_s13  ;;  %s105_s22 = scalar_lea.vmem [#allocation6], %s8603_s2 }
  0x62   :  { %v6383_v31 = vpack.c.bf16 %v152_v29, %v148_v28  ;;  %v151_v34 = vld [vmem:[#allocation9 + $0xb0] sm:$0xff]  ;;  %v6353_v35 = vpack.c.bf16 %v149_v32, %v145_v30  ;;  %v154_v36 = vld [vmem:[#allocation9 + $0xc8] sm:$0xff]  ;;  %v156_v38 = vld [vmem:[#allocation9 + $0xd8] sm:$0xff]  ;;  %s109_s1 = scalar_lea.vmem [#allocation6], %s8605_s0  ;;  %s113_s17 = scalar_lea.vmem [#allocation6], %s8607_s29 }
  0x63   :  { %6350 = vmatpush1.bf16.msra.mxu0 %v6349_v22  ;;  %v158_v37 = vld [vmem:[#allocation9 + $0xe8] sm:$0xff]  ;;  %v6385_v39 = vpack.c.bf16 %v151_v34, %v147_v33  ;;  %v160_v41 = vld [vmem:[#allocation9 + $0xf8] sm:$0xff]  ;;  %v153_v42 = vld [vmem:[#allocation9 + $0xc0] sm:$0xff]  ;;  %s117_s23 = scalar_lea.vmem [#allocation6], %s8609_s14  ;;  %s121_s24 = scalar_lea.vmem [#allocation6], %s8611_s18 }
  0x64   :  { %6382 = vmatpush1.bf16.msra.mxu1 %v6381_v26  ;;  %6352 = vmatprep.subr.bf16.mxu0 %v6351_v27  ;;  %v6355_v40 = vpack.c.bf16 %v158_v37, %v154_v36  ;;  %v157_v43 = vld [vmem:[#allocation9 + $0xe0] sm:$0xff]  ;;  %v6387_v44 = vpack.c.bf16 %v160_v41, %v156_v38  ;;  %v155_v45 = vld [vmem:[#allocation9 + $0xd0] sm:$0xff]  ;;  %v162_v47 = vld [vmem:[#allocation9 + $0x108] sm:$0xff]  ;;  %s125_s25 = scalar_lea.vmem [#allocation6], %s8613_s19 }
  0x65   :  { %6384 = vmatprep.subr.bf16.mxu1 %v6383_v31  ;;  %v159_v46 = vld [vmem:[#allocation9 + $0xf0] sm:$0xff]  ;;  %v166_v48 = vld [vmem:[#allocation9 + $0x128] sm:$0xff]  ;;  %v164_v49 = vld [vmem:[#allocation9 + $0x118] sm:$0xff]  ;;  %v6357_v51 = vpack.c.bf16 %v157_v43, %v153_v42 }
  0x66   :  { %v168_v50 = vld [vmem:[#allocation9 + $0x138] sm:$0xff]  ;;  %v6389_v52 = vpack.c.bf16 %v159_v46, %v155_v45  ;;  %v6359_v53 = vpack.c.bf16 %v166_v48, %v162_v47  ;;  %v161_v54 = vld [vmem:[#allocation9 + $0x100] sm:$0xff]  ;;  %v163_v56 = vld [vmem:[#allocation9 + $0x110] sm:$0xff] }
  0x67   :  { %6354 = vmatpush1.bf16.msra.mxu0 %v6353_v35  ;;  %v165_v55 = vld [vmem:[#allocation9 + $0x120] sm:$0xff]  ;;  %v6391_v57 = vpack.c.bf16 %v168_v50, %v164_v49  ;;  %v167_v58 = vld [vmem:[#allocation9 + $0x130] sm:$0xff]  ;;  %v170_v59 = vld [vmem:[#allocation9 + $0x148] sm:$0xff] }
  0x68   :  { %6386 = vmatpush1.bf16.msra.mxu1 %v6385_v39  ;;  %6356 = vmatprep.subr.bf16.mxu0 %v6355_v40  ;;  %v174_v60 = vld [vmem:[#allocation9 + $0x168] sm:$0xff]  ;;  %v172_v61 = vld [vmem:[#allocation9 + $0x158] sm:$0xff]  ;;  %v6361_v63 = vpack.c.bf16 %v165_v55, %v161_v54  ;;  %v169_v1 = vld [vmem:[#allocation9 + $0x140] sm:$0xff]  ;;  %v6393_v2 = vpack.c.bf16 %v167_v58, %v163_v56 }
  0x69   :  { %6388 = vmatprep.subr.bf16.mxu1 %v6387_v44  ;;  %v176_v62 = vld [vmem:[#allocation9 + $0x178] sm:$0xff]  ;;  %v6363_v3 = vpack.c.bf16 %v174_v60, %v170_v59  ;;  %v173_v4 = vld [vmem:[#allocation9 + $0x160] sm:$0xff]  ;;  %v171_v5 = vld [vmem:[#allocation9 + $0x150] sm:$0xff] }
  0x6a   :  { %v175_v6 = vld [vmem:[#allocation9 + $0x170] sm:$0xff]  ;;  %v6395_v7 = vpack.c.bf16 %v176_v62, %v172_v61  ;;  %v178_v8 = vld [vmem:[#allocation9 + $0x188] sm:$0xff]  ;;  %v180_v10 = vld [vmem:[#allocation9 + $0x198] sm:$0xff]  ;;  %v6365_v14 = vpack.c.bf16 %v173_v4, %v169_v1 }
  0x6b   :  { %6358 = vmatpush1.bf16.msra.mxu0 %v6357_v51  ;;  %v182_v9 = vld [vmem:[#allocation9 + $0x1a8] sm:$0xff]  ;;  %v184_v11 = vld [vmem:[#allocation9 + $0x1b8] sm:$0xff]  ;;  %v177_v12 = vld [vmem:[#allocation9 + $0x180] sm:$0xff]  ;;  %v6397_v19 = vpack.c.bf16 %v175_v6, %v171_v5 }
  0x6c   :  { %6390 = vmatpush1.bf16.msra.mxu1 %v6389_v52  ;;  %6360 = vmatprep.subr.bf16.mxu0 %v6359_v53  ;;  %v181_v13 = vld [vmem:[#allocation9 + $0x1a0] sm:$0xff]  ;;  %v179_v15 = vld [vmem:[#allocation9 + $0x190] sm:$0xff]  ;;  %v186_v17 = vld [vmem:[#allocation9 + $0x1c8] sm:$0xff]  ;;  %v6367_v20 = vpack.c.bf16 %v182_v9, %v178_v8  ;;  %v6399_v25 = vpack.c.bf16 %v184_v11, %v180_v10 }
  0x6d   :  { %6392 = vmatprep.subr.bf16.mxu1 %v6391_v57  ;;  %v183_v16 = vld [vmem:[#allocation9 + $0x1b0] sm:$0xff]  ;;  %v190_v18 = vld [vmem:[#allocation9 + $0x1e8] sm:$0xff]  ;;  %v188_v21 = vld [vmem:[#allocation9 + $0x1d8] sm:$0xff]  ;;  %v6369_v32 = vpack.c.bf16 %v181_v13, %v177_v12 }
  0x6e   :  { %v192_v22 = vld [vmem:[#allocation9 + $0x1f8] sm:$0xff]  ;;  %v98_v23 = vld [vmem:[%s97_s20] sm:$0x1]  ;;  %v6401_v33 = vpack.c.bf16 %v183_v16, %v179_v15  ;;  %v6371_v34 = vpack.c.bf16 %v190_v18, %v186_v17  ;;  %v185_v35 = vld [vmem:[#allocation9 + $0x1c0] sm:$0xff] }
  0x6f   :  { %6362 = vmatpush1.bf16.msra.mxu0 %v6361_v63  ;;  %v102_v24 = vld [vmem:[%s101_s21] sm:$0x1]  ;;  %99 = vst [vmem:[#allocation2] sm:$0x1] %v98_v23  ;;  %v189_v36 = vld [vmem:[#allocation9 + $0x1e0] sm:$0xff]  ;;  %v6403_v38 = vpack.c.bf16 %v192_v22, %v188_v21  ;;  %v364_v40 = vld [vmem:[#allocation11 + $0x8] sm:$0xff] }
  0x70   :  { %6394 = vmatpush1.bf16.msra.mxu1 %v6393_v2  ;;  %6364 = vmatprep.subr.bf16.mxu0 %v6363_v3  ;;  %103 = vst [vmem:[#allocation2 + $0x1] sm:$0x1] %v102_v24  ;;  %v106_v26 = vld [vmem:[%s105_s22] sm:$0x1]  ;;  %v368_v41 = vld [vmem:[#allocation11 + $0x28] sm:$0xff]  ;;  %v366_v42 = vld [vmem:[#allocation11 + $0x18] sm:$0xff]  ;;  %v6373_v44 = vpack.c.bf16 %v189_v36, %v185_v35 }
  0x71   :  { %6396 = vmatprep.subr.bf16.mxu1 %v6395_v7  ;;  %v110_v27 = vld [vmem:[%s109_s1] sm:$0x1]  ;;  %107 = vst [vmem:[#allocation2 + $0x2] sm:$0x1] %v106_v26  ;;  %v370_v43 = vld [vmem:[#allocation11 + $0x38] sm:$0xff]  ;;  %v8623_v46 = vpack.c.bf16 %v368_v41, %v364_v40  ;;  %v363_v47 = vld [vmem:[#allocation11] sm:$0xff] }
  0x72   :  { %v114_v28 = vld [vmem:[%s113_s17] sm:$0x1]  ;;  %111 = vst [vmem:[#allocation2 + $0x3] sm:$0x1] %v110_v27  ;;  %v367_v48 = vld [vmem:[#allocation11 + $0x20] sm:$0xff]  ;;  %v8625_v50 = vpack.c.bf16 %v370_v43, %v366_v42  ;;  %v372_v52 = vld [vmem:[#allocation11 + $0x48] sm:$0xff] }
  0x73   :  { %115 = vst [vmem:[#allocation2 + $0x4] sm:$0x1] %v114_v28  ;;  %v118_v29 = vld [vmem:[%s117_s23] sm:$0x1]  ;;  %6366 = vmatpush1.bf16.msra.mxu0 %v6365_v14  ;;  %v376_v53 = vld [vmem:[#allocation11 + $0x68] sm:$0xff]  ;;  %v374_v54 = vld [vmem:[#allocation11 + $0x58] sm:$0xff]  ;;  %v8627_v57 = vpack.c.bf16 %v367_v48, %v363_v47 }
  0x74   :  { %v122_v30 = vld [vmem:[%s121_s24] sm:$0x1]  ;;  %119 = vst [vmem:[#allocation2 + $0x5] sm:$0x1] %v118_v29  ;;  %6398 = vmatpush1.bf16.msra.mxu1 %v6397_v19  ;;  %6368 = vmatprep.subr.bf16.mxu0 %v6367_v20  ;;  %v378_v55 = vld [vmem:[#allocation11 + $0x78] sm:$0xff]  ;;  %v8632_v59 = vpack.c.bf16 %v376_v53, %v372_v52  ;;  %v371_v60 = vld [vmem:[#allocation11 + $0x40] sm:$0xff] }
  0x75   :  { %v126_v31 = vld [vmem:[%s125_s25] sm:$0x1]  ;;  %123 = vst [vmem:[#allocation2 + $0x6] sm:$0x1] %v122_v30  ;;  %6400 = vmatprep.subr.bf16.mxu1 %v6399_v25  ;;  %v375_v61 = vld [vmem:[#allocation11 + $0x60] sm:$0xff]  ;;  %v8635_v63 = vpack.c.bf16 %v378_v55, %v374_v54  ;;  %v380_v2 = vld [vmem:[#allocation11 + $0x88] sm:$0xff] }
  0x76   :  { %127 = vst [vmem:[#allocation2 + $0x7] sm:$0x1] %v126_v31  ;;  %v187_v37 = vld [vmem:[#allocation9 + $0x1d0] sm:$0xff]  ;;  %v384_v3 = vld [vmem:[#allocation11 + $0xa8] sm:$0xff]  ;;  %v382_v4 = vld [vmem:[#allocation11 + $0x98] sm:$0xff]  ;;  %v8638_v6 = vpack.c.bf16 %v375_v61, %v371_v60 }
  0x77   :  { %v191_v39 = vld [vmem:[#allocation9 + $0x1f0] sm:$0xff]  ;;  %6370 = vmatpush1.bf16.msra.mxu0 %v6369_v32  ;;  %v386_v5 = vld [vmem:[#allocation11 + $0xb8] sm:$0xff]  ;;  %v8644_v8 = vpack.c.bf16 %v384_v3, %v380_v2  ;;  %v379_v9 = vld [vmem:[#allocation11 + $0x80] sm:$0xff] }
  0x78   :  { %6402 = vmatpush1.bf16.msra.mxu1 %v6401_v33  ;;  %6372 = vmatprep.subr.bf16.mxu0 %v6371_v34  ;;  %v6405_v45 = vpack.c.bf16 %v191_v39, %v187_v37  ;;  %v365_v49 = vld [vmem:[#allocation11 + $0x10] sm:$0xff]  ;;  %v383_v10 = vld [vmem:[#allocation11 + $0xa0] sm:$0xff]  ;;  %v8647_v12 = vpack.c.bf16 %v386_v5, %v382_v4  ;;  %v388_v14 = vld [vmem:[#allocation11 + $0xc8] sm:$0xff] }
  0x79   :  { %6404 = vmatprep.subr.bf16.mxu1 %v6403_v38  ;;  %v369_v51 = vld [vmem:[#allocation11 + $0x30] sm:$0xff]  ;;  %v392_v15 = vld [vmem:[#allocation11 + $0xe8] sm:$0xff]  ;;  %v390_v16 = vld [vmem:[#allocation11 + $0xd8] sm:$0xff]  ;;  %v8652_v18 = vpack.c.bf16 %v383_v10, %v379_v9 }
  0x7a   :  { %v8630_v58 = vpack.c.bf16 %v369_v51, %v365_v49  ;;  %v373_v62 = vld [vmem:[#allocation11 + $0x50] sm:$0xff]  ;;  %v394_v17 = vld [vmem:[#allocation11 + $0xf8] sm:$0xff]  ;;  %v8658_v20 = vpack.c.bf16 %v392_v15, %v388_v14  ;;  %v387_v21 = vld [vmem:[#allocation11 + $0xc0] sm:$0xff] }
  0x7b   :  { %6374 = vmatpush1.bf16.msra.mxu0 %v6373_v44  ;;  %v377_v1 = vld [vmem:[#allocation11 + $0x70] sm:$0xff]  ;;  %v391_v22 = vld [vmem:[#allocation11 + $0xe0] sm:$0xff]  ;;  %v8661_v24 = vpack.c.bf16 %v394_v17, %v390_v16  ;;  %v396_v26 = vld [vmem:[#allocation11 + $0x108] sm:$0xff] }
  0x7c   :  { %6406 = vmatpush1.bf16.msra.mxu1 %v6405_v45  ;;  %6408 = vmatprep.subr.bf16.mxu0 %v8623_v46  ;;  %v8642_v7 = vpack.c.bf16 %v377_v1, %v373_v62  ;;  %v381_v11 = vld [vmem:[#allocation11 + $0x90] sm:$0xff]  ;;  %v400_v27 = vld [vmem:[#allocation11 + $0x128] sm:$0xff]  ;;  %v398_v28 = vld [vmem:[#allocation11 + $0x118] sm:$0xff]  ;;  %v8664_v30 = vpack.c.bf16 %v391_v22, %v387_v21 }
  0x7d   :  { %v128_v56 = vld [vmem:[#allocation2] sm:$0xff]  ;;  %6440 = vmatprep.subr.bf16.mxu1 %v8625_v50  ;;  %v402_v29 = vld [vmem:[#allocation11 + $0x138] sm:$0xff]  ;;  %v8670_v32 = vpack.c.bf16 %v400_v27, %v396_v26  ;;  %v395_v33 = vld [vmem:[#allocation11 + $0x100] sm:$0xff] }
  0x7e   :  { %280 = vmatmul.mubr.f32.vlgmr.msra.gmra.mrb[0].mxu0 %v128_v56  ;;  %v385_v13 = vld [vmem:[#allocation11 + $0xb0] sm:$0xff]  ;;  %v399_v34 = vld [vmem:[#allocation11 + $0x120] sm:$0xff]  ;;  %v8673_v36 = vpack.c.bf16 %v402_v29, %v398_v28  ;;  %v404_v38 = vld [vmem:[#allocation11 + $0x148] sm:$0xff] }
  0x7f   :  { %351 = vmatmul.mubr.f32.vlgmr.msra.gmra.mrb[0].mxu1 %v128_v56  ;;  %6410 = vmatpush1.bf16.msra.mxu0 %v8627_v57  ;;  %v8656_v19 = vpack.c.bf16 %v385_v13, %v381_v11  ;;  %v389_v23 = vld [vmem:[#allocation11 + $0xd0] sm:$0xff]  ;;  %v408_v39 = vld [vmem:[#allocation11 + $0x168] sm:$0xff]  ;;  %v406_v40 = vld [vmem:[#allocation11 + $0x158] sm:$0xff]  ;;  %v8676_v42 = vpack.c.bf16 %v399_v34, %v395_v33 }
  0x80   :  { %6442 = vmatpush1.bf16.msra.mxu1 %v8630_v58  ;;  %6412 = vmatprep.subr.bf16.mxu0 %v8632_v59  ;;  %v393_v25 = vld [vmem:[#allocation11 + $0xf0] sm:$0xff]  ;;  %v410_v41 = vld [vmem:[#allocation11 + $0x178] sm:$0xff]  ;;  %v8682_v44 = vpack.c.bf16 %v408_v39, %v404_v38  ;;  %v403_v45 = vld [vmem:[#allocation11 + $0x140] sm:$0xff] }
  0x81   :  { %6444 = vmatprep.subr.bf16.mxu1 %v8635_v63  ;;  %491 = vmatprep.mubr.f32.mxu0 %v10456_v0  ;;  %v8668_v31 = vpack.c.bf16 %v393_v25, %v389_v23  ;;  %v397_v35 = vld [vmem:[#allocation11 + $0x110] sm:$0xff]  ;;  %v407_v47 = vld [vmem:[#allocation11 + $0x160] sm:$0xff]  ;;  %v8685_v49 = vpack.c.bf16 %v410_v41, %v406_v40  ;;  %v412_v52 = vld [vmem:[#allocation11 + $0x188] sm:$0xff] }
  0x82   :  { %562 = vmatprep.mubr.f32.mxu1 %v10456_v0  ;;  %v401_v37 = vld [vmem:[#allocation11 + $0x130] sm:$0xff]  ;;  %v416_v53 = vld [vmem:[#allocation11 + $0x1a8] sm:$0xff]  ;;  %v414_v54 = vld [vmem:[#allocation11 + $0x198] sm:$0xff]  ;;  %v8688_v56 = vpack.c.bf16 %v407_v47, %v403_v45 }
  0x83   :  { %6414 = vmatpush1.bf16.msra.mxu0 %v8638_v6  ;;  %v8680_v43 = vpack.c.bf16 %v401_v37, %v397_v35  ;;  %v405_v48 = vld [vmem:[#allocation11 + $0x150] sm:$0xff]  ;;  %v418_v55 = vld [vmem:[#allocation11 + $0x1b8] sm:$0xff]  ;;  %v8694_v61 = vpack.c.bf16 %v416_v53, %v412_v52  ;;  %v411_v62 = vld [vmem:[#allocation11 + $0x180] sm:$0xff] }
  0x84   :  { %6446 = vmatpush1.bf16.msra.mxu1 %v8642_v7  ;;  %6416 = vmatprep.subr.bf16.mxu0 %v8644_v8  ;;  %v409_v51 = vld [vmem:[#allocation11 + $0x170] sm:$0xff]  ;;  %v415_v1 = vld [vmem:[#allocation11 + $0x1a0] sm:$0xff]  ;;  %v8697_v3 = vpack.c.bf16 %v418_v55, %v414_v54  ;;  %v420_v5 = vld [vmem:[#allocation11 + $0x1c8] sm:$0xff] }
  0x85   :  { %6448 = vmatprep.subr.bf16.mxu1 %v8647_v12  ;;  %v8692_v60 = vpack.c.bf16 %v409_v51, %v405_v48  ;;  %v413_v2 = vld [vmem:[#allocation11 + $0x190] sm:$0xff]  ;;  %v424_v9 = vld [vmem:[#allocation11 + $0x1e8] sm:$0xff]  ;;  %v422_v10 = vld [vmem:[#allocation11 + $0x1d8] sm:$0xff]  ;;  %v8700_v13 = vpack.c.bf16 %v415_v1, %v411_v62 }
  0x86   :  { %v417_v4 = vld [vmem:[#allocation11 + $0x1b0] sm:$0xff]  ;;  %v426_v11 = vld [vmem:[#allocation11 + $0x1f8] sm:$0xff]  ;;  %v8706_v15 = vpack.c.bf16 %v424_v9, %v420_v5  ;;  %v419_v16 = vld [vmem:[#allocation11 + $0x1c0] sm:$0xff] }
  0x87   :  { %6418 = vmatpush1.bf16.msra.mxu0 %v8652_v18  ;;  %v8704_v14 = vpack.c.bf16 %v417_v4, %v413_v2  ;;  %v423_v17 = vld [vmem:[#allocation11 + $0x1e0] sm:$0xff]  ;;  %v8709_v21 = vpack.c.bf16 %v426_v11, %v422_v10  ;;  %v421_v22 = vld [vmem:[#allocation11 + $0x1d0] sm:$0xff]  ;;  %v664_v28 = vld [vmem:[#allocation11 + $0x208] sm:$0xff] }
  0x88   :  { %6450 = vmatpush1.bf16.msra.mxu1 %v8656_v19  ;;  %6420 = vmatprep.subr.bf16.mxu0 %v8658_v20  ;;  %v425_v23 = vld [vmem:[#allocation11 + $0x1f0] sm:$0xff]  ;;  %v8712_v25 = vpack.c.bf16 %v423_v17, %v419_v16  ;;  %v668_v29 = vld [vmem:[#allocation11 + $0x228] sm:$0xff]  ;;  %v666_v33 = vld [vmem:[#allocation11 + $0x218] sm:$0xff] }
  0x89   :  { %6452 = vmatprep.subr.bf16.mxu1 %v8661_v24  ;;  %v8716_v26 = vpack.c.bf16 %v425_v23, %v421_v22  ;;  %v357_v27 = vld [vmem:[%s10451_s7] sm:$0x1]  ;;  %v8726_v34 = vpack.c.bf16 %v668_v29, %v664_v28  ;;  %v670_v35 = vld [vmem:[#allocation11 + $0x238] sm:$0xff]  ;;  %v663_v37 = vld [vmem:[#allocation11 + $0x200] sm:$0xff] }
  0x8a   :  { %v667_v38 = vld [vmem:[#allocation11 + $0x220] sm:$0xff]  ;;  %v8728_v39 = vpack.c.bf16 %v670_v35, %v666_v33  ;;  %v665_v41 = vld [vmem:[#allocation11 + $0x210] sm:$0xff]  ;;  %v672_v47 = vld [vmem:[#allocation11 + $0x248] sm:$0xff] }
  0x8b   :  { %6422 = vmatpush1.bf16.msra.mxu0 %v8664_v30  ;;  %v8730_v40 = vpack.c.bf16 %v667_v38, %v663_v37  ;;  %v669_v45 = vld [vmem:[#allocation11 + $0x230] sm:$0xff]  ;;  %v676_v51 = vld [vmem:[#allocation11 + $0x268] sm:$0xff]  ;;  %v674_v52 = vld [vmem:[#allocation11 + $0x258] sm:$0xff] }
  0x8c   :  { %6454 = vmatpush1.bf16.msra.mxu1 %v8668_v31  ;;  %6424 = vmatprep.subr.bf16.mxu0 %v8670_v32  ;;  %v8733_v48 = vpack.c.bf16 %v669_v45, %v665_v41  ;;  %v678_v53 = vld [vmem:[#allocation11 + $0x278] sm:$0xff]  ;;  %v8737_v54 = vpack.c.bf16 %v676_v51, %v672_v47  ;;  %v671_v62 = vld [vmem:[#allocation11 + $0x240] sm:$0xff]  ;;  %v673_v2 = vld [vmem:[#allocation11 + $0x250] sm:$0xff] }
  0x8d   :  { %6456 = vmatprep.subr.bf16.mxu1 %v8673_v36  ;;  %v8739_v55 = vpack.c.bf16 %v678_v53, %v674_v52  ;;  %v675_v1 = vld [vmem:[#allocation11 + $0x260] sm:$0xff]  ;;  %v677_v5 = vld [vmem:[#allocation11 + $0x270] sm:$0xff]  ;;  %v680_v9 = vld [vmem:[#allocation11 + $0x288] sm:$0xff] }
  0x8e   :  { %v8742_v4 = vpack.c.bf16 %v675_v1, %v671_v62  ;;  %v684_v10 = vld [vmem:[#allocation11 + $0x2a8] sm:$0xff]  ;;  %v8746_v11 = vpack.c.bf16 %v677_v5, %v673_v2  ;;  %v682_v17 = vld [vmem:[#allocation11 + $0x298] sm:$0xff]  ;;  %v679_v23 = vld [vmem:[#allocation11 + $0x280] sm:$0xff] }
  0x8f   :  { %6426 = vmatpush1.bf16.msra.mxu0 %v8676_v42  ;;  %v8748_v16 = vpack.c.bf16 %v684_v10, %v680_v9  ;;  %v686_v22 = vld [vmem:[#allocation11 + $0x2b8] sm:$0xff]  ;;  %v683_v28 = vld [vmem:[#allocation11 + $0x2a0] sm:$0xff]  ;;  %v681_v29 = vld [vmem:[#allocation11 + $0x290] sm:$0xff] }
  0x90   :  { %6458 = vmatpush1.bf16.msra.mxu1 %v8680_v43  ;;  %6428 = vmatprep.subr.bf16.mxu0 %v8682_v44  ;;  %v685_v33 = vld [vmem:[#allocation11 + $0x2b0] sm:$0xff]  ;;  %v8753_v35 = vpack.c.bf16 %v683_v28, %v679_v23  ;;  %v688_v37 = vld [vmem:[#allocation11 + $0x2c8] sm:$0xff]  ;;  %v690_v41 = vld [vmem:[#allocation11 + $0x2d8] sm:$0xff] }
  0x91   :  { %6460 = vmatprep.subr.bf16.mxu1 %v8685_v49  ;;  %v692_v38 = vld [vmem:[#allocation11 + $0x2e8] sm:$0xff]  ;;  %v8757_v45 = vpack.c.bf16 %v685_v33, %v681_v29  ;;  %v694_v51 = vld [vmem:[#allocation11 + $0x2f8] sm:$0xff]  ;;  %v687_v52 = vld [vmem:[#allocation11 + $0x2c0] sm:$0xff] }
  0x92   :  { %v8759_v47 = vpack.c.bf16 %v692_v38, %v688_v37  ;;  %v691_v53 = vld [vmem:[#allocation11 + $0x2e0] sm:$0xff]  ;;  %v8762_v62 = vpack.c.bf16 %v694_v51, %v690_v41  ;;  %v689_v1 = vld [vmem:[#allocation11 + $0x2d0] sm:$0xff]  ;;  %v696_v5 = vld [vmem:[#allocation11 + $0x308] sm:$0xff] }
  0x93   :  { %6430 = vmatpush1.bf16.msra.mxu0 %v8688_v56  ;;  %10683 = vst [vmem:[#allocation24_spill] sm:$0xff] %v8757_v45  ;;  %v693_v2 = vld [vmem:[#allocation11 + $0x2f0] sm:$0xff]  ;;  %v700_v9 = vld [vmem:[#allocation11 + $0x328] sm:$0xff]  ;;  %v698_v10 = vld [vmem:[#allocation11 + $0x318] sm:$0xff] }
  0x94   :  { %6462 = vmatpush1.bf16.msra.mxu1 %v8692_v60  ;;  %6432 = vmatprep.subr.bf16.mxu0 %v8694_v61  ;;  %10684 = vst [vmem:[#allocation25_spill] sm:$0xff] %v8759_v47  ;;  %10685 = vst [vmem:[#allocation26_spill] sm:$0xff] %v8762_v62  ;;  %v8769_v23 = vpack.c.bf16 %v693_v2, %v689_v1  ;;  %v8771_v28 = vpack.c.bf16 %v700_v9, %v696_v5  ;;  %v695_v29 = vld [vmem:[#allocation11 + $0x300] sm:$0xff]  ;;  %v697_v38 = vld [vmem:[#allocation11 + $0x310] sm:$0xff] }
  0x95   :  { %6464 = vmatprep.subr.bf16.mxu1 %v8697_v3  ;;  %v699_v33 = vld [vmem:[#allocation11 + $0x320] sm:$0xff]  ;;  %v701_v41 = vld [vmem:[#allocation11 + $0x330] sm:$0xff]  ;;  %v708_v1 = vld [vmem:[#allocation11 + $0x368] sm:$0xff] }
  0x96   :  { %10687 = vst [vmem:[#allocation28_spill] sm:$0xff] %v8769_v23  ;;  %10688 = vst [vmem:[#allocation29_spill] sm:$0xff] %v8771_v28  ;;  %v8777_v51 = vpack.c.bf16 %v699_v33, %v695_v29  ;;  %v706_v2 = vld [vmem:[#allocation11 + $0x358] sm:$0xff] }
  0x97   :  { %6434 = vmatpush1.bf16.msra.mxu0 %v8700_v13  ;;  %v710_v9 = vld [vmem:[#allocation11 + $0x378] sm:$0xff] }
  0x98   :  { %6466 = vmatpush1.bf16.msra.mxu1 %v8704_v14  ;;  %6436 = vmatprep.subr.bf16.mxu0 %v8706_v15  ;;  %10690 = vst [vmem:[#allocation31_spill] sm:$0xff] %v8777_v51  ;;  %v8788_v29 = vpack.c.bf16 %v710_v9, %v706_v2  ;;  %v718_v2 = vld [vmem:[#allocation11 + $0x3b8] sm:$0xff]  ;;  %v711_v9 = vld [vmem:[#allocation11 + $0x380] sm:$0xff] }
  0x99   :  { %6468 = vmatprep.subr.bf16.mxu1 %v8709_v21 }
  0x9a   :  { %10693 = vst [vmem:[#allocation34_spill] sm:$0xff] %v8788_v29 }
  0x9b   :  { %6438 = vmatpush1.bf16.msra.mxu0 %v8712_v25 }
  0x9c   :  { %6470 = vmatpush1.bf16.msra.mxu1 %v8716_v26  ;;  %6472 = vmatprep.subr.bf16.mxu0 %v8726_v34 }
  0x9d   :  { %6504 = vmatprep.subr.bf16.mxu1 %v8728_v39 }
  0x9e   :  { %492 = vmatmul.mubr.f32.vlgmr.msra.gmra.mrb[2].mxu0 %v357_v27 }
  0x9f   :  { %563 = vmatmul.mubr.f32.vlgmr.msra.gmra.mrb[2].mxu1 %v357_v27  ;;  %791 = vmatprep.mubr.f32.mxu0 %v10456_v0  ;;  %v8750_v27 = vpack.c.bf16 %v686_v22, %v682_v17  ;;  %v702_v17 = vld [vmem:[#allocation11 + $0x338] sm:$0xff]  ;;  %v8765_v22 = vpack.c.bf16 %v691_v53, %v687_v52  ;;  %v8781_v52 = vpack.c.bf16 %v701_v41, %v697_v38  ;;  %v704_v53 = vld [vmem:[#allocation11 + $0x348] sm:$0xff]  ;;  %v705_v38 = vld [vmem:[#allocation11 + $0x350] sm:$0xff] }
  0xa0   :  { %862 = vmatprep.mubr.f32.mxu1 %v10456_v0  ;;  %6474 = vmatpush1.bf16.msra.mxu0 %v8730_v40  ;;  %v8774_v37 = vpack.c.bf16 %v702_v17, %v698_v10  ;;  %v8786_v5 = vpack.c.bf16 %v708_v1, %v704_v53  ;;  %v703_v10 = vld [vmem:[#allocation11 + $0x340] sm:$0xff]  ;;  %v709_v41 = vld [vmem:[#allocation11 + $0x370] sm:$0xff]  ;;  %v716_v53 = vld [vmem:[#allocation11 + $0x3a8] sm:$0xff] }
  0xa1   :  { %6506 = vmatpush1.bf16.msra.mxu1 %v8733_v48  ;;  %6476 = vmatprep.subr.bf16.mxu0 %v8737_v54  ;;  %10686 = vst [vmem:[#allocation27_spill] sm:$0xff] %v8765_v22  ;;  %10691 = vst [vmem:[#allocation32_spill] sm:$0xff] %v8781_v52  ;;  %v707_v17 = vld [vmem:[#allocation11 + $0x360] sm:$0xff]  ;;  %v8793_v0 = vpack.c.bf16 %v709_v41, %v705_v38  ;;  %v714_v1 = vld [vmem:[#allocation11 + $0x398] sm:$0xff] }
  0xa2   :  { %6508 = vmatprep.subr.bf16.mxu1 %v8739_v55  ;;  %10689 = vst [vmem:[#allocation30_spill] sm:$0xff] %v8774_v37  ;;  %10692 = vst [vmem:[#allocation33_spill] sm:$0xff] %v8786_v5  ;;  %v8790_v33 = vpack.c.bf16 %v707_v17, %v703_v10  ;;  %v715_v10 = vld [vmem:[#allocation11 + $0x3a0] sm:$0xff]  ;;  %v8800_v17 = vpack.c.bf16 %v718_v2, %v714_v1  ;;  %v713_v38 = vld [vmem:[#allocation11 + $0x390] sm:$0xff] }
  0xa3   :  { %10695 = vst [vmem:[#allocation36_spill] sm:$0xff] %v8793_v0  ;;  %v717_v41 = vld [vmem:[#allocation11 + $0x3b0] sm:$0xff]  ;;  %v726_v1 = vld [vmem:[#allocation11 + $0x3f8] sm:$0xff]  ;;  %v719_v2 = vld [vmem:[#allocation11 + $0x3c0] sm:$0xff] }
  0xa4   :  { %6478 = vmatpush1.bf16.msra.mxu0 %v8742_v4  ;;  %10694 = vst [vmem:[#allocation35_spill] sm:$0xff] %v8790_v33  ;;  %10697 = vst [vmem:[#allocation38_spill] sm:$0xff] %v8800_v17 }
  0xa5   :  { %6510 = vmatpush1.bf16.msra.mxu1 %v8746_v11  ;;  %6480 = vmatprep.subr.bf16.mxu0 %v8748_v16 }
  0xa6   :  { %6512 = vmatprep.subr.bf16.mxu1 %v8750_v27 }
  0xa8   :  { %6482 = vmatpush1.bf16.msra.mxu0 %v8753_v35 }
  0xa9   :  { %6514 = vmatpush1.bf16.msra.mxu1 %v8757_v45  ;;  %6484 = vmatprep.subr.bf16.mxu0 %v8759_v47 }
  0xaa   :  { %6516 = vmatprep.subr.bf16.mxu1 %v8762_v62 }
  0xac   :  { %6486 = vmatpush1.bf16.msra.mxu0 %v8765_v22 }
  0xad   :  { %6518 = vmatpush1.bf16.msra.mxu1 %v8769_v23  ;;  %6488 = vmatprep.subr.bf16.mxu0 %v8771_v28  ;;  %v618_v28 = vld [vmem:[#allocation9 + $0x2a0] sm:$0xff]  ;;  %v651_v23 = vld [vmem:[#allocation9 + $0x3a8] sm:$0xff] }
  0xae   :  { %6520 = vmatprep.subr.bf16.mxu1 %v8774_v37  ;;  %v8802_v37 = vpack.c.bf16 %v715_v10, %v711_v9  ;;  %v723_v9 = vld [vmem:[#allocation11 + $0x3e0] sm:$0xff] }
  0xb0   :  { %6490 = vmatpush1.bf16.msra.mxu0 %v8777_v51  ;;  %10698 = vst [vmem:[#allocation39_spill] sm:$0xff] %v8802_v37 }
  0xb1   :  { %6522 = vmatpush1.bf16.msra.mxu1 %v8781_v52  ;;  %6492 = vmatprep.subr.bf16.mxu0 %v8786_v5  ;;  %v712_v52 = vld [vmem:[#allocation11 + $0x388] sm:$0xff]  ;;  %v8814_v5 = vpack.c.bf16 %v723_v9, %v719_v2  ;;  %v602_v2 = vld [vmem:[#allocation9 + $0x220] sm:$0xff] }
  0xb2   :  { %6524 = vmatprep.subr.bf16.mxu1 %v8788_v29  ;;  %v8798_v51 = vpack.c.bf16 %v716_v53, %v712_v52  ;;  %v8805_v29 = vpack.c.bf16 %v717_v41, %v713_v38  ;;  %v724_v52 = vld [vmem:[#allocation11 + $0x3e8] sm:$0xff]  ;;  %v722_v53 = vld [vmem:[#allocation11 + $0x3d8] sm:$0xff]  ;;  %v721_v38 = vld [vmem:[#allocation11 + $0x3d0] sm:$0xff] }
  0xb3   :  { %v8812_v10 = vpack.c.bf16 %v726_v1, %v722_v53  ;;  %10702 = vst [vmem:[#allocation43_spill] sm:$0xff] %v8814_v5  ;;  %v725_v41 = vld [vmem:[#allocation11 + $0x3f0] sm:$0xff]  ;;  %v605_v53 = vld [vmem:[#allocation9 + $0x238] sm:$0xff]  ;;  %v598_v1 = vld [vmem:[#allocation9 + $0x200] sm:$0xff] }
  0xb4   :  { %6494 = vmatpush1.bf16.msra.mxu0 %v8790_v33  ;;  %10696 = vst [vmem:[#allocation37_spill] sm:$0xff] %v8798_v51  ;;  %10699 = vst [vmem:[#allocation40_spill] sm:$0xff] %v8805_v29 }
  0xb5   :  { %6526 = vmatpush1.bf16.msra.mxu1 %v8793_v0  ;;  %6496 = vmatprep.subr.bf16.mxu0 %v8798_v51  ;;  %v720_v0 = vld [vmem:[#allocation11 + $0x3c8] sm:$0xff]  ;;  %10701 = vst [vmem:[#allocation42_spill] sm:$0xff] %v8812_v10  ;;  %v8826_v51 = vpack.c.bf16 %v602_v2, %v598_v1  ;;  %v613_v1 = vld [vmem:[#allocation9 + $0x278] sm:$0xff]  ;;  %v606_v2 = vld [vmem:[#allocation9 + $0x240] sm:$0xff] }
  0xb6   :  { %6528 = vmatprep.subr.bf16.mxu1 %v8800_v17  ;;  %v8810_v33 = vpack.c.bf16 %v724_v52, %v720_v0  ;;  %v8817_v17 = vpack.c.bf16 %v725_v41, %v721_v38  ;;  %v603_v0 = vld [vmem:[#allocation9 + $0x228] sm:$0xff]  ;;  %v601_v52 = vld [vmem:[#allocation9 + $0x218] sm:$0xff]  ;;  %v600_v38 = vld [vmem:[#allocation9 + $0x210] sm:$0xff] }
  0xb7   :  { %v8824_v9 = vpack.c.bf16 %v605_v53, %v601_v52  ;;  %10706 = vst [vmem:[#allocation47_spill] sm:$0xff] %v8826_v51  ;;  %v604_v41 = vld [vmem:[#allocation9 + $0x230] sm:$0xff]  ;;  %v609_v53 = vld [vmem:[#allocation9 + $0x258] sm:$0xff] }
  0xb8   :  { %6498 = vmatpush1.bf16.msra.mxu0 %v8802_v37  ;;  %10700 = vst [vmem:[#allocation41_spill] sm:$0xff] %v8810_v33  ;;  %10703 = vst [vmem:[#allocation44_spill] sm:$0xff] %v8817_v17 }
  0xb9   :  { %6530 = vmatpush1.bf16.msra.mxu1 %v8805_v29  ;;  %6500 = vmatprep.subr.bf16.mxu0 %v8810_v33  ;;  %v599_v29 = vld [vmem:[#allocation9 + $0x208] sm:$0xff]  ;;  %10705 = vst [vmem:[#allocation46_spill] sm:$0xff] %v8824_v9  ;;  %v10710_v33 = vmov 0.0  }
  0xba   :  { %6532 = vmatprep.subr.bf16.mxu1 %v8812_v10  ;;  %v8822_v37 = vpack.c.bf16 %v603_v0, %v599_v29  ;;  %v8832_v10 = vpack.c.bf16 %v604_v41, %v600_v38  ;;  %v607_v29 = vld [vmem:[#allocation9 + $0x248] sm:$0xff]  ;;  %v608_v38 = vld [vmem:[#allocation9 + $0x250] sm:$0xff] }
  0xbb   :  { %v611_v0 = vld [vmem:[#allocation9 + $0x268] sm:$0xff]  ;;  %v612_v41 = vld [vmem:[#allocation9 + $0x270] sm:$0xff] }
  0xbc   :  { %6502 = vmatpush1.bf16.msra.mxu0 %v8814_v5  ;;  %10704 = vst [vmem:[#allocation45_spill] sm:$0xff] %v8822_v37  ;;  %v6232_v5 = vld [vmem:[%s10451_s7 + $0x1] sm:$0x1]  ;;  %10707 = vst [vmem:[#allocation48_spill] sm:$0xff] %v8832_v10  ;;  %v8836_v52 = vpack.c.bf16 %v611_v0, %v607_v29  ;;  %v615_v29 = vld [vmem:[#allocation9 + $0x288] sm:$0xff] }
  0xbd   :  { %6534 = vmatpush1.bf16.msra.mxu1 %v8817_v17  ;;  %6536 = vmatprep.subr.bf16.mxu0 %v8822_v37  ;;  %v8839_v37 = vpack.c.bf16 %v613_v1, %v609_v53  ;;  %v610_v17 = vld [vmem:[#allocation9 + $0x260] sm:$0xff]  ;;  %v619_v0 = vld [vmem:[#allocation9 + $0x2a8] sm:$0xff]  ;;  %v621_v1 = vld [vmem:[#allocation9 + $0x2b8] sm:$0xff] }
  0xbe   :  { %6568 = vmatprep.subr.bf16.mxu1 %v8824_v9  ;;  %10708 = vst [vmem:[#allocation49_spill] sm:$0xff] %v8836_v52  ;;  %v8843_v9 = vpack.c.bf16 %v610_v17, %v606_v2  ;;  %v8850_v53 = vpack.c.bf16 %v619_v0, %v615_v29  ;;  %v627_v29 = vld [vmem:[#allocation9 + $0x2e8] sm:$0xff]  ;;  %v625_v0 = vld [vmem:[#allocation9 + $0x2d8] sm:$0xff] }
  0xbf   :  { %792 = vmatmul.mubr.f32.vlgmr.msra.gmra.mrb[4].mxu0 %v6232_v5  ;;  %10709 = vst [vmem:[#allocation50_spill] sm:$0xff] %v8839_v37 }
  0xc0   :  { %863 = vmatmul.mubr.f32.vlgmr.msra.gmra.mrb[4].mxu1 %v6232_v5  ;;  %6538 = vmatpush1.bf16.msra.mxu0 %v8826_v51  ;;  %10711 = vst [vmem:[#allocation51_spill] sm:$0xff] %v8843_v9  ;;  %v8845_v5 = vpack.c.bf16 %v612_v41, %v608_v38  ;;  %10713 = vst [vmem:[#allocation53_spill] sm:$0xff] %v8850_v53  ;;  %v614_v51 = vld [vmem:[#allocation9 + $0x280] sm:$0xff]  ;;  %v616_v38 = vld [vmem:[#allocation9 + $0x290] sm:$0xff] }
  0xc1   :  { %6570 = vmatpush1.bf16.msra.mxu1 %v8832_v10  ;;  %933 = vmatprep.mubr.f32.mxu0 %v10710_v33  ;;  %v617_v10 = vld [vmem:[#allocation9 + $0x298] sm:$0xff]  ;;  %v8855_v2 = vpack.c.bf16 %v618_v28, %v614_v51  ;;  %v620_v41 = vld [vmem:[#allocation9 + $0x2b0] sm:$0xff] }
  0xc2   :  { %6540 = vmatprep.subr.bf16.mxu0 %v8836_v52  ;;  %10712 = vst [vmem:[#allocation52_spill] sm:$0xff] %v8845_v5  ;;  %1004 = vmatprep.mubr.f32.mxu1 %v10710_v33  ;;  %v8853_v17 = vpack.c.bf16 %v621_v1, %v617_v10  ;;  %v622_v10 = vld [vmem:[#allocation9 + $0x2c0] sm:$0xff] }
  0xc3   :  { %6572 = vmatprep.subr.bf16.mxu1 %v8839_v37  ;;  %10715 = vst [vmem:[#allocation55_spill] sm:$0xff] %v8855_v2  ;;  %v8858_v37 = vpack.c.bf16 %v620_v41, %v616_v38  ;;  %v626_v1 = vld [vmem:[#allocation9 + $0x2e0] sm:$0xff]  ;;  %v624_v38 = vld [vmem:[#allocation9 + $0x2d0] sm:$0xff] }
  0xc4   :  { %6542 = vmatpush1.bf16.msra.mxu0 %v8843_v9  ;;  %10714 = vst [vmem:[#allocation54_spill] sm:$0xff] %v8853_v17  ;;  %v623_v9 = vld [vmem:[#allocation9 + $0x2c8] sm:$0xff]  ;;  %v8867_v51 = vpack.c.bf16 %v626_v1, %v622_v10  ;;  %v628_v41 = vld [vmem:[#allocation9 + $0x2f0] sm:$0xff] }
  0xc5   :  { %6574 = vmatpush1.bf16.msra.mxu1 %v8845_v5  ;;  %6544 = vmatprep.subr.bf16.mxu0 %v8850_v53  ;;  %10716 = vst [vmem:[#allocation56_spill] sm:$0xff] %v8858_v37  ;;  %v8862_v52 = vpack.c.bf16 %v627_v29, %v623_v9  ;;  %v629_v5 = vld [vmem:[#allocation9 + $0x2f8] sm:$0xff]  ;;  %v635_v9 = vld [vmem:[#allocation9 + $0x328] sm:$0xff] }
  0xc6   :  { %6576 = vmatprep.subr.bf16.mxu1 %v8853_v17  ;;  %v8865_v28 = vpack.c.bf16 %v629_v5, %v625_v0  ;;  %10719 = vst [vmem:[#allocation59_spill] sm:$0xff] %v8867_v51  ;;  %v8870_v17 = vpack.c.bf16 %v628_v41, %v624_v38  ;;  %v633_v29 = vld [vmem:[#allocation9 + $0x318] sm:$0xff]  ;;  %v630_v5 = vld [vmem:[#allocation9 + $0x300] sm:$0xff]  ;;  %v632_v38 = vld [vmem:[#allocation9 + $0x310] sm:$0xff] }
  0xc7   :  { %10717 = vst [vmem:[#allocation57_spill] sm:$0xff] %v8862_v52  ;;  %v634_v0 = vld [vmem:[#allocation9 + $0x320] sm:$0xff]  ;;  %v636_v41 = vld [vmem:[#allocation9 + $0x330] sm:$0xff] }
  0xc8   :  { %6546 = vmatpush1.bf16.msra.mxu0 %v8855_v2  ;;  %10718 = vst [vmem:[#allocation58_spill] sm:$0xff] %v8865_v28  ;;  %10720 = vst [vmem:[#allocation60_spill] sm:$0xff] %v8870_v17  ;;  %v631_v2 = vld [vmem:[#allocation9 + $0x308] sm:$0xff]  ;;  %v8879_v1 = vpack.c.bf16 %v634_v0, %v630_v5 }
  0xc9   :  { %6578 = vmatpush1.bf16.msra.mxu1 %v8858_v37  ;;  %6548 = vmatprep.subr.bf16.mxu0 %v8862_v52  ;;  %v8874_v53 = vpack.c.bf16 %v635_v9, %v631_v2  ;;  %v637_v37 = vld [vmem:[#allocation9 + $0x338] sm:$0xff]  ;;  %v643_v2 = vld [vmem:[#allocation9 + $0x368] sm:$0xff] }
  0xca   :  { %6580 = vmatprep.subr.bf16.mxu1 %v8865_v28  ;;  %v8877_v10 = vpack.c.bf16 %v637_v37, %v633_v29  ;;  %10723 = vst [vmem:[#allocation63_spill] sm:$0xff] %v8879_v1  ;;  %v8882_v28 = vpack.c.bf16 %v636_v41, %v632_v38  ;;  %v641_v9 = vld [vmem:[#allocation9 + $0x358] sm:$0xff]  ;;  %v638_v37 = vld [vmem:[#allocation9 + $0x340] sm:$0xff]  ;;  %v640_v38 = vld [vmem:[#allocation9 + $0x350] sm:$0xff] }
  0xcb   :  { %10721 = vst [vmem:[#allocation61_spill] sm:$0xff] %v8874_v53  ;;  %v642_v29 = vld [vmem:[#allocation9 + $0x360] sm:$0xff]  ;;  %v644_v41 = vld [vmem:[#allocation9 + $0x370] sm:$0xff] }
  0xcc   :  { %6550 = vmatpush1.bf16.msra.mxu0 %v8867_v51  ;;  %10722 = vst [vmem:[#allocation62_spill] sm:$0xff] %v8877_v10  ;;  %10724 = vst [vmem:[#allocation64_spill] sm:$0xff] %v8882_v28  ;;  %v639_v51 = vld [vmem:[#allocation9 + $0x348] sm:$0xff]  ;;  %v8891_v0 = vpack.c.bf16 %v642_v29, %v638_v37  ;;  %v648_v37 = vld [vmem:[#allocation9 + $0x390] sm:$0xff] }
  0xcd   :  { %6582 = vmatpush1.bf16.msra.mxu1 %v8870_v17  ;;  %6552 = vmatprep.subr.bf16.mxu0 %v8874_v53  ;;  %v8886_v52 = vpack.c.bf16 %v643_v2, %v639_v51  ;;  %v645_v17 = vld [vmem:[#allocation9 + $0x378] sm:$0xff]  ;;  %v647_v53 = vld [vmem:[#allocation9 + $0x388] sm:$0xff] }
  0xce   :  { %6584 = vmatprep.subr.bf16.mxu1 %v8877_v10  ;;  %v8889_v5 = vpack.c.bf16 %v645_v17, %v641_v9  ;;  %10727 = vst [vmem:[#allocation67_spill] sm:$0xff] %v8891_v0  ;;  %v8894_v10 = vpack.c.bf16 %v644_v41, %v640_v38  ;;  %v653_v51 = vld [vmem:[#allocation9 + $0x3b8] sm:$0xff]  ;;  %v8897_v2 = vpack.c.bf16 %v651_v23, %v647_v53  ;;  %v646_v17 = vld [vmem:[#allocation9 + $0x380] sm:$0xff]  ;;  %v659_v38 = vld [vmem:[#allocation9 + $0x3e8] sm:$0xff] }
  0xcf   :  { %10725 = vst [vmem:[#allocation65_spill] sm:$0xff] %v8886_v52  ;;  %v650_v9 = vld [vmem:[#allocation9 + $0x3a0] sm:$0xff]  ;;  %v657_v53 = vld [vmem:[#allocation9 + $0x3d8] sm:$0xff] }
  0xd0   :  { %6554 = vmatpush1.bf16.msra.mxu0 %v8879_v1  ;;  %10726 = vst [vmem:[#allocation66_spill] sm:$0xff] %v8889_v5  ;;  %10728 = vst [vmem:[#allocation68_spill] sm:$0xff] %v8894_v10  ;;  %v649_v1 = vld [vmem:[#allocation9 + $0x398] sm:$0xff]  ;;  %v8902_v29 = vpack.c.bf16 %v650_v9, %v646_v17  ;;  %v658_v17 = vld [vmem:[#allocation9 + $0x3e0] sm:$0xff] }
  0xd1   :  { %6586 = vmatpush1.bf16.msra.mxu1 %v8882_v28  ;;  %6556 = vmatprep.subr.bf16.mxu0 %v8886_v52  ;;  %10729 = vst [vmem:[#allocation69_spill] sm:$0xff] %v8897_v2  ;;  %v8899_v22 = vpack.c.bf16 %v653_v51, %v649_v1  ;;  %v652_v28 = vld [vmem:[#allocation9 + $0x3b0] sm:$0xff]  ;;  %v655_v52 = vld [vmem:[#allocation9 + $0x3c8] sm:$0xff]  ;;  %v661_v1 = vld [vmem:[#allocation9 + $0x3f8] sm:$0xff] }
  0xd2   :  { %6588 = vmatprep.subr.bf16.mxu1 %v8889_v5  ;;  %10731 = vst [vmem:[#allocation71_spill] sm:$0xff] %v8902_v29  ;;  %v8906_v41 = vpack.c.bf16 %v652_v28, %v648_v37  ;;  %v8908_v23 = vpack.c.bf16 %v659_v38, %v655_v52  ;;  %v654_v51 = vld [vmem:[#allocation9 + $0x3c0] sm:$0xff]  ;;  %v8911_v5 = vpack.c.bf16 %v661_v1, %v657_v53  ;;  %v656_v9 = vld [vmem:[#allocation9 + $0x3d0] sm:$0xff]  ;;  %v195_v1 = vlaneseq }
  0xd3   :  { %10730 = vst [vmem:[#allocation70_spill] sm:$0xff] %v8899_v22  ;;  %v8914_v62 = vpack.c.bf16 %v658_v17, %v654_v51 }
  0xd4   :  { %6558 = vmatpush1.bf16.msra.mxu0 %v8891_v0  ;;  %10732 = vst [vmem:[#allocation72_spill] sm:$0xff] %v8906_v41  ;;  %10733 = vst [vmem:[#allocation73_spill] sm:$0xff] %v8908_v23  ;;  %v660_v0 = vld [vmem:[#allocation9 + $0x3f0] sm:$0xff]  ;;  %v196_v51 = vshrl.u32 %v195_v1, 7 }
  0xd5   :  { %6590 = vmatpush1.bf16.msra.mxu1 %v8894_v10  ;;  %6560 = vmatprep.subr.bf16.mxu0 %v8897_v2  ;;  %10734 = vst [vmem:[#allocation74_spill] sm:$0xff] %v8911_v5  ;;  %10735 = vst [vmem:[#allocation75_spill] sm:$0xff] %v8914_v62  ;;  %v8918_v52 = vpack.c.bf16 %v660_v0, %v656_v9  ;;  %v193_v0 = vld [vmem:[%s10448_s4] sm:$0xf] }
  0xd6   :  { %6592 = vmatprep.subr.bf16.mxu1 %v8899_v22  ;;  %v8925_v17 = vsub.s32 0, %v196_v51  ;;  %v8930_v9 = vsub.s32 1, %v196_v51  ;;  %v8943_v47 = vsub.s32 3, %v196_v51 }
  0xd7   :  { %10736 = vst [vmem:[#allocation76_spill] sm:$0xff] %v8918_v52 }
  0xd8   :  { %6562 = vmatpush1.bf16.msra.mxu0 %v8902_v29  ;;  %10737 = vst [vmem:[#allocation77_spill] sm:$0xff] %v8925_v17  ;;  %10738 = vst [vmem:[#allocation78_spill] sm:$0xff] %v8930_v9 }
  0xd9   :  { %6594 = vmatpush1.bf16.msra.mxu1 %v8906_v41  ;;  %6564 = vmatprep.subr.bf16.mxu0 %v8908_v23  ;;  %10742 = vst [vmem:[#allocation82_spill] sm:$0xff] %v8943_v47 }
  0xda   :  { %6596 = vmatprep.subr.bf16.mxu1 %v8911_v5 }
  0xdc   :  { %6566 = vmatpush1.bf16.msra.mxu0 %v8914_v62  ;;  %v8934_v62 = vsub.s32 2, %v196_v51 }
  0xdd   :  { %6598 = vmatpush1.bf16.msra.mxu1 %v8918_v52  ;;  %6600 = vmatprep.subr.bf16.mxu0 %v8623_v46  ;;  %v198_v52 = vrot.slane %v193_v0, %v8925_v17  ;;  %v202_v46 = vrot.slane %v193_v0, %v8930_v9 }
  0xde   :  { %6632 = vmatprep.subr.bf16.mxu1 %v8625_v50  ;;  %10739 = vst [vmem:[#allocation79_spill] sm:$0xff] %v8934_v62  ;;  %v206_v22 = vrot.slane %v193_v0, %v8934_v62 }
 0x151   :  { %v281_v28 = vpop.f32.mrb[0].mxu0 }
 0x152   :  { %v283_v37 = vpop.f32.mrb[1].mxu0  ;;  %v352_v38 = vpop.f32.mrb[0].mxu1  ;;  %v8936_v50 = vadd.f32 %v281_v28, %v198_v52  ;;  %v210_v52 = vrot.slane %v193_v0, %v8943_v47 }
 0x153   :  { %v354_v53 = vpop.f32.mrb[1].mxu1  ;;  %v8938_v5 = vadd.f32 %v283_v37, %v202_v46  ;;  %v8945_v45 = vadd.f32 %v352_v38, %v206_v22 }
 0x154   :  { %10740 = vst [vmem:[#allocation80_spill] sm:$0xff] %v8936_v50 }
 0x155   :  { %10741 = vst [vmem:[#allocation81_spill] sm:$0xff] %v8938_v5  ;;  %10743 = vst [vmem:[#allocation83_spill] sm:$0xff] %v8945_v45 }
 0x171   :  { %v493_v23 = vpop.f32.mrb[2].mxu0 }
 0x172   :  { %v569_v1 = vadd.f32 %v493_v23, %v8936_v50  ;;  %v564_v41 = vpop.f32.mrb[2].mxu1  ;;  %v495_v29 = vpop.f32.mrb[3].mxu0  ;;  %v8949_v23 = vadd.f32 %v354_v53, %v210_v52 }
 0x173   :  { %v570_v2 = vadd.f32 %v495_v29, %v8938_v5  ;;  %v566_v10 = vpop.f32.mrb[3].mxu1  ;;  %v571_v28 = vadd.f32 %v564_v41, %v8945_v45  ;;  %v360_v41 = vld [vmem:[%s10452_s8] sm:$0x1] }
 0x174   :  { %v6234_v17 = vmul.f32 -1.442695, %v569_v1  ;;  %v572_v46 = vadd.f32 %v566_v10, %v8949_v23 }
 0x175   :  { %v6235_v9 = vmul.f32 -1.442695, %v570_v2  ;;  %v6236_v37 = vmul.f32 -1.442695, %v571_v28 }
 0x176   :  { %8016 = vpow2.f32 %v6234_v17 }
 0x177   :  { %8018 = vpow2.f32 %v6235_v9 }
 0x178   :  { %8020 = vpow2.f32 %v6236_v37 }
 0x179   :  { %8022 = vtanh.f32 %v572_v46 }
 0x180   :  { %v8017_v50 = vpop.eup %8016 }
 0x181   :  { %v582_v29 = vadd.f32 1.0, %v8017_v50  ;;  %v8019_v51 = vpop.eup %8018 }
 0x182   :  { %v583_v2 = vadd.f32 1.0, %v8019_v51  ;;  %v8021_v22 = vpop.eup %8020 }
 0x183   :  { %8024 = vrcp.f32 %v582_v29  ;;  %v8023_v38 = vpop.eup %8022  ;;  %v584_v9 = vadd.f32 1.0, %v8021_v22 }
 0x184   :  { %8026 = vrcp.f32 %v583_v2 }
 0x185   :  { %8028 = vrcp.f32 %v584_v9 }
 0x18d   :  { %v8025_v17 = vpop.eup %8024 }
 0x18e   :  { %v593_v53 = vmul.f32 %v8025_v17, %v8023_v38  ;;  %v8027_v0 = vpop.eup %8026  ;;  %v6233_v17 = vld [vmem:[%s10452_s8 + $0x1] sm:$0x1] }
 0x18f   :  { %v592_v1 = vmul.f32 %v8027_v0, %v360_v41  ;;  %v8029_v50 = vpop.eup %8028 }
 0x191   :  { %v8955_v10 = vadd.f32 %v593_v53, %v592_v1 }
 0x193   :  { %8030 = vtanh.f32 %v8955_v10 }
 0x19d   :  { %v8031_v52 = vpop.eup %8030 }
 0x19e   :  { %v596_v28 = vmul.f32 %v8031_v52, %v8029_v50 }
 0x1a0   :  { %934 = vmatmul.mubr.f32.vlgmr.msra.gmra.mrb[4].mxu0 %v596_v28  ;;  %1005 = vmatmul.mubr.f32.vlgmr.msra.gmra.mrb[4].mxu1 %v596_v28 }
 0x1a1   :  { %6602 = vmatpush1.bf16.msra.mxu0 %v8627_v57  ;;  %6634 = vmatpush1.bf16.msra.mxu1 %v8630_v58  ;;  %v10744_v57 = vld [vmem:[#allocation24_spill] sm:$0xff]  ;;  %v10745_v58 = vld [vmem:[#allocation25_spill] sm:$0xff] }
 0x1a2   :  { %6604 = vmatprep.subr.bf16.mxu0 %v8632_v59  ;;  %6636 = vmatprep.subr.bf16.mxu1 %v8635_v63  ;;  %v10746_v59 = vld [vmem:[#allocation26_spill] sm:$0xff]  ;;  %v10747_v63 = vld [vmem:[#allocation27_spill] sm:$0xff] }
 0x1a3   :  { %1191 = vmatprep.mubr.f32.mxu0 %v10710_v33  ;;  %1262 = vmatprep.mubr.f32.mxu1 %v10710_v33 }
 0x1a5   :  { %6606 = vmatpush1.bf16.msra.mxu0 %v8638_v6  ;;  %6638 = vmatpush1.bf16.msra.mxu1 %v8642_v7  ;;  %v10748_v6 = vld [vmem:[#allocation28_spill] sm:$0xff]  ;;  %v10749_v7 = vld [vmem:[#allocation29_spill] sm:$0xff] }
 0x1a6   :  { %6608 = vmatprep.subr.bf16.mxu0 %v8644_v8  ;;  %6640 = vmatprep.subr.bf16.mxu1 %v8647_v12  ;;  %v10750_v8 = vld [vmem:[#allocation30_spill] sm:$0xff]  ;;  %v10751_v12 = vld [vmem:[#allocation31_spill] sm:$0xff] }
 0x1a9   :  { %6610 = vmatpush1.bf16.msra.mxu0 %v8652_v18  ;;  %6642 = vmatpush1.bf16.msra.mxu1 %v8656_v19  ;;  %v10752_v18 = vld [vmem:[#allocation32_spill] sm:$0xff]  ;;  %v10753_v19 = vld [vmem:[#allocation33_spill] sm:$0xff] }
 0x1aa   :  { %6612 = vmatprep.subr.bf16.mxu0 %v8658_v20  ;;  %6644 = vmatprep.subr.bf16.mxu1 %v8661_v24  ;;  %v10754_v20 = vld [vmem:[#allocation34_spill] sm:$0xff]  ;;  %v10755_v24 = vld [vmem:[#allocation35_spill] sm:$0xff] }
 0x1ad   :  { %6614 = vmatpush1.bf16.msra.mxu0 %v8664_v30  ;;  %6646 = vmatpush1.bf16.msra.mxu1 %v8668_v31  ;;  %v10756_v30 = vld [vmem:[#allocation36_spill] sm:$0xff]  ;;  %v10757_v31 = vld [vmem:[#allocation37_spill] sm:$0xff] }
 0x1ae   :  { %6616 = vmatprep.subr.bf16.mxu0 %v8670_v32  ;;  %6648 = vmatprep.subr.bf16.mxu1 %v8673_v36  ;;  %v10758_v32 = vld [vmem:[#allocation38_spill] sm:$0xff]  ;;  %v10759_v36 = vld [vmem:[#allocation39_spill] sm:$0xff] }
 0x1b1   :  { %6618 = vmatpush1.bf16.msra.mxu0 %v8676_v42  ;;  %6650 = vmatpush1.bf16.msra.mxu1 %v8680_v43  ;;  %v10760_v42 = vld [vmem:[#allocation40_spill] sm:$0xff]  ;;  %v10761_v43 = vld [vmem:[#allocation41_spill] sm:$0xff] }
 0x1b2   :  { %6620 = vmatprep.subr.bf16.mxu0 %v8682_v44  ;;  %6652 = vmatprep.subr.bf16.mxu1 %v8685_v49  ;;  %v10762_v44 = vld [vmem:[#allocation42_spill] sm:$0xff]  ;;  %v10763_v49 = vld [vmem:[#allocation43_spill] sm:$0xff] }
 0x1b5   :  { %6622 = vmatpush1.bf16.msra.mxu0 %v8688_v56  ;;  %6654 = vmatpush1.bf16.msra.mxu1 %v8692_v60  ;;  %v10764_v56 = vld [vmem:[#allocation44_spill] sm:$0xff]  ;;  %v10765_v60 = vld [vmem:[#allocation45_spill] sm:$0xff] }
 0x1b6   :  { %6624 = vmatprep.subr.bf16.mxu0 %v8694_v61  ;;  %6656 = vmatprep.subr.bf16.mxu1 %v8697_v3  ;;  %v10766_v61 = vld [vmem:[#allocation46_spill] sm:$0xff]  ;;  %v6237_v3 = vld [vmem:[%s10448_s4 + $0x4] sm:$0xf] }
 0x1b9   :  { %6626 = vmatpush1.bf16.msra.mxu0 %v8700_v13  ;;  %6658 = vmatpush1.bf16.msra.mxu1 %v8704_v14  ;;  %v10767_v13 = vld [vmem:[#allocation77_spill] sm:$0xff] }
 0x1ba   :  { %6628 = vmatprep.subr.bf16.mxu0 %v8706_v15  ;;  %6660 = vmatprep.subr.bf16.mxu1 %v8709_v21  ;;  %v1017_v14 = vrot.slane %v6237_v3, %v10767_v13  ;;  %v10768_v15 = vld [vmem:[#allocation78_spill] sm:$0xff] }
 0x1bb   :  { %v1021_v21 = vrot.slane %v6237_v3, %v10768_v15 }
 0x1bd   :  { %6630 = vmatpush1.bf16.msra.mxu0 %v8712_v25  ;;  %6662 = vmatpush1.bf16.msra.mxu1 %v8716_v26 }
 0x1be   :  { %6664 = vmatprep.subr.bf16.mxu0 %v8726_v34  ;;  %6696 = vmatprep.subr.bf16.mxu1 %v8728_v39 }
 0x1c0   :  { %1192 = vmatmul.mubr.f32.vlgmr.msra.gmra.mrb[6].mxu0 %v596_v28  ;;  %1263 = vmatmul.mubr.f32.vlgmr.msra.gmra.mrb[6].mxu1 %v596_v28 }
 0x1c1   :  { %6666 = vmatpush1.bf16.msra.mxu0 %v8730_v40  ;;  %6698 = vmatpush1.bf16.msra.mxu1 %v8733_v48 }
 0x1c2   :  { %6668 = vmatprep.subr.bf16.mxu0 %v8737_v54  ;;  %6700 = vmatprep.subr.bf16.mxu1 %v8739_v55 }
 0x1c3   :  { %1504 = vmatprep.mubr.f32.mxu0 %v10710_v33  ;;  %1575 = vmatprep.mubr.f32.mxu1 %v10710_v33 }
 0x1c5   :  { %6670 = vmatpush1.bf16.msra.mxu0 %v8742_v4  ;;  %6702 = vmatpush1.bf16.msra.mxu1 %v8746_v11  ;;  %v1025_v4 = vrot.slane %v6237_v3, %v8934_v62  ;;  %v1029_v11 = vrot.slane %v6237_v3, %v8943_v47 }
 0x1c6   :  { %6672 = vmatprep.subr.bf16.mxu0 %v8748_v16  ;;  %6704 = vmatprep.subr.bf16.mxu1 %v8750_v27 }
 0x1c9   :  { %6674 = vmatpush1.bf16.msra.mxu0 %v8753_v35  ;;  %6706 = vmatpush1.bf16.msra.mxu1 %v10744_v57 }
 0x1ca   :  { %6676 = vmatprep.subr.bf16.mxu0 %v10745_v58  ;;  %6708 = vmatprep.subr.bf16.mxu1 %v10746_v59 }
 0x1cd   :  { %6678 = vmatpush1.bf16.msra.mxu0 %v10747_v63  ;;  %6710 = vmatpush1.bf16.msra.mxu1 %v10748_v6  ;;  %v10769_v63 = vld [vmem:[#allocation80_spill] sm:$0xff] }
 0x1ce   :  { %6680 = vmatprep.subr.bf16.mxu0 %v10749_v7  ;;  %6712 = vmatprep.subr.bf16.mxu1 %v10750_v8 }
 0x1d1   :  { %6682 = vmatpush1.bf16.msra.mxu0 %v10751_v12  ;;  %6714 = vmatpush1.bf16.msra.mxu1 %v10752_v18 }
 0x1d2   :  { %6684 = vmatprep.subr.bf16.mxu0 %v10753_v19  ;;  %6716 = vmatprep.subr.bf16.mxu1 %v10754_v20 }
 0x1d5   :  { %6686 = vmatpush1.bf16.msra.mxu0 %v10755_v24  ;;  %6718 = vmatpush1.bf16.msra.mxu1 %v10756_v30 }
 0x1d6   :  { %6688 = vmatprep.subr.bf16.mxu0 %v10757_v31  ;;  %6720 = vmatprep.subr.bf16.mxu1 %v10758_v32 }
 0x1d9   :  { %6690 = vmatpush1.bf16.msra.mxu0 %v10759_v36  ;;  %6722 = vmatpush1.bf16.msra.mxu1 %v10760_v42 }
 0x1da   :  { %6692 = vmatprep.subr.bf16.mxu0 %v10761_v43  ;;  %6724 = vmatprep.subr.bf16.mxu1 %v10762_v44  ;;  %v10770_v43 = vld [vmem:[#allocation47_spill] sm:$0xff]  ;;  %v10771_v44 = vld [vmem:[#allocation48_spill] sm:$0xff] }
 0x1dd   :  { %6694 = vmatpush1.bf16.msra.mxu0 %v10763_v49  ;;  %6726 = vmatpush1.bf16.msra.mxu1 %v10764_v56  ;;  %v10772_v56 = vld [vmem:[#allocation49_spill] sm:$0xff] }
 0x1de   :  { %6728 = vmatprep.subr.bf16.mxu0 %v10765_v60  ;;  %6760 = vmatprep.subr.bf16.mxu1 %v10766_v61  ;;  %v10773_v60 = vld [vmem:[#allocation50_spill] sm:$0xff] }
 0x273   :  { %v935_v25 = vpop.f32.mrb[4].mxu0  ;;  %v1006_v26 = vpop.f32.mrb[4].mxu1 }
 0x274   :  { %v1034_v34 = vadd.f32 %v1017_v14, %v935_v25  ;;  %v937_v39 = vpop.f32.mrb[5].mxu0  ;;  %v1008_v40 = vpop.f32.mrb[5].mxu1  ;;  %v1036_v16 = vadd.f32 %v1025_v4, %v1006_v26  ;;  %v10774_v14 = vld [vmem:[#allocation51_spill] sm:$0xff]  ;;  %v10776_v25 = vld [vmem:[#allocation53_spill] sm:$0xff]  ;;  %v10777_v26 = vld [vmem:[#allocation54_spill] sm:$0xff] }
 0x275   :  { %v1035_v48 = vadd.f32 %v1021_v21, %v937_v39  ;;  %v1037_v27 = vadd.f32 %v1029_v11, %v1008_v40  ;;  %v10775_v21 = vld [vmem:[#allocation52_spill] sm:$0xff]  ;;  %v10780_v40 = vld [vmem:[#allocation57_spill] sm:$0xff]  ;;  %v10782_v4 = vld [vmem:[#allocation59_spill] sm:$0xff] }
 0x276   :  { %v6238_v54 = vmul.f32 -1.442695, %v1034_v34  ;;  %v6240_v35 = vmul.f32 -1.442695, %v1036_v16  ;;  %v10778_v34 = vld [vmem:[#allocation55_spill] sm:$0xff]  ;;  %v10779_v39 = vld [vmem:[#allocation56_spill] sm:$0xff] }
 0x277   :  { %v6239_v55 = vmul.f32 -1.442695, %v1035_v48  ;;  %v10781_v48 = vld [vmem:[#allocation58_spill] sm:$0xff]  ;;  %v10783_v11 = vld [vmem:[#allocation60_spill] sm:$0xff] }
 0x278   :  { %8032 = vpow2.f32 %v6238_v54 }
 0x279   :  { %8034 = vpow2.f32 %v6239_v55 }
 0x27a   :  { %8036 = vtanh.f32 %v1037_v27  ;;  %v10784_v27 = vld [vmem:[#allocation61_spill] sm:$0xff] }
 0x27b   :  { %8038 = vpow2.f32 %v6240_v35  ;;  %v10785_v35 = vld [vmem:[#allocation62_spill] sm:$0xff] }
 0x282   :  { %v8033_v37 = vpop.eup %8032 }
 0x283   :  { %v1047_v46 = vadd.f32 1.0, %v8033_v37  ;;  %v8035_v29 = vpop.eup %8034  ;;  %v1305_v37 = vrot.slane %v8955_v10, 7  ;;  %v10791_v10 = vld [vmem:[#allocation68_spill] sm:$0xff] }
 0x284   :  { %v1048_v51 = vadd.f32 1.0, %v8035_v29  ;;  %v8037_v2 = vpop.eup %8036 }
 0x285   :  { %8040 = vrcp.f32 %v1047_v46  ;;  %v8039_v22 = vpop.eup %8038 }
 0x286   :  { %8042 = vrcp.f32 %v1048_v51  ;;  %v1049_v0 = vadd.f32 1.0, %v8039_v22  ;;  %v10786_v22 = vld [vmem:[#allocation63_spill] sm:$0xff] }
 0x288   :  { %8044 = vrcp.f32 %v1049_v0  ;;  %v10790_v0 = vld [vmem:[#allocation67_spill] sm:$0xff] }
 0x28f   :  { %v8041_v38 = vpop.eup %8040 }
 0x290   :  { %v1058_v41 = vmul.f32 %v8041_v38, %v8037_v2  ;;  %v8043_v53 = vpop.eup %8042  ;;  %v10787_v38 = vld [vmem:[#allocation64_spill] sm:$0xff] }
 0x291   :  { %v1057_v9 = vmul.f32 %v8043_v53, %v6233_v17  ;;  %v10788_v17 = vld [vmem:[#allocation65_spill] sm:$0xff] }
 0x292   :  { %v8045_v24 = vpop.eup %8044 }
 0x293   :  { %v1193_v1 = vpop.f32.mrb[6].mxu0  ;;  %v1264_v50 = vpop.f32.mrb[6].mxu1  ;;  %v9036_v52 = vadd.f32 %v1058_v41, %v1057_v9  ;;  %v10789_v41 = vld [vmem:[#allocation66_spill] sm:$0xff]  ;;  %v10792_v9 = vld [vmem:[#allocation69_spill] sm:$0xff] }
 0x294   :  { %v1273_v28 = vrot.slane %v1193_v1, 7  ;;  %v1195_v57 = vpop.f32.mrb[7].mxu0  ;;  %v1266_v58 = vpop.f32.mrb[7].mxu1  ;;  %v1275_v18 = vrot.slane %v1264_v50, 7  ;;  %v10793_v1 = vld [vmem:[#allocation70_spill] sm:$0xff]  ;;  %v1779_v50 = vld [vmem:[#allocation11 + $0x8] sm:$0xff] }
 0x295   :  { %v1274_v59 = vrot.slane %v1195_v57, 7  ;;  %8046 = vtanh.f32 %v9036_v52  ;;  %v1276_v19 = vrot.slane %v1266_v58, 7  ;;  %v1781_v57 = vld [vmem:[#allocation11 + $0x18] sm:$0xff] }
 0x296   :  { %v1281_v6 = vadd.f32 %v1273_v28, %v10769_v63  ;;  %v1283_v20 = vadd.f32 %v1275_v18, %v8945_v45  ;;  %v1783_v28 = vld [vmem:[#allocation11 + $0x28] sm:$0xff]  ;;  %v1785_v58 = vld [vmem:[#allocation11 + $0x38] sm:$0xff] }
 0x297   :  { %v1282_v7 = vadd.f32 %v1274_v59, %v8938_v5  ;;  %v1284_v31 = vadd.f32 %v1276_v19, %v8949_v23  ;;  %v10794_v59 = vld [vmem:[#allocation71_spill] sm:$0xff]  ;;  %v9079_v18 = vpack.c.bf16 %v1785_v58, %v1781_v57  ;;  %v1808_v57 = vld [vmem:[#allocation11 + $0xf0] sm:$0xff] }
 0x298   :  { %v6241_v8 = vmul.f32 -1.442695, %v1281_v6  ;;  %v6243_v36 = vmul.f32 -1.442695, %v1283_v20  ;;  %v10795_v6 = vld [vmem:[#allocation72_spill] sm:$0xff]  ;;  %v10798_v19 = vld [vmem:[#allocation75_spill] sm:$0xff] }
 0x299   :  { %v6242_v12 = vmul.f32 -1.442695, %v1282_v7  ;;  %v10796_v7 = vld [vmem:[#allocation73_spill] sm:$0xff]  ;;  %v10799_v20 = vld [vmem:[#allocation76_spill] sm:$0xff] }
 0x29a   :  { %8048 = vpow2.f32 %v6241_v8  ;;  %v10797_v8 = vld [vmem:[#allocation74_spill] sm:$0xff]  ;;  %v1811_v58 = vld [vmem:[#allocation11 + $0x108] sm:$0xff] }
 0x29b   :  { %8050 = vpow2.f32 %v6242_v12  ;;  %v9077_v12 = vpack.c.bf16 %v1783_v28, %v1779_v50  ;;  %v1804_v28 = vld [vmem:[#allocation11 + $0xd0] sm:$0xff] }
 0x29c   :  { %8052 = vtanh.f32 %v1284_v31 }
 0x29d   :  { %8054 = vpow2.f32 %v6243_v36  ;;  %v1784_v36 = vld [vmem:[#allocation11 + $0x30] sm:$0xff] }
 0x29f   :  { %v8047_v30 = vpop.eup %8046 }
 0x2a0   :  { %v1061_v32 = vmul.f32 %v8047_v30, %v8045_v24  ;;  %v1778_v24 = vld [vmem:[#allocation11] sm:$0xff] }
 0x2a1   :  { %v1782_v30 = vld [vmem:[#allocation11 + $0x20] sm:$0xff] }
 0x2a2   :  { %1062 = vst [vmem:[#allocation3] sm:$0x1] %v1061_v32  ;;  %1505 = vmatmul.mubr.f32.vlgmr.msra.gmra.mrb[8].mxu0 %v1061_v32  ;;  %1576 = vmatmul.mubr.f32.vlgmr.msra.gmra.mrb[8].mxu1 %v1061_v32  ;;  %v1780_v32 = vld [vmem:[#allocation11 + $0x10] sm:$0xff] }
 0x2a3   :  { %6730 = vmatpush1.bf16.msra.mxu0 %v10770_v43  ;;  %6762 = vmatpush1.bf16.msra.mxu1 %v10771_v44  ;;  %v1791_v44 = vld [vmem:[#allocation11 + $0x68] sm:$0xff] }
 0x2a4   :  { %v8049_v42 = vpop.eup %8048  ;;  %6732 = vmatprep.subr.bf16.mxu0 %v10772_v56  ;;  %6764 = vmatprep.subr.bf16.mxu1 %v10773_v60  ;;  %v1793_v56 = vld [vmem:[#allocation11 + $0x78] sm:$0xff] }
 0x2a5   :  { %v1294_v49 = vadd.f32 1.0, %v8049_v42  ;;  %v8051_v61 = vpop.eup %8050  ;;  %1649 = vmatprep.mubr.f32.mxu0 %v10710_v33  ;;  %1720 = vmatprep.mubr.f32.mxu1 %v10710_v33  ;;  %v1787_v42 = vld [vmem:[#allocation11 + $0x48] sm:$0xff] }
 0x2a6   :  { %v1295_v3 = vadd.f32 1.0, %v8051_v61  ;;  %v8053_v54 = vpop.eup %8052  ;;  %v9085_v61 = vpack.c.bf16 %v1782_v30, %v1778_v24  ;;  %v1814_v24 = vld [vmem:[#allocation11 + $0x120] sm:$0xff] }
 0x2a7   :  { %8056 = vrcp.f32 %v1294_v49  ;;  %6734 = vmatpush1.bf16.msra.mxu0 %v10774_v14  ;;  %6766 = vmatpush1.bf16.msra.mxu1 %v10775_v21  ;;  %v8055_v55 = vpop.eup %8054  ;;  %v1789_v49 = vld [vmem:[#allocation11 + $0x58] sm:$0xff]  ;;  %v1786_v14 = vld [vmem:[#allocation11 + $0x40] sm:$0xff] }
 0x2a8   :  { %8058 = vrcp.f32 %v1295_v3  ;;  %6736 = vmatprep.subr.bf16.mxu0 %v10776_v25  ;;  %6768 = vmatprep.subr.bf16.mxu1 %v10777_v26  ;;  %v1296_v51 = vadd.f32 1.0, %v8055_v55  ;;  %v9087_v3 = vpack.c.bf16 %v1784_v36, %v1780_v32  ;;  %v1790_v21 = vld [vmem:[#allocation11 + $0x60] sm:$0xff]  ;;  %v9091_v26 = vpack.c.bf16 %v1791_v44, %v1787_v42  ;;  %v1797_v55 = vld [vmem:[#allocation11 + $0x98] sm:$0xff]  ;;  %v1812_v32 = vld [vmem:[#allocation11 + $0x110] sm:$0xff] }
 0x2a9   :  { %v1816_v36 = vld [vmem:[#allocation11 + $0x130] sm:$0xff]  ;;  %v1819_v42 = vld [vmem:[#allocation11 + $0x148] sm:$0xff]  ;;  %v1821_v44 = vld [vmem:[#allocation11 + $0x158] sm:$0xff] }
 0x2aa   :  { %8060 = vrcp.f32 %v1296_v51  ;;  %v1800_v51 = vld [vmem:[#allocation11 + $0xb0] sm:$0xff] }
 0x2ab   :  { %6738 = vmatpush1.bf16.msra.mxu0 %v10778_v34  ;;  %6770 = vmatpush1.bf16.msra.mxu1 %v10779_v39  ;;  %v9093_v34 = vpack.c.bf16 %v1793_v56, %v1789_v49  ;;  %v1788_v39 = vld [vmem:[#allocation11 + $0x50] sm:$0xff]  ;;  %v1825_v49 = vld [vmem:[#allocation11 + $0x178] sm:$0xff] }
 0x2ac   :  { %6740 = vmatprep.subr.bf16.mxu0 %v10780_v40  ;;  %6772 = vmatprep.subr.bf16.mxu1 %v10781_v48  ;;  %v1792_v40 = vld [vmem:[#allocation11 + $0x70] sm:$0xff]  ;;  %v1795_v48 = vld [vmem:[#allocation11 + $0x88] sm:$0xff] }
 0x2af   :  { %6742 = vmatpush1.bf16.msra.mxu0 %v10782_v4  ;;  %6774 = vmatpush1.bf16.msra.mxu1 %v10783_v11  ;;  %v1801_v4 = vld [vmem:[#allocation11 + $0xb8] sm:$0xff]  ;;  %v9099_v11 = vpack.c.bf16 %v1790_v21, %v1786_v14  ;;  %v1818_v14 = vld [vmem:[#allocation11 + $0x140] sm:$0xff] }
 0x2b0   :  { %6744 = vmatprep.subr.bf16.mxu0 %v10784_v27  ;;  %6776 = vmatprep.subr.bf16.mxu1 %v10785_v35  ;;  %v1794_v27 = vld [vmem:[#allocation11 + $0x80] sm:$0xff] }
 0x2b1   :  { %v8057_v16 = vpop.eup %8056  ;;  %v1798_v35 = vld [vmem:[#allocation11 + $0xa0] sm:$0xff] }
 0x2b2   :  { %v1308_v46 = vmul.f32 %v8057_v16, %v8053_v54  ;;  %v8059_v29 = vpop.eup %8058  ;;  %v1799_v54 = vld [vmem:[#allocation11 + $0xa8] sm:$0xff]  ;;  %v9101_v16 = vpack.c.bf16 %v1792_v40, %v1788_v39  ;;  %v1822_v21 = vld [vmem:[#allocation11 + $0x160] sm:$0xff]  ;;  %v9145_v40 = vpack.c.bf16 %v1825_v49, %v1821_v44 }
 0x2b3   :  { %v1307_v2 = vmul.f32 %v8059_v29, %v1305_v37  ;;  %6746 = vmatpush1.bf16.msra.mxu0 %v10786_v22  ;;  %6778 = vmatpush1.bf16.msra.mxu1 %v10787_v38  ;;  %v9105_v37 = vpack.c.bf16 %v1799_v54, %v1795_v48  ;;  %v1796_v29 = vld [vmem:[#allocation11 + $0x90] sm:$0xff]  ;;  %v1807_v22 = vld [vmem:[#allocation11 + $0xe8] sm:$0xff]  ;;  %v1805_v38 = vld [vmem:[#allocation11 + $0xd8] sm:$0xff] }
 0x2b4   :  { %6748 = vmatprep.subr.bf16.mxu0 %v10788_v17  ;;  %6780 = vmatprep.subr.bf16.mxu1 %v10789_v41  ;;  %v8061_v31 = vpop.eup %8060  ;;  %v1809_v17 = vld [vmem:[#allocation11 + $0xf8] sm:$0xff]  ;;  %v9113_v41 = vpack.c.bf16 %v1798_v35, %v1794_v27  ;;  %v1820_v48 = vld [vmem:[#allocation11 + $0x150] sm:$0xff] }
 0x2b5   :  { %v9066_v53 = vadd.f32 %v1308_v46, %v1307_v2  ;;  %v9107_v46 = vpack.c.bf16 %v1801_v4, %v1797_v55  ;;  %v1803_v2 = vld [vmem:[#allocation11 + $0xc8] sm:$0xff]  ;;  %v9121_v50 = vpack.c.bf16 %v1809_v17, %v1805_v38  ;;  %v1824_v54 = vld [vmem:[#allocation11 + $0x170] sm:$0xff]  ;;  %v1829_v27 = vld [vmem:[#allocation11 + $0x198] sm:$0xff] }
 0x2b6   :  { %v1827_v55 = vld [vmem:[#allocation11 + $0x188] sm:$0xff]  ;;  %v1833_v35 = vld [vmem:[#allocation11 + $0x1b8] sm:$0xff] }
 0x2b7   :  { %8062 = vtanh.f32 %v9066_v53  ;;  %6750 = vmatpush1.bf16.msra.mxu0 %v10790_v0  ;;  %6782 = vmatpush1.bf16.msra.mxu1 %v10791_v10  ;;  %v9115_v0 = vpack.c.bf16 %v1800_v51, %v1796_v29  ;;  %v1802_v10 = vld [vmem:[#allocation11 + $0xc0] sm:$0xff]  ;;  %v1831_v4 = vld [vmem:[#allocation11 + $0x1a8] sm:$0xff]  ;;  %v9149_v29 = vpack.c.bf16 %v1822_v21, %v1818_v14  ;;  %v9151_v51 = vpack.c.bf16 %v1824_v54, %v1820_v48  ;;  %v2094_v48 = vld [vmem:[#allocation11 + $0x218] sm:$0xff] }
 0x2b8   :  { %6752 = vmatprep.subr.bf16.mxu0 %v10792_v9  ;;  %6784 = vmatprep.subr.bf16.mxu1 %v10793_v1  ;;  %v1806_v9 = vld [vmem:[#allocation11 + $0xe0] sm:$0xff]  ;;  %v9119_v1 = vpack.c.bf16 %v1807_v22, %v1803_v2  ;;  %v9155_v38 = vpack.c.bf16 %v1831_v4, %v1827_v55  ;;  %v9157_v17 = vpack.c.bf16 %v1833_v35, %v1829_v27  ;;  %v2092_v14 = vld [vmem:[#allocation11 + $0x208] sm:$0xff]  ;;  %v2098_v55 = vld [vmem:[#allocation11 + $0x238] sm:$0xff] }
 0x2b9   :  { %v1826_v2 = vld [vmem:[#allocation11 + $0x180] sm:$0xff]  ;;  %v2096_v21 = vld [vmem:[#allocation11 + $0x228] sm:$0xff]  ;;  %v9187_v35 = vpack.c.bf16 %v2098_v55, %v2094_v48 }
 0x2ba   :  { %v1830_v22 = vld [vmem:[#allocation11 + $0x1a0] sm:$0xff]  ;;  %v9185_v54 = vpack.c.bf16 %v2096_v21, %v2092_v14  ;;  %v2101_v14 = vld [vmem:[#allocation11 + $0x250] sm:$0xff]  ;;  %v2108_v55 = vld [vmem:[#allocation11 + $0x288] sm:$0xff] }
 0x2bb   :  { %6754 = vmatpush1.bf16.msra.mxu0 %v10794_v59  ;;  %6786 = vmatpush1.bf16.msra.mxu1 %v10795_v6  ;;  %v1815_v59 = vld [vmem:[#allocation11 + $0x128] sm:$0xff]  ;;  %v1813_v6 = vld [vmem:[#allocation11 + $0x118] sm:$0xff]  ;;  %v2091_v4 = vld [vmem:[#allocation11 + $0x200] sm:$0xff] }
 0x2bc   :  { %6756 = vmatprep.subr.bf16.mxu0 %v10796_v7  ;;  %6788 = vmatprep.subr.bf16.mxu1 %v10797_v8  ;;  %v1817_v7 = vld [vmem:[#allocation11 + $0x138] sm:$0xff]  ;;  %v9125_v8 = vpack.c.bf16 %v1806_v9, %v1802_v10  ;;  %v9131_v30 = vpack.c.bf16 %v1815_v59, %v1811_v58  ;;  %v1828_v10 = vld [vmem:[#allocation11 + $0x190] sm:$0xff]  ;;  %v2095_v27 = vld [vmem:[#allocation11 + $0x220] sm:$0xff] }
 0x2bd   :  { %v1832_v9 = vld [vmem:[#allocation11 + $0x1b0] sm:$0xff]  ;;  %v1837_v58 = vld [vmem:[#allocation11 + $0x1d8] sm:$0xff] }
 0x2be   :  { %v1841_v59 = vld [vmem:[#allocation11 + $0x1f8] sm:$0xff]  ;;  %v2105_v21 = vld [vmem:[#allocation11 + $0x270] sm:$0xff] }
 0x2bf   :  { %6758 = vmatpush1.bf16.msra.mxu0 %v10798_v19  ;;  %6790 = vmatpush1.bf16.msra.mxu1 %v10799_v20  ;;  %v9127_v19 = vpack.c.bf16 %v1808_v57, %v1804_v28  ;;  %v1810_v20 = vld [vmem:[#allocation11 + $0x100] sm:$0xff]  ;;  %v1835_v28 = vld [vmem:[#allocation11 + $0x1c8] sm:$0xff]  ;;  %v9204_v48 = vpack.c.bf16 %v2105_v21, %v2101_v14 }
 0x2c0   :  { %6792 = vmatprep.subr.bf16.mxu0 %v9077_v12  ;;  %6824 = vmatprep.subr.bf16.mxu1 %v9079_v18  ;;  %v9137_v56 = vpack.c.bf16 %v1814_v24, %v1810_v20  ;;  %v1839_v57 = vld [vmem:[#allocation11 + $0x1e8] sm:$0xff]  ;;  %v1834_v20 = vld [vmem:[#allocation11 + $0x1c0] sm:$0xff] }
 0x2c1   :  { %v8063_v43 = vpop.eup %8062  ;;  %v9167_v24 = vpack.c.bf16 %v1839_v57, %v1835_v28  ;;  %v2104_v28 = vld [vmem:[#allocation11 + $0x268] sm:$0xff]  ;;  %v2102_v57 = vld [vmem:[#allocation11 + $0x258] sm:$0xff]  ;;  %10805 = vst [vmem:[#allocation29_spill] sm:$0xff] %v9204_v48 }
 0x2c2   :  { %v1311_v60 = vmul.f32 %v8063_v43, %v8061_v31  ;;  %v9133_v31 = vpack.c.bf16 %v1817_v7, %v1813_v6  ;;  %v1823_v43 = vld [vmem:[#allocation11 + $0x168] sm:$0xff]  ;;  %v9161_v6 = vpack.c.bf16 %v1830_v22, %v1826_v2  ;;  %v9163_v7 = vpack.c.bf16 %v1832_v9, %v1828_v10  ;;  %v2093_v22 = vld [vmem:[#allocation11 + $0x210] sm:$0xff] }
 0x2c3   :  { %v9143_v39 = vpack.c.bf16 %v1823_v43, %v1819_v42  ;;  %v1836_v42 = vld [vmem:[#allocation11 + $0x1d0] sm:$0xff]  ;;  %v9189_v2 = vpack.c.bf16 %v2095_v27, %v2091_v4  ;;  %v2100_v9 = vld [vmem:[#allocation11 + $0x248] sm:$0xff]  ;;  %v2110_v27 = vld [vmem:[#allocation11 + $0x298] sm:$0xff] }
 0x2c4   :  { %v9089_v25 = vrot.slane %v1311_v60, 1  ;;  %v9139_v60 = vpack.c.bf16 %v1816_v36, %v1812_v32  ;;  %v9169_v32 = vpack.c.bf16 %v1841_v59, %v1837_v58  ;;  %v1838_v36 = vld [vmem:[#allocation11 + $0x1e0] sm:$0xff]  ;;  %v1840_v43 = vld [vmem:[#allocation11 + $0x1f0] sm:$0xff]  ;;  %v9197_v58 = vpack.c.bf16 %v2104_v28, %v2100_v9  ;;  %v2106_v59 = vld [vmem:[#allocation11 + $0x278] sm:$0xff] }
 0x2c5   :  { %v9173_v44 = vpack.c.bf16 %v1838_v36, %v1834_v20  ;;  %v9175_v49 = vpack.c.bf16 %v1840_v43, %v1836_v42  ;;  %10800 = vst [vmem:[#allocation24_spill] sm:$0xff] %v9189_v2  ;;  %v2097_v10 = vld [vmem:[#allocation11 + $0x230] sm:$0xff]  ;;  %v2099_v20 = vld [vmem:[#allocation11 + $0x240] sm:$0xff]  ;;  %v9199_v42 = vpack.c.bf16 %v2106_v59, %v2102_v57  ;;  %v2112_v4 = vld [vmem:[#allocation11 + $0x2a8] sm:$0xff] }
 0x2c6   :  { %1650 = vmatmul.mubr.f32.vlgmr.msra.gmra.mrb[8].mxu0 %v9089_v25  ;;  %1721 = vmatmul.mubr.f32.vlgmr.msra.gmra.mrb[8].mxu1 %v9089_v25  ;;  %10802 = vst [vmem:[#allocation26_spill] sm:$0xff] %v9197_v58  ;;  %v2103_v36 = vld [vmem:[#allocation11 + $0x260] sm:$0xff]  ;;  %v2116_v21 = vld [vmem:[#allocation11 + $0x2c8] sm:$0xff] }
 0x2c7   :  { %6794 = vmatpush1.bf16.msra.mxu0 %v9085_v61  ;;  %6826 = vmatpush1.bf16.msra.mxu1 %v9087_v3  ;;  %10803 = vst [vmem:[#allocation27_spill] sm:$0xff] %v9199_v42  ;;  %v9201_v43 = vpack.c.bf16 %v2103_v36, %v2099_v20  ;;  %v2107_v9 = vld [vmem:[#allocation11 + $0x280] sm:$0xff]  ;;  %v2109_v20 = vld [vmem:[#allocation11 + $0x290] sm:$0xff] }
 0x2c8   :  { %6796 = vmatprep.subr.bf16.mxu0 %v9091_v26  ;;  %6828 = vmatprep.subr.bf16.mxu1 %v9093_v34  ;;  %v2111_v28 = vld [vmem:[#allocation11 + $0x2a0] sm:$0xff]  ;;  %v2113_v36 = vld [vmem:[#allocation11 + $0x2b0] sm:$0xff] }
 0x2c9   :  { %1906 = vmatprep.mubr.f32.mxu0 %v10710_v33  ;;  %1977 = vmatprep.mubr.f32.mxu1 %v10710_v33  ;;  %10804 = vst [vmem:[#allocation28_spill] sm:$0xff] %v9201_v43  ;;  %v9213_v59 = vpack.c.bf16 %v2111_v28, %v2107_v9  ;;  %v9216_v14 = vpack.c.bf16 %v2113_v36, %v2109_v20  ;;  %v2119_v9 = vld [vmem:[#allocation11 + $0x2e0] sm:$0xff]  ;;  %v2117_v20 = vld [vmem:[#allocation11 + $0x2d0] sm:$0xff] }
 0x2ca   :  { %v2121_v36 = vld [vmem:[#allocation11 + $0x2f0] sm:$0xff] }
 0x2cb   :  { %6798 = vmatpush1.bf16.msra.mxu0 %v9099_v11  ;;  %6830 = vmatpush1.bf16.msra.mxu1 %v9101_v16  ;;  %10808 = vst [vmem:[#allocation32_spill] sm:$0xff] %v9213_v59  ;;  %10809 = vst [vmem:[#allocation33_spill] sm:$0xff] %v9216_v14 }
 0x2cc   :  { %6800 = vmatprep.subr.bf16.mxu0 %v9105_v37  ;;  %6832 = vmatprep.subr.bf16.mxu1 %v9107_v46 }
 0x2cf   :  { %6802 = vmatpush1.bf16.msra.mxu0 %v9113_v41  ;;  %6834 = vmatpush1.bf16.msra.mxu1 %v9115_v0 }
 0x2d0   :  { %6804 = vmatprep.subr.bf16.mxu0 %v9119_v1  ;;  %6836 = vmatprep.subr.bf16.mxu1 %v9121_v50 }
 0x2d3   :  { %6806 = vmatpush1.bf16.msra.mxu0 %v9125_v8  ;;  %6838 = vmatpush1.bf16.msra.mxu1 %v9127_v19 }
 0x2d4   :  { %6808 = vmatprep.subr.bf16.mxu0 %v9131_v30  ;;  %6840 = vmatprep.subr.bf16.mxu1 %v9133_v31 }
 0x2d7   :  { %6810 = vmatpush1.bf16.msra.mxu0 %v9137_v56  ;;  %6842 = vmatpush1.bf16.msra.mxu1 %v9139_v60 }
 0x2d8   :  { %6812 = vmatprep.subr.bf16.mxu0 %v9143_v39  ;;  %6844 = vmatprep.subr.bf16.mxu1 %v9145_v40 }
 0x2db   :  { %6814 = vmatpush1.bf16.msra.mxu0 %v9149_v29  ;;  %6846 = vmatpush1.bf16.msra.mxu1 %v9151_v51 }
 0x2dc   :  { %6816 = vmatprep.subr.bf16.mxu0 %v9155_v38  ;;  %6848 = vmatprep.subr.bf16.mxu1 %v9157_v17 }
 0x2df   :  { %6818 = vmatpush1.bf16.msra.mxu0 %v9161_v6  ;;  %6850 = vmatpush1.bf16.msra.mxu1 %v9163_v7 }
 0x2e0   :  { %6820 = vmatprep.subr.bf16.mxu0 %v9167_v24  ;;  %6852 = vmatprep.subr.bf16.mxu1 %v9169_v32 }
 0x2e3   :  { %6822 = vmatpush1.bf16.msra.mxu0 %v9173_v44  ;;  %6854 = vmatpush1.bf16.msra.mxu1 %v9175_v49 }
 0x2e4   :  { %6856 = vmatprep.subr.bf16.mxu0 %v9185_v54  ;;  %6888 = vmatprep.subr.bf16.mxu1 %v9187_v35 }
 0x2e6   :  { %1907 = vmatmul.mubr.f32.vlgmr.msra.gmra.mrb[10].mxu0 %v9089_v25  ;;  %1978 = vmatmul.mubr.f32.vlgmr.msra.gmra.mrb[10].mxu1 %v9089_v25  ;;  %v9192_v25 = vpack.c.bf16 %v2097_v10, %v2093_v22  ;;  %v9209_v22 = vpack.c.bf16 %v2112_v4, %v2108_v55  ;;  %v2114_v10 = vld [vmem:[#allocation11 + $0x2b8] sm:$0xff]  ;;  %v2120_v55 = vld [vmem:[#allocation11 + $0x2e8] sm:$0xff] }
 0x2e7   :  { %2219 = vmatprep.mubr.f32.mxu0 %v10710_v33  ;;  %2290 = vmatprep.mubr.f32.mxu1 %v10710_v33  ;;  %v9211_v57 = vpack.c.bf16 %v2114_v10, %v2110_v27  ;;  %v2118_v4 = vld [vmem:[#allocation11 + $0x2d8] sm:$0xff]  ;;  %v2115_v10 = vld [vmem:[#allocation11 + $0x2c0] sm:$0xff] }
 0x2e8   :  { %10801 = vst [vmem:[#allocation25_spill] sm:$0xff] %v9192_v25  ;;  %6858 = vmatpush1.bf16.msra.mxu0 %v9189_v2  ;;  %6890 = vmatpush1.bf16.msra.mxu1 %v9192_v25  ;;  %10806 = vst [vmem:[#allocation30_spill] sm:$0xff] %v9209_v22  ;;  %v2122_v27 = vld [vmem:[#allocation11 + $0x2f8] sm:$0xff] }
 0x2e9   :  { %6860 = vmatprep.subr.bf16.mxu0 %v9197_v58  ;;  %6892 = vmatprep.subr.bf16.mxu1 %v9199_v42  ;;  %10807 = vst [vmem:[#allocation31_spill] sm:$0xff] %v9211_v57  ;;  %v9223_v28 = vpack.c.bf16 %v2122_v27, %v2118_v4  ;;  %v2130_v4 = vld [vmem:[#allocation11 + $0x338] sm:$0xff]  ;;  %v2123_v27 = vld [vmem:[#allocation11 + $0x300] sm:$0xff] }
 0x2ea   :  { %v2046_v25 = vld [vmem:[#allocation9 + $0x298] sm:$0xff] }
 0x2eb   :  { %10811 = vst [vmem:[#allocation35_spill] sm:$0xff] %v9223_v28  ;;  %v2050_v2 = vld [vmem:[#allocation9 + $0x2b8] sm:$0xff] }
 0x2ec   :  { %6862 = vmatpush1.bf16.msra.mxu0 %v9201_v43  ;;  %6894 = vmatpush1.bf16.msra.mxu1 %v9204_v48  ;;  %v9221_v48 = vpack.c.bf16 %v2120_v55, %v2116_v21  ;;  %v9225_v43 = vpack.c.bf16 %v2119_v9, %v2115_v10  ;;  %v2124_v21 = vld [vmem:[#allocation11 + $0x308] sm:$0xff]  ;;  %v2127_v10 = vld [vmem:[#allocation11 + $0x320] sm:$0xff] }
 0x2ed   :  { %6864 = vmatprep.subr.bf16.mxu0 %v9209_v22  ;;  %6896 = vmatprep.subr.bf16.mxu1 %v9211_v57  ;;  %v9228_v57 = vpack.c.bf16 %v2121_v36, %v2117_v20  ;;  %v2128_v55 = vld [vmem:[#allocation11 + $0x328] sm:$0xff]  ;;  %v9237_v22 = vpack.c.bf16 %v2127_v10, %v2123_v27  ;;  %v2125_v20 = vld [vmem:[#allocation11 + $0x310] sm:$0xff]  ;;  %v2135_v27 = vld [vmem:[#allocation11 + $0x360] sm:$0xff] }
 0x2ee   :  { %10810 = vst [vmem:[#allocation34_spill] sm:$0xff] %v9221_v48  ;;  %10812 = vst [vmem:[#allocation36_spill] sm:$0xff] %v9225_v43  ;;  %v2129_v36 = vld [vmem:[#allocation11 + $0x330] sm:$0xff] }
 0x2ef   :  { %10813 = vst [vmem:[#allocation37_spill] sm:$0xff] %v9228_v57  ;;  %10816 = vst [vmem:[#allocation40_spill] sm:$0xff] %v9237_v22 }
 0x2f0   :  { %6866 = vmatpush1.bf16.msra.mxu0 %v9213_v59  ;;  %6898 = vmatpush1.bf16.msra.mxu1 %v9216_v14  ;;  %v2126_v14 = vld [vmem:[#allocation11 + $0x318] sm:$0xff]  ;;  %v9233_v59 = vpack.c.bf16 %v2128_v55, %v2124_v21  ;;  %v2136_v21 = vld [vmem:[#allocation11 + $0x368] sm:$0xff] }
 0x2f1   :  { %6868 = vmatprep.subr.bf16.mxu0 %v9221_v48  ;;  %6900 = vmatprep.subr.bf16.mxu1 %v9223_v28  ;;  %v9235_v9 = vpack.c.bf16 %v2130_v4, %v2126_v14  ;;  %v9240_v28 = vpack.c.bf16 %v2129_v36, %v2125_v20  ;;  %v2134_v55 = vld [vmem:[#allocation11 + $0x358] sm:$0xff]  ;;  %v2131_v4 = vld [vmem:[#allocation11 + $0x340] sm:$0xff]  ;;  %v2133_v20 = vld [vmem:[#allocation11 + $0x350] sm:$0xff] }
 0x2f2   :  { %10814 = vst [vmem:[#allocation38_spill] sm:$0xff] %v9233_v59  ;;  %v2138_v14 = vld [vmem:[#allocation11 + $0x378] sm:$0xff]  ;;  %v9249_v48 = vpack.c.bf16 %v2135_v27, %v2131_v4  ;;  %v2137_v36 = vld [vmem:[#allocation11 + $0x370] sm:$0xff]  ;;  %v2143_v4 = vld [vmem:[#allocation11 + $0x3a0] sm:$0xff] }
 0x2f3   :  { %10815 = vst [vmem:[#allocation39_spill] sm:$0xff] %v9235_v9  ;;  %10817 = vst [vmem:[#allocation41_spill] sm:$0xff] %v9240_v28  ;;  %v9247_v10 = vpack.c.bf16 %v2138_v14, %v2134_v55  ;;  %v2146_v55 = vld [vmem:[#allocation11 + $0x3b8] sm:$0xff]  ;;  %v2139_v14 = vld [vmem:[#allocation11 + $0x380] sm:$0xff] }
 0x2f4   :  { %6870 = vmatpush1.bf16.msra.mxu0 %v9225_v43  ;;  %6902 = vmatpush1.bf16.msra.mxu1 %v9228_v57  ;;  %v2132_v57 = vld [vmem:[#allocation11 + $0x348] sm:$0xff]  ;;  %10820 = vst [vmem:[#allocation44_spill] sm:$0xff] %v9249_v48 }
 0x2f5   :  { %6872 = vmatprep.subr.bf16.mxu0 %v9233_v59  ;;  %6904 = vmatprep.subr.bf16.mxu1 %v9235_v9  ;;  %v9245_v43 = vpack.c.bf16 %v2136_v21, %v2132_v57  ;;  %10819 = vst [vmem:[#allocation43_spill] sm:$0xff] %v9247_v10  ;;  %v9252_v9 = vpack.c.bf16 %v2137_v36, %v2133_v20  ;;  %v2144_v57 = vld [vmem:[#allocation11 + $0x3a8] sm:$0xff]  ;;  %v2142_v21 = vld [vmem:[#allocation11 + $0x398] sm:$0xff]  ;;  %v2141_v20 = vld [vmem:[#allocation11 + $0x390] sm:$0xff] }
 0x2f6   :  { %v9259_v27 = vpack.c.bf16 %v2146_v55, %v2142_v21  ;;  %v9261_v59 = vpack.c.bf16 %v2143_v4, %v2139_v14  ;;  %v2145_v36 = vld [vmem:[#allocation11 + $0x3b0] sm:$0xff]  ;;  %v2154_v21 = vld [vmem:[#allocation11 + $0x3f8] sm:$0xff]  ;;  %v2147_v55 = vld [vmem:[#allocation11 + $0x3c0] sm:$0xff] }
 0x2f7   :  { %10818 = vst [vmem:[#allocation42_spill] sm:$0xff] %v9245_v43  ;;  %10821 = vst [vmem:[#allocation45_spill] sm:$0xff] %v9252_v9  ;;  %v2151_v14 = vld [vmem:[#allocation11 + $0x3e0] sm:$0xff] }
 0x2f8   :  { %6874 = vmatpush1.bf16.msra.mxu0 %v9237_v22  ;;  %6906 = vmatpush1.bf16.msra.mxu1 %v9240_v28  ;;  %v2140_v28 = vld [vmem:[#allocation11 + $0x388] sm:$0xff]  ;;  %10823 = vst [vmem:[#allocation47_spill] sm:$0xff] %v9259_v27  ;;  %10824 = vst [vmem:[#allocation48_spill] sm:$0xff] %v9261_v59 }
 0x2f9   :  { %6876 = vmatprep.subr.bf16.mxu0 %v9245_v43  ;;  %6908 = vmatprep.subr.bf16.mxu1 %v9247_v10  ;;  %v9257_v22 = vpack.c.bf16 %v2144_v57, %v2140_v28  ;;  %v9264_v10 = vpack.c.bf16 %v2145_v36, %v2141_v20  ;;  %v2152_v28 = vld [vmem:[#allocation11 + $0x3e8] sm:$0xff]  ;;  %v2150_v57 = vld [vmem:[#allocation11 + $0x3d8] sm:$0xff]  ;;  %v9273_v43 = vpack.c.bf16 %v2151_v14, %v2147_v55  ;;  %v2149_v20 = vld [vmem:[#allocation11 + $0x3d0] sm:$0xff] }
 0x2fa   :  { %v9271_v4 = vpack.c.bf16 %v2154_v21, %v2150_v57  ;;  %v2153_v36 = vld [vmem:[#allocation11 + $0x3f0] sm:$0xff]  ;;  %v2034_v57 = vld [vmem:[#allocation9 + $0x238] sm:$0xff] }
 0x2fb   :  { %10822 = vst [vmem:[#allocation46_spill] sm:$0xff] %v9257_v22  ;;  %10825 = vst [vmem:[#allocation49_spill] sm:$0xff] %v9264_v10  ;;  %v6244_v55 = vld [vmem:[%s10448_s4 + $0x4] sm:$0xf] }
 0x2fc   :  { %6878 = vmatpush1.bf16.msra.mxu0 %v9249_v48  ;;  %6910 = vmatpush1.bf16.msra.mxu1 %v9252_v9  ;;  %v2148_v9 = vld [vmem:[#allocation11 + $0x3c8] sm:$0xff]  ;;  %10827 = vst [vmem:[#allocation51_spill] sm:$0xff] %v9271_v4  ;;  %10828 = vst [vmem:[#allocation52_spill] sm:$0xff] %v9273_v43  ;;  %v1732_v14 = vrot.slane %v6244_v55, %v10767_v13 }
 0x2fd   :  { %6880 = vmatprep.subr.bf16.mxu0 %v9257_v22  ;;  %6912 = vmatprep.subr.bf16.mxu1 %v9259_v27  ;;  %v9269_v48 = vpack.c.bf16 %v2152_v28, %v2148_v9  ;;  %v9276_v27 = vpack.c.bf16 %v2153_v36, %v2149_v20  ;;  %v2028_v9 = vld [vmem:[#allocation9 + $0x208] sm:$0xff]  ;;  %v1736_v20 = vrot.slane %v6244_v55, %v10768_v15 }
 0x2fe   :  { %v2032_v28 = vld [vmem:[#allocation9 + $0x228] sm:$0xff] }
 0x2ff   :  { %10826 = vst [vmem:[#allocation50_spill] sm:$0xff] %v9269_v48  ;;  %10829 = vst [vmem:[#allocation53_spill] sm:$0xff] %v9276_v27 }
 0x300   :  { %6882 = vmatpush1.bf16.msra.mxu0 %v9261_v59  ;;  %6914 = vmatpush1.bf16.msra.mxu1 %v9264_v10  ;;  %v2030_v10 = vld [vmem:[#allocation9 + $0x218] sm:$0xff]  ;;  %v9281_v59 = vpack.c.bf16 %v2032_v28, %v2028_v9 }
 0x301   :  { %6884 = vmatprep.subr.bf16.mxu0 %v9269_v48  ;;  %6916 = vmatprep.subr.bf16.mxu1 %v9271_v4  ;;  %v9283_v21 = vpack.c.bf16 %v2034_v57, %v2030_v10 }
 0x302   :  { %10830 = vst [vmem:[#allocation54_spill] sm:$0xff] %v9281_v59 }
 0x303   :  { %10831 = vst [vmem:[#allocation55_spill] sm:$0xff] %v9283_v21 }
 0x304   :  { %6886 = vmatpush1.bf16.msra.mxu0 %v9273_v43  ;;  %6918 = vmatpush1.bf16.msra.mxu1 %v9276_v27 }
 0x305   :  { %6920 = vmatprep.subr.bf16.mxu0 %v9281_v59  ;;  %6952 = vmatprep.subr.bf16.mxu1 %v9283_v21  ;;  %v1740_v59 = vrot.slane %v6244_v55, %v8934_v62  ;;  %v1744_v21 = vrot.slane %v6244_v55, %v8943_v47  ;;  %v2048_v62 = vld [vmem:[#allocation9 + $0x2a8] sm:$0xff] }
 0x399   :  { %v1651_v36 = vpop.f32.mrb[8].mxu0  ;;  %v1722_v27 = vpop.f32.mrb[8].mxu1 }
 0x39a   :  { %v1749_v43 = vadd.f32 %v1732_v14, %v1651_v36  ;;  %v1653_v9 = vpop.f32.mrb[9].mxu0  ;;  %v1724_v28 = vpop.f32.mrb[9].mxu1  ;;  %v1751_v48 = vadd.f32 %v1740_v59, %v1722_v27 }
 0x39b   :  { %v1750_v4 = vadd.f32 %v1736_v20, %v1653_v9  ;;  %v1752_v22 = vadd.f32 %v1744_v21, %v1724_v28 }
 0x39c   :  { %v6245_v10 = vmul.f32 -1.442695, %v1749_v43  ;;  %v6247_v42 = vmul.f32 -1.442695, %v1751_v48 }
 0x39d   :  { %v6246_v57 = vmul.f32 -1.442695, %v1750_v4 }
 0x39e   :  { %8064 = vpow2.f32 %v6245_v10 }
 0x39f   :  { %8066 = vpow2.f32 %v6246_v57 }
 0x3a0   :  { %8068 = vtanh.f32 %v1752_v22 }
 0x3a1   :  { %8070 = vpow2.f32 %v6247_v42 }
 0x3a8   :  { %v8065_v13 = vpop.eup %8064 }
 0x3a9   :  { %v1762_v58 = vadd.f32 1.0, %v8065_v13  ;;  %v8067_v15 = vpop.eup %8066 }
 0x3aa   :  { %v1763_v14 = vadd.f32 1.0, %v8067_v15  ;;  %v8069_v20 = vpop.eup %8068 }
 0x3ab   :  { %8072 = vrcp.f32 %v1762_v58  ;;  %v8071_v43 = vpop.eup %8070 }
 0x3ac   :  { %8074 = vrcp.f32 %v1763_v14  ;;  %v1764_v10 = vadd.f32 1.0, %v8071_v43 }
 0x3ae   :  { %8076 = vrcp.f32 %v1764_v10 }
 0x3b5   :  { %v8073_v4 = vpop.eup %8072 }
 0x3b6   :  { %v1773_v36 = vmul.f32 %v8073_v4, %v8069_v20  ;;  %v8075_v9 = vpop.eup %8074  ;;  %v2031_v20 = vld [vmem:[#allocation9 + $0x220] sm:$0xff]  ;;  %v2029_v4 = vld [vmem:[#allocation9 + $0x210] sm:$0xff] }
 0x3b7   :  { %v1772_v57 = vmul.f32 %v8075_v9, %v9036_v52  ;;  %v2027_v52 = vld [vmem:[#allocation9 + $0x200] sm:$0xff]  ;;  %v2036_v9 = vld [vmem:[#allocation9 + $0x248] sm:$0xff] }
 0x3b9   :  { %v1908_v55 = vpop.f32.mrb[10].mxu0  ;;  %v1979_v59 = vpop.f32.mrb[10].mxu1  ;;  %v9295_v27 = vadd.f32 %v1773_v36, %v1772_v57  ;;  %v2033_v36 = vld [vmem:[#allocation9 + $0x230] sm:$0xff]  ;;  %v2040_v57 = vld [vmem:[#allocation9 + $0x268] sm:$0xff] }
 0x3ba   :  { %v1988_v48 = vrot.slane %v1908_v55, 6  ;;  %v1910_v13 = vpop.f32.mrb[11].mxu0  ;;  %v1981_v22 = vpop.f32.mrb[11].mxu1  ;;  %v1990_v14 = vrot.slane %v1979_v59, 6  ;;  %v2038_v55 = vld [vmem:[#allocation9 + $0x258] sm:$0xff]  ;;  %v2039_v59 = vld [vmem:[#allocation9 + $0x260] sm:$0xff] }
 0x3bb   :  { %10832 = vst [vmem:[#allocation56_spill] sm:$0xff] %v9295_v27  ;;  %v1989_v42 = vrot.slane %v1910_v13, 6  ;;  %8078 = vtanh.f32 %v9295_v27  ;;  %v1991_v43 = vrot.slane %v1981_v22, 6  ;;  %v2042_v13 = vld [vmem:[#allocation9 + $0x278] sm:$0xff]  ;;  %v8077_v27 = vpop.eup %8076  ;;  %v9306_v22 = vpack.c.bf16 %v2040_v57, %v2036_v9  ;;  %v2045_v57 = vld [vmem:[#allocation9 + $0x290] sm:$0xff] }
 0x3bc   :  { %v1996_v15 = vadd.f32 %v1988_v48, %v10769_v63  ;;  %v1998_v10 = vadd.f32 %v1990_v14, %v8945_v45  ;;  %v9301_v63 = vpack.c.bf16 %v2031_v20, %v2027_v52  ;;  %v2041_v14 = vld [vmem:[#allocation9 + $0x270] sm:$0xff]  ;;  %v2044_v45 = vld [vmem:[#allocation9 + $0x288] sm:$0xff] }
 0x3bd   :  { %v1997_v58 = vadd.f32 %v1989_v42, %v8938_v5  ;;  %v9303_v42 = vpack.c.bf16 %v2033_v36, %v2029_v4  ;;  %10834 = vst [vmem:[#allocation58_spill] sm:$0xff] %v9306_v22  ;;  %v2037_v5 = vld [vmem:[#allocation9 + $0x250] sm:$0xff]  ;;  %v2047_v4 = vld [vmem:[#allocation9 + $0x2a0] sm:$0xff]  ;;  %v9318_v9 = vpack.c.bf16 %v2048_v62, %v2044_v45 }
 0x3be   :  { %v6248_v21 = vmul.f32 -1.442695, %v1996_v15  ;;  %v2035_v15 = vld [vmem:[#allocation9 + $0x240] sm:$0xff]  ;;  %v6250_v47 = vmul.f32 -1.442695, %v1998_v10  ;;  %v9314_v20 = vpack.c.bf16 %v2041_v14, %v2037_v5  ;;  %v9320_v10 = vpack.c.bf16 %v2050_v2, %v2046_v25  ;;  %v2054_v5 = vld [vmem:[#allocation9 + $0x2d8] sm:$0xff] }
 0x3bf   :  { %v6249_v28 = vmul.f32 -1.442695, %v1997_v58  ;;  %10833 = vst [vmem:[#allocation57_spill] sm:$0xff] %v9303_v42  ;;  %v1999_v58 = vadd.f32 %v1991_v43, %v8949_v23  ;;  %v2043_v43 = vld [vmem:[#allocation9 + $0x280] sm:$0xff]  ;;  %10838 = vst [vmem:[#allocation62_spill] sm:$0xff] %v9318_v9  ;;  %v2053_v14 = vld [vmem:[#allocation9 + $0x2d0] sm:$0xff] }
 0x3c0   :  { %8080 = vpow2.f32 %v6248_v21  ;;  %10837 = vst [vmem:[#allocation61_spill] sm:$0xff] %v9314_v20  ;;  %10839 = vst [vmem:[#allocation63_spill] sm:$0xff] %v9320_v10  ;;  %v9326_v45 = vpack.c.bf16 %v2047_v4, %v2043_v43  ;;  %v2051_v2 = vld [vmem:[#allocation9 + $0x2c0] sm:$0xff]  ;;  %v2066_v43 = vld [vmem:[#allocation9 + $0x338] sm:$0xff] }
 0x3c1   :  { %8082 = vpow2.f32 %v6249_v28  ;;  %v9308_v28 = vpack.c.bf16 %v2042_v13, %v2038_v55  ;;  %v2049_v55 = vld [vmem:[#allocation9 + $0x2b0] sm:$0xff]  ;;  %v2052_v13 = vld [vmem:[#allocation9 + $0x2c8] sm:$0xff]  ;;  %v2055_v25 = vld [vmem:[#allocation9 + $0x2e0] sm:$0xff] }
 0x3c2   :  { %8084 = vtanh.f32 %v1999_v58  ;;  %10840 = vst [vmem:[#allocation64_spill] sm:$0xff] %v9326_v45  ;;  %v9328_v62 = vpack.c.bf16 %v2049_v55, %v2045_v57  ;;  %v9338_v4 = vpack.c.bf16 %v2055_v25, %v2051_v2  ;;  %v2059_v55 = vld [vmem:[#allocation9 + $0x300] sm:$0xff] }
 0x3c3   :  { %10835 = vst [vmem:[#allocation59_spill] sm:$0xff] %v9308_v28  ;;  %8086 = vpow2.f32 %v6250_v47 }
 0x3c4   :  { %10841 = vst [vmem:[#allocation65_spill] sm:$0xff] %v9328_v62  ;;  %10844 = vst [vmem:[#allocation68_spill] sm:$0xff] %v9338_v4 }
 0x3c5   :  { %v8079_v48 = vpop.eup %8078 }
 0x3c6   :  { %v1776_v21 = vmul.f32 %v8079_v48, %v8077_v27  ;;  %v9312_v27 = vpack.c.bf16 %v2039_v59, %v2035_v15  ;;  %v2056_v15 = vld [vmem:[#allocation9 + $0x2e8] sm:$0xff]  ;;  %v2058_v59 = vld [vmem:[#allocation9 + $0x2f8] sm:$0xff] }
 0x3c7   :  { %v9332_v47 = vpack.c.bf16 %v2056_v15, %v2052_v13 }
 0x3c8   :  { %1777 = vst [vmem:[#allocation3 + $0x1] sm:$0x1] %v1776_v21  ;;  %2220 = vmatmul.mubr.f32.vlgmr.msra.gmra.mrb[12].mxu0 %v1776_v21  ;;  %2291 = vmatmul.mubr.f32.vlgmr.msra.gmra.mrb[12].mxu1 %v1776_v21  ;;  %10836 = vst [vmem:[#allocation60_spill] sm:$0xff] %v9312_v27  ;;  %v9334_v21 = vpack.c.bf16 %v2058_v59, %v2054_v5  ;;  %v2061_v5 = vld [vmem:[#allocation9 + $0x310] sm:$0xff] }
 0x3c9   :  { %6922 = vmatpush1.bf16.msra.mxu0 %v9301_v63  ;;  %6954 = vmatpush1.bf16.msra.mxu1 %v9303_v42  ;;  %10842 = vst [vmem:[#allocation66_spill] sm:$0xff] %v9332_v47  ;;  %v2065_v59 = vld [vmem:[#allocation9 + $0x330] sm:$0xff] }
 0x3ca   :  { %v8081_v52 = vpop.eup %8080  ;;  %6924 = vmatprep.subr.bf16.mxu0 %v9306_v22  ;;  %6956 = vmatprep.subr.bf16.mxu1 %v9308_v28  ;;  %10843 = vst [vmem:[#allocation67_spill] sm:$0xff] %v9334_v21 }
 0x3cb   :  { %v2009_v36 = vadd.f32 1.0, %v8081_v52  ;;  %v8083_v48 = vpop.eup %8082  ;;  %2364 = vmatprep.mubr.f32.mxu0 %v10710_v33  ;;  %2435 = vmatprep.mubr.f32.mxu1 %v10710_v33  ;;  %v2057_v52 = vld [vmem:[#allocation9 + $0x2f0] sm:$0xff] }
 0x3cc   :  { %v2010_v58 = vadd.f32 1.0, %v8083_v48  ;;  %v2064_v48 = vld [vmem:[#allocation9 + $0x328] sm:$0xff]  ;;  %v9340_v57 = vpack.c.bf16 %v2057_v52, %v2053_v14  ;;  %v8085_v2 = vpop.eup %8084  ;;  %v9352_v52 = vpack.c.bf16 %v2065_v59, %v2061_v5  ;;  %v2078_v5 = vld [vmem:[#allocation9 + $0x398] sm:$0xff] }
 0x3cd   :  { %8088 = vrcp.f32 %v2009_v36  ;;  %6926 = vmatpush1.bf16.msra.mxu0 %v9312_v27  ;;  %6958 = vmatpush1.bf16.msra.mxu1 %v9314_v20  ;;  %v2060_v36 = vld [vmem:[#allocation9 + $0x308] sm:$0xff]  ;;  %v2062_v20 = vld [vmem:[#allocation9 + $0x318] sm:$0xff]  ;;  %v8087_v25 = vpop.eup %8086  ;;  %v2073_v27 = vld [vmem:[#allocation9 + $0x370] sm:$0xff] }
 0x3ce   :  { %8090 = vrcp.f32 %v2010_v58  ;;  %6928 = vmatprep.subr.bf16.mxu0 %v9318_v9  ;;  %6960 = vmatprep.subr.bf16.mxu1 %v9320_v10  ;;  %10845 = vst [vmem:[#allocation69_spill] sm:$0xff] %v9340_v57  ;;  %v2063_v58 = vld [vmem:[#allocation9 + $0x320] sm:$0xff]  ;;  %v9344_v13 = vpack.c.bf16 %v2064_v48, %v2060_v36  ;;  %v9346_v15 = vpack.c.bf16 %v2066_v43, %v2062_v20  ;;  %v2068_v10 = vld [vmem:[#allocation9 + $0x348] sm:$0xff]  ;;  %v2070_v9 = vld [vmem:[#allocation9 + $0x358] sm:$0xff]  ;;  %v2011_v22 = vadd.f32 1.0, %v8087_v25 }
 0x3cf   :  { %v9350_v14 = vpack.c.bf16 %v2063_v58, %v2059_v55  ;;  %10846 = vst [vmem:[#allocation70_spill] sm:$0xff] %v9352_v52  ;;  %v2067_v36 = vld [vmem:[#allocation9 + $0x340] sm:$0xff]  ;;  %v2080_v58 = vld [vmem:[#allocation9 + $0x3a8] sm:$0xff]  ;;  %v2082_v59 = vld [vmem:[#allocation9 + $0x3b8] sm:$0xff] }
 0x3d0   :  { %v2071_v48 = vld [vmem:[#allocation9 + $0x360] sm:$0xff]  ;;  %v2077_v25 = vld [vmem:[#allocation9 + $0x390] sm:$0xff]  ;;  %8092 = vrcp.f32 %v2011_v22 }
 0x3d1   :  { %6930 = vmatpush1.bf16.msra.mxu0 %v9326_v45  ;;  %6962 = vmatpush1.bf16.msra.mxu1 %v9328_v62  ;;  %v2072_v45 = vld [vmem:[#allocation9 + $0x368] sm:$0xff]  ;;  %v2074_v62 = vld [vmem:[#allocation9 + $0x378] sm:$0xff]  ;;  %v2087_v22 = vld [vmem:[#allocation9 + $0x3e0] sm:$0xff] }
 0x3d2   :  { %6932 = vmatprep.subr.bf16.mxu0 %v9332_v47  ;;  %6964 = vmatprep.subr.bf16.mxu1 %v9334_v21  ;;  %v9356_v43 = vpack.c.bf16 %v2072_v45, %v2068_v10  ;;  %v9358_v21 = vpack.c.bf16 %v2074_v62, %v2070_v9  ;;  %v2069_v47 = vld [vmem:[#allocation9 + $0x350] sm:$0xff]  ;;  %v9363_v10 = vpack.c.bf16 %v2071_v48, %v2067_v36  ;;  %v2075_v45 = vld [vmem:[#allocation9 + $0x380] sm:$0xff]  ;;  %v2086_v36 = vld [vmem:[#allocation9 + $0x3d8] sm:$0xff] }
 0x3d3   :  { %v9365_v9 = vpack.c.bf16 %v2073_v27, %v2069_v47  ;;  %v2079_v62 = vld [vmem:[#allocation9 + $0x3a0] sm:$0xff]  ;;  %v2090_v48 = vld [vmem:[#allocation9 + $0x3f8] sm:$0xff] }
 0x3d4   :  { %v9378_v27 = vpack.c.bf16 %v2079_v62, %v2075_v45 }
 0x3d5   :  { %6934 = vmatpush1.bf16.msra.mxu0 %v9338_v4  ;;  %6966 = vmatpush1.bf16.msra.mxu1 %v9340_v57  ;;  %v2076_v4 = vld [vmem:[#allocation9 + $0x388] sm:$0xff]  ;;  %v2020_v57 = vrot.slane %v9066_v53, 7 }
 0x3d6   :  { %6936 = vmatprep.subr.bf16.mxu0 %v9344_v13  ;;  %6968 = vmatprep.subr.bf16.mxu1 %v9346_v15  ;;  %v9369_v53 = vpack.c.bf16 %v2080_v58, %v2076_v4  ;;  %v2083_v4 = vld [vmem:[#allocation9 + $0x3c0] sm:$0xff]  ;;  %v2085_v58 = vld [vmem:[#allocation9 + $0x3d0] sm:$0xff] }
 0x3d7   :  { %v8089_v20 = vpop.eup %8088 }
 0x3d8   :  { %v2023_v55 = vmul.f32 %v8089_v20, %v8085_v2  ;;  %v8091_v28 = vpop.eup %8090  ;;  %v9371_v2 = vpack.c.bf16 %v2082_v59, %v2078_v5  ;;  %v2089_v5 = vld [vmem:[#allocation9 + $0x3f0] sm:$0xff]  ;;  %v9390_v59 = vpack.c.bf16 %v2087_v22, %v2083_v4 }
 0x3d9   :  { %v2022_v42 = vmul.f32 %v8091_v28, %v2020_v57  ;;  %6938 = vmatpush1.bf16.msra.mxu0 %v9350_v14  ;;  %6970 = vmatpush1.bf16.msra.mxu1 %v9352_v52  ;;  %v2081_v28 = vld [vmem:[#allocation9 + $0x3b0] sm:$0xff]  ;;  %v2084_v57 = vld [vmem:[#allocation9 + $0x3c8] sm:$0xff]  ;;  %v9392_v45 = vpack.c.bf16 %v2089_v5, %v2085_v58 }
 0x3da   :  { %6940 = vmatprep.subr.bf16.mxu0 %v9356_v43  ;;  %6972 = vmatprep.subr.bf16.mxu1 %v9358_v21  ;;  %v2088_v52 = vld [vmem:[#allocation9 + $0x3e8] sm:$0xff]  ;;  %v9380_v47 = vpack.c.bf16 %v2081_v28, %v2077_v25 }
 0x3db   :  { %v9373_v20 = vadd.f32 %v2023_v55, %v2022_v42  ;;  %v9384_v42 = vpack.c.bf16 %v2088_v52, %v2084_v57  ;;  %v9386_v55 = vpack.c.bf16 %v2090_v48, %v2086_v36  ;;  %v8093_v52 = vpop.eup %8092  ;;  %v10880_v36 = vld [vmem:[#allocation78_spill] sm:$0xff] }
 0x3dd   :  { %8094 = vtanh.f32 %v9373_v20  ;;  %6942 = vmatpush1.bf16.msra.mxu0 %v9363_v10  ;;  %6974 = vmatpush1.bf16.msra.mxu1 %v9365_v9 }
 0x3de   :  { %6944 = vmatprep.subr.bf16.mxu0 %v9369_v53  ;;  %6976 = vmatprep.subr.bf16.mxu1 %v9371_v2 }
 0x3e1   :  { %6946 = vmatpush1.bf16.msra.mxu0 %v9378_v27  ;;  %6978 = vmatpush1.bf16.msra.mxu1 %v9380_v47 }
 0x3e2   :  { %6948 = vmatprep.subr.bf16.mxu0 %v9384_v42  ;;  %6980 = vmatprep.subr.bf16.mxu1 %v9386_v55 }
 0x3e5   :  { %6950 = vmatpush1.bf16.msra.mxu0 %v9390_v59  ;;  %6982 = vmatpush1.bf16.msra.mxu1 %v9392_v45 }
 0x3e6   :  { %6984 = vmatprep.subr.bf16.mxu0 %v9077_v12  ;;  %7016 = vmatprep.subr.bf16.mxu1 %v9079_v18  ;;  %v10847_v12 = vld [vmem:[#allocation24_spill] sm:$0xff]  ;;  %v10848_v18 = vld [vmem:[#allocation25_spill] sm:$0xff] }
 0x3e7   :  { %v8095_v62 = vpop.eup %8094 }
 0x3e8   :  { %v2026_v25 = vmul.f32 %v8095_v62, %v8093_v52 }
 0x3ea   :  { %v2298_v28 = vrot.slane %v2026_v25, 2 }
 0x3ec   :  { %2365 = vmatmul.mubr.f32.vlgmr.msra.gmra.mrb[12].mxu0 %v2298_v28  ;;  %2436 = vmatmul.mubr.f32.vlgmr.msra.gmra.mrb[12].mxu1 %v2298_v28 }
 0x3ed   :  { %6986 = vmatpush1.bf16.msra.mxu0 %v9085_v61  ;;  %7018 = vmatpush1.bf16.msra.mxu1 %v9087_v3  ;;  %v10849_v61 = vld [vmem:[#allocation26_spill] sm:$0xff]  ;;  %v10850_v3 = vld [vmem:[#allocation27_spill] sm:$0xff] }
 0x3ee   :  { %6988 = vmatprep.subr.bf16.mxu0 %v9091_v26  ;;  %7020 = vmatprep.subr.bf16.mxu1 %v9093_v34  ;;  %v10851_v26 = vld [vmem:[#allocation28_spill] sm:$0xff]  ;;  %v10852_v34 = vld [vmem:[#allocation29_spill] sm:$0xff] }
 0x3ef   :  { %2621 = vmatprep.mubr.f32.mxu0 %v10710_v33  ;;  %2692 = vmatprep.mubr.f32.mxu1 %v10710_v33 }
 0x3f1   :  { %6990 = vmatpush1.bf16.msra.mxu0 %v9099_v11  ;;  %7022 = vmatpush1.bf16.msra.mxu1 %v9101_v16  ;;  %v10853_v11 = vld [vmem:[#allocation30_spill] sm:$0xff]  ;;  %v10854_v16 = vld [vmem:[#allocation31_spill] sm:$0xff] }
 0x3f2   :  { %6992 = vmatprep.subr.bf16.mxu0 %v9105_v37  ;;  %7024 = vmatprep.subr.bf16.mxu1 %v9107_v46  ;;  %v10855_v37 = vld [vmem:[#allocation32_spill] sm:$0xff]  ;;  %v10856_v46 = vld [vmem:[#allocation33_spill] sm:$0xff] }
 0x3f5   :  { %6994 = vmatpush1.bf16.msra.mxu0 %v9113_v41  ;;  %7026 = vmatpush1.bf16.msra.mxu1 %v9115_v0  ;;  %v10857_v41 = vld [vmem:[#allocation34_spill] sm:$0xff]  ;;  %v10858_v0 = vld [vmem:[#allocation35_spill] sm:$0xff] }
 0x3f6   :  { %6996 = vmatprep.subr.bf16.mxu0 %v9119_v1  ;;  %7028 = vmatprep.subr.bf16.mxu1 %v9121_v50  ;;  %v10859_v1 = vld [vmem:[#allocation36_spill] sm:$0xff]  ;;  %v10860_v50 = vld [vmem:[#allocation37_spill] sm:$0xff] }
 0x3f9   :  { %6998 = vmatpush1.bf16.msra.mxu0 %v9125_v8  ;;  %7030 = vmatpush1.bf16.msra.mxu1 %v9127_v19  ;;  %v10861_v8 = vld [vmem:[#allocation38_spill] sm:$0xff]  ;;  %v10862_v19 = vld [vmem:[#allocation39_spill] sm:$0xff] }
 0x3fa   :  { %7000 = vmatprep.subr.bf16.mxu0 %v9131_v30  ;;  %7032 = vmatprep.subr.bf16.mxu1 %v9133_v31  ;;  %v10863_v30 = vld [vmem:[#allocation40_spill] sm:$0xff]  ;;  %v10864_v31 = vld [vmem:[#allocation41_spill] sm:$0xff] }
 0x3fd   :  { %7002 = vmatpush1.bf16.msra.mxu0 %v9137_v56  ;;  %7034 = vmatpush1.bf16.msra.mxu1 %v9139_v60  ;;  %v10865_v56 = vld [vmem:[#allocation42_spill] sm:$0xff]  ;;  %v10866_v60 = vld [vmem:[#allocation43_spill] sm:$0xff] }
 0x3fe   :  { %7004 = vmatprep.subr.bf16.mxu0 %v9143_v39  ;;  %7036 = vmatprep.subr.bf16.mxu1 %v9145_v40  ;;  %v10867_v39 = vld [vmem:[#allocation44_spill] sm:$0xff]  ;;  %v10868_v40 = vld [vmem:[#allocation45_spill] sm:$0xff] }
 0x401   :  { %7006 = vmatpush1.bf16.msra.mxu0 %v9149_v29  ;;  %7038 = vmatpush1.bf16.msra.mxu1 %v9151_v51  ;;  %v10869_v29 = vld [vmem:[#allocation46_spill] sm:$0xff]  ;;  %v10870_v51 = vld [vmem:[#allocation47_spill] sm:$0xff] }
 0x402   :  { %7008 = vmatprep.subr.bf16.mxu0 %v9155_v38  ;;  %7040 = vmatprep.subr.bf16.mxu1 %v9157_v17  ;;  %v10871_v38 = vld [vmem:[#allocation48_spill] sm:$0xff]  ;;  %v10872_v17 = vld [vmem:[#allocation49_spill] sm:$0xff] }
 0x405   :  { %7010 = vmatpush1.bf16.msra.mxu0 %v9161_v6  ;;  %7042 = vmatpush1.bf16.msra.mxu1 %v9163_v7  ;;  %v10873_v6 = vld [vmem:[#allocation50_spill] sm:$0xff]  ;;  %v10874_v7 = vld [vmem:[#allocation51_spill] sm:$0xff] }
 0x406   :  { %7012 = vmatprep.subr.bf16.mxu0 %v9167_v24  ;;  %7044 = vmatprep.subr.bf16.mxu1 %v9169_v32  ;;  %v10875_v24 = vld [vmem:[#allocation52_spill] sm:$0xff]  ;;  %v10876_v32 = vld [vmem:[#allocation53_spill] sm:$0xff] }
 0x409   :  { %7014 = vmatpush1.bf16.msra.mxu0 %v9173_v44  ;;  %7046 = vmatpush1.bf16.msra.mxu1 %v9175_v49  ;;  %v10877_v44 = vld [vmem:[#allocation54_spill] sm:$0xff]  ;;  %v10878_v49 = vld [vmem:[#allocation55_spill] sm:$0xff] }
 0x40a   :  { %7048 = vmatprep.subr.bf16.mxu0 %v9185_v54  ;;  %7080 = vmatprep.subr.bf16.mxu1 %v9187_v35  ;;  %v6251_v54 = vld [vmem:[%s10448_s4 + $0x4] sm:$0xf] }
 0x40b   :  { %v10879_v35 = vld [vmem:[#allocation77_spill] sm:$0xff]  ;;  %v2451_v48 = vrot.slane %v6251_v54, %v10880_v36 }
 0x40c   :  { %2622 = vmatmul.mubr.f32.vlgmr.msra.gmra.mrb[14].mxu0 %v2298_v28  ;;  %2693 = vmatmul.mubr.f32.vlgmr.msra.gmra.mrb[14].mxu1 %v2298_v28  ;;  %v2447_v57 = vrot.slane %v6251_v54, %v10879_v35 }
 0x40d   :  { %7050 = vmatpush1.bf16.msra.mxu0 %v10847_v12  ;;  %7082 = vmatpush1.bf16.msra.mxu1 %v10848_v18  ;;  %v10881_v12 = vld [vmem:[#allocation79_spill] sm:$0xff] }
 0x40e   :  { %7052 = vmatprep.subr.bf16.mxu0 %v10849_v61  ;;  %7084 = vmatprep.subr.bf16.mxu1 %v10850_v3  ;;  %v2455_v18 = vrot.slane %v6251_v54, %v10881_v12  ;;  %v10882_v61 = vld [vmem:[#allocation82_spill] sm:$0xff] }
 0x40f   :  { %2934 = vmatprep.mubr.f32.mxu0 %v10710_v33  ;;  %3005 = vmatprep.mubr.f32.mxu1 %v10710_v33  ;;  %v2459_v3 = vrot.slane %v6251_v54, %v10882_v61 }
 0x411   :  { %7054 = vmatpush1.bf16.msra.mxu0 %v10851_v26  ;;  %7086 = vmatpush1.bf16.msra.mxu1 %v10852_v34 }
 0x412   :  { %7056 = vmatprep.subr.bf16.mxu0 %v10853_v11  ;;  %7088 = vmatprep.subr.bf16.mxu1 %v10854_v16 }
 0x415   :  { %7058 = vmatpush1.bf16.msra.mxu0 %v10855_v37  ;;  %7090 = vmatpush1.bf16.msra.mxu1 %v10856_v46 }
 0x416   :  { %7060 = vmatprep.subr.bf16.mxu0 %v10857_v41  ;;  %7092 = vmatprep.subr.bf16.mxu1 %v10858_v0 }
 0x419   :  { %7062 = vmatpush1.bf16.msra.mxu0 %v10859_v1  ;;  %7094 = vmatpush1.bf16.msra.mxu1 %v10860_v50 }
 0x41a   :  { %7064 = vmatprep.subr.bf16.mxu0 %v10861_v8  ;;  %7096 = vmatprep.subr.bf16.mxu1 %v10862_v19 }
 0x41d   :  { %7066 = vmatpush1.bf16.msra.mxu0 %v10863_v30  ;;  %7098 = vmatpush1.bf16.msra.mxu1 %v10864_v31  ;;  %v10883_v31 = vld [vmem:[#allocation56_spill] sm:$0xff] }
 0x41e   :  { %7068 = vmatprep.subr.bf16.mxu0 %v10865_v56  ;;  %7100 = vmatprep.subr.bf16.mxu1 %v10866_v60 }
 0x421   :  { %7070 = vmatpush1.bf16.msra.mxu0 %v10867_v39  ;;  %7102 = vmatpush1.bf16.msra.mxu1 %v10868_v40 }
 0x422   :  { %7072 = vmatprep.subr.bf16.mxu0 %v10869_v29  ;;  %7104 = vmatprep.subr.bf16.mxu1 %v10870_v51 }
 0x425   :  { %7074 = vmatpush1.bf16.msra.mxu0 %v10871_v38  ;;  %7106 = vmatpush1.bf16.msra.mxu1 %v10872_v17 }
 0x426   :  { %7076 = vmatprep.subr.bf16.mxu0 %v10873_v6  ;;  %7108 = vmatprep.subr.bf16.mxu1 %v10874_v7  ;;  %v10884_v6 = vld [vmem:[#allocation80_spill] sm:$0xff] }
 0x429   :  { %7078 = vmatpush1.bf16.msra.mxu0 %v10875_v24  ;;  %7110 = vmatpush1.bf16.msra.mxu1 %v10876_v32  ;;  %v10885_v24 = vld [vmem:[#allocation81_spill] sm:$0xff] }
 0x42a   :  { %7112 = vmatprep.subr.bf16.mxu0 %v10877_v44  ;;  %7144 = vmatprep.subr.bf16.mxu1 %v10878_v49 }
 0x4bf   :  { %v2366_v4 = vpop.f32.mrb[12].mxu0  ;;  %v2437_v22 = vpop.f32.mrb[12].mxu1 }
 0x4c0   :  { %v2464_v58 = vadd.f32 %v2447_v57, %v2366_v4  ;;  %v2368_v5 = vpop.f32.mrb[13].mxu0  ;;  %v2439_v52 = vpop.f32.mrb[13].mxu1  ;;  %v2466_v26 = vadd.f32 %v2455_v18, %v2437_v22 }
 0x4c1   :  { %v2465_v62 = vadd.f32 %v2451_v48, %v2368_v5  ;;  %v2467_v34 = vadd.f32 %v2459_v3, %v2439_v52  ;;  %v10886_v48 = vld [vmem:[#allocation83_spill] sm:$0xff]  ;;  %v10888_v3 = vld [vmem:[#allocation58_spill] sm:$0xff] }
 0x4c2   :  { %v6252_v25 = vmul.f32 -1.442695, %v2464_v58  ;;  %v6254_v11 = vmul.f32 -1.442695, %v2466_v26  ;;  %v10889_v26 = vld [vmem:[#allocation59_spill] sm:$0xff] }
 0x4c3   :  { %v6253_v28 = vmul.f32 -1.442695, %v2465_v62 }
 0x4c4   :  { %8096 = vpow2.f32 %v6252_v25 }
 0x4c5   :  { %8098 = vpow2.f32 %v6253_v28  ;;  %v10887_v28 = vld [vmem:[#allocation57_spill] sm:$0xff] }
 0x4c6   :  { %8100 = vtanh.f32 %v2467_v34 }
 0x4c7   :  { %8102 = vpow2.f32 %v6254_v11 }
 0x4ce   :  { %v8097_v16 = vpop.eup %8096 }
 0x4cf   :  { %v2477_v37 = vadd.f32 1.0, %v8097_v16  ;;  %v8099_v46 = vpop.eup %8098  ;;  %v10890_v16 = vld [vmem:[#allocation60_spill] sm:$0xff] }
 0x4d0   :  { %v2478_v41 = vadd.f32 1.0, %v8099_v46  ;;  %v8101_v0 = vpop.eup %8100  ;;  %v10893_v46 = vld [vmem:[#allocation63_spill] sm:$0xff] }
 0x4d1   :  { %8104 = vrcp.f32 %v2477_v37  ;;  %v8103_v1 = vpop.eup %8102  ;;  %v10891_v37 = vld [vmem:[#allocation61_spill] sm:$0xff] }
 0x4d2   :  { %8106 = vrcp.f32 %v2478_v41  ;;  %v2479_v30 = vadd.f32 1.0, %v8103_v1  ;;  %v10894_v41 = vld [vmem:[#allocation64_spill] sm:$0xff]  ;;  %v10896_v1 = vld [vmem:[#allocation66_spill] sm:$0xff] }
 0x4d4   :  { %8108 = vrcp.f32 %v2479_v30  ;;  %v10898_v30 = vld [vmem:[#allocation68_spill] sm:$0xff] }
 0x4db   :  { %v8105_v50 = vpop.eup %8104 }
 0x4dc   :  { %v2488_v8 = vmul.f32 %v8105_v50, %v8101_v0  ;;  %v8107_v19 = vpop.eup %8106  ;;  %v10895_v0 = vld [vmem:[#allocation65_spill] sm:$0xff]  ;;  %v10897_v50 = vld [vmem:[#allocation67_spill] sm:$0xff] }
 0x4dd   :  { %v2487_v56 = vmul.f32 %v8107_v19, %v10883_v31  ;;  %v10899_v31 = vld [vmem:[#allocation69_spill] sm:$0xff] }
 0x4de   :  { %v8109_v22 = vpop.eup %8108 }
 0x4df   :  { %v2623_v60 = vpop.f32.mrb[14].mxu0  ;;  %v2694_v39 = vpop.f32.mrb[14].mxu1  ;;  %v9476_v40 = vadd.f32 %v2488_v8, %v2487_v56 }
 0x4e0   :  { %v2703_v29 = vrot.slane %v2623_v60, 5  ;;  %v2625_v51 = vpop.f32.mrb[15].mxu0  ;;  %v2696_v38 = vpop.f32.mrb[15].mxu1  ;;  %v2705_v54 = vrot.slane %v2694_v39, 5  ;;  %v2735_v60 = vrot.slane %v9373_v20, 7  ;;  %v3215_v20 = vld [vmem:[#allocation11 + $0x38] sm:$0xff] }
 0x4e1   :  { %v2704_v17 = vrot.slane %v2625_v51, 5  ;;  %8110 = vtanh.f32 %v9476_v40  ;;  %v2706_v57 = vrot.slane %v2696_v38, 5 }
 0x4e2   :  { %v2711_v7 = vadd.f32 %v2703_v29, %v10884_v6  ;;  %v2713_v4 = vadd.f32 %v2705_v54, %v10886_v48 }
 0x4e3   :  { %v2712_v32 = vadd.f32 %v2704_v17, %v10885_v24  ;;  %v2714_v5 = vadd.f32 %v2706_v57, %v8949_v23  ;;  %v10900_v17 = vld [vmem:[#allocation70_spill] sm:$0xff] }
 0x4e4   :  { %v6255_v44 = vmul.f32 -1.442695, %v2711_v7  ;;  %v6257_v62 = vmul.f32 -1.442695, %v2713_v4  ;;  %v3220_v57 = vld [vmem:[#allocation11 + $0x60] sm:$0xff] }
 0x4e5   :  { %v6256_v49 = vmul.f32 -1.442695, %v2712_v32  ;;  %v3219_v32 = vld [vmem:[#allocation11 + $0x58] sm:$0xff] }
 0x4e6   :  { %8112 = vpow2.f32 %v6255_v44  ;;  %v3223_v44 = vld [vmem:[#allocation11 + $0x78] sm:$0xff] }
 0x4e7   :  { %8114 = vpow2.f32 %v6256_v49 }
 0x4e8   :  { %8116 = vtanh.f32 %v2714_v5  ;;  %v3218_v5 = vld [vmem:[#allocation11 + $0x50] sm:$0xff] }
 0x4e9   :  { %8118 = vpow2.f32 %v6257_v62  ;;  %v3225_v62 = vld [vmem:[#allocation11 + $0x88] sm:$0xff] }
 0x4eb   :  { %v8111_v58 = vpop.eup %8110 }
 0x4ec   :  { %v2491_v52 = vmul.f32 %v8111_v58, %v8109_v22  ;;  %v9533_v58 = vpack.c.bf16 %v3223_v44, %v3219_v32  ;;  %v3255_v32 = vld [vmem:[#allocation11 + $0x178] sm:$0xff] }
 0x4ee   :  { %2492 = vst [vmem:[#allocation3 + $0x2] sm:$0x1] %v2491_v52  ;;  %2935 = vmatmul.mubr.f32.vlgmr.msra.gmra.mrb[16].mxu0 %v2491_v52  ;;  %3006 = vmatmul.mubr.f32.vlgmr.msra.gmra.mrb[16].mxu1 %v2491_v52  ;;  %v3222_v52 = vld [vmem:[#allocation11 + $0x70] sm:$0xff] }
 0x4ef   :  { %7114 = vmatpush1.bf16.msra.mxu0 %v9301_v63  ;;  %7146 = vmatpush1.bf16.msra.mxu1 %v10887_v28  ;;  %v10892_v63 = vld [vmem:[#allocation62_spill] sm:$0xff] }
 0x4f0   :  { %v8113_v25 = vpop.eup %8112  ;;  %7116 = vmatprep.subr.bf16.mxu0 %v10888_v3  ;;  %7148 = vmatprep.subr.bf16.mxu1 %v10889_v26  ;;  %v3227_v28 = vld [vmem:[#allocation11 + $0x98] sm:$0xff]  ;;  %v9541_v26 = vpack.c.bf16 %v3222_v52, %v3218_v5 }
 0x4f1   :  { %v2724_v18 = vadd.f32 1.0, %v8113_v25  ;;  %v8115_v34 = vpop.eup %8114  ;;  %3079 = vmatprep.mubr.f32.mxu0 %v10710_v33  ;;  %3150 = vmatprep.mubr.f32.mxu1 %v10710_v33  ;;  %v3229_v25 = vld [vmem:[#allocation11 + $0xa8] sm:$0xff] }
 0x4f2   :  { %v2725_v11 = vadd.f32 1.0, %v8115_v34  ;;  %v8117_v8 = vpop.eup %8116  ;;  %v3224_v34 = vld [vmem:[#allocation11 + $0x80] sm:$0xff] }
 0x4f3   :  { %8120 = vrcp.f32 %v2724_v18  ;;  %7118 = vmatpush1.bf16.msra.mxu0 %v10890_v16  ;;  %7150 = vmatpush1.bf16.msra.mxu1 %v10891_v37  ;;  %v8119_v19 = vpop.eup %8118  ;;  %v3231_v18 = vld [vmem:[#allocation11 + $0xb8] sm:$0xff]  ;;  %v9545_v16 = vpack.c.bf16 %v3229_v25, %v3225_v62  ;;  %v3250_v62 = vld [vmem:[#allocation11 + $0x150] sm:$0xff] }
 0x4f4   :  { %8122 = vrcp.f32 %v2725_v11  ;;  %7120 = vmatprep.subr.bf16.mxu0 %v10892_v63  ;;  %7152 = vmatprep.subr.bf16.mxu1 %v10893_v46  ;;  %v2726_v51 = vadd.f32 1.0, %v8119_v19  ;;  %v3228_v11 = vld [vmem:[#allocation11 + $0xa0] sm:$0xff]  ;;  %v9547_v37 = vpack.c.bf16 %v3231_v18, %v3227_v28  ;;  %v3226_v63 = vld [vmem:[#allocation11 + $0x90] sm:$0xff]  ;;  %v3257_v28 = vld [vmem:[#allocation11 + $0x188] sm:$0xff] }
 0x4f5   :  { %v3230_v46 = vld [vmem:[#allocation11 + $0xb0] sm:$0xff]  ;;  %v3261_v18 = vld [vmem:[#allocation11 + $0x1a8] sm:$0xff] }
 0x4f6   :  { %8124 = vrcp.f32 %v2726_v51  ;;  %v9555_v19 = vpack.c.bf16 %v3230_v46, %v3226_v63  ;;  %v3241_v51 = vld [vmem:[#allocation11 + $0x108] sm:$0xff]  ;;  %v3254_v25 = vld [vmem:[#allocation11 + $0x170] sm:$0xff] }
 0x4f7   :  { %7122 = vmatpush1.bf16.msra.mxu0 %v10894_v41  ;;  %7154 = vmatpush1.bf16.msra.mxu1 %v10895_v0  ;;  %v3233_v41 = vld [vmem:[#allocation11 + $0xc8] sm:$0xff]  ;;  %v9591_v46 = vpack.c.bf16 %v3254_v25, %v3250_v62  ;;  %v3524_v62 = vld [vmem:[#allocation11 + $0x218] sm:$0xff] }
 0x4f8   :  { %7124 = vmatprep.subr.bf16.mxu0 %v10896_v1  ;;  %7156 = vmatprep.subr.bf16.mxu1 %v10897_v50  ;;  %v3237_v0 = vld [vmem:[#allocation11 + $0xe8] sm:$0xff]  ;;  %v3235_v1 = vld [vmem:[#allocation11 + $0xd8] sm:$0xff] }
 0x4f9   :  { %v3239_v50 = vld [vmem:[#allocation11 + $0xf8] sm:$0xff] }
 0x4fb   :  { %7126 = vmatpush1.bf16.msra.mxu0 %v10898_v30  ;;  %7158 = vmatpush1.bf16.msra.mxu1 %v10899_v31  ;;  %v3232_v30 = vld [vmem:[#allocation11 + $0xc0] sm:$0xff] }
 0x4fc   :  { %7128 = vmatprep.subr.bf16.mxu0 %v9344_v13  ;;  %7160 = vmatprep.subr.bf16.mxu1 %v9346_v15  ;;  %v3209_v13 = vld [vmem:[#allocation11 + $0x8] sm:$0xff]  ;;  %v3236_v31 = vld [vmem:[#allocation11 + $0xe0] sm:$0xff] }
 0x4fd   :  { %v8121_v56 = vpop.eup %8120  ;;  %v3213_v15 = vld [vmem:[#allocation11 + $0x28] sm:$0xff] }
 0x4fe   :  { %v2738_v39 = vmul.f32 %v8121_v56, %v8117_v8  ;;  %v8123_v29 = vpop.eup %8122  ;;  %v9553_v8 = vpack.c.bf16 %v3228_v11, %v3224_v34  ;;  %v9559_v56 = vpack.c.bf16 %v3237_v0, %v3233_v41  ;;  %v3259_v34 = vld [vmem:[#allocation11 + $0x198] sm:$0xff]  ;;  %v3256_v41 = vld [vmem:[#allocation11 + $0x180] sm:$0xff] }
 0x4ff   :  { %v2737_v38 = vmul.f32 %v8123_v29, %v2735_v60  ;;  %7130 = vmatpush1.bf16.msra.mxu0 %v9350_v14  ;;  %7162 = vmatpush1.bf16.msra.mxu1 %v10900_v17  ;;  %v3211_v14 = vld [vmem:[#allocation11 + $0x18] sm:$0xff]  ;;  %v9561_v60 = vpack.c.bf16 %v3239_v50, %v3235_v1  ;;  %v3238_v29 = vld [vmem:[#allocation11 + $0xf0] sm:$0xff]  ;;  %v3260_v0 = vld [vmem:[#allocation11 + $0x1a0] sm:$0xff]  ;;  %v9595_v1 = vpack.c.bf16 %v3261_v18, %v3257_v28 }
 0x500   :  { %7132 = vmatprep.subr.bf16.mxu0 %v9356_v43  ;;  %7164 = vmatprep.subr.bf16.mxu1 %v9358_v21  ;;  %v9517_v21 = vpack.c.bf16 %v3213_v15, %v3209_v13  ;;  %v9519_v43 = vpack.c.bf16 %v3215_v20, %v3211_v14  ;;  %v3243_v17 = vld [vmem:[#allocation11 + $0x118] sm:$0xff]  ;;  %v9565_v15 = vpack.c.bf16 %v3236_v31, %v3232_v30  ;;  %v3240_v20 = vld [vmem:[#allocation11 + $0x100] sm:$0xff]  ;;  %v3258_v30 = vld [vmem:[#allocation11 + $0x190] sm:$0xff] }
 0x501   :  { %v9506_v7 = vadd.f32 %v2738_v39, %v2737_v38  ;;  %v3234_v39 = vld [vmem:[#allocation11 + $0xd0] sm:$0xff]  ;;  %v3245_v38 = vld [vmem:[#allocation11 + $0x128] sm:$0xff]  ;;  %v3247_v13 = vld [vmem:[#allocation11 + $0x138] sm:$0xff] }
 0x502   :  { %v9567_v14 = vpack.c.bf16 %v3238_v29, %v3234_v39  ;;  %v3263_v11 = vld [vmem:[#allocation11 + $0x1b8] sm:$0xff]  ;;  %v3262_v31 = vld [vmem:[#allocation11 + $0x1b0] sm:$0xff]  ;;  %v3265_v39 = vld [vmem:[#allocation11 + $0x1c8] sm:$0xff] }
 0x503   :  { %8126 = vtanh.f32 %v9506_v7  ;;  %7134 = vmatpush1.bf16.msra.mxu0 %v9363_v10  ;;  %7166 = vmatpush1.bf16.msra.mxu1 %v9365_v9  ;;  %v3208_v10 = vld [vmem:[#allocation11] sm:$0xff]  ;;  %v9597_v50 = vpack.c.bf16 %v3263_v11, %v3259_v34  ;;  %v3269_v29 = vld [vmem:[#allocation11 + $0x1e8] sm:$0xff]  ;;  %v3528_v28 = vld [vmem:[#allocation11 + $0x238] sm:$0xff] }
 0x504   :  { %7136 = vmatprep.subr.bf16.mxu0 %v9369_v53  ;;  %7168 = vmatprep.subr.bf16.mxu1 %v9371_v2  ;;  %v3212_v9 = vld [vmem:[#allocation11 + $0x20] sm:$0xff]  ;;  %v8125_v53 = vpop.eup %8124  ;;  %v3210_v2 = vld [vmem:[#allocation11 + $0x10] sm:$0xff]  ;;  %v9627_v11 = vpack.c.bf16 %v3528_v28, %v3524_v62  ;;  %v3538_v28 = vld [vmem:[#allocation11 + $0x288] sm:$0xff] }
 0x505   :  { %v9525_v54 = vpack.c.bf16 %v3212_v9, %v3208_v10  ;;  %v3244_v10 = vld [vmem:[#allocation11 + $0x120] sm:$0xff]  ;;  %v9571_v9 = vpack.c.bf16 %v3245_v38, %v3241_v51  ;;  %v3267_v51 = vld [vmem:[#allocation11 + $0x1d8] sm:$0xff] }
 0x506   :  { %v9577_v44 = vpack.c.bf16 %v3244_v10, %v3240_v20  ;;  %v3271_v38 = vld [vmem:[#allocation11 + $0x1f8] sm:$0xff]  ;;  %v3264_v20 = vld [vmem:[#allocation11 + $0x1c0] sm:$0xff]  ;;  %v9607_v10 = vpack.c.bf16 %v3269_v29, %v3265_v39  ;;  %v3534_v39 = vld [vmem:[#allocation11 + $0x268] sm:$0xff] }
 0x507   :  { %7138 = vmatpush1.bf16.msra.mxu0 %v9378_v27  ;;  %7170 = vmatpush1.bf16.msra.mxu1 %v9380_v47  ;;  %v3214_v27 = vld [vmem:[#allocation11 + $0x30] sm:$0xff]  ;;  %v3217_v47 = vld [vmem:[#allocation11 + $0x48] sm:$0xff]  ;;  %v3521_v18 = vld [vmem:[#allocation11 + $0x200] sm:$0xff] }
 0x508   :  { %7140 = vmatprep.subr.bf16.mxu0 %v9384_v42  ;;  %7172 = vmatprep.subr.bf16.mxu1 %v9386_v55  ;;  %v3221_v55 = vld [vmem:[#allocation11 + $0x68] sm:$0xff]  ;;  %v3525_v34 = vld [vmem:[#allocation11 + $0x220] sm:$0xff]  ;;  %v3532_v29 = vld [vmem:[#allocation11 + $0x258] sm:$0xff] }
 0x509   :  { %v9531_v22 = vpack.c.bf16 %v3221_v55, %v3217_v47  ;;  %v3249_v47 = vld [vmem:[#allocation11 + $0x148] sm:$0xff]  ;;  %v3251_v55 = vld [vmem:[#allocation11 + $0x158] sm:$0xff] }
 0x50a   :  { %v9585_v52 = vpack.c.bf16 %v3255_v32, %v3251_v55 }
 0x50b   :  { %7142 = vmatpush1.bf16.msra.mxu0 %v9390_v59  ;;  %7174 = vmatpush1.bf16.msra.mxu1 %v9392_v45  ;;  %v9527_v59 = vpack.c.bf16 %v3214_v27, %v3210_v2  ;;  %v3216_v45 = vld [vmem:[#allocation11 + $0x40] sm:$0xff]  ;;  %v3242_v2 = vld [vmem:[#allocation11 + $0x110] sm:$0xff] }
 0x50c   :  { %7176 = vmatprep.subr.bf16.mxu0 %v9517_v21  ;;  %7208 = vmatprep.subr.bf16.mxu1 %v9519_v43  ;;  %v9539_v3 = vpack.c.bf16 %v3220_v57, %v3216_v45  ;;  %v3246_v27 = vld [vmem:[#allocation11 + $0x130] sm:$0xff]  ;;  %v3248_v45 = vld [vmem:[#allocation11 + $0x140] sm:$0xff] }
 0x50d   :  { %v8127_v42 = vpop.eup %8126  ;;  %v3252_v57 = vld [vmem:[#allocation11 + $0x160] sm:$0xff] }
 0x50e   :  { %v2741_v49 = vmul.f32 %v8127_v42, %v8125_v53  ;;  %v9573_v53 = vpack.c.bf16 %v3247_v13, %v3243_v17  ;;  %v3253_v42 = vld [vmem:[#allocation11 + $0x168] sm:$0xff]  ;;  %v9589_v63 = vpack.c.bf16 %v3252_v57, %v3248_v45  ;;  %v9601_v17 = vpack.c.bf16 %v3260_v0, %v3256_v41  ;;  %v3523_v0 = vld [vmem:[#allocation11 + $0x210] sm:$0xff] }
 0x50f   :  { %v9583_v5 = vpack.c.bf16 %v3253_v42, %v3249_v47  ;;  %v9603_v13 = vpack.c.bf16 %v3262_v31, %v3258_v30  ;;  %v3266_v47 = vld [vmem:[#allocation11 + $0x1d0] sm:$0xff]  ;;  %v3522_v45 = vld [vmem:[#allocation11 + $0x208] sm:$0xff]  ;;  %v9629_v41 = vpack.c.bf16 %v3525_v34, %v3521_v18  ;;  %v3540_v34 = vld [vmem:[#allocation11 + $0x298] sm:$0xff] }
 0x510   :  { %v9529_v4 = vrot.slane %v2741_v49, 3  ;;  %v9579_v49 = vpack.c.bf16 %v3246_v27, %v3242_v2  ;;  %v9609_v2 = vpack.c.bf16 %v3271_v38, %v3267_v51  ;;  %v3268_v27 = vld [vmem:[#allocation11 + $0x1e0] sm:$0xff]  ;;  %v3270_v42 = vld [vmem:[#allocation11 + $0x1f0] sm:$0xff]  ;;  %v3526_v57 = vld [vmem:[#allocation11 + $0x228] sm:$0xff] }
 0x511   :  { %v9613_v55 = vpack.c.bf16 %v3268_v27, %v3264_v20  ;;  %v9615_v32 = vpack.c.bf16 %v3270_v42, %v3266_v47  ;;  %v9625_v25 = vpack.c.bf16 %v3526_v57, %v3522_v45  ;;  %10901 = vst [vmem:[#allocation71_spill] sm:$0xff] %v9629_v41  ;;  %v3527_v30 = vld [vmem:[#allocation11 + $0x230] sm:$0xff]  ;;  %v3530_v31 = vld [vmem:[#allocation11 + $0x248] sm:$0xff]  ;;  %v3536_v38 = vld [vmem:[#allocation11 + $0x278] sm:$0xff] }
 0x512   :  { %3080 = vmatmul.mubr.f32.vlgmr.msra.gmra.mrb[16].mxu0 %v9529_v4  ;;  %3151 = vmatmul.mubr.f32.vlgmr.msra.gmra.mrb[16].mxu1 %v9529_v4  ;;  %v9637_v51 = vpack.c.bf16 %v3534_v39, %v3530_v31  ;;  %v3529_v20 = vld [vmem:[#allocation11 + $0x240] sm:$0xff]  ;;  %v9639_v47 = vpack.c.bf16 %v3536_v38, %v3532_v29  ;;  %v3531_v45 = vld [vmem:[#allocation11 + $0x250] sm:$0xff]  ;;  %v3542_v18 = vld [vmem:[#allocation11 + $0x2a8] sm:$0xff] }
 0x513   :  { %7178 = vmatpush1.bf16.msra.mxu0 %v9525_v54  ;;  %7210 = vmatpush1.bf16.msra.mxu1 %v9527_v59  ;;  %v3533_v27 = vld [vmem:[#allocation11 + $0x260] sm:$0xff]  ;;  %v3535_v57 = vld [vmem:[#allocation11 + $0x270] sm:$0xff] }
 0x514   :  { %7180 = vmatprep.subr.bf16.mxu0 %v9531_v22  ;;  %7212 = vmatprep.subr.bf16.mxu1 %v9533_v58  ;;  %10903 = vst [vmem:[#allocation73_spill] sm:$0xff] %v9637_v51  ;;  %10904 = vst [vmem:[#allocation74_spill] sm:$0xff] %v9639_v47  ;;  %v9641_v42 = vpack.c.bf16 %v3533_v27, %v3529_v20  ;;  %v9644_v62 = vpack.c.bf16 %v3535_v57, %v3531_v45  ;;  %v3537_v31 = vld [vmem:[#allocation11 + $0x280] sm:$0xff]  ;;  %v3539_v20 = vld [vmem:[#allocation11 + $0x290] sm:$0xff] }
 0x515   :  { %3336 = vmatprep.mubr.f32.mxu0 %v10710_v33  ;;  %3407 = vmatprep.mubr.f32.mxu1 %v10710_v33  ;;  %v3541_v39 = vld [vmem:[#allocation11 + $0x2a0] sm:$0xff]  ;;  %v3543_v27 = vld [vmem:[#allocation11 + $0x2b0] sm:$0xff]  ;;  %v3546_v57 = vld [vmem:[#allocation11 + $0x2c8] sm:$0xff] }
 0x516   :  { %10905 = vst [vmem:[#allocation75_spill] sm:$0xff] %v9641_v42  ;;  %10906 = vst [vmem:[#allocation76_spill] sm:$0xff] %v9644_v62  ;;  %v9653_v38 = vpack.c.bf16 %v3541_v39, %v3537_v31  ;;  %v9656_v45 = vpack.c.bf16 %v3543_v27, %v3539_v20  ;;  %v3549_v31 = vld [vmem:[#allocation11 + $0x2e0] sm:$0xff]  ;;  %v3547_v20 = vld [vmem:[#allocation11 + $0x2d0] sm:$0xff] }
 0x517   :  { %7182 = vmatpush1.bf16.msra.mxu0 %v9539_v3  ;;  %7214 = vmatpush1.bf16.msra.mxu1 %v9541_v26  ;;  %v3551_v27 = vld [vmem:[#allocation11 + $0x2f0] sm:$0xff] }
 0x518   :  { %7184 = vmatprep.subr.bf16.mxu0 %v9545_v16  ;;  %7216 = vmatprep.subr.bf16.mxu1 %v9547_v37  ;;  %10909 = vst [vmem:[#allocation26_spill] sm:$0xff] %v9653_v38  ;;  %10910 = vst [vmem:[#allocation27_spill] sm:$0xff] %v9656_v45 }
 0x51b   :  { %7186 = vmatpush1.bf16.msra.mxu0 %v9553_v8  ;;  %7218 = vmatpush1.bf16.msra.mxu1 %v9555_v19 }
 0x51c   :  { %7188 = vmatprep.subr.bf16.mxu0 %v9559_v56  ;;  %7220 = vmatprep.subr.bf16.mxu1 %v9561_v60 }
 0x51f   :  { %7190 = vmatpush1.bf16.msra.mxu0 %v9565_v15  ;;  %7222 = vmatpush1.bf16.msra.mxu1 %v9567_v14 }
 0x520   :  { %7192 = vmatprep.subr.bf16.mxu0 %v9571_v9  ;;  %7224 = vmatprep.subr.bf16.mxu1 %v9573_v53 }
 0x523   :  { %7194 = vmatpush1.bf16.msra.mxu0 %v9577_v44  ;;  %7226 = vmatpush1.bf16.msra.mxu1 %v9579_v49 }
 0x524   :  { %7196 = vmatprep.subr.bf16.mxu0 %v9583_v5  ;;  %7228 = vmatprep.subr.bf16.mxu1 %v9585_v52 }
 0x527   :  { %7198 = vmatpush1.bf16.msra.mxu0 %v9589_v63  ;;  %7230 = vmatpush1.bf16.msra.mxu1 %v9591_v46 }
 0x528   :  { %7200 = vmatprep.subr.bf16.mxu0 %v9595_v1  ;;  %7232 = vmatprep.subr.bf16.mxu1 %v9597_v50 }
 0x52b   :  { %7202 = vmatpush1.bf16.msra.mxu0 %v9601_v17  ;;  %7234 = vmatpush1.bf16.msra.mxu1 %v9603_v13 }
 0x52c   :  { %7204 = vmatprep.subr.bf16.mxu0 %v9607_v10  ;;  %7236 = vmatprep.subr.bf16.mxu1 %v9609_v2 }
 0x52f   :  { %7206 = vmatpush1.bf16.msra.mxu0 %v9613_v55  ;;  %7238 = vmatpush1.bf16.msra.mxu1 %v9615_v32 }
 0x530   :  { %7240 = vmatprep.subr.bf16.mxu0 %v9625_v25  ;;  %7272 = vmatprep.subr.bf16.mxu1 %v9627_v11 }
 0x532   :  { %3337 = vmatmul.mubr.f32.vlgmr.msra.gmra.mrb[18].mxu0 %v9529_v4  ;;  %3408 = vmatmul.mubr.f32.vlgmr.msra.gmra.mrb[18].mxu1 %v9529_v4  ;;  %v9632_v4 = vpack.c.bf16 %v3527_v30, %v3523_v0  ;;  %v9649_v0 = vpack.c.bf16 %v3542_v18, %v3538_v28  ;;  %v3544_v30 = vld [vmem:[#allocation11 + $0x2b8] sm:$0xff]  ;;  %v3550_v28 = vld [vmem:[#allocation11 + $0x2e8] sm:$0xff] }
 0x533   :  { %3649 = vmatprep.mubr.f32.mxu0 %v10710_v33  ;;  %3720 = vmatprep.mubr.f32.mxu1 %v10710_v33  ;;  %v9651_v29 = vpack.c.bf16 %v3544_v30, %v3540_v34  ;;  %v3548_v18 = vld [vmem:[#allocation11 + $0x2d8] sm:$0xff]  ;;  %v3545_v30 = vld [vmem:[#allocation11 + $0x2c0] sm:$0xff] }
 0x534   :  { %10902 = vst [vmem:[#allocation72_spill] sm:$0xff] %v9632_v4  ;;  %7242 = vmatpush1.bf16.msra.mxu0 %v9629_v41  ;;  %7274 = vmatpush1.bf16.msra.mxu1 %v9632_v4  ;;  %10907 = vst [vmem:[#allocation24_spill] sm:$0xff] %v9649_v0  ;;  %v3552_v34 = vld [vmem:[#allocation11 + $0x2f8] sm:$0xff] }
 0x535   :  { %7244 = vmatprep.subr.bf16.mxu0 %v9637_v51  ;;  %7276 = vmatprep.subr.bf16.mxu1 %v9639_v47  ;;  %10908 = vst [vmem:[#allocation25_spill] sm:$0xff] %v9651_v29  ;;  %v9663_v39 = vpack.c.bf16 %v3552_v34, %v3548_v18  ;;  %v3560_v18 = vld [vmem:[#allocation11 + $0x338] sm:$0xff]  ;;  %v3553_v34 = vld [vmem:[#allocation11 + $0x300] sm:$0xff] }
 0x536   :  { %v3476_v4 = vld [vmem:[#allocation9 + $0x298] sm:$0xff] }
 0x537   :  { %10912 = vst [vmem:[#allocation29_spill] sm:$0xff] %v9663_v39  ;;  %v3480_v41 = vld [vmem:[#allocation9 + $0x2b8] sm:$0xff] }
 0x538   :  { %7246 = vmatpush1.bf16.msra.mxu0 %v9641_v42  ;;  %7278 = vmatpush1.bf16.msra.mxu1 %v9644_v62  ;;  %v9661_v62 = vpack.c.bf16 %v3550_v28, %v3546_v57  ;;  %v9665_v42 = vpack.c.bf16 %v3549_v31, %v3545_v30  ;;  %v3554_v57 = vld [vmem:[#allocation11 + $0x308] sm:$0xff]  ;;  %v3557_v30 = vld [vmem:[#allocation11 + $0x320] sm:$0xff] }
 0x539   :  { %7248 = vmatprep.subr.bf16.mxu0 %v9649_v0  ;;  %7280 = vmatprep.subr.bf16.mxu1 %v9651_v29  ;;  %v9668_v29 = vpack.c.bf16 %v3551_v27, %v3547_v20  ;;  %v3558_v28 = vld [vmem:[#allocation11 + $0x328] sm:$0xff]  ;;  %v9677_v0 = vpack.c.bf16 %v3557_v30, %v3553_v34  ;;  %v3555_v20 = vld [vmem:[#allocation11 + $0x310] sm:$0xff]  ;;  %v3565_v34 = vld [vmem:[#allocation11 + $0x360] sm:$0xff] }
 0x53a   :  { %10911 = vst [vmem:[#allocation28_spill] sm:$0xff] %v9661_v62  ;;  %10913 = vst [vmem:[#allocation30_spill] sm:$0xff] %v9665_v42  ;;  %v3559_v27 = vld [vmem:[#allocation11 + $0x330] sm:$0xff] }
 0x53b   :  { %10914 = vst [vmem:[#allocation31_spill] sm:$0xff] %v9668_v29  ;;  %10917 = vst [vmem:[#allocation34_spill] sm:$0xff] %v9677_v0 }
 0x53c   :  { %7250 = vmatpush1.bf16.msra.mxu0 %v9653_v38  ;;  %7282 = vmatpush1.bf16.msra.mxu1 %v9656_v45  ;;  %v3556_v45 = vld [vmem:[#allocation11 + $0x318] sm:$0xff]  ;;  %v9673_v38 = vpack.c.bf16 %v3558_v28, %v3554_v57  ;;  %v3566_v57 = vld [vmem:[#allocation11 + $0x368] sm:$0xff] }
 0x53d   :  { %7252 = vmatprep.subr.bf16.mxu0 %v9661_v62  ;;  %7284 = vmatprep.subr.bf16.mxu1 %v9663_v39  ;;  %v9675_v31 = vpack.c.bf16 %v3560_v18, %v3556_v45  ;;  %v9680_v39 = vpack.c.bf16 %v3559_v27, %v3555_v20  ;;  %v3564_v28 = vld [vmem:[#allocation11 + $0x358] sm:$0xff]  ;;  %v3561_v18 = vld [vmem:[#allocation11 + $0x340] sm:$0xff]  ;;  %v3563_v20 = vld [vmem:[#allocation11 + $0x350] sm:$0xff] }
 0x53e   :  { %10915 = vst [vmem:[#allocation32_spill] sm:$0xff] %v9673_v38  ;;  %v3568_v45 = vld [vmem:[#allocation11 + $0x378] sm:$0xff]  ;;  %v9689_v62 = vpack.c.bf16 %v3565_v34, %v3561_v18  ;;  %v3567_v27 = vld [vmem:[#allocation11 + $0x370] sm:$0xff]  ;;  %v3573_v18 = vld [vmem:[#allocation11 + $0x3a0] sm:$0xff] }
 0x53f   :  { %10916 = vst [vmem:[#allocation33_spill] sm:$0xff] %v9675_v31  ;;  %10918 = vst [vmem:[#allocation35_spill] sm:$0xff] %v9680_v39  ;;  %v9687_v30 = vpack.c.bf16 %v3568_v45, %v3564_v28  ;;  %v3576_v28 = vld [vmem:[#allocation11 + $0x3b8] sm:$0xff]  ;;  %v3569_v45 = vld [vmem:[#allocation11 + $0x380] sm:$0xff] }
 0x540   :  { %7254 = vmatpush1.bf16.msra.mxu0 %v9665_v42  ;;  %7286 = vmatpush1.bf16.msra.mxu1 %v9668_v29  ;;  %v3562_v29 = vld [vmem:[#allocation11 + $0x348] sm:$0xff]  ;;  %10921 = vst [vmem:[#allocation38_spill] sm:$0xff] %v9689_v62 }
 0x541   :  { %7256 = vmatprep.subr.bf16.mxu0 %v9673_v38  ;;  %7288 = vmatprep.subr.bf16.mxu1 %v9675_v31  ;;  %v9685_v42 = vpack.c.bf16 %v3566_v57, %v3562_v29  ;;  %10920 = vst [vmem:[#allocation37_spill] sm:$0xff] %v9687_v30  ;;  %v9692_v31 = vpack.c.bf16 %v3567_v27, %v3563_v20  ;;  %v3574_v29 = vld [vmem:[#allocation11 + $0x3a8] sm:$0xff]  ;;  %v3572_v57 = vld [vmem:[#allocation11 + $0x398] sm:$0xff]  ;;  %v3571_v20 = vld [vmem:[#allocation11 + $0x390] sm:$0xff] }
 0x542   :  { %v9699_v34 = vpack.c.bf16 %v3576_v28, %v3572_v57  ;;  %v9701_v38 = vpack.c.bf16 %v3573_v18, %v3569_v45  ;;  %v3575_v27 = vld [vmem:[#allocation11 + $0x3b0] sm:$0xff]  ;;  %v3584_v57 = vld [vmem:[#allocation11 + $0x3f8] sm:$0xff]  ;;  %v3577_v28 = vld [vmem:[#allocation11 + $0x3c0] sm:$0xff] }
 0x543   :  { %10919 = vst [vmem:[#allocation36_spill] sm:$0xff] %v9685_v42  ;;  %10922 = vst [vmem:[#allocation39_spill] sm:$0xff] %v9692_v31  ;;  %v3581_v45 = vld [vmem:[#allocation11 + $0x3e0] sm:$0xff] }
 0x544   :  { %7258 = vmatpush1.bf16.msra.mxu0 %v9677_v0  ;;  %7290 = vmatpush1.bf16.msra.mxu1 %v9680_v39  ;;  %v3570_v39 = vld [vmem:[#allocation11 + $0x388] sm:$0xff]  ;;  %10924 = vst [vmem:[#allocation41_spill] sm:$0xff] %v9699_v34  ;;  %10925 = vst [vmem:[#allocation42_spill] sm:$0xff] %v9701_v38 }
 0x545   :  { %7260 = vmatprep.subr.bf16.mxu0 %v9685_v42  ;;  %7292 = vmatprep.subr.bf16.mxu1 %v9687_v30  ;;  %v9697_v0 = vpack.c.bf16 %v3574_v29, %v3570_v39  ;;  %v9704_v30 = vpack.c.bf16 %v3575_v27, %v3571_v20  ;;  %v3582_v39 = vld [vmem:[#allocation11 + $0x3e8] sm:$0xff]  ;;  %v3580_v29 = vld [vmem:[#allocation11 + $0x3d8] sm:$0xff]  ;;  %v9713_v42 = vpack.c.bf16 %v3581_v45, %v3577_v28  ;;  %v3579_v20 = vld [vmem:[#allocation11 + $0x3d0] sm:$0xff] }
 0x546   :  { %v9711_v18 = vpack.c.bf16 %v3584_v57, %v3580_v29  ;;  %v3583_v27 = vld [vmem:[#allocation11 + $0x3f0] sm:$0xff]  ;;  %v3464_v29 = vld [vmem:[#allocation9 + $0x238] sm:$0xff] }
 0x547   :  { %10923 = vst [vmem:[#allocation40_spill] sm:$0xff] %v9697_v0  ;;  %10926 = vst [vmem:[#allocation43_spill] sm:$0xff] %v9704_v30  ;;  %v6258_v28 = vld [vmem:[%s10448_s4 + $0x4] sm:$0xf] }
 0x548   :  { %7262 = vmatpush1.bf16.msra.mxu0 %v9689_v62  ;;  %7294 = vmatpush1.bf16.msra.mxu1 %v9692_v31  ;;  %v3578_v31 = vld [vmem:[#allocation11 + $0x3c8] sm:$0xff]  ;;  %10928 = vst [vmem:[#allocation45_spill] sm:$0xff] %v9711_v18  ;;  %10929 = vst [vmem:[#allocation46_spill] sm:$0xff] %v9713_v42  ;;  %v3162_v45 = vrot.slane %v6258_v28, %v10879_v35 }
 0x549   :  { %7264 = vmatprep.subr.bf16.mxu0 %v9697_v0  ;;  %7296 = vmatprep.subr.bf16.mxu1 %v9699_v34  ;;  %v9709_v62 = vpack.c.bf16 %v3582_v39, %v3578_v31  ;;  %v9716_v34 = vpack.c.bf16 %v3583_v27, %v3579_v20  ;;  %v3458_v31 = vld [vmem:[#allocation9 + $0x208] sm:$0xff]  ;;  %v3166_v20 = vrot.slane %v6258_v28, %v10880_v36 }
 0x54a   :  { %v3462_v39 = vld [vmem:[#allocation9 + $0x228] sm:$0xff] }
 0x54b   :  { %10927 = vst [vmem:[#allocation44_spill] sm:$0xff] %v9709_v62  ;;  %10930 = vst [vmem:[#allocation47_spill] sm:$0xff] %v9716_v34 }
 0x54c   :  { %7266 = vmatpush1.bf16.msra.mxu0 %v9701_v38  ;;  %7298 = vmatpush1.bf16.msra.mxu1 %v9704_v30  ;;  %v3460_v30 = vld [vmem:[#allocation9 + $0x218] sm:$0xff]  ;;  %v9721_v38 = vpack.c.bf16 %v3462_v39, %v3458_v31 }
 0x54d   :  { %7268 = vmatprep.subr.bf16.mxu0 %v9709_v62  ;;  %7300 = vmatprep.subr.bf16.mxu1 %v9711_v18  ;;  %v9723_v57 = vpack.c.bf16 %v3464_v29, %v3460_v30 }
 0x54e   :  { %10931 = vst [vmem:[#allocation48_spill] sm:$0xff] %v9721_v38 }
 0x54f   :  { %10932 = vst [vmem:[#allocation49_spill] sm:$0xff] %v9723_v57 }
 0x550   :  { %7270 = vmatpush1.bf16.msra.mxu0 %v9713_v42  ;;  %7302 = vmatpush1.bf16.msra.mxu1 %v9716_v34 }
 0x551   :  { %7304 = vmatprep.subr.bf16.mxu0 %v9721_v38  ;;  %7336 = vmatprep.subr.bf16.mxu1 %v9723_v57  ;;  %v3170_v38 = vrot.slane %v6258_v28, %v10881_v12  ;;  %v3174_v57 = vrot.slane %v6258_v28, %v10882_v61  ;;  %v3478_v12 = vld [vmem:[#allocation9 + $0x2a8] sm:$0xff] }
 0x5e5   :  { %v3081_v27 = vpop.f32.mrb[16].mxu0  ;;  %v3152_v34 = vpop.f32.mrb[16].mxu1 }
 0x5e6   :  { %v3179_v42 = vadd.f32 %v3162_v45, %v3081_v27  ;;  %v3083_v31 = vpop.f32.mrb[17].mxu0  ;;  %v3154_v39 = vpop.f32.mrb[17].mxu1  ;;  %v3181_v62 = vadd.f32 %v3170_v38, %v3152_v34 }
 0x5e7   :  { %v3180_v18 = vadd.f32 %v3166_v20, %v3083_v31  ;;  %v3182_v0 = vadd.f32 %v3174_v57, %v3154_v39 }
 0x5e8   :  { %v6259_v30 = vmul.f32 -1.442695, %v3179_v42  ;;  %v6261_v47 = vmul.f32 -1.442695, %v3181_v62 }
 0x5e9   :  { %v6260_v29 = vmul.f32 -1.442695, %v3180_v18 }
 0x5ea   :  { %8128 = vpow2.f32 %v6259_v30 }
 0x5eb   :  { %8130 = vpow2.f32 %v6260_v29 }
 0x5ec   :  { %8132 = vtanh.f32 %v3182_v0 }
 0x5ed   :  { %8134 = vpow2.f32 %v6261_v47 }
 0x5f4   :  { %v8129_v35 = vpop.eup %8128 }
 0x5f5   :  { %v3192_v51 = vadd.f32 1.0, %v8129_v35  ;;  %v8131_v36 = vpop.eup %8130 }
 0x5f6   :  { %v3193_v45 = vadd.f32 1.0, %v8131_v36  ;;  %v8133_v20 = vpop.eup %8132 }
 0x5f7   :  { %8136 = vrcp.f32 %v3192_v51  ;;  %v8135_v42 = vpop.eup %8134 }
 0x5f8   :  { %8138 = vrcp.f32 %v3193_v45  ;;  %v3194_v30 = vadd.f32 1.0, %v8135_v42 }
 0x5fa   :  { %8140 = vrcp.f32 %v3194_v30 }
 0x601   :  { %v8137_v18 = vpop.eup %8136 }
 0x602   :  { %v3203_v27 = vmul.f32 %v8137_v18, %v8133_v20  ;;  %v8139_v31 = vpop.eup %8138  ;;  %v3461_v20 = vld [vmem:[#allocation9 + $0x220] sm:$0xff]  ;;  %v3459_v18 = vld [vmem:[#allocation9 + $0x210] sm:$0xff] }
 0x603   :  { %v3202_v29 = vmul.f32 %v8139_v31, %v9476_v40  ;;  %v3457_v40 = vld [vmem:[#allocation9 + $0x200] sm:$0xff]  ;;  %v3466_v31 = vld [vmem:[#allocation9 + $0x248] sm:$0xff] }
 0x605   :  { %v3338_v28 = vpop.f32.mrb[18].mxu0  ;;  %v3409_v38 = vpop.f32.mrb[18].mxu1  ;;  %v9735_v34 = vadd.f32 %v3203_v27, %v3202_v29  ;;  %v3463_v27 = vld [vmem:[#allocation9 + $0x230] sm:$0xff]  ;;  %v3470_v29 = vld [vmem:[#allocation9 + $0x268] sm:$0xff] }
 0x606   :  { %v3418_v62 = vrot.slane %v3338_v28, 4  ;;  %v3340_v35 = vpop.f32.mrb[19].mxu0  ;;  %v3411_v0 = vpop.f32.mrb[19].mxu1  ;;  %v3420_v45 = vrot.slane %v3409_v38, 4  ;;  %v3468_v28 = vld [vmem:[#allocation9 + $0x258] sm:$0xff]  ;;  %v3469_v38 = vld [vmem:[#allocation9 + $0x260] sm:$0xff] }
 0x607   :  { %10933 = vst [vmem:[#allocation50_spill] sm:$0xff] %v9735_v34  ;;  %v3419_v47 = vrot.slane %v3340_v35, 4  ;;  %8142 = vtanh.f32 %v9735_v34  ;;  %v3421_v42 = vrot.slane %v3411_v0, 4  ;;  %v3472_v35 = vld [vmem:[#allocation9 + $0x278] sm:$0xff]  ;;  %v8141_v34 = vpop.eup %8140  ;;  %v9746_v0 = vpack.c.bf16 %v3470_v29, %v3466_v31  ;;  %v3475_v29 = vld [vmem:[#allocation9 + $0x290] sm:$0xff] }
 0x608   :  { %v3426_v36 = vadd.f32 %v3418_v62, %v10884_v6  ;;  %v3428_v30 = vadd.f32 %v3420_v45, %v10886_v48  ;;  %v9741_v6 = vpack.c.bf16 %v3461_v20, %v3457_v40  ;;  %v3471_v45 = vld [vmem:[#allocation9 + $0x270] sm:$0xff]  ;;  %v3474_v48 = vld [vmem:[#allocation9 + $0x288] sm:$0xff] }
 0x609   :  { %v3427_v51 = vadd.f32 %v3419_v47, %v10885_v24  ;;  %v9743_v47 = vpack.c.bf16 %v3463_v27, %v3459_v18  ;;  %10935 = vst [vmem:[#allocation52_spill] sm:$0xff] %v9746_v0  ;;  %v3467_v24 = vld [vmem:[#allocation9 + $0x250] sm:$0xff]  ;;  %v3477_v18 = vld [vmem:[#allocation9 + $0x2a0] sm:$0xff]  ;;  %v9758_v31 = vpack.c.bf16 %v3478_v12, %v3474_v48 }
 0x60a   :  { %v6262_v57 = vmul.f32 -1.442695, %v3426_v36  ;;  %v3465_v36 = vld [vmem:[#allocation9 + $0x240] sm:$0xff]  ;;  %v6264_v61 = vmul.f32 -1.442695, %v3428_v30  ;;  %v9754_v20 = vpack.c.bf16 %v3471_v45, %v3467_v24  ;;  %v9760_v30 = vpack.c.bf16 %v3480_v41, %v3476_v4  ;;  %v3484_v24 = vld [vmem:[#allocation9 + $0x2d8] sm:$0xff] }
 0x60b   :  { %v6263_v39 = vmul.f32 -1.442695, %v3427_v51  ;;  %10934 = vst [vmem:[#allocation51_spill] sm:$0xff] %v9743_v47  ;;  %v3429_v51 = vadd.f32 %v3421_v42, %v8949_v23  ;;  %v3473_v42 = vld [vmem:[#allocation9 + $0x280] sm:$0xff]  ;;  %10939 = vst [vmem:[#allocation56_spill] sm:$0xff] %v9758_v31  ;;  %v3483_v45 = vld [vmem:[#allocation9 + $0x2d0] sm:$0xff] }
 0x60c   :  { %8144 = vpow2.f32 %v6262_v57  ;;  %10938 = vst [vmem:[#allocation55_spill] sm:$0xff] %v9754_v20  ;;  %10940 = vst [vmem:[#allocation57_spill] sm:$0xff] %v9760_v30  ;;  %v9766_v12 = vpack.c.bf16 %v3477_v18, %v3473_v42  ;;  %v3481_v41 = vld [vmem:[#allocation9 + $0x2c0] sm:$0xff]  ;;  %v3496_v42 = vld [vmem:[#allocation9 + $0x338] sm:$0xff] }
 0x60d   :  { %8146 = vpow2.f32 %v6263_v39  ;;  %v9748_v39 = vpack.c.bf16 %v3472_v35, %v3468_v28  ;;  %v3479_v28 = vld [vmem:[#allocation9 + $0x2b0] sm:$0xff]  ;;  %v3482_v35 = vld [vmem:[#allocation9 + $0x2c8] sm:$0xff]  ;;  %v3485_v4 = vld [vmem:[#allocation9 + $0x2e0] sm:$0xff] }
 0x60e   :  { %8148 = vtanh.f32 %v3429_v51  ;;  %10941 = vst [vmem:[#allocation58_spill] sm:$0xff] %v9766_v12  ;;  %v9768_v48 = vpack.c.bf16 %v3479_v28, %v3475_v29  ;;  %v9778_v18 = vpack.c.bf16 %v3485_v4, %v3481_v41  ;;  %v3489_v28 = vld [vmem:[#allocation9 + $0x300] sm:$0xff] }
 0x60f   :  { %10936 = vst [vmem:[#allocation53_spill] sm:$0xff] %v9748_v39  ;;  %8150 = vpow2.f32 %v6264_v61 }
 0x610   :  { %10942 = vst [vmem:[#allocation59_spill] sm:$0xff] %v9768_v48  ;;  %10945 = vst [vmem:[#allocation62_spill] sm:$0xff] %v9778_v18 }
 0x611   :  { %v8143_v62 = vpop.eup %8142 }
 0x612   :  { %v3206_v57 = vmul.f32 %v8143_v62, %v8141_v34  ;;  %v9752_v34 = vpack.c.bf16 %v3469_v38, %v3465_v36  ;;  %v3486_v36 = vld [vmem:[#allocation9 + $0x2e8] sm:$0xff]  ;;  %v3488_v38 = vld [vmem:[#allocation9 + $0x2f8] sm:$0xff] }
 0x613   :  { %v9772_v61 = vpack.c.bf16 %v3486_v36, %v3482_v35 }
 0x614   :  { %3207 = vst [vmem:[#allocation3 + $0x3] sm:$0x1] %v3206_v57  ;;  %3650 = vmatmul.mubr.f32.vlgmr.msra.gmra.mrb[20].mxu0 %v3206_v57  ;;  %3721 = vmatmul.mubr.f32.vlgmr.msra.gmra.mrb[20].mxu1 %v3206_v57  ;;  %10937 = vst [vmem:[#allocation54_spill] sm:$0xff] %v9752_v34  ;;  %v9774_v57 = vpack.c.bf16 %v3488_v38, %v3484_v24  ;;  %v3491_v24 = vld [vmem:[#allocation9 + $0x310] sm:$0xff] }
 0x615   :  { %7306 = vmatpush1.bf16.msra.mxu0 %v9741_v6  ;;  %7338 = vmatpush1.bf16.msra.mxu1 %v9743_v47  ;;  %10943 = vst [vmem:[#allocation60_spill] sm:$0xff] %v9772_v61  ;;  %v3495_v38 = vld [vmem:[#allocation9 + $0x330] sm:$0xff] }
 0x616   :  { %v8145_v40 = vpop.eup %8144  ;;  %7308 = vmatprep.subr.bf16.mxu0 %v9746_v0  ;;  %7340 = vmatprep.subr.bf16.mxu1 %v9748_v39  ;;  %10944 = vst [vmem:[#allocation61_spill] sm:$0xff] %v9774_v57 }
 0x617   :  { %v3439_v27 = vadd.f32 1.0, %v8145_v40  ;;  %v8147_v62 = vpop.eup %8146  ;;  %3794 = vmatprep.mubr.f32.mxu0 %v10710_v33  ;;  %3865 = vmatprep.mubr.f32.mxu1 %v10710_v33  ;;  %v3487_v40 = vld [vmem:[#allocation9 + $0x2f0] sm:$0xff] }
 0x618   :  { %v3440_v51 = vadd.f32 1.0, %v8147_v62  ;;  %v3494_v62 = vld [vmem:[#allocation9 + $0x328] sm:$0xff]  ;;  %v9780_v29 = vpack.c.bf16 %v3487_v40, %v3483_v45  ;;  %v8149_v41 = vpop.eup %8148  ;;  %v9792_v40 = vpack.c.bf16 %v3495_v38, %v3491_v24  ;;  %v3508_v24 = vld [vmem:[#allocation9 + $0x398] sm:$0xff] }
 0x619   :  { %8152 = vrcp.f32 %v3439_v27  ;;  %7310 = vmatpush1.bf16.msra.mxu0 %v9752_v34  ;;  %7342 = vmatpush1.bf16.msra.mxu1 %v9754_v20  ;;  %v3490_v27 = vld [vmem:[#allocation9 + $0x308] sm:$0xff]  ;;  %v3492_v20 = vld [vmem:[#allocation9 + $0x318] sm:$0xff]  ;;  %v8151_v4 = vpop.eup %8150  ;;  %v3503_v34 = vld [vmem:[#allocation9 + $0x370] sm:$0xff] }
 0x61a   :  { %8154 = vrcp.f32 %v3440_v51  ;;  %7312 = vmatprep.subr.bf16.mxu0 %v9758_v31  ;;  %7344 = vmatprep.subr.bf16.mxu1 %v9760_v30  ;;  %10946 = vst [vmem:[#allocation63_spill] sm:$0xff] %v9780_v29  ;;  %v3493_v51 = vld [vmem:[#allocation9 + $0x320] sm:$0xff]  ;;  %v9784_v35 = vpack.c.bf16 %v3494_v62, %v3490_v27  ;;  %v9786_v36 = vpack.c.bf16 %v3496_v42, %v3492_v20  ;;  %v3498_v30 = vld [vmem:[#allocation9 + $0x348] sm:$0xff]  ;;  %v3500_v31 = vld [vmem:[#allocation9 + $0x358] sm:$0xff]  ;;  %v3441_v0 = vadd.f32 1.0, %v8151_v4 }
 0x61b   :  { %v9790_v45 = vpack.c.bf16 %v3493_v51, %v3489_v28  ;;  %10947 = vst [vmem:[#allocation64_spill] sm:$0xff] %v9792_v40  ;;  %v3497_v27 = vld [vmem:[#allocation9 + $0x340] sm:$0xff]  ;;  %v3510_v51 = vld [vmem:[#allocation9 + $0x3a8] sm:$0xff]  ;;  %v3512_v38 = vld [vmem:[#allocation9 + $0x3b8] sm:$0xff] }
 0x61c   :  { %v3501_v62 = vld [vmem:[#allocation9 + $0x360] sm:$0xff]  ;;  %v3507_v4 = vld [vmem:[#allocation9 + $0x390] sm:$0xff]  ;;  %8156 = vrcp.f32 %v3441_v0 }
 0x61d   :  { %7314 = vmatpush1.bf16.msra.mxu0 %v9766_v12  ;;  %7346 = vmatpush1.bf16.msra.mxu1 %v9768_v48  ;;  %v3502_v12 = vld [vmem:[#allocation9 + $0x368] sm:$0xff]  ;;  %v3504_v48 = vld [vmem:[#allocation9 + $0x378] sm:$0xff]  ;;  %v3517_v0 = vld [vmem:[#allocation9 + $0x3e0] sm:$0xff] }
 0x61e   :  { %7316 = vmatprep.subr.bf16.mxu0 %v9772_v61  ;;  %7348 = vmatprep.subr.bf16.mxu1 %v9774_v57  ;;  %v9796_v42 = vpack.c.bf16 %v3502_v12, %v3498_v30  ;;  %v9798_v57 = vpack.c.bf16 %v3504_v48, %v3500_v31  ;;  %v3499_v61 = vld [vmem:[#allocation9 + $0x350] sm:$0xff]  ;;  %v9803_v30 = vpack.c.bf16 %v3501_v62, %v3497_v27  ;;  %v3505_v12 = vld [vmem:[#allocation9 + $0x380] sm:$0xff]  ;;  %v3516_v27 = vld [vmem:[#allocation9 + $0x3d8] sm:$0xff] }
 0x61f   :  { %v9805_v31 = vpack.c.bf16 %v3503_v34, %v3499_v61  ;;  %v3509_v48 = vld [vmem:[#allocation9 + $0x3a0] sm:$0xff]  ;;  %v3520_v62 = vld [vmem:[#allocation9 + $0x3f8] sm:$0xff] }
 0x620   :  { %v9818_v34 = vpack.c.bf16 %v3509_v48, %v3505_v12 }
 0x621   :  { %7318 = vmatpush1.bf16.msra.mxu0 %v9778_v18  ;;  %7350 = vmatpush1.bf16.msra.mxu1 %v9780_v29  ;;  %v3506_v18 = vld [vmem:[#allocation9 + $0x388] sm:$0xff]  ;;  %v3450_v29 = vrot.slane %v9506_v7, 7 }
 0x622   :  { %7320 = vmatprep.subr.bf16.mxu0 %v9784_v35  ;;  %7352 = vmatprep.subr.bf16.mxu1 %v9786_v36  ;;  %v9809_v7 = vpack.c.bf16 %v3510_v51, %v3506_v18  ;;  %v3513_v18 = vld [vmem:[#allocation9 + $0x3c0] sm:$0xff]  ;;  %v3515_v51 = vld [vmem:[#allocation9 + $0x3d0] sm:$0xff] }
 0x623   :  { %v8153_v20 = vpop.eup %8152 }
 0x624   :  { %v3453_v28 = vmul.f32 %v8153_v20, %v8149_v41  ;;  %v8155_v39 = vpop.eup %8154  ;;  %v9811_v41 = vpack.c.bf16 %v3512_v38, %v3508_v24  ;;  %v3519_v24 = vld [vmem:[#allocation9 + $0x3f0] sm:$0xff]  ;;  %v9830_v38 = vpack.c.bf16 %v3517_v0, %v3513_v18 }
 0x625   :  { %v3452_v47 = vmul.f32 %v8155_v39, %v3450_v29  ;;  %7322 = vmatpush1.bf16.msra.mxu0 %v9790_v45  ;;  %7354 = vmatpush1.bf16.msra.mxu1 %v9792_v40  ;;  %v3511_v39 = vld [vmem:[#allocation9 + $0x3b0] sm:$0xff]  ;;  %v3514_v29 = vld [vmem:[#allocation9 + $0x3c8] sm:$0xff]  ;;  %v9832_v12 = vpack.c.bf16 %v3519_v24, %v3515_v51 }
 0x626   :  { %7324 = vmatprep.subr.bf16.mxu0 %v9796_v42  ;;  %7356 = vmatprep.subr.bf16.mxu1 %v9798_v57  ;;  %v3518_v40 = vld [vmem:[#allocation9 + $0x3e8] sm:$0xff]  ;;  %v9820_v61 = vpack.c.bf16 %v3511_v39, %v3507_v4 }
 0x627   :  { %v9813_v20 = vadd.f32 %v3453_v28, %v3452_v47  ;;  %v9824_v47 = vpack.c.bf16 %v3518_v40, %v3514_v29  ;;  %v9826_v28 = vpack.c.bf16 %v3520_v62, %v3516_v27  ;;  %v8157_v40 = vpop.eup %8156  ;;  %v10981_v27 = vld [vmem:[#allocation78_spill] sm:$0xff] }
 0x629   :  { %8158 = vtanh.f32 %v9813_v20  ;;  %7326 = vmatpush1.bf16.msra.mxu0 %v9803_v30  ;;  %7358 = vmatpush1.bf16.msra.mxu1 %v9805_v31 }
 0x62a   :  { %7328 = vmatprep.subr.bf16.mxu0 %v9809_v7  ;;  %7360 = vmatprep.subr.bf16.mxu1 %v9811_v41 }
 0x62d   :  { %7330 = vmatpush1.bf16.msra.mxu0 %v9818_v34  ;;  %7362 = vmatpush1.bf16.msra.mxu1 %v9820_v61 }
 0x62e   :  { %7332 = vmatprep.subr.bf16.mxu0 %v9824_v47  ;;  %7364 = vmatprep.subr.bf16.mxu1 %v9826_v28 }
 0x631   :  { %7334 = vmatpush1.bf16.msra.mxu0 %v9830_v38  ;;  %7366 = vmatpush1.bf16.msra.mxu1 %v9832_v12 }
 0x632   :  { %7368 = vmatprep.subr.bf16.mxu0 %v9517_v21  ;;  %7400 = vmatprep.subr.bf16.mxu1 %v9519_v43  ;;  %v10948_v21 = vld [vmem:[#allocation71_spill] sm:$0xff]  ;;  %v10949_v43 = vld [vmem:[#allocation72_spill] sm:$0xff] }
 0x633   :  { %v8159_v48 = vpop.eup %8158 }
 0x634   :  { %v3456_v4 = vmul.f32 %v8159_v48, %v8157_v40 }
 0x636   :  { %v3728_v39 = vrot.slane %v3456_v4, 4 }
 0x638   :  { %3795 = vmatmul.mubr.f32.vlgmr.msra.gmra.mrb[20].mxu0 %v3728_v39  ;;  %3866 = vmatmul.mubr.f32.vlgmr.msra.gmra.mrb[20].mxu1 %v3728_v39 }
 0x639   :  { %7370 = vmatpush1.bf16.msra.mxu0 %v9525_v54  ;;  %7402 = vmatpush1.bf16.msra.mxu1 %v9527_v59  ;;  %v10950_v54 = vld [vmem:[#allocation73_spill] sm:$0xff]  ;;  %v10951_v59 = vld [vmem:[#allocation74_spill] sm:$0xff] }
 0x63a   :  { %7372 = vmatprep.subr.bf16.mxu0 %v9531_v22  ;;  %7404 = vmatprep.subr.bf16.mxu1 %v9533_v58  ;;  %v10952_v22 = vld [vmem:[#allocation75_spill] sm:$0xff]  ;;  %v10953_v58 = vld [vmem:[#allocation76_spill] sm:$0xff] }
 0x63b   :  { %4051 = vmatprep.mubr.f32.mxu0 %v10710_v33  ;;  %4122 = vmatprep.mubr.f32.mxu1 %v10710_v33 }
 0x63d   :  { %7374 = vmatpush1.bf16.msra.mxu0 %v9539_v3  ;;  %7406 = vmatpush1.bf16.msra.mxu1 %v9541_v26  ;;  %v10954_v3 = vld [vmem:[#allocation24_spill] sm:$0xff]  ;;  %v10955_v26 = vld [vmem:[#allocation25_spill] sm:$0xff] }
 0x63e   :  { %7376 = vmatprep.subr.bf16.mxu0 %v9545_v16  ;;  %7408 = vmatprep.subr.bf16.mxu1 %v9547_v37  ;;  %v10956_v16 = vld [vmem:[#allocation26_spill] sm:$0xff]  ;;  %v10957_v37 = vld [vmem:[#allocation27_spill] sm:$0xff] }
 0x641   :  { %7378 = vmatpush1.bf16.msra.mxu0 %v9553_v8  ;;  %7410 = vmatpush1.bf16.msra.mxu1 %v9555_v19  ;;  %v10958_v8 = vld [vmem:[#allocation28_spill] sm:$0xff]  ;;  %v10959_v19 = vld [vmem:[#allocation29_spill] sm:$0xff] }
 0x642   :  { %7380 = vmatprep.subr.bf16.mxu0 %v9559_v56  ;;  %7412 = vmatprep.subr.bf16.mxu1 %v9561_v60  ;;  %v10960_v56 = vld [vmem:[#allocation30_spill] sm:$0xff]  ;;  %v10961_v60 = vld [vmem:[#allocation31_spill] sm:$0xff] }
 0x645   :  { %7382 = vmatpush1.bf16.msra.mxu0 %v9565_v15  ;;  %7414 = vmatpush1.bf16.msra.mxu1 %v9567_v14  ;;  %v10962_v15 = vld [vmem:[#allocation32_spill] sm:$0xff]  ;;  %v10963_v14 = vld [vmem:[#allocation33_spill] sm:$0xff] }
 0x646   :  { %7384 = vmatprep.subr.bf16.mxu0 %v9571_v9  ;;  %7416 = vmatprep.subr.bf16.mxu1 %v9573_v53  ;;  %v10964_v9 = vld [vmem:[#allocation34_spill] sm:$0xff]  ;;  %v10965_v53 = vld [vmem:[#allocation35_spill] sm:$0xff] }
 0x649   :  { %7386 = vmatpush1.bf16.msra.mxu0 %v9577_v44  ;;  %7418 = vmatpush1.bf16.msra.mxu1 %v9579_v49  ;;  %v10966_v44 = vld [vmem:[#allocation36_spill] sm:$0xff]  ;;  %v10967_v49 = vld [vmem:[#allocation37_spill] sm:$0xff] }
 0x64a   :  { %7388 = vmatprep.subr.bf16.mxu0 %v9583_v5  ;;  %7420 = vmatprep.subr.bf16.mxu1 %v9585_v52  ;;  %v10968_v5 = vld [vmem:[#allocation38_spill] sm:$0xff]  ;;  %v10969_v52 = vld [vmem:[#allocation39_spill] sm:$0xff] }
 0x64d   :  { %7390 = vmatpush1.bf16.msra.mxu0 %v9589_v63  ;;  %7422 = vmatpush1.bf16.msra.mxu1 %v9591_v46  ;;  %v10970_v63 = vld [vmem:[#allocation40_spill] sm:$0xff]  ;;  %v10971_v46 = vld [vmem:[#allocation41_spill] sm:$0xff] }
 0x64e   :  { %7392 = vmatprep.subr.bf16.mxu0 %v9595_v1  ;;  %7424 = vmatprep.subr.bf16.mxu1 %v9597_v50  ;;  %v10972_v1 = vld [vmem:[#allocation42_spill] sm:$0xff]  ;;  %v10973_v50 = vld [vmem:[#allocation43_spill] sm:$0xff] }
 0x651   :  { %7394 = vmatpush1.bf16.msra.mxu0 %v9601_v17  ;;  %7426 = vmatpush1.bf16.msra.mxu1 %v9603_v13  ;;  %v10974_v17 = vld [vmem:[#allocation44_spill] sm:$0xff]  ;;  %v10975_v13 = vld [vmem:[#allocation45_spill] sm:$0xff] }
 0x652   :  { %7396 = vmatprep.subr.bf16.mxu0 %v9607_v10  ;;  %7428 = vmatprep.subr.bf16.mxu1 %v9609_v2  ;;  %v10976_v10 = vld [vmem:[#allocation46_spill] sm:$0xff]  ;;  %v10977_v2 = vld [vmem:[#allocation47_spill] sm:$0xff] }
 0x655   :  { %7398 = vmatpush1.bf16.msra.mxu0 %v9613_v55  ;;  %7430 = vmatpush1.bf16.msra.mxu1 %v9615_v32  ;;  %v10978_v55 = vld [vmem:[#allocation48_spill] sm:$0xff]  ;;  %v10979_v32 = vld [vmem:[#allocation49_spill] sm:$0xff] }
 0x656   :  { %7432 = vmatprep.subr.bf16.mxu0 %v9625_v25  ;;  %7464 = vmatprep.subr.bf16.mxu1 %v9627_v11  ;;  %v6265_v25 = vld [vmem:[%s10448_s4 + $0x4] sm:$0xf] }
 0x657   :  { %v10980_v11 = vld [vmem:[#allocation77_spill] sm:$0xff]  ;;  %v3881_v62 = vrot.slane %v6265_v25, %v10981_v27 }
 0x658   :  { %4052 = vmatmul.mubr.f32.vlgmr.msra.gmra.mrb[22].mxu0 %v3728_v39  ;;  %4123 = vmatmul.mubr.f32.vlgmr.msra.gmra.mrb[22].mxu1 %v3728_v39  ;;  %v3877_v29 = vrot.slane %v6265_v25, %v10980_v11 }
 0x659   :  { %7434 = vmatpush1.bf16.msra.mxu0 %v10948_v21  ;;  %7466 = vmatpush1.bf16.msra.mxu1 %v10949_v43  ;;  %v10982_v21 = vld [vmem:[#allocation79_spill] sm:$0xff] }
 0x65a   :  { %7436 = vmatprep.subr.bf16.mxu0 %v10950_v54  ;;  %7468 = vmatprep.subr.bf16.mxu1 %v10951_v59  ;;  %v3885_v43 = vrot.slane %v6265_v25, %v10982_v21  ;;  %v10983_v54 = vld [vmem:[#allocation82_spill] sm:$0xff] }
 0x65b   :  { %4364 = vmatprep.mubr.f32.mxu0 %v10710_v33  ;;  %4435 = vmatprep.mubr.f32.mxu1 %v10710_v33  ;;  %v3889_v59 = vrot.slane %v6265_v25, %v10983_v54 }
 0x65d   :  { %7438 = vmatpush1.bf16.msra.mxu0 %v10952_v22  ;;  %7470 = vmatpush1.bf16.msra.mxu1 %v10953_v58 }
 0x65e   :  { %7440 = vmatprep.subr.bf16.mxu0 %v10954_v3  ;;  %7472 = vmatprep.subr.bf16.mxu1 %v10955_v26 }
 0x661   :  { %7442 = vmatpush1.bf16.msra.mxu0 %v10956_v16  ;;  %7474 = vmatpush1.bf16.msra.mxu1 %v10957_v37 }
 0x662   :  { %7444 = vmatprep.subr.bf16.mxu0 %v10958_v8  ;;  %7476 = vmatprep.subr.bf16.mxu1 %v10959_v19 }
 0x665   :  { %7446 = vmatpush1.bf16.msra.mxu0 %v10960_v56  ;;  %7478 = vmatpush1.bf16.msra.mxu1 %v10961_v60 }
 0x666   :  { %7448 = vmatprep.subr.bf16.mxu0 %v10962_v15  ;;  %7480 = vmatprep.subr.bf16.mxu1 %v10963_v14 }
 0x669   :  { %7450 = vmatpush1.bf16.msra.mxu0 %v10964_v9  ;;  %7482 = vmatpush1.bf16.msra.mxu1 %v10965_v53  ;;  %v10984_v53 = vld [vmem:[#allocation50_spill] sm:$0xff] }
 0x66a   :  { %7452 = vmatprep.subr.bf16.mxu0 %v10966_v44  ;;  %7484 = vmatprep.subr.bf16.mxu1 %v10967_v49 }
 0x66d   :  { %7454 = vmatpush1.bf16.msra.mxu0 %v10968_v5  ;;  %7486 = vmatpush1.bf16.msra.mxu1 %v10969_v52 }
 0x66e   :  { %7456 = vmatprep.subr.bf16.mxu0 %v10970_v63  ;;  %7488 = vmatprep.subr.bf16.mxu1 %v10971_v46 }
 0x671   :  { %7458 = vmatpush1.bf16.msra.mxu0 %v10972_v1  ;;  %7490 = vmatpush1.bf16.msra.mxu1 %v10973_v50 }
 0x672   :  { %7460 = vmatprep.subr.bf16.mxu0 %v10974_v17  ;;  %7492 = vmatprep.subr.bf16.mxu1 %v10975_v13  ;;  %v10985_v17 = vld [vmem:[#allocation80_spill] sm:$0xff] }
 0x675   :  { %7462 = vmatpush1.bf16.msra.mxu0 %v10976_v10  ;;  %7494 = vmatpush1.bf16.msra.mxu1 %v10977_v2  ;;  %v10986_v10 = vld [vmem:[#allocation81_spill] sm:$0xff] }
 0x676   :  { %7496 = vmatprep.subr.bf16.mxu0 %v10978_v55  ;;  %7528 = vmatprep.subr.bf16.mxu1 %v10979_v32 }
 0x70b   :  { %v3796_v18 = vpop.f32.mrb[20].mxu0  ;;  %v3867_v0 = vpop.f32.mrb[20].mxu1 }
 0x70c   :  { %v3894_v51 = vadd.f32 %v3877_v29, %v3796_v18  ;;  %v3798_v24 = vpop.f32.mrb[21].mxu0  ;;  %v3869_v40 = vpop.f32.mrb[21].mxu1  ;;  %v3896_v22 = vadd.f32 %v3885_v43, %v3867_v0 }
 0x70d   :  { %v3895_v48 = vadd.f32 %v3881_v62, %v3798_v24  ;;  %v3897_v58 = vadd.f32 %v3889_v59, %v3869_v40  ;;  %v10987_v62 = vld [vmem:[#allocation83_spill] sm:$0xff]  ;;  %v10989_v59 = vld [vmem:[#allocation52_spill] sm:$0xff] }
 0x70e   :  { %v6266_v4 = vmul.f32 -1.442695, %v3894_v51  ;;  %v6268_v3 = vmul.f32 -1.442695, %v3896_v22  ;;  %v10990_v22 = vld [vmem:[#allocation53_spill] sm:$0xff] }
 0x70f   :  { %v6267_v39 = vmul.f32 -1.442695, %v3895_v48 }
 0x710   :  { %8160 = vpow2.f32 %v6266_v4 }
 0x711   :  { %8162 = vpow2.f32 %v6267_v39  ;;  %v10988_v39 = vld [vmem:[#allocation51_spill] sm:$0xff] }
 0x712   :  { %8164 = vtanh.f32 %v3897_v58 }
 0x713   :  { %8166 = vpow2.f32 %v6268_v3 }
 0x71a   :  { %v8161_v26 = vpop.eup %8160 }
 0x71b   :  { %v3907_v16 = vadd.f32 1.0, %v8161_v26  ;;  %v8163_v37 = vpop.eup %8162  ;;  %v10991_v26 = vld [vmem:[#allocation54_spill] sm:$0xff] }
 0x71c   :  { %v3908_v8 = vadd.f32 1.0, %v8163_v37  ;;  %v8165_v19 = vpop.eup %8164  ;;  %v10994_v37 = vld [vmem:[#allocation57_spill] sm:$0xff] }
 0x71d   :  { %8168 = vrcp.f32 %v3907_v16  ;;  %v8167_v56 = vpop.eup %8166  ;;  %v10992_v16 = vld [vmem:[#allocation55_spill] sm:$0xff] }
 0x71e   :  { %8170 = vrcp.f32 %v3908_v8  ;;  %v3909_v9 = vadd.f32 1.0, %v8167_v56  ;;  %v10995_v8 = vld [vmem:[#allocation58_spill] sm:$0xff]  ;;  %v10997_v56 = vld [vmem:[#allocation60_spill] sm:$0xff] }
 0x720   :  { %8172 = vrcp.f32 %v3909_v9  ;;  %v10999_v9 = vld [vmem:[#allocation62_spill] sm:$0xff] }
 0x727   :  { %v8169_v60 = vpop.eup %8168 }
 0x728   :  { %v3918_v15 = vmul.f32 %v8169_v60, %v8165_v19  ;;  %v8171_v14 = vpop.eup %8170  ;;  %v10996_v19 = vld [vmem:[#allocation59_spill] sm:$0xff]  ;;  %v10998_v60 = vld [vmem:[#allocation61_spill] sm:$0xff] }
 0x729   :  { %v3917_v44 = vmul.f32 %v8171_v14, %v10984_v53  ;;  %v11000_v53 = vld [vmem:[#allocation63_spill] sm:$0xff] }
 0x72a   :  { %v8173_v0 = vpop.eup %8172 }
 0x72b   :  { %v4053_v49 = vpop.f32.mrb[22].mxu0  ;;  %v4124_v5 = vpop.f32.mrb[22].mxu1  ;;  %v9916_v52 = vadd.f32 %v3918_v15, %v3917_v44 }
 0x72c   :  { %v4133_v63 = vrot.slane %v4053_v49, 3  ;;  %v4055_v46 = vpop.f32.mrb[23].mxu0  ;;  %v4126_v1 = vpop.f32.mrb[23].mxu1  ;;  %v4135_v25 = vrot.slane %v4124_v5, 3  ;;  %v4165_v49 = vrot.slane %v9813_v20, 7  ;;  %v4645_v20 = vld [vmem:[#allocation11 + $0x38] sm:$0xff] }
 0x72d   :  { %v4134_v50 = vrot.slane %v4055_v46, 3  ;;  %8174 = vtanh.f32 %v9916_v52  ;;  %v4136_v29 = vrot.slane %v4126_v1, 3 }
 0x72e   :  { %v4141_v13 = vadd.f32 %v4133_v63, %v10985_v17  ;;  %v4143_v18 = vadd.f32 %v4135_v25, %v10987_v62 }
 0x72f   :  { %v4142_v2 = vadd.f32 %v4134_v50, %v10986_v10  ;;  %v4144_v24 = vadd.f32 %v4136_v29, %v8949_v23  ;;  %v11001_v50 = vld [vmem:[#allocation64_spill] sm:$0xff]  ;;  %v4650_v29 = vld [vmem:[#allocation11 + $0x60] sm:$0xff] }
 0x730   :  { %v6269_v55 = vmul.f32 -1.442695, %v4141_v13  ;;  %v6271_v48 = vmul.f32 -1.442695, %v4143_v18 }
 0x731   :  { %v6270_v32 = vmul.f32 -1.442695, %v4142_v2  ;;  %v4649_v2 = vld [vmem:[#allocation11 + $0x58] sm:$0xff] }
 0x732   :  { %8176 = vpow2.f32 %v6269_v55  ;;  %v4653_v55 = vld [vmem:[#allocation11 + $0x78] sm:$0xff] }
 0x733   :  { %8178 = vpow2.f32 %v6270_v32 }
 0x734   :  { %8180 = vtanh.f32 %v4144_v24  ;;  %v4648_v24 = vld [vmem:[#allocation11 + $0x50] sm:$0xff] }
 0x735   :  { %8182 = vpow2.f32 %v6271_v48  ;;  %v4655_v48 = vld [vmem:[#allocation11 + $0x88] sm:$0xff] }
 0x737   :  { %v8175_v51 = vpop.eup %8174 }
 0x738   :  { %v3921_v40 = vmul.f32 %v8175_v51, %v8173_v0  ;;  %v9973_v51 = vpack.c.bf16 %v4653_v55, %v4649_v2  ;;  %v4685_v2 = vld [vmem:[#allocation11 + $0x178] sm:$0xff] }
 0x73a   :  { %3922 = vst [vmem:[#allocation3 + $0x4] sm:$0x1] %v3921_v40  ;;  %4365 = vmatmul.mubr.f32.vlgmr.msra.gmra.mrb[24].mxu0 %v3921_v40  ;;  %4436 = vmatmul.mubr.f32.vlgmr.msra.gmra.mrb[24].mxu1 %v3921_v40  ;;  %v4652_v40 = vld [vmem:[#allocation11 + $0x70] sm:$0xff] }
 0x73b   :  { %7498 = vmatpush1.bf16.msra.mxu0 %v9741_v6  ;;  %7530 = vmatpush1.bf16.msra.mxu1 %v10988_v39  ;;  %v10993_v6 = vld [vmem:[#allocation56_spill] sm:$0xff]  ;;  %v4657_v39 = vld [vmem:[#allocation11 + $0x98] sm:$0xff] }
 0x73c   :  { %v8177_v4 = vpop.eup %8176  ;;  %7500 = vmatprep.subr.bf16.mxu0 %v10989_v59  ;;  %7532 = vmatprep.subr.bf16.mxu1 %v10990_v22  ;;  %v9981_v22 = vpack.c.bf16 %v4652_v40, %v4648_v24 }
 0x73d   :  { %v4154_v43 = vadd.f32 1.0, %v8177_v4  ;;  %v8179_v58 = vpop.eup %8178  ;;  %4509 = vmatprep.mubr.f32.mxu0 %v10710_v33  ;;  %4580 = vmatprep.mubr.f32.mxu1 %v10710_v33  ;;  %v4659_v4 = vld [vmem:[#allocation11 + $0xa8] sm:$0xff] }
 0x73e   :  { %v4155_v3 = vadd.f32 1.0, %v8179_v58  ;;  %v8181_v15 = vpop.eup %8180  ;;  %v4654_v58 = vld [vmem:[#allocation11 + $0x80] sm:$0xff] }
 0x73f   :  { %8184 = vrcp.f32 %v4154_v43  ;;  %7502 = vmatpush1.bf16.msra.mxu0 %v10991_v26  ;;  %7534 = vmatpush1.bf16.msra.mxu1 %v10992_v16  ;;  %v8183_v14 = vpop.eup %8182  ;;  %v4661_v43 = vld [vmem:[#allocation11 + $0xb8] sm:$0xff]  ;;  %v9985_v26 = vpack.c.bf16 %v4659_v4, %v4655_v48  ;;  %v4680_v48 = vld [vmem:[#allocation11 + $0x150] sm:$0xff] }
 0x740   :  { %8186 = vrcp.f32 %v4155_v3  ;;  %7504 = vmatprep.subr.bf16.mxu0 %v10993_v6  ;;  %7536 = vmatprep.subr.bf16.mxu1 %v10994_v37  ;;  %v4156_v46 = vadd.f32 1.0, %v8183_v14  ;;  %v4658_v3 = vld [vmem:[#allocation11 + $0xa0] sm:$0xff]  ;;  %v9987_v16 = vpack.c.bf16 %v4661_v43, %v4657_v39  ;;  %v4656_v6 = vld [vmem:[#allocation11 + $0x90] sm:$0xff]  ;;  %v4687_v39 = vld [vmem:[#allocation11 + $0x188] sm:$0xff] }
 0x741   :  { %v4660_v37 = vld [vmem:[#allocation11 + $0xb0] sm:$0xff]  ;;  %v4691_v43 = vld [vmem:[#allocation11 + $0x1a8] sm:$0xff] }
 0x742   :  { %8188 = vrcp.f32 %v4156_v46  ;;  %v9995_v14 = vpack.c.bf16 %v4660_v37, %v4656_v6  ;;  %v4671_v46 = vld [vmem:[#allocation11 + $0x108] sm:$0xff]  ;;  %v4684_v4 = vld [vmem:[#allocation11 + $0x170] sm:$0xff] }
 0x743   :  { %7506 = vmatpush1.bf16.msra.mxu0 %v10995_v8  ;;  %7538 = vmatpush1.bf16.msra.mxu1 %v10996_v19  ;;  %v4663_v8 = vld [vmem:[#allocation11 + $0xc8] sm:$0xff]  ;;  %v10031_v37 = vpack.c.bf16 %v4684_v4, %v4680_v48  ;;  %v4954_v48 = vld [vmem:[#allocation11 + $0x218] sm:$0xff] }
 0x744   :  { %7508 = vmatprep.subr.bf16.mxu0 %v10997_v56  ;;  %7540 = vmatprep.subr.bf16.mxu1 %v10998_v60  ;;  %v4667_v19 = vld [vmem:[#allocation11 + $0xe8] sm:$0xff]  ;;  %v4665_v56 = vld [vmem:[#allocation11 + $0xd8] sm:$0xff] }
 0x745   :  { %v4669_v60 = vld [vmem:[#allocation11 + $0xf8] sm:$0xff] }
 0x747   :  { %7510 = vmatpush1.bf16.msra.mxu0 %v10999_v9  ;;  %7542 = vmatpush1.bf16.msra.mxu1 %v11000_v53  ;;  %v4662_v9 = vld [vmem:[#allocation11 + $0xc0] sm:$0xff] }
 0x748   :  { %7512 = vmatprep.subr.bf16.mxu0 %v9784_v35  ;;  %7544 = vmatprep.subr.bf16.mxu1 %v9786_v36  ;;  %v4639_v35 = vld [vmem:[#allocation11 + $0x8] sm:$0xff]  ;;  %v4666_v53 = vld [vmem:[#allocation11 + $0xe0] sm:$0xff] }
 0x749   :  { %v8185_v44 = vpop.eup %8184  ;;  %v4643_v36 = vld [vmem:[#allocation11 + $0x28] sm:$0xff] }
 0x74a   :  { %v4168_v5 = vmul.f32 %v8185_v44, %v8181_v15  ;;  %v8187_v63 = vpop.eup %8186  ;;  %v9993_v15 = vpack.c.bf16 %v4658_v3, %v4654_v58  ;;  %v9999_v44 = vpack.c.bf16 %v4667_v19, %v4663_v8  ;;  %v4689_v58 = vld [vmem:[#allocation11 + $0x198] sm:$0xff]  ;;  %v4686_v8 = vld [vmem:[#allocation11 + $0x180] sm:$0xff] }
 0x74b   :  { %v4167_v1 = vmul.f32 %v8187_v63, %v4165_v49  ;;  %7514 = vmatpush1.bf16.msra.mxu0 %v9790_v45  ;;  %7546 = vmatpush1.bf16.msra.mxu1 %v11001_v50  ;;  %v4641_v45 = vld [vmem:[#allocation11 + $0x18] sm:$0xff]  ;;  %v10001_v49 = vpack.c.bf16 %v4669_v60, %v4665_v56  ;;  %v4668_v63 = vld [vmem:[#allocation11 + $0xf0] sm:$0xff]  ;;  %v4690_v19 = vld [vmem:[#allocation11 + $0x1a0] sm:$0xff]  ;;  %v10035_v56 = vpack.c.bf16 %v4691_v43, %v4687_v39 }
 0x74c   :  { %7516 = vmatprep.subr.bf16.mxu0 %v9796_v42  ;;  %7548 = vmatprep.subr.bf16.mxu1 %v9798_v57  ;;  %v9957_v57 = vpack.c.bf16 %v4643_v36, %v4639_v35  ;;  %v9959_v42 = vpack.c.bf16 %v4645_v20, %v4641_v45  ;;  %v4673_v50 = vld [vmem:[#allocation11 + $0x118] sm:$0xff]  ;;  %v10005_v36 = vpack.c.bf16 %v4666_v53, %v4662_v9  ;;  %v4670_v20 = vld [vmem:[#allocation11 + $0x100] sm:$0xff]  ;;  %v4688_v9 = vld [vmem:[#allocation11 + $0x190] sm:$0xff] }
 0x74d   :  { %v9946_v13 = vadd.f32 %v4168_v5, %v4167_v1  ;;  %v4664_v5 = vld [vmem:[#allocation11 + $0xd0] sm:$0xff]  ;;  %v4675_v1 = vld [vmem:[#allocation11 + $0x128] sm:$0xff]  ;;  %v4677_v35 = vld [vmem:[#allocation11 + $0x138] sm:$0xff] }
 0x74e   :  { %v10007_v45 = vpack.c.bf16 %v4668_v63, %v4664_v5  ;;  %v4693_v3 = vld [vmem:[#allocation11 + $0x1b8] sm:$0xff]  ;;  %v4692_v53 = vld [vmem:[#allocation11 + $0x1b0] sm:$0xff]  ;;  %v4695_v5 = vld [vmem:[#allocation11 + $0x1c8] sm:$0xff] }
 0x74f   :  { %8190 = vtanh.f32 %v9946_v13  ;;  %7518 = vmatpush1.bf16.msra.mxu0 %v9803_v30  ;;  %7550 = vmatpush1.bf16.msra.mxu1 %v9805_v31  ;;  %v4638_v30 = vld [vmem:[#allocation11] sm:$0xff]  ;;  %v10037_v60 = vpack.c.bf16 %v4693_v3, %v4689_v58  ;;  %v4699_v63 = vld [vmem:[#allocation11 + $0x1e8] sm:$0xff]  ;;  %v4958_v39 = vld [vmem:[#allocation11 + $0x238] sm:$0xff] }
 0x750   :  { %7520 = vmatprep.subr.bf16.mxu0 %v9809_v7  ;;  %7552 = vmatprep.subr.bf16.mxu1 %v9811_v41  ;;  %v4642_v31 = vld [vmem:[#allocation11 + $0x20] sm:$0xff]  ;;  %v8189_v7 = vpop.eup %8188  ;;  %v4640_v41 = vld [vmem:[#allocation11 + $0x10] sm:$0xff]  ;;  %v10067_v3 = vpack.c.bf16 %v4958_v39, %v4954_v48  ;;  %v4968_v39 = vld [vmem:[#allocation11 + $0x288] sm:$0xff] }
 0x751   :  { %v9965_v25 = vpack.c.bf16 %v4642_v31, %v4638_v30  ;;  %v4674_v30 = vld [vmem:[#allocation11 + $0x120] sm:$0xff]  ;;  %v10011_v31 = vpack.c.bf16 %v4675_v1, %v4671_v46  ;;  %v4697_v46 = vld [vmem:[#allocation11 + $0x1d8] sm:$0xff] }
 0x752   :  { %v10017_v55 = vpack.c.bf16 %v4674_v30, %v4670_v20  ;;  %v4701_v1 = vld [vmem:[#allocation11 + $0x1f8] sm:$0xff]  ;;  %v4694_v20 = vld [vmem:[#allocation11 + $0x1c0] sm:$0xff]  ;;  %v10047_v30 = vpack.c.bf16 %v4699_v63, %v4695_v5  ;;  %v4964_v5 = vld [vmem:[#allocation11 + $0x268] sm:$0xff] }
 0x753   :  { %7522 = vmatpush1.bf16.msra.mxu0 %v9818_v34  ;;  %7554 = vmatpush1.bf16.msra.mxu1 %v9820_v61  ;;  %v4644_v34 = vld [vmem:[#allocation11 + $0x30] sm:$0xff]  ;;  %v4647_v61 = vld [vmem:[#allocation11 + $0x48] sm:$0xff]  ;;  %v4951_v43 = vld [vmem:[#allocation11 + $0x200] sm:$0xff] }
 0x754   :  { %7524 = vmatprep.subr.bf16.mxu0 %v9824_v47  ;;  %7556 = vmatprep.subr.bf16.mxu1 %v9826_v28  ;;  %v4651_v28 = vld [vmem:[#allocation11 + $0x68] sm:$0xff]  ;;  %v4955_v58 = vld [vmem:[#allocation11 + $0x220] sm:$0xff]  ;;  %v4962_v63 = vld [vmem:[#allocation11 + $0x258] sm:$0xff] }
 0x755   :  { %v9971_v0 = vpack.c.bf16 %v4651_v28, %v4647_v61  ;;  %v4679_v61 = vld [vmem:[#allocation11 + $0x148] sm:$0xff]  ;;  %v4681_v28 = vld [vmem:[#allocation11 + $0x158] sm:$0xff] }
 0x756   :  { %v10025_v40 = vpack.c.bf16 %v4685_v2, %v4681_v28 }
 0x757   :  { %7526 = vmatpush1.bf16.msra.mxu0 %v9830_v38  ;;  %7558 = vmatpush1.bf16.msra.mxu1 %v9832_v12  ;;  %v9967_v38 = vpack.c.bf16 %v4644_v34, %v4640_v41  ;;  %v4646_v12 = vld [vmem:[#allocation11 + $0x40] sm:$0xff]  ;;  %v4672_v41 = vld [vmem:[#allocation11 + $0x110] sm:$0xff] }
 0x758   :  { %7560 = vmatprep.subr.bf16.mxu0 %v9957_v57  ;;  %7592 = vmatprep.subr.bf16.mxu1 %v9959_v42  ;;  %v9979_v59 = vpack.c.bf16 %v4650_v29, %v4646_v12  ;;  %v4676_v34 = vld [vmem:[#allocation11 + $0x130] sm:$0xff]  ;;  %v4678_v12 = vld [vmem:[#allocation11 + $0x140] sm:$0xff] }
 0x759   :  { %v8191_v47 = vpop.eup %8190  ;;  %v4682_v29 = vld [vmem:[#allocation11 + $0x160] sm:$0xff] }
 0x75a   :  { %v4171_v32 = vmul.f32 %v8191_v47, %v8189_v7  ;;  %v10013_v7 = vpack.c.bf16 %v4677_v35, %v4673_v50  ;;  %v4683_v47 = vld [vmem:[#allocation11 + $0x168] sm:$0xff]  ;;  %v10029_v6 = vpack.c.bf16 %v4682_v29, %v4678_v12  ;;  %v10041_v50 = vpack.c.bf16 %v4690_v19, %v4686_v8  ;;  %v4953_v19 = vld [vmem:[#allocation11 + $0x210] sm:$0xff] }
 0x75b   :  { %v10023_v24 = vpack.c.bf16 %v4683_v47, %v4679_v61  ;;  %v10043_v35 = vpack.c.bf16 %v4692_v53, %v4688_v9  ;;  %v4696_v61 = vld [vmem:[#allocation11 + $0x1d0] sm:$0xff]  ;;  %v4952_v12 = vld [vmem:[#allocation11 + $0x208] sm:$0xff]  ;;  %v10069_v8 = vpack.c.bf16 %v4955_v58, %v4951_v43  ;;  %v4970_v58 = vld [vmem:[#allocation11 + $0x298] sm:$0xff] }
 0x75c   :  { %v9969_v18 = vrot.slane %v4171_v32, 5  ;;  %v10019_v32 = vpack.c.bf16 %v4676_v34, %v4672_v41  ;;  %v10049_v41 = vpack.c.bf16 %v4701_v1, %v4697_v46  ;;  %v4698_v34 = vld [vmem:[#allocation11 + $0x1e0] sm:$0xff]  ;;  %v4700_v47 = vld [vmem:[#allocation11 + $0x1f0] sm:$0xff]  ;;  %v4956_v29 = vld [vmem:[#allocation11 + $0x228] sm:$0xff] }
 0x75d   :  { %v10053_v28 = vpack.c.bf16 %v4698_v34, %v4694_v20  ;;  %v10055_v2 = vpack.c.bf16 %v4700_v47, %v4696_v61  ;;  %v10065_v4 = vpack.c.bf16 %v4956_v29, %v4952_v12  ;;  %11002 = vst [vmem:[#allocation65_spill] sm:$0xff] %v10069_v8  ;;  %v4957_v9 = vld [vmem:[#allocation11 + $0x230] sm:$0xff]  ;;  %v4960_v53 = vld [vmem:[#allocation11 + $0x248] sm:$0xff]  ;;  %v4966_v1 = vld [vmem:[#allocation11 + $0x278] sm:$0xff] }
 0x75e   :  { %4510 = vmatmul.mubr.f32.vlgmr.msra.gmra.mrb[24].mxu0 %v9969_v18  ;;  %4581 = vmatmul.mubr.f32.vlgmr.msra.gmra.mrb[24].mxu1 %v9969_v18  ;;  %v10077_v46 = vpack.c.bf16 %v4964_v5, %v4960_v53  ;;  %v4959_v20 = vld [vmem:[#allocation11 + $0x240] sm:$0xff]  ;;  %v10079_v61 = vpack.c.bf16 %v4966_v1, %v4962_v63  ;;  %v4961_v12 = vld [vmem:[#allocation11 + $0x250] sm:$0xff]  ;;  %v4972_v43 = vld [vmem:[#allocation11 + $0x2a8] sm:$0xff] }
 0x75f   :  { %7562 = vmatpush1.bf16.msra.mxu0 %v9965_v25  ;;  %7594 = vmatpush1.bf16.msra.mxu1 %v9967_v38  ;;  %v4963_v34 = vld [vmem:[#allocation11 + $0x260] sm:$0xff]  ;;  %v4965_v29 = vld [vmem:[#allocation11 + $0x270] sm:$0xff] }
 0x760   :  { %7564 = vmatprep.subr.bf16.mxu0 %v9971_v0  ;;  %7596 = vmatprep.subr.bf16.mxu1 %v9973_v51  ;;  %11004 = vst [vmem:[#allocation67_spill] sm:$0xff] %v10077_v46  ;;  %11005 = vst [vmem:[#allocation68_spill] sm:$0xff] %v10079_v61  ;;  %v10081_v47 = vpack.c.bf16 %v4963_v34, %v4959_v20  ;;  %v10084_v48 = vpack.c.bf16 %v4965_v29, %v4961_v12  ;;  %v4967_v53 = vld [vmem:[#allocation11 + $0x280] sm:$0xff]  ;;  %v4969_v20 = vld [vmem:[#allocation11 + $0x290] sm:$0xff] }
 0x761   :  { %4766 = vmatprep.mubr.f32.mxu0 %v10710_v33  ;;  %4837 = vmatprep.mubr.f32.mxu1 %v10710_v33  ;;  %v4971_v5 = vld [vmem:[#allocation11 + $0x2a0] sm:$0xff]  ;;  %v4973_v34 = vld [vmem:[#allocation11 + $0x2b0] sm:$0xff]  ;;  %v4976_v29 = vld [vmem:[#allocation11 + $0x2c8] sm:$0xff] }
 0x762   :  { %11006 = vst [vmem:[#allocation69_spill] sm:$0xff] %v10081_v47  ;;  %11007 = vst [vmem:[#allocation70_spill] sm:$0xff] %v10084_v48  ;;  %v10093_v1 = vpack.c.bf16 %v4971_v5, %v4967_v53  ;;  %v10096_v12 = vpack.c.bf16 %v4973_v34, %v4969_v20  ;;  %v4979_v53 = vld [vmem:[#allocation11 + $0x2e0] sm:$0xff]  ;;  %v4977_v20 = vld [vmem:[#allocation11 + $0x2d0] sm:$0xff] }
 0x763   :  { %7566 = vmatpush1.bf16.msra.mxu0 %v9979_v59  ;;  %7598 = vmatpush1.bf16.msra.mxu1 %v9981_v22  ;;  %v4981_v34 = vld [vmem:[#allocation11 + $0x2f0] sm:$0xff] }
 0x764   :  { %7568 = vmatprep.subr.bf16.mxu0 %v9985_v26  ;;  %7600 = vmatprep.subr.bf16.mxu1 %v9987_v16  ;;  %11010 = vst [vmem:[#allocation73_spill] sm:$0xff] %v10093_v1  ;;  %11011 = vst [vmem:[#allocation74_spill] sm:$0xff] %v10096_v12 }
 0x767   :  { %7570 = vmatpush1.bf16.msra.mxu0 %v9993_v15  ;;  %7602 = vmatpush1.bf16.msra.mxu1 %v9995_v14 }
 0x768   :  { %7572 = vmatprep.subr.bf16.mxu0 %v9999_v44  ;;  %7604 = vmatprep.subr.bf16.mxu1 %v10001_v49 }
 0x76b   :  { %7574 = vmatpush1.bf16.msra.mxu0 %v10005_v36  ;;  %7606 = vmatpush1.bf16.msra.mxu1 %v10007_v45 }
 0x76c   :  { %7576 = vmatprep.subr.bf16.mxu0 %v10011_v31  ;;  %7608 = vmatprep.subr.bf16.mxu1 %v10013_v7 }
 0x76f   :  { %7578 = vmatpush1.bf16.msra.mxu0 %v10017_v55  ;;  %7610 = vmatpush1.bf16.msra.mxu1 %v10019_v32 }
 0x770   :  { %7580 = vmatprep.subr.bf16.mxu0 %v10023_v24  ;;  %7612 = vmatprep.subr.bf16.mxu1 %v10025_v40 }
 0x773   :  { %7582 = vmatpush1.bf16.msra.mxu0 %v10029_v6  ;;  %7614 = vmatpush1.bf16.msra.mxu1 %v10031_v37 }
 0x774   :  { %7584 = vmatprep.subr.bf16.mxu0 %v10035_v56  ;;  %7616 = vmatprep.subr.bf16.mxu1 %v10037_v60 }
 0x777   :  { %7586 = vmatpush1.bf16.msra.mxu0 %v10041_v50  ;;  %7618 = vmatpush1.bf16.msra.mxu1 %v10043_v35 }
 0x778   :  { %7588 = vmatprep.subr.bf16.mxu0 %v10047_v30  ;;  %7620 = vmatprep.subr.bf16.mxu1 %v10049_v41 }
 0x77b   :  { %7590 = vmatpush1.bf16.msra.mxu0 %v10053_v28  ;;  %7622 = vmatpush1.bf16.msra.mxu1 %v10055_v2 }
 0x77c   :  { %7624 = vmatprep.subr.bf16.mxu0 %v10065_v4  ;;  %7656 = vmatprep.subr.bf16.mxu1 %v10067_v3 }
 0x77e   :  { %4767 = vmatmul.mubr.f32.vlgmr.msra.gmra.mrb[26].mxu0 %v9969_v18  ;;  %4838 = vmatmul.mubr.f32.vlgmr.msra.gmra.mrb[26].mxu1 %v9969_v18  ;;  %v10072_v18 = vpack.c.bf16 %v4957_v9, %v4953_v19  ;;  %v10089_v19 = vpack.c.bf16 %v4972_v43, %v4968_v39  ;;  %v4974_v9 = vld [vmem:[#allocation11 + $0x2b8] sm:$0xff]  ;;  %v4980_v39 = vld [vmem:[#allocation11 + $0x2e8] sm:$0xff] }
 0x77f   :  { %5079 = vmatprep.mubr.f32.mxu0 %v10710_v33  ;;  %5150 = vmatprep.mubr.f32.mxu1 %v10710_v33  ;;  %v10091_v63 = vpack.c.bf16 %v4974_v9, %v4970_v58  ;;  %v4978_v43 = vld [vmem:[#allocation11 + $0x2d8] sm:$0xff]  ;;  %v4975_v9 = vld [vmem:[#allocation11 + $0x2c0] sm:$0xff] }
 0x780   :  { %11003 = vst [vmem:[#allocation66_spill] sm:$0xff] %v10072_v18  ;;  %7626 = vmatpush1.bf16.msra.mxu0 %v10069_v8  ;;  %7658 = vmatpush1.bf16.msra.mxu1 %v10072_v18  ;;  %11008 = vst [vmem:[#allocation71_spill] sm:$0xff] %v10089_v19  ;;  %v4982_v58 = vld [vmem:[#allocation11 + $0x2f8] sm:$0xff] }
 0x781   :  { %7628 = vmatprep.subr.bf16.mxu0 %v10077_v46  ;;  %7660 = vmatprep.subr.bf16.mxu1 %v10079_v61  ;;  %11009 = vst [vmem:[#allocation72_spill] sm:$0xff] %v10091_v63  ;;  %v10103_v5 = vpack.c.bf16 %v4982_v58, %v4978_v43  ;;  %v4990_v43 = vld [vmem:[#allocation11 + $0x338] sm:$0xff]  ;;  %v4983_v58 = vld [vmem:[#allocation11 + $0x300] sm:$0xff] }
 0x782   :  { %v4906_v18 = vld [vmem:[#allocation9 + $0x298] sm:$0xff] }
 0x783   :  { %11013 = vst [vmem:[#allocation76_spill] sm:$0xff] %v10103_v5  ;;  %v4910_v8 = vld [vmem:[#allocation9 + $0x2b8] sm:$0xff] }
 0x784   :  { %7630 = vmatpush1.bf16.msra.mxu0 %v10081_v47  ;;  %7662 = vmatpush1.bf16.msra.mxu1 %v10084_v48  ;;  %v10101_v48 = vpack.c.bf16 %v4980_v39, %v4976_v29  ;;  %v10105_v47 = vpack.c.bf16 %v4979_v53, %v4975_v9  ;;  %v4984_v29 = vld [vmem:[#allocation11 + $0x308] sm:$0xff]  ;;  %v4987_v9 = vld [vmem:[#allocation11 + $0x320] sm:$0xff] }
 0x785   :  { %7632 = vmatprep.subr.bf16.mxu0 %v10089_v19  ;;  %7664 = vmatprep.subr.bf16.mxu1 %v10091_v63  ;;  %v10108_v63 = vpack.c.bf16 %v4981_v34, %v4977_v20  ;;  %v4988_v39 = vld [vmem:[#allocation11 + $0x328] sm:$0xff]  ;;  %v10117_v19 = vpack.c.bf16 %v4987_v9, %v4983_v58  ;;  %v4985_v20 = vld [vmem:[#allocation11 + $0x310] sm:$0xff]  ;;  %v4995_v58 = vld [vmem:[#allocation11 + $0x360] sm:$0xff] }
 0x786   :  { %11012 = vst [vmem:[#allocation75_spill] sm:$0xff] %v10101_v48  ;;  %11014 = vst [vmem:[#allocation24_spill] sm:$0xff] %v10105_v47  ;;  %v4989_v34 = vld [vmem:[#allocation11 + $0x330] sm:$0xff] }
 0x787   :  { %11015 = vst [vmem:[#allocation25_spill] sm:$0xff] %v10108_v63  ;;  %11018 = vst [vmem:[#allocation28_spill] sm:$0xff] %v10117_v19 }
 0x788   :  { %7634 = vmatpush1.bf16.msra.mxu0 %v10093_v1  ;;  %7666 = vmatpush1.bf16.msra.mxu1 %v10096_v12  ;;  %v4986_v12 = vld [vmem:[#allocation11 + $0x318] sm:$0xff]  ;;  %v10113_v1 = vpack.c.bf16 %v4988_v39, %v4984_v29  ;;  %v4996_v29 = vld [vmem:[#allocation11 + $0x368] sm:$0xff] }
 0x789   :  { %7636 = vmatprep.subr.bf16.mxu0 %v10101_v48  ;;  %7668 = vmatprep.subr.bf16.mxu1 %v10103_v5  ;;  %v10115_v53 = vpack.c.bf16 %v4990_v43, %v4986_v12  ;;  %v10120_v5 = vpack.c.bf16 %v4989_v34, %v4985_v20  ;;  %v4994_v39 = vld [vmem:[#allocation11 + $0x358] sm:$0xff]  ;;  %v4991_v43 = vld [vmem:[#allocation11 + $0x340] sm:$0xff]  ;;  %v4993_v20 = vld [vmem:[#allocation11 + $0x350] sm:$0xff] }
 0x78a   :  { %11016 = vst [vmem:[#allocation26_spill] sm:$0xff] %v10113_v1  ;;  %v4998_v12 = vld [vmem:[#allocation11 + $0x378] sm:$0xff]  ;;  %v10129_v48 = vpack.c.bf16 %v4995_v58, %v4991_v43  ;;  %v4997_v34 = vld [vmem:[#allocation11 + $0x370] sm:$0xff]  ;;  %v5003_v43 = vld [vmem:[#allocation11 + $0x3a0] sm:$0xff] }
 0x78b   :  { %11017 = vst [vmem:[#allocation27_spill] sm:$0xff] %v10115_v53  ;;  %11019 = vst [vmem:[#allocation29_spill] sm:$0xff] %v10120_v5  ;;  %v10127_v9 = vpack.c.bf16 %v4998_v12, %v4994_v39  ;;  %v5006_v39 = vld [vmem:[#allocation11 + $0x3b8] sm:$0xff]  ;;  %v4999_v12 = vld [vmem:[#allocation11 + $0x380] sm:$0xff] }
 0x78c   :  { %7638 = vmatpush1.bf16.msra.mxu0 %v10105_v47  ;;  %7670 = vmatpush1.bf16.msra.mxu1 %v10108_v63  ;;  %v4992_v63 = vld [vmem:[#allocation11 + $0x348] sm:$0xff]  ;;  %11022 = vst [vmem:[#allocation32_spill] sm:$0xff] %v10129_v48 }
 0x78d   :  { %7640 = vmatprep.subr.bf16.mxu0 %v10113_v1  ;;  %7672 = vmatprep.subr.bf16.mxu1 %v10115_v53  ;;  %v10125_v47 = vpack.c.bf16 %v4996_v29, %v4992_v63  ;;  %11021 = vst [vmem:[#allocation31_spill] sm:$0xff] %v10127_v9  ;;  %v10132_v53 = vpack.c.bf16 %v4997_v34, %v4993_v20  ;;  %v5004_v63 = vld [vmem:[#allocation11 + $0x3a8] sm:$0xff]  ;;  %v5002_v29 = vld [vmem:[#allocation11 + $0x398] sm:$0xff]  ;;  %v5001_v20 = vld [vmem:[#allocation11 + $0x390] sm:$0xff] }
 0x78e   :  { %v10139_v58 = vpack.c.bf16 %v5006_v39, %v5002_v29  ;;  %v10141_v1 = vpack.c.bf16 %v5003_v43, %v4999_v12  ;;  %v5005_v34 = vld [vmem:[#allocation11 + $0x3b0] sm:$0xff]  ;;  %v5014_v29 = vld [vmem:[#allocation11 + $0x3f8] sm:$0xff]  ;;  %v5007_v39 = vld [vmem:[#allocation11 + $0x3c0] sm:$0xff] }
 0x78f   :  { %11020 = vst [vmem:[#allocation30_spill] sm:$0xff] %v10125_v47  ;;  %11023 = vst [vmem:[#allocation33_spill] sm:$0xff] %v10132_v53  ;;  %v5011_v12 = vld [vmem:[#allocation11 + $0x3e0] sm:$0xff] }
 0x790   :  { %7642 = vmatpush1.bf16.msra.mxu0 %v10117_v19  ;;  %7674 = vmatpush1.bf16.msra.mxu1 %v10120_v5  ;;  %v5000_v5 = vld [vmem:[#allocation11 + $0x388] sm:$0xff]  ;;  %11025 = vst [vmem:[#allocation35_spill] sm:$0xff] %v10139_v58  ;;  %11026 = vst [vmem:[#allocation36_spill] sm:$0xff] %v10141_v1 }
 0x791   :  { %7644 = vmatprep.subr.bf16.mxu0 %v10125_v47  ;;  %7676 = vmatprep.subr.bf16.mxu1 %v10127_v9  ;;  %v10137_v19 = vpack.c.bf16 %v5004_v63, %v5000_v5  ;;  %v10144_v9 = vpack.c.bf16 %v5005_v34, %v5001_v20  ;;  %v5012_v5 = vld [vmem:[#allocation11 + $0x3e8] sm:$0xff]  ;;  %v5010_v63 = vld [vmem:[#allocation11 + $0x3d8] sm:$0xff]  ;;  %v10153_v47 = vpack.c.bf16 %v5011_v12, %v5007_v39  ;;  %v5009_v20 = vld [vmem:[#allocation11 + $0x3d0] sm:$0xff] }
 0x792   :  { %v10151_v43 = vpack.c.bf16 %v5014_v29, %v5010_v63  ;;  %v5013_v34 = vld [vmem:[#allocation11 + $0x3f0] sm:$0xff]  ;;  %v4894_v63 = vld [vmem:[#allocation9 + $0x238] sm:$0xff] }
 0x793   :  { %11024 = vst [vmem:[#allocation34_spill] sm:$0xff] %v10137_v19  ;;  %11027 = vst [vmem:[#allocation37_spill] sm:$0xff] %v10144_v9  ;;  %v6272_v39 = vld [vmem:[%s10448_s4 + $0x4] sm:$0xf] }
 0x794   :  { %7646 = vmatpush1.bf16.msra.mxu0 %v10129_v48  ;;  %7678 = vmatpush1.bf16.msra.mxu1 %v10132_v53  ;;  %v5008_v53 = vld [vmem:[#allocation11 + $0x3c8] sm:$0xff]  ;;  %11029 = vst [vmem:[#allocation39_spill] sm:$0xff] %v10151_v43  ;;  %11030 = vst [vmem:[#allocation40_spill] sm:$0xff] %v10153_v47  ;;  %v4592_v12 = vrot.slane %v6272_v39, %v10980_v11 }
 0x795   :  { %7648 = vmatprep.subr.bf16.mxu0 %v10137_v19  ;;  %7680 = vmatprep.subr.bf16.mxu1 %v10139_v58  ;;  %v10149_v48 = vpack.c.bf16 %v5012_v5, %v5008_v53  ;;  %v10156_v58 = vpack.c.bf16 %v5013_v34, %v5009_v20  ;;  %v4888_v53 = vld [vmem:[#allocation9 + $0x208] sm:$0xff]  ;;  %v4596_v20 = vrot.slane %v6272_v39, %v10981_v27 }
 0x796   :  { %v4892_v5 = vld [vmem:[#allocation9 + $0x228] sm:$0xff] }
 0x797   :  { %11028 = vst [vmem:[#allocation38_spill] sm:$0xff] %v10149_v48  ;;  %11031 = vst [vmem:[#allocation41_spill] sm:$0xff] %v10156_v58 }
 0x798   :  { %7650 = vmatpush1.bf16.msra.mxu0 %v10141_v1  ;;  %7682 = vmatpush1.bf16.msra.mxu1 %v10144_v9  ;;  %v4890_v9 = vld [vmem:[#allocation9 + $0x218] sm:$0xff]  ;;  %v10161_v1 = vpack.c.bf16 %v4892_v5, %v4888_v53 }
 0x799   :  { %7652 = vmatprep.subr.bf16.mxu0 %v10149_v48  ;;  %7684 = vmatprep.subr.bf16.mxu1 %v10151_v43  ;;  %v10163_v29 = vpack.c.bf16 %v4894_v63, %v4890_v9 }
 0x79a   :  { %11032 = vst [vmem:[#allocation42_spill] sm:$0xff] %v10161_v1 }
 0x79b   :  { %11033 = vst [vmem:[#allocation43_spill] sm:$0xff] %v10163_v29 }
 0x79c   :  { %7654 = vmatpush1.bf16.msra.mxu0 %v10153_v47  ;;  %7686 = vmatpush1.bf16.msra.mxu1 %v10156_v58 }
 0x79d   :  { %7688 = vmatprep.subr.bf16.mxu0 %v10161_v1  ;;  %7720 = vmatprep.subr.bf16.mxu1 %v10163_v29  ;;  %v4600_v1 = vrot.slane %v6272_v39, %v10982_v21  ;;  %v4604_v29 = vrot.slane %v6272_v39, %v10983_v54  ;;  %v4908_v21 = vld [vmem:[#allocation9 + $0x2a8] sm:$0xff] }
 0x831   :  { %v4511_v34 = vpop.f32.mrb[24].mxu0  ;;  %v4582_v58 = vpop.f32.mrb[24].mxu1 }
 0x832   :  { %v4609_v47 = vadd.f32 %v4592_v12, %v4511_v34  ;;  %v4513_v53 = vpop.f32.mrb[25].mxu0  ;;  %v4584_v5 = vpop.f32.mrb[25].mxu1  ;;  %v4611_v48 = vadd.f32 %v4600_v1, %v4582_v58 }
 0x833   :  { %v4610_v43 = vadd.f32 %v4596_v20, %v4513_v53  ;;  %v4612_v19 = vadd.f32 %v4604_v29, %v4584_v5 }
 0x834   :  { %v6273_v9 = vmul.f32 -1.442695, %v4609_v47  ;;  %v6275_v61 = vmul.f32 -1.442695, %v4611_v48 }
 0x835   :  { %v6274_v63 = vmul.f32 -1.442695, %v4610_v43 }
 0x836   :  { %8192 = vpow2.f32 %v6273_v9 }
 0x837   :  { %8194 = vpow2.f32 %v6274_v63 }
 0x838   :  { %8196 = vtanh.f32 %v4612_v19 }
 0x839   :  { %8198 = vpow2.f32 %v6275_v61 }
 0x840   :  { %v8193_v11 = vpop.eup %8192 }
 0x841   :  { %v4622_v46 = vadd.f32 1.0, %v8193_v11  ;;  %v8195_v27 = vpop.eup %8194 }
 0x842   :  { %v4623_v12 = vadd.f32 1.0, %v8195_v27  ;;  %v8197_v20 = vpop.eup %8196 }
 0x843   :  { %8200 = vrcp.f32 %v4622_v46  ;;  %v8199_v47 = vpop.eup %8198 }
 0x844   :  { %8202 = vrcp.f32 %v4623_v12  ;;  %v4624_v9 = vadd.f32 1.0, %v8199_v47 }
 0x846   :  { %8204 = vrcp.f32 %v4624_v9 }
 0x84d   :  { %v8201_v43 = vpop.eup %8200 }
 0x84e   :  { %v4633_v34 = vmul.f32 %v8201_v43, %v8197_v20  ;;  %v8203_v53 = vpop.eup %8202  ;;  %v4891_v20 = vld [vmem:[#allocation9 + $0x220] sm:$0xff]  ;;  %v4889_v43 = vld [vmem:[#allocation9 + $0x210] sm:$0xff] }
 0x84f   :  { %v4632_v63 = vmul.f32 %v8203_v53, %v9916_v52  ;;  %v4887_v52 = vld [vmem:[#allocation9 + $0x200] sm:$0xff]  ;;  %v4896_v53 = vld [vmem:[#allocation9 + $0x248] sm:$0xff] }
 0x851   :  { %v4768_v39 = vpop.f32.mrb[26].mxu0  ;;  %v4839_v1 = vpop.f32.mrb[26].mxu1  ;;  %v10175_v58 = vadd.f32 %v4633_v34, %v4632_v63  ;;  %v4893_v34 = vld [vmem:[#allocation9 + $0x230] sm:$0xff]  ;;  %v4900_v63 = vld [vmem:[#allocation9 + $0x268] sm:$0xff] }
 0x852   :  { %v4848_v48 = vrot.slane %v4768_v39, 2  ;;  %v4770_v11 = vpop.f32.mrb[27].mxu0  ;;  %v4841_v19 = vpop.f32.mrb[27].mxu1  ;;  %v4850_v12 = vrot.slane %v4839_v1, 2  ;;  %v4898_v39 = vld [vmem:[#allocation9 + $0x258] sm:$0xff]  ;;  %v4899_v1 = vld [vmem:[#allocation9 + $0x260] sm:$0xff] }
 0x853   :  { %11034 = vst [vmem:[#allocation44_spill] sm:$0xff] %v10175_v58  ;;  %v4849_v61 = vrot.slane %v4770_v11, 2  ;;  %8206 = vtanh.f32 %v10175_v58  ;;  %v4851_v47 = vrot.slane %v4841_v19, 2  ;;  %v4902_v11 = vld [vmem:[#allocation9 + $0x278] sm:$0xff]  ;;  %v8205_v58 = vpop.eup %8204  ;;  %v10186_v19 = vpack.c.bf16 %v4900_v63, %v4896_v53  ;;  %v4905_v63 = vld [vmem:[#allocation9 + $0x290] sm:$0xff] }
 0x854   :  { %v4856_v27 = vadd.f32 %v4848_v48, %v10985_v17  ;;  %v4858_v9 = vadd.f32 %v4850_v12, %v10987_v62  ;;  %v10181_v17 = vpack.c.bf16 %v4891_v20, %v4887_v52  ;;  %v4901_v12 = vld [vmem:[#allocation9 + $0x270] sm:$0xff]  ;;  %v4904_v62 = vld [vmem:[#allocation9 + $0x288] sm:$0xff] }
 0x855   :  { %v4857_v46 = vadd.f32 %v4849_v61, %v10986_v10  ;;  %v10183_v61 = vpack.c.bf16 %v4893_v34, %v4889_v43  ;;  %11036 = vst [vmem:[#allocation46_spill] sm:$0xff] %v10186_v19  ;;  %v4897_v10 = vld [vmem:[#allocation9 + $0x250] sm:$0xff]  ;;  %v4907_v43 = vld [vmem:[#allocation9 + $0x2a0] sm:$0xff]  ;;  %v10198_v53 = vpack.c.bf16 %v4908_v21, %v4904_v62 }
 0x856   :  { %v6276_v29 = vmul.f32 -1.442695, %v4856_v27  ;;  %v4895_v27 = vld [vmem:[#allocation9 + $0x240] sm:$0xff]  ;;  %v6278_v54 = vmul.f32 -1.442695, %v4858_v9  ;;  %v10194_v20 = vpack.c.bf16 %v4901_v12, %v4897_v10  ;;  %v10200_v9 = vpack.c.bf16 %v4910_v8, %v4906_v18  ;;  %v4914_v10 = vld [vmem:[#allocation9 + $0x2d8] sm:$0xff] }
 0x857   :  { %v6277_v5 = vmul.f32 -1.442695, %v4857_v46  ;;  %11035 = vst [vmem:[#allocation45_spill] sm:$0xff] %v10183_v61  ;;  %v4859_v46 = vadd.f32 %v4851_v47, %v8949_v23  ;;  %v4903_v47 = vld [vmem:[#allocation9 + $0x280] sm:$0xff]  ;;  %11040 = vst [vmem:[#allocation50_spill] sm:$0xff] %v10198_v53  ;;  %v4913_v12 = vld [vmem:[#allocation9 + $0x2d0] sm:$0xff] }
 0x858   :  { %8208 = vpow2.f32 %v6276_v29  ;;  %11039 = vst [vmem:[#allocation49_spill] sm:$0xff] %v10194_v20  ;;  %11041 = vst [vmem:[#allocation51_spill] sm:$0xff] %v10200_v9  ;;  %v10206_v21 = vpack.c.bf16 %v4907_v43, %v4903_v47  ;;  %v4911_v8 = vld [vmem:[#allocation9 + $0x2c0] sm:$0xff]  ;;  %v4926_v47 = vld [vmem:[#allocation9 + $0x338] sm:$0xff] }
 0x859   :  { %8210 = vpow2.f32 %v6277_v5  ;;  %v10188_v5 = vpack.c.bf16 %v4902_v11, %v4898_v39  ;;  %v4909_v39 = vld [vmem:[#allocation9 + $0x2b0] sm:$0xff]  ;;  %v4912_v11 = vld [vmem:[#allocation9 + $0x2c8] sm:$0xff]  ;;  %v4915_v18 = vld [vmem:[#allocation9 + $0x2e0] sm:$0xff] }
 0x85a   :  { %8212 = vtanh.f32 %v4859_v46  ;;  %11042 = vst [vmem:[#allocation52_spill] sm:$0xff] %v10206_v21  ;;  %v10208_v62 = vpack.c.bf16 %v4909_v39, %v4905_v63  ;;  %v10218_v43 = vpack.c.bf16 %v4915_v18, %v4911_v8  ;;  %v4919_v39 = vld [vmem:[#allocation9 + $0x300] sm:$0xff] }
 0x85b   :  { %11037 = vst [vmem:[#allocation47_spill] sm:$0xff] %v10188_v5  ;;  %8214 = vpow2.f32 %v6278_v54 }
 0x85c   :  { %11043 = vst [vmem:[#allocation53_spill] sm:$0xff] %v10208_v62  ;;  %11046 = vst [vmem:[#allocation56_spill] sm:$0xff] %v10218_v43 }
 0x85d   :  { %v8207_v48 = vpop.eup %8206 }
 0x85e   :  { %v4636_v29 = vmul.f32 %v8207_v48, %v8205_v58  ;;  %v10192_v58 = vpack.c.bf16 %v4899_v1, %v4895_v27  ;;  %v4916_v27 = vld [vmem:[#allocation9 + $0x2e8] sm:$0xff]  ;;  %v4918_v1 = vld [vmem:[#allocation9 + $0x2f8] sm:$0xff] }
 0x85f   :  { %v10212_v54 = vpack.c.bf16 %v4916_v27, %v4912_v11 }
 0x860   :  { %4637 = vst [vmem:[#allocation3 + $0x5] sm:$0x1] %v4636_v29  ;;  %5080 = vmatmul.mubr.f32.vlgmr.msra.gmra.mrb[28].mxu0 %v4636_v29  ;;  %5151 = vmatmul.mubr.f32.vlgmr.msra.gmra.mrb[28].mxu1 %v4636_v29  ;;  %11038 = vst [vmem:[#allocation48_spill] sm:$0xff] %v10192_v58  ;;  %v10214_v29 = vpack.c.bf16 %v4918_v1, %v4914_v10  ;;  %v4921_v10 = vld [vmem:[#allocation9 + $0x310] sm:$0xff] }
 0x861   :  { %7690 = vmatpush1.bf16.msra.mxu0 %v10181_v17  ;;  %7722 = vmatpush1.bf16.msra.mxu1 %v10183_v61  ;;  %11044 = vst [vmem:[#allocation54_spill] sm:$0xff] %v10212_v54  ;;  %v4925_v1 = vld [vmem:[#allocation9 + $0x330] sm:$0xff] }
 0x862   :  { %v8209_v52 = vpop.eup %8208  ;;  %7692 = vmatprep.subr.bf16.mxu0 %v10186_v19  ;;  %7724 = vmatprep.subr.bf16.mxu1 %v10188_v5  ;;  %11045 = vst [vmem:[#allocation55_spill] sm:$0xff] %v10214_v29 }
 0x863   :  { %v4869_v34 = vadd.f32 1.0, %v8209_v52  ;;  %v8211_v48 = vpop.eup %8210  ;;  %5224 = vmatprep.mubr.f32.mxu0 %v10710_v33  ;;  %5295 = vmatprep.mubr.f32.mxu1 %v10710_v33  ;;  %v4917_v52 = vld [vmem:[#allocation9 + $0x2f0] sm:$0xff] }
 0x864   :  { %v4870_v46 = vadd.f32 1.0, %v8211_v48  ;;  %v4924_v48 = vld [vmem:[#allocation9 + $0x328] sm:$0xff]  ;;  %v10220_v63 = vpack.c.bf16 %v4917_v52, %v4913_v12  ;;  %v8213_v8 = vpop.eup %8212  ;;  %v10232_v52 = vpack.c.bf16 %v4925_v1, %v4921_v10  ;;  %v4938_v10 = vld [vmem:[#allocation9 + $0x398] sm:$0xff] }
 0x865   :  { %8216 = vrcp.f32 %v4869_v34  ;;  %7694 = vmatpush1.bf16.msra.mxu0 %v10192_v58  ;;  %7726 = vmatpush1.bf16.msra.mxu1 %v10194_v20  ;;  %v4920_v34 = vld [vmem:[#allocation9 + $0x308] sm:$0xff]  ;;  %v4922_v20 = vld [vmem:[#allocation9 + $0x318] sm:$0xff]  ;;  %v8215_v18 = vpop.eup %8214  ;;  %v4933_v58 = vld [vmem:[#allocation9 + $0x370] sm:$0xff] }
 0x866   :  { %8218 = vrcp.f32 %v4870_v46  ;;  %7696 = vmatprep.subr.bf16.mxu0 %v10198_v53  ;;  %7728 = vmatprep.subr.bf16.mxu1 %v10200_v9  ;;  %11047 = vst [vmem:[#allocation57_spill] sm:$0xff] %v10220_v63  ;;  %v4923_v46 = vld [vmem:[#allocation9 + $0x320] sm:$0xff]  ;;  %v10224_v11 = vpack.c.bf16 %v4924_v48, %v4920_v34  ;;  %v10226_v27 = vpack.c.bf16 %v4926_v47, %v4922_v20  ;;  %v4928_v9 = vld [vmem:[#allocation9 + $0x348] sm:$0xff]  ;;  %v4930_v53 = vld [vmem:[#allocation9 + $0x358] sm:$0xff]  ;;  %v4871_v19 = vadd.f32 1.0, %v8215_v18 }
 0x867   :  { %v10230_v12 = vpack.c.bf16 %v4923_v46, %v4919_v39  ;;  %11048 = vst [vmem:[#allocation58_spill] sm:$0xff] %v10232_v52  ;;  %v4927_v34 = vld [vmem:[#allocation9 + $0x340] sm:$0xff]  ;;  %v4940_v46 = vld [vmem:[#allocation9 + $0x3a8] sm:$0xff]  ;;  %v4942_v1 = vld [vmem:[#allocation9 + $0x3b8] sm:$0xff] }
 0x868   :  { %v4931_v48 = vld [vmem:[#allocation9 + $0x360] sm:$0xff]  ;;  %v4937_v18 = vld [vmem:[#allocation9 + $0x390] sm:$0xff]  ;;  %8220 = vrcp.f32 %v4871_v19 }
 0x869   :  { %7698 = vmatpush1.bf16.msra.mxu0 %v10206_v21  ;;  %7730 = vmatpush1.bf16.msra.mxu1 %v10208_v62  ;;  %v4932_v21 = vld [vmem:[#allocation9 + $0x368] sm:$0xff]  ;;  %v4934_v62 = vld [vmem:[#allocation9 + $0x378] sm:$0xff]  ;;  %v4947_v19 = vld [vmem:[#allocation9 + $0x3e0] sm:$0xff] }
 0x86a   :  { %7700 = vmatprep.subr.bf16.mxu0 %v10212_v54  ;;  %7732 = vmatprep.subr.bf16.mxu1 %v10214_v29  ;;  %v10236_v47 = vpack.c.bf16 %v4932_v21, %v4928_v9  ;;  %v10238_v29 = vpack.c.bf16 %v4934_v62, %v4930_v53  ;;  %v4929_v54 = vld [vmem:[#allocation9 + $0x350] sm:$0xff]  ;;  %v10243_v9 = vpack.c.bf16 %v4931_v48, %v4927_v34  ;;  %v4935_v21 = vld [vmem:[#allocation9 + $0x380] sm:$0xff]  ;;  %v4946_v34 = vld [vmem:[#allocation9 + $0x3d8] sm:$0xff] }
 0x86b   :  { %v10245_v53 = vpack.c.bf16 %v4933_v58, %v4929_v54  ;;  %v4939_v62 = vld [vmem:[#allocation9 + $0x3a0] sm:$0xff]  ;;  %v4950_v48 = vld [vmem:[#allocation9 + $0x3f8] sm:$0xff] }
 0x86c   :  { %v10258_v58 = vpack.c.bf16 %v4939_v62, %v4935_v21 }
 0x86d   :  { %7702 = vmatpush1.bf16.msra.mxu0 %v10218_v43  ;;  %7734 = vmatpush1.bf16.msra.mxu1 %v10220_v63  ;;  %v4936_v43 = vld [vmem:[#allocation9 + $0x388] sm:$0xff]  ;;  %v4880_v63 = vrot.slane %v9946_v13, 7 }
 0x86e   :  { %7704 = vmatprep.subr.bf16.mxu0 %v10224_v11  ;;  %7736 = vmatprep.subr.bf16.mxu1 %v10226_v27  ;;  %v10249_v13 = vpack.c.bf16 %v4940_v46, %v4936_v43  ;;  %v4943_v43 = vld [vmem:[#allocation9 + $0x3c0] sm:$0xff]  ;;  %v4945_v46 = vld [vmem:[#allocation9 + $0x3d0] sm:$0xff] }
 0x86f   :  { %v8217_v20 = vpop.eup %8216 }
 0x870   :  { %v4883_v39 = vmul.f32 %v8217_v20, %v8213_v8  ;;  %v8219_v5 = vpop.eup %8218  ;;  %v10251_v8 = vpack.c.bf16 %v4942_v1, %v4938_v10  ;;  %v4949_v10 = vld [vmem:[#allocation9 + $0x3f0] sm:$0xff]  ;;  %v10270_v1 = vpack.c.bf16 %v4947_v19, %v4943_v43 }
 0x871   :  { %v4882_v61 = vmul.f32 %v8219_v5, %v4880_v63  ;;  %7706 = vmatpush1.bf16.msra.mxu0 %v10230_v12  ;;  %7738 = vmatpush1.bf16.msra.mxu1 %v10232_v52  ;;  %v4941_v5 = vld [vmem:[#allocation9 + $0x3b0] sm:$0xff]  ;;  %v4944_v63 = vld [vmem:[#allocation9 + $0x3c8] sm:$0xff]  ;;  %v10272_v21 = vpack.c.bf16 %v4949_v10, %v4945_v46 }
 0x872   :  { %7708 = vmatprep.subr.bf16.mxu0 %v10236_v47  ;;  %7740 = vmatprep.subr.bf16.mxu1 %v10238_v29  ;;  %v4948_v52 = vld [vmem:[#allocation9 + $0x3e8] sm:$0xff]  ;;  %v10260_v54 = vpack.c.bf16 %v4941_v5, %v4937_v18 }
 0x873   :  { %v10253_v20 = vadd.f32 %v4883_v39, %v4882_v61  ;;  %v10264_v61 = vpack.c.bf16 %v4948_v52, %v4944_v63  ;;  %v10266_v39 = vpack.c.bf16 %v4950_v48, %v4946_v34  ;;  %v8221_v52 = vpop.eup %8220  ;;  %v11082_v34 = vld [vmem:[#allocation78_spill] sm:$0xff] }
 0x875   :  { %8222 = vtanh.f32 %v10253_v20  ;;  %7710 = vmatpush1.bf16.msra.mxu0 %v10243_v9  ;;  %7742 = vmatpush1.bf16.msra.mxu1 %v10245_v53 }
 0x876   :  { %7712 = vmatprep.subr.bf16.mxu0 %v10249_v13  ;;  %7744 = vmatprep.subr.bf16.mxu1 %v10251_v8 }
 0x879   :  { %7714 = vmatpush1.bf16.msra.mxu0 %v10258_v58  ;;  %7746 = vmatpush1.bf16.msra.mxu1 %v10260_v54 }
 0x87a   :  { %7716 = vmatprep.subr.bf16.mxu0 %v10264_v61  ;;  %7748 = vmatprep.subr.bf16.mxu1 %v10266_v39 }
 0x87d   :  { %7718 = vmatpush1.bf16.msra.mxu0 %v10270_v1  ;;  %7750 = vmatpush1.bf16.msra.mxu1 %v10272_v21 }
 0x87e   :  { %7752 = vmatprep.subr.bf16.mxu0 %v9957_v57  ;;  %7784 = vmatprep.subr.bf16.mxu1 %v9959_v42  ;;  %v11049_v57 = vld [vmem:[#allocation65_spill] sm:$0xff]  ;;  %v11050_v42 = vld [vmem:[#allocation66_spill] sm:$0xff] }
 0x87f   :  { %v8223_v62 = vpop.eup %8222 }
 0x880   :  { %v4886_v18 = vmul.f32 %v8223_v62, %v8221_v52 }
 0x882   :  { %v5158_v5 = vrot.slane %v4886_v18, 6 }
 0x884   :  { %5225 = vmatmul.mubr.f32.vlgmr.msra.gmra.mrb[28].mxu0 %v5158_v5  ;;  %5296 = vmatmul.mubr.f32.vlgmr.msra.gmra.mrb[28].mxu1 %v5158_v5 }
 0x885   :  { %7754 = vmatpush1.bf16.msra.mxu0 %v9965_v25  ;;  %7786 = vmatpush1.bf16.msra.mxu1 %v9967_v38  ;;  %v11051_v25 = vld [vmem:[#allocation67_spill] sm:$0xff]  ;;  %v11052_v38 = vld [vmem:[#allocation68_spill] sm:$0xff] }
 0x886   :  { %7756 = vmatprep.subr.bf16.mxu0 %v9971_v0  ;;  %7788 = vmatprep.subr.bf16.mxu1 %v9973_v51  ;;  %v11053_v0 = vld [vmem:[#allocation69_spill] sm:$0xff]  ;;  %v11054_v51 = vld [vmem:[#allocation70_spill] sm:$0xff] }
 0x887   :  { %5481 = vmatprep.mubr.f32.mxu0 %v10710_v33  ;;  %5552 = vmatprep.mubr.f32.mxu1 %v10710_v33 }
 0x889   :  { %7758 = vmatpush1.bf16.msra.mxu0 %v9979_v59  ;;  %7790 = vmatpush1.bf16.msra.mxu1 %v9981_v22  ;;  %v11055_v59 = vld [vmem:[#allocation71_spill] sm:$0xff]  ;;  %v11056_v22 = vld [vmem:[#allocation72_spill] sm:$0xff] }
 0x88a   :  { %7760 = vmatprep.subr.bf16.mxu0 %v9985_v26  ;;  %7792 = vmatprep.subr.bf16.mxu1 %v9987_v16  ;;  %v11057_v26 = vld [vmem:[#allocation73_spill] sm:$0xff]  ;;  %v11058_v16 = vld [vmem:[#allocation74_spill] sm:$0xff] }
 0x88d   :  { %7762 = vmatpush1.bf16.msra.mxu0 %v9993_v15  ;;  %7794 = vmatpush1.bf16.msra.mxu1 %v9995_v14  ;;  %v11059_v15 = vld [vmem:[#allocation75_spill] sm:$0xff]  ;;  %v11060_v14 = vld [vmem:[#allocation76_spill] sm:$0xff] }
 0x88e   :  { %7764 = vmatprep.subr.bf16.mxu0 %v9999_v44  ;;  %7796 = vmatprep.subr.bf16.mxu1 %v10001_v49  ;;  %v11061_v44 = vld [vmem:[#allocation24_spill] sm:$0xff]  ;;  %v11062_v49 = vld [vmem:[#allocation25_spill] sm:$0xff] }
 0x891   :  { %7766 = vmatpush1.bf16.msra.mxu0 %v10005_v36  ;;  %7798 = vmatpush1.bf16.msra.mxu1 %v10007_v45  ;;  %v11063_v36 = vld [vmem:[#allocation26_spill] sm:$0xff]  ;;  %v11064_v45 = vld [vmem:[#allocation27_spill] sm:$0xff] }
 0x892   :  { %7768 = vmatprep.subr.bf16.mxu0 %v10011_v31  ;;  %7800 = vmatprep.subr.bf16.mxu1 %v10013_v7  ;;  %v11065_v31 = vld [vmem:[#allocation28_spill] sm:$0xff]  ;;  %v11066_v7 = vld [vmem:[#allocation29_spill] sm:$0xff] }
 0x895   :  { %7770 = vmatpush1.bf16.msra.mxu0 %v10017_v55  ;;  %7802 = vmatpush1.bf16.msra.mxu1 %v10019_v32  ;;  %v11067_v55 = vld [vmem:[#allocation30_spill] sm:$0xff]  ;;  %v11068_v32 = vld [vmem:[#allocation31_spill] sm:$0xff] }
 0x896   :  { %7772 = vmatprep.subr.bf16.mxu0 %v10023_v24  ;;  %7804 = vmatprep.subr.bf16.mxu1 %v10025_v40  ;;  %v11069_v24 = vld [vmem:[#allocation32_spill] sm:$0xff]  ;;  %v11070_v40 = vld [vmem:[#allocation33_spill] sm:$0xff] }
 0x899   :  { %7774 = vmatpush1.bf16.msra.mxu0 %v10029_v6  ;;  %7806 = vmatpush1.bf16.msra.mxu1 %v10031_v37  ;;  %v11071_v6 = vld [vmem:[#allocation34_spill] sm:$0xff]  ;;  %v11072_v37 = vld [vmem:[#allocation35_spill] sm:$0xff] }
 0x89a   :  { %7776 = vmatprep.subr.bf16.mxu0 %v10035_v56  ;;  %7808 = vmatprep.subr.bf16.mxu1 %v10037_v60  ;;  %v11073_v56 = vld [vmem:[#allocation36_spill] sm:$0xff]  ;;  %v11074_v60 = vld [vmem:[#allocation37_spill] sm:$0xff] }
 0x89d   :  { %7778 = vmatpush1.bf16.msra.mxu0 %v10041_v50  ;;  %7810 = vmatpush1.bf16.msra.mxu1 %v10043_v35  ;;  %v11075_v50 = vld [vmem:[#allocation38_spill] sm:$0xff]  ;;  %v11076_v35 = vld [vmem:[#allocation39_spill] sm:$0xff] }
 0x89e   :  { %7780 = vmatprep.subr.bf16.mxu0 %v10047_v30  ;;  %7812 = vmatprep.subr.bf16.mxu1 %v10049_v41  ;;  %v11077_v30 = vld [vmem:[#allocation40_spill] sm:$0xff]  ;;  %v11078_v41 = vld [vmem:[#allocation41_spill] sm:$0xff] }
 0x8a1   :  { %7782 = vmatpush1.bf16.msra.mxu0 %v10053_v28  ;;  %7814 = vmatpush1.bf16.msra.mxu1 %v10055_v2  ;;  %v11079_v28 = vld [vmem:[#allocation42_spill] sm:$0xff]  ;;  %v11080_v2 = vld [vmem:[#allocation43_spill] sm:$0xff] }
 0x8a2   :  { %7816 = vmatprep.subr.bf16.mxu0 %v10065_v4  ;;  %7848 = vmatprep.subr.bf16.mxu1 %v10067_v3  ;;  %v6279_v4 = vld [vmem:[%s10448_s4 + $0x4] sm:$0xf] }
 0x8a3   :  { %v11081_v3 = vld [vmem:[#allocation77_spill] sm:$0xff]  ;;  %v5311_v48 = vrot.slane %v6279_v4, %v11082_v34 }
 0x8a4   :  { %5482 = vmatmul.mubr.f32.vlgmr.msra.gmra.mrb[30].mxu0 %v5158_v5  ;;  %5553 = vmatmul.mubr.f32.vlgmr.msra.gmra.mrb[30].mxu1 %v5158_v5  ;;  %v5307_v63 = vrot.slane %v6279_v4, %v11081_v3 }
 0x8a5   :  { %7818 = vmatpush1.bf16.msra.mxu0 %v11049_v57  ;;  %7850 = vmatpush1.bf16.msra.mxu1 %v11050_v42  ;;  %v11083_v57 = vld [vmem:[#allocation79_spill] sm:$0xff] }
 0x8a6   :  { %7820 = vmatprep.subr.bf16.mxu0 %v11051_v25  ;;  %7852 = vmatprep.subr.bf16.mxu1 %v11052_v38  ;;  %v5315_v42 = vrot.slane %v6279_v4, %v11083_v57  ;;  %v11084_v25 = vld [vmem:[#allocation82_spill] sm:$0xff] }
 0x8a7   :  { %5794 = vmatprep.mubr.f32.mxu0 %v10710_v33  ;;  %5865 = vmatprep.mubr.f32.mxu1 %v10710_v33  ;;  %v5319_v38 = vrot.slane %v6279_v4, %v11084_v25 }
 0x8a9   :  { %7822 = vmatpush1.bf16.msra.mxu0 %v11053_v0  ;;  %7854 = vmatpush1.bf16.msra.mxu1 %v11054_v51 }
 0x8aa   :  { %7824 = vmatprep.subr.bf16.mxu0 %v11055_v59  ;;  %7856 = vmatprep.subr.bf16.mxu1 %v11056_v22 }
 0x8ad   :  { %7826 = vmatpush1.bf16.msra.mxu0 %v11057_v26  ;;  %7858 = vmatpush1.bf16.msra.mxu1 %v11058_v16 }
 0x8ae   :  { %7828 = vmatprep.subr.bf16.mxu0 %v11059_v15  ;;  %7860 = vmatprep.subr.bf16.mxu1 %v11060_v14 }
 0x8b1   :  { %7830 = vmatpush1.bf16.msra.mxu0 %v11061_v44  ;;  %7862 = vmatpush1.bf16.msra.mxu1 %v11062_v49 }
 0x8b2   :  { %7832 = vmatprep.subr.bf16.mxu0 %v11063_v36  ;;  %7864 = vmatprep.subr.bf16.mxu1 %v11064_v45 }
 0x8b5   :  { %7834 = vmatpush1.bf16.msra.mxu0 %v11065_v31  ;;  %7866 = vmatpush1.bf16.msra.mxu1 %v11066_v7  ;;  %v11085_v7 = vld [vmem:[#allocation44_spill] sm:$0xff] }
 0x8b6   :  { %7836 = vmatprep.subr.bf16.mxu0 %v11067_v55  ;;  %7868 = vmatprep.subr.bf16.mxu1 %v11068_v32 }
 0x8b9   :  { %7838 = vmatpush1.bf16.msra.mxu0 %v11069_v24  ;;  %7870 = vmatpush1.bf16.msra.mxu1 %v11070_v40 }
 0x8ba   :  { %7840 = vmatprep.subr.bf16.mxu0 %v11071_v6  ;;  %7872 = vmatprep.subr.bf16.mxu1 %v11072_v37 }
 0x8bd   :  { %7842 = vmatpush1.bf16.msra.mxu0 %v11073_v56  ;;  %7874 = vmatpush1.bf16.msra.mxu1 %v11074_v60 }
 0x8be   :  { %7844 = vmatprep.subr.bf16.mxu0 %v11075_v50  ;;  %7876 = vmatprep.subr.bf16.mxu1 %v11076_v35  ;;  %v11086_v50 = vld [vmem:[#allocation80_spill] sm:$0xff] }
 0x8c1   :  { %7846 = vmatpush1.bf16.msra.mxu0 %v11077_v30  ;;  %7878 = vmatpush1.bf16.msra.mxu1 %v11078_v41  ;;  %v11087_v30 = vld [vmem:[#allocation81_spill] sm:$0xff] }
 0x8c2   :  { %7880 = vmatprep.subr.bf16.mxu0 %v11079_v28  ;;  %7912 = vmatprep.subr.bf16.mxu1 %v11080_v2 }
 0x957   :  { %v5226_v43 = vpop.f32.mrb[28].mxu0  ;;  %v5297_v19 = vpop.f32.mrb[28].mxu1 }
 0x958   :  { %v5324_v46 = vadd.f32 %v5307_v63, %v5226_v43  ;;  %v5228_v10 = vpop.f32.mrb[29].mxu0  ;;  %v5299_v52 = vpop.f32.mrb[29].mxu1  ;;  %v5326_v0 = vadd.f32 %v5315_v42, %v5297_v19 }
 0x959   :  { %v5325_v62 = vadd.f32 %v5311_v48, %v5228_v10  ;;  %v5327_v51 = vadd.f32 %v5319_v38, %v5299_v52  ;;  %v11088_v48 = vld [vmem:[#allocation83_spill] sm:$0xff]  ;;  %v11090_v38 = vld [vmem:[#allocation46_spill] sm:$0xff] }
 0x95a   :  { %v6280_v18 = vmul.f32 -1.442695, %v5324_v46  ;;  %v6282_v59 = vmul.f32 -1.442695, %v5326_v0  ;;  %v11091_v0 = vld [vmem:[#allocation47_spill] sm:$0xff] }
 0x95b   :  { %v6281_v5 = vmul.f32 -1.442695, %v5325_v62 }
 0x95c   :  { %8224 = vpow2.f32 %v6280_v18 }
 0x95d   :  { %8226 = vpow2.f32 %v6281_v5  ;;  %v11089_v5 = vld [vmem:[#allocation45_spill] sm:$0xff] }
 0x95e   :  { %8228 = vtanh.f32 %v5327_v51 }
 0x95f   :  { %8230 = vpow2.f32 %v6282_v59  ;;  %v11092_v59 = vld [vmem:[#allocation48_spill] sm:$0xff] }
 0x966   :  { %v8225_v22 = vpop.eup %8224 }
 0x967   :  { %v5337_v26 = vadd.f32 1.0, %v8225_v22  ;;  %v8227_v16 = vpop.eup %8226  ;;  %v11093_v22 = vld [vmem:[#allocation49_spill] sm:$0xff] }
 0x968   :  { %v5338_v15 = vadd.f32 1.0, %v8227_v16  ;;  %v8229_v14 = vpop.eup %8228  ;;  %v11096_v16 = vld [vmem:[#allocation52_spill] sm:$0xff] }
 0x969   :  { %8232 = vrcp.f32 %v5337_v26  ;;  %v8231_v44 = vpop.eup %8230  ;;  %v11095_v26 = vld [vmem:[#allocation51_spill] sm:$0xff] }
 0x96a   :  { %8234 = vrcp.f32 %v5338_v15  ;;  %v5339_v31 = vadd.f32 1.0, %v8231_v44  ;;  %v11097_v15 = vld [vmem:[#allocation53_spill] sm:$0xff]  ;;  %v11099_v44 = vld [vmem:[#allocation55_spill] sm:$0xff] }
 0x96c   :  { %8236 = vrcp.f32 %v5339_v31  ;;  %v11101_v31 = vld [vmem:[#allocation57_spill] sm:$0xff] }
 0x973   :  { %v8233_v49 = vpop.eup %8232 }
 0x974   :  { %v5348_v36 = vmul.f32 %v8233_v49, %v8229_v14  ;;  %v8235_v45 = vpop.eup %8234  ;;  %v11098_v14 = vld [vmem:[#allocation54_spill] sm:$0xff] }
 0x975   :  { %v5347_v55 = vmul.f32 %v8235_v45, %v11085_v7  ;;  %v11100_v45 = vld [vmem:[#allocation56_spill] sm:$0xff] }
 0x976   :  { %v8237_v19 = vpop.eup %8236 }
 0x977   :  { %v5483_v32 = vpop.f32.mrb[30].mxu0  ;;  %v5554_v24 = vpop.f32.mrb[30].mxu1  ;;  %v10356_v40 = vadd.f32 %v5348_v36, %v5347_v55  ;;  %v5595_v55 = vrot.slane %v10253_v20, 7  ;;  %v6072_v20 = vld [vmem:[#allocation12 + $0x18] sm:$0xff] }
 0x978   :  { %v5563_v6 = vrot.slane %v5483_v32, 1  ;;  %v5485_v37 = vpop.f32.mrb[31].mxu0  ;;  %v5556_v56 = vpop.f32.mrb[31].mxu1  ;;  %v5565_v4 = vrot.slane %v5554_v24, 1 }
 0x979   :  { %v5564_v60 = vrot.slane %v5485_v37, 1  ;;  %8238 = vtanh.f32 %v10356_v40  ;;  %v5566_v63 = vrot.slane %v5556_v56, 1  ;;  %v11102_v56 = vld [vmem:[#allocation58_spill] sm:$0xff] }
 0x97a   :  { %v5571_v35 = vadd.f32 %v5563_v6, %v11086_v50  ;;  %v5573_v43 = vadd.f32 %v5565_v4, %v11088_v48  ;;  %v6082_v48 = vld [vmem:[#allocation12 + $0x68] sm:$0xff] }
 0x97b   :  { %v5572_v41 = vadd.f32 %v5564_v60, %v11087_v30  ;;  %v5574_v10 = vadd.f32 %v5566_v63, %v8949_v23  ;;  %v6078_v30 = vld [vmem:[#allocation12 + $0x48] sm:$0xff]  ;;  %v6081_v63 = vld [vmem:[#allocation12 + $0x60] sm:$0xff] }
 0x97c   :  { %v6283_v28 = vmul.f32 -1.442695, %v5571_v35  ;;  %v6285_v62 = vmul.f32 -1.442695, %v5573_v43  ;;  %v6077_v35 = vld [vmem:[#allocation12 + $0x40] sm:$0xff]  ;;  %v7962_v43 = vpack.c.bf16 %v6082_v48, %v6081_v63 }
 0x97d   :  { %v6284_v2 = vmul.f32 -1.442695, %v5572_v41  ;;  %v7956_v41 = vpack.c.bf16 %v6078_v30, %v6077_v35 }
 0x97e   :  { %8240 = vpow2.f32 %v6283_v28  ;;  %v6079_v28 = vld [vmem:[#allocation12 + $0x50] sm:$0xff] }
 0x97f   :  { %8242 = vpow2.f32 %v6284_v2  ;;  %v6080_v2 = vld [vmem:[#allocation12 + $0x58] sm:$0xff] }
 0x980   :  { %8244 = vtanh.f32 %v5574_v10  ;;  %v7959_v4 = vpack.c.bf16 %v6080_v2, %v6079_v28 }
 0x981   :  { %8246 = vpow2.f32 %v6285_v62 }
 0x983   :  { %v8239_v46 = vpop.eup %8238 }
 0x984   :  { %v5351_v52 = vmul.f32 %v8239_v46, %v8237_v19  ;;  %v6083_v19 = vld [vmem:[#allocation12 + $0x70] sm:$0xff]  ;;  %v6084_v46 = vld [vmem:[#allocation12 + $0x78] sm:$0xff] }
 0x985   :  { %v7965_v10 = vpack.c.bf16 %v6084_v46, %v6083_v19 }
 0x986   :  { %5352 = vst [vmem:[#allocation3 + $0x6] sm:$0x1] %v5351_v52  ;;  %5795 = vmatmul.mubr.f32.vlgmr.msra.gmra.mrb[32].mxu0 %v5351_v52  ;;  %5866 = vmatmul.mubr.f32.vlgmr.msra.gmra.mrb[32].mxu1 %v5351_v52  ;;  %v6286_v52 = vld [vmem:[%s10448_s4 + $0x4] sm:$0xf]  ;;  %s8462_s4 = smov [#allocation15]  }
 0x987   :  { %7882 = vmatpush1.bf16.msra.mxu0 %v10181_v17  ;;  %7914 = vmatpush1.bf16.msra.mxu1 %v11089_v5  ;;  %v11094_v17 = vld [vmem:[#allocation50_spill] sm:$0xff]  ;;  %v6022_v62 = vrot.slane %v6286_v52, %v11081_v3  ;;  %s6184_s26 = sshll.u32 %s8462_s4, 4  ;;  %s6185_s26 = int_to_ptr.vmem [resolvable:$true] %s6184_s26 }
 0x988   :  { %v8241_v18 = vpop.eup %8240  ;;  %7884 = vmatprep.subr.bf16.mxu0 %v11090_v38  ;;  %7916 = vmatprep.subr.bf16.mxu1 %v11091_v0  ;;  %s8372_s27 = scalar_lea.vmem %s6185_s26, 32  ;;  %p8377_p10 = scmp.lt.s32.totalorder %s6185_s26, %s6185_s26 }
 0x989   :  { %v5584_v42 = vadd.f32 1.0, %v8241_v18  ;;  %v8243_v51 = vpop.eup %8242  ;;  %5939 = vmatprep.mubr.f32.mxu0 %v10710_v33  ;;  %6010 = vmatprep.mubr.f32.mxu1 %v10710_v33  ;;  %v6026_v18 = vrot.slane %v6286_v52, %v11082_v34  ;;  %p8373_p9 = scmp.ne.s32.totalorder %s6185_s26, %s8372_s27  ;;  %p8378_p11 = scmp.lt.s32.totalorder %s8372_s27, %s8372_s27 }
 0x98a   :  { %v5585_v23 = vadd.f32 1.0, %v8243_v51  ;;  %v8245_v49 = vpop.eup %8244 }
 0x98b   :  { %8248 = vrcp.f32 %v5584_v42  ;;  %7886 = vmatpush1.bf16.msra.mxu0 %v11092_v59  ;;  %7918 = vmatpush1.bf16.msra.mxu1 %v11093_v22  ;;  %v8247_v36 = vpop.eup %8246  ;;  %p8379_p12 = por %p8378_p11, %p8377_p10 }
 0x98c   :  { %8250 = vrcp.f32 %v5585_v23  ;;  %7888 = vmatprep.subr.bf16.mxu0 %v11094_v17  ;;  %7920 = vmatprep.subr.bf16.mxu1 %v11095_v26  ;;  %v5586_v6 = vadd.f32 1.0, %v8247_v36  ;;  %v6034_v17 = vrot.slane %v6286_v52, %v11084_v25 }
 0x98d   :  { %p8380_p13 = pnand %p8379_p12, %p8373_p9 }
 0x98e   :  { %8252 = vrcp.f32 %v5586_v6 }
 0x98f   :  { %7890 = vmatpush1.bf16.msra.mxu0 %v11096_v16  ;;  %7922 = vmatpush1.bf16.msra.mxu1 %v11097_v15 }
 0x990   :  { %7892 = vmatprep.subr.bf16.mxu0 %v11098_v14  ;;  %7924 = vmatprep.subr.bf16.mxu1 %v11099_v44 }
 0x993   :  { %7894 = vmatpush1.bf16.msra.mxu0 %v11100_v45  ;;  %7926 = vmatpush1.bf16.msra.mxu1 %v11101_v31 }
 0x994   :  { %7896 = vmatprep.subr.bf16.mxu0 %v10224_v11  ;;  %7928 = vmatprep.subr.bf16.mxu1 %v10226_v27 }
 0x995   :  { %v8249_v7 = vpop.eup %8248 }
 0x996   :  { %v5598_v32 = vmul.f32 %v8249_v7, %v8245_v49  ;;  %v8251_v24 = vpop.eup %8250 }
 0x997   :  { %v5597_v37 = vmul.f32 %v8251_v24, %v5595_v55  ;;  %7898 = vmatpush1.bf16.msra.mxu0 %v10230_v12  ;;  %7930 = vmatpush1.bf16.msra.mxu1 %v11102_v56 }
 0x998   :  { %7900 = vmatprep.subr.bf16.mxu0 %v10236_v47  ;;  %7932 = vmatprep.subr.bf16.mxu1 %v10238_v29  ;;  %v8253_v29 = vpop.eup %8252  ;;  %v6069_v47 = vld [vmem:[#allocation12] sm:$0xff] }
 0x999   :  { %v5599_v60 = vadd.f32 %v5598_v32, %v5597_v37 }
 0x99b   :  { %8254 = vtanh.f32 %v5599_v60  ;;  %6164 = vst [vmem:[#allocation17 - $0x7] sm:$0x80] %v5599_v60  ;;  %7902 = vmatpush1.bf16.msra.mxu0 %v10243_v9  ;;  %7934 = vmatpush1.bf16.msra.mxu1 %v10245_v53  ;;  %v6070_v9 = vld [vmem:[#allocation12 + $0x8] sm:$0xff] }
 0x99c   :  { %7904 = vmatprep.subr.bf16.mxu0 %v10249_v13  ;;  %7936 = vmatprep.subr.bf16.mxu1 %v10251_v8  ;;  %v7944_v53 = vpack.c.bf16 %v6070_v9, %v6069_v47  ;;  %v8460_v13 = vmov 0.0|0.0   ;;  %v6071_v8 = vld [vmem:[#allocation12 + $0x10] sm:$0xff] }
 0x99f   :  { %7906 = vmatpush1.bf16.msra.mxu0 %v10258_v58  ;;  %7938 = vmatpush1.bf16.msra.mxu1 %v10260_v54  ;;  %v7947_v58 = vpack.c.bf16 %v6072_v20, %v6071_v8  ;;  %v6073_v54 = vld [vmem:[#allocation12 + $0x20] sm:$0xff] }
 0x9a0   :  { %7908 = vmatprep.subr.bf16.mxu0 %v10264_v61  ;;  %7940 = vmatprep.subr.bf16.mxu1 %v10266_v39  ;;  %v6074_v61 = vld [vmem:[#allocation12 + $0x28] sm:$0xff] }
 0x9a1   :  { %v7950_v39 = vpack.c.bf16 %v6074_v61, %v6073_v54 }
 0x9a3   :  { %7910 = vmatpush1.bf16.msra.mxu0 %v10270_v1  ;;  %7942 = vmatpush1.bf16.msra.mxu1 %v10272_v21  ;;  %v6075_v1 = vld [vmem:[#allocation12 + $0x30] sm:$0xff]  ;;  %v6076_v21 = vld [vmem:[#allocation12 + $0x38] sm:$0xff] }
 0x9a4   :  { %7943 = vmatprep.subr.bf16.mxu0 %v8460_v13  ;;  %v7953_v50 = vpack.c.bf16 %v6076_v21, %v6075_v1 }
 0x9a5   :  { %v8255_v11 = vpop.eup %8254 }
 0x9a6   :  { %v5601_v27 = vmul.f32 %v8255_v11, %v8253_v29 }
 0x9a8   :  { %v5873_v12 = vrot.slane %v5601_v27, 7  ;;  %6163 = vst [vmem:[#allocation15 - $0x7] sm:$0x80] %v5601_v27 }
 0x9aa   :  { %5940 = vmatmul.mubr.f32.vlgmr.msra.gmra.mrb[32].mxu0 %v5873_v12  ;;  %6011 = vmatmul.mubr.f32.vlgmr.msra.gmra.mrb[32].mxu1 %v5873_v12 }
 0x9ab   :  { %7945 = vmatpush3.bf16.msra.mxu0 %v7944_v53  ;;  %6340 = vmatprep.mubr.msk.f32.mxu0 %vm8461_vm0, %v10710_v33  ;;  %v6030_v33 = vrot.slane %v6286_v52, %v11083_v57 }
 0x9ac   :  { %7946 = vmatprep.subr.bf16.mxu0 %v8460_v13 }
 0x9af   :  { %7948 = vmatpush3.bf16.msra.mxu0 %v7947_v58 }
 0x9b0   :  { %7949 = vmatprep.subr.bf16.mxu0 %v8460_v13 }
 0x9b3   :  { %7951 = vmatpush3.bf16.msra.mxu0 %v7950_v39 }
 0x9b4   :  { %7952 = vmatprep.subr.bf16.mxu0 %v8460_v13 }
 0x9b7   :  { %7954 = vmatpush3.bf16.msra.mxu0 %v7953_v50 }
 0x9b8   :  { %7955 = vmatprep.subr.bf16.mxu0 %v8460_v13 }
 0x9bb   :  { %7957 = vmatpush3.bf16.msra.mxu0 %v7956_v41 }
 0x9bc   :  { %7958 = vmatprep.subr.bf16.mxu0 %v8460_v13 }
 0x9bf   :  { %7960 = vmatpush3.bf16.msra.mxu0 %v7959_v4 }
 0x9c0   :  { %7961 = vmatprep.subr.bf16.mxu0 %v8460_v13 }
 0x9c3   :  { %7963 = vmatpush3.bf16.msra.mxu0 %v7962_v43 }
 0x9c4   :  { %7964 = vmatprep.subr.bf16.mxu0 %v8460_v13 }
 0x9c7   :  { %7966 = vmatpush3.bf16.msra.mxu0 %v7965_v10 }
 0xa7d   :  { %v5941_v5 = vpop.f32.mrb[32].mxu0  ;;  %v6012_v42 = vpop.f32.mrb[32].mxu1 }
 0xa7e   :  { %v6039_v38 = vadd.f32 %v6022_v62, %v5941_v5  ;;  %v5943_v0 = vpop.f32.mrb[33].mxu0  ;;  %v6014_v51 = vpop.f32.mrb[33].mxu1  ;;  %v6041_v26 = vadd.f32 %v6030_v33, %v6012_v42 }
 0xa7f   :  { %v6040_v23 = vadd.f32 %v6026_v18, %v5943_v0  ;;  %v6042_v16 = vadd.f32 %v6034_v17, %v6014_v51 }
 0xa80   :  { %v6287_v59 = vmul.f32 -1.442695, %v6039_v38  ;;  %v6289_v15 = vmul.f32 -1.442695, %v6041_v26 }
 0xa81   :  { %v6288_v22 = vmul.f32 -1.442695, %v6040_v23 }
 0xa82   :  { %8256 = vpow2.f32 %v6287_v59 }
 0xa83   :  { %8258 = vpow2.f32 %v6288_v22 }
 0xa84   :  { %8260 = vtanh.f32 %v6042_v16 }
 0xa85   :  { %8262 = vpow2.f32 %v6289_v15 }
 0xa8c   :  { %v8257_v3 = vpop.eup %8256 }
 0xa8d   :  { %v6052_v14 = vadd.f32 1.0, %v8257_v3  ;;  %v8259_v34 = vpop.eup %8258 }
 0xa8e   :  { %v6053_v44 = vadd.f32 1.0, %v8259_v34  ;;  %v8261_v49 = vpop.eup %8260 }
 0xa8f   :  { %8264 = vrcp.f32 %v6052_v14  ;;  %v8263_v36 = vpop.eup %8262 }
 0xa90   :  { %8266 = vrcp.f32 %v6053_v44  ;;  %v6054_v57 = vadd.f32 1.0, %v8263_v36 }
 0xa92   :  { %8268 = vrcp.f32 %v6054_v57 }
 0xa99   :  { %v8265_v45 = vpop.eup %8264 }
 0xa9a   :  { %v6063_v31 = vmul.f32 %v8265_v45, %v8261_v49  ;;  %v8267_v7 = vpop.eup %8266 }
 0xa9b   :  { %v6062_v55 = vmul.f32 %v8267_v7, %v10356_v40 }
 0xa9c   :  { %v8269_v32 = vpop.eup %8268 }
 0xa9d   :  { %v6064_v25 = vadd.f32 %v6063_v31, %v6062_v55 }
 0xa9f   :  { %8270 = vtanh.f32 %v6064_v25  ;;  %6168 = vst [vmem:[#allocation17 + $0x1] sm:$0x1] %v6064_v25 }
 0xaa9   :  { %v8271_v24 = vpop.eup %8270 }
 0xaaa   :  { %v6066_v6 = vmul.f32 %v8271_v24, %v8269_v32 }
 0xaac   :  { %6067 = vst [vmem:[#allocation3 + $0x7] sm:$0x1] %v6066_v6  ;;  %6166 = vst [vmem:[#allocation15 + $0x1] sm:$0x1] %v6066_v6 }
 0xab3   :  { %v6068_v37 = vld [vmem:[#allocation3] sm:$0xff] }
 0xab4   :  { %6341 = vmatmul.mubr.f32.vlgmr.msra.gmra.mrb[34].mxu0 %v6068_v37 }
 0xab5   :  { %8383 = shalt.err (!%p8380_p13)
}
 0xab6   :  { %s8384_s7 = scalar_lea.hbm %s10454_s10, 32 }
 0xab7   :  { %p8385_p0 = scmp.ne.s32.totalorder %s10454_s10, %s8384_s7  ;;  %p8388_p1 = scmp.lt.u32.totalorder %s8384_s7, %s10454_s10 }
 0xab9   :  { %p8390_p2 = pnand %p8388_p1, %p8385_p0 }
 0xabb   :  { %8393 = shalt.err (!%p8390_p2)
}
 0xabc   :  { %s8463_s5 = smov 16   ;;  %s8464_s13 = smov 1  }
 0xabd   :  { %6190 = dma.vmem_to_hbm [thread:$0]  %s6185_s26, 32, %s10454_s10, [#allocation16], %s8463_s5, %s8463_s5, %s8464_s13  }
 0xabe   :  { %s8465_s0 = smov [#allocation17]  }
 0xabf   :  { %s6196_s29 = sshll.u32 %s8465_s0, 4  ;;  %s6197_s29 = int_to_ptr.vmem [resolvable:$true] %s6196_s29 }
 0xac0   :  { %s8394_s14 = scalar_lea.vmem %s6197_s29, 32  ;;  %p8399_p4 = scmp.lt.s32.totalorder %s6197_s29, %s6197_s29 }
 0xac1   :  { %p8395_p3 = scmp.ne.s32.totalorder %s6197_s29, %s8394_s14  ;;  %p8400_p5 = scmp.lt.s32.totalorder %s8394_s14, %s8394_s14 }
 0xac3   :  { %p8401_p6 = por %p8400_p5, %p8399_p4 }
 0xac5   :  { %p8402_p7 = pnand %p8401_p6, %p8395_p3 }
 0xac7   :  { %8405 = shalt.err (!%p8402_p7)
}
 0xac8   :  { %s8406_s20 = scalar_lea.hbm %s10455_s11, 32 }
 0xac9   :  { %p8407_p8 = scmp.ne.s32.totalorder %s10455_s11, %s8406_s20  ;;  %p8410_p9 = scmp.lt.u32.totalorder %s8406_s20, %s10455_s11 }
 0xacb   :  { %p8412_p10 = pnand %p8410_p9, %p8407_p8 }
 0xacd   :  { %8415 = shalt.err (!%p8412_p10)
}
 0xace   :  { %6202 = dma.vmem_to_hbm [thread:$0]  %s6197_s29, 32, %s10455_s11, [#allocation16], %s8463_s5, %s8463_s5, %s8464_s13  }
 0xacf   :  { %v6290_v40 = vld [vmem:[%s10450_s6] ss:$0 sm:$0xff]  ;;  %s8466_s4 = smov [#allocation14]  }
 0xad0   :  { %s6175_s26 = sshll.u32 %s8466_s4, 4  ;;  %s6176_s26 = int_to_ptr.vmem [resolvable:$true] %s6175_s26 }
 0xad1   :  { %s8416_s27 = scalar_lea.vmem %s6176_s26, 128  ;;  %p8421_p12 = scmp.lt.s32.totalorder %s6176_s26, %s6176_s26 }
 0xad2   :  { %p8417_p11 = scmp.ne.s32.totalorder %s6176_s26, %s8416_s27  ;;  %p8422_p13 = scmp.lt.s32.totalorder %s8416_s27, %s8416_s27 }
 0xad4   :  { %p8423_p0 = por %p8422_p13, %p8421_p12 }
 0xad6   :  { %p8424_p1 = pnand %p8423_p0, %p8417_p11 }
 0xb87   :  { %v6158_v56 = vpop.f32.mrb[34].mxu0 }
 0xb88   :  { %v6159_v60 = vadd.f32 %v6290_v40, %v6158_v56  ;;  %v6342_v29 = vpop.f32.mrb[35].mxu0 }
 0xb8a   :  { %6162 = vst [vmem:[#allocation14] sm:$0xff] %v6159_v60 }
 0xb8b   :  { %8427 = shalt.err (!%p8424_p1)
}
 0xb8c   :  { %s8428_s30 = scalar_lea.hbm %s10453_s9, 128 }
 0xb8d   :  { %p8429_p2 = scmp.ne.s32.totalorder %s10453_s9, %s8428_s30  ;;  %p8432_p3 = scmp.lt.u32.totalorder %s8428_s30, %s10453_s9 }
 0xb8f   :  { %p8434_p4 = pnand %p8432_p3, %p8429_p2 }
 0xb91   :  { %8437 = shalt.err (!%p8434_p4)
}
 0xb92   :  { %6178 = dma.vmem_to_hbm [thread:$0]  %s6176_s26, 128, %s10453_s9, [#allocation8]  }
 0xb93   :  { %8446 = dma.done.wait [#allocation8], 128  }
 0xb94   :  { %8447 = vsyncadd [#allocation8], 4294967168 }
 0xb95   :  { %8448 = dma.done.wait [#allocation16], 64  }
 0xb96   :  { %8449 = vsyncadd [#allocation16], 4294967232 }
 0xb97   :  { %6212 = vsyncpa [#allocation7], 1 }
 0xb98   :  { %6213 = vsyncpa [#allocation10], 1 }
 0xb99   :  { %6214 = vsyncpa [#allocation13], 1 }
 0xb9a   :  { %6215 = vsyncpa [#allocation8], 1 }
 0xb9b   :  { %6216 = vsyncpa [#allocation16], 1 }

</bundles_post_ra>
